<compile_context>
chip_gen: v6e
topology: v6e:2x2x1
jax: 0.10.0
libtpu: 0.0.40
codegen_flags: <defaults>
</compile_context>

<pallas_src>
import functools
import math

import jax
import jax.numpy as jnp
from jax.experimental import pallas as pl
from jax.experimental.pallas import tpu as pltpu

# ----------------------------- config ---------------------------------------
CONV_CFG = ((8, 4), (4, 2))   # (kernel, stride) per frozen feature-extractor conv
C_FEAT = 32                   # conv channels
HID = 32                      # encoder hidden size
FFN = 128                     # feed-forward inner dim
_K0, _S0 = CONV_CFG[0]
_K1, _S1 = CONV_CFG[1]


def _rup(x, m):
    return ((x + m - 1) // m) * m


def feat_extract_output_lengths(lengths):
    # mirrors Wav2Vec2Model._get_feat_extract_output_lengths (works on ints and arrays)
    for (k, s) in CONV_CFG:
        lengths = (lengths - k) // s + 1
    return lengths


# --------------------- the single fused encoder kernel -----------------------
def _encoder_kernel(lens_ref, af_ref, encw_ref, w128_ref, vec_ref, o_ref, *, B, Tp, NF):
    f32, bf16 = jnp.float32, jnp.bfloat16
    NR0 = Tp + 8                      # conv0 frame-pair rows computed per batch

    def mm(a, b):                     # bf16 MXU operands, f32 accumulation
        return jnp.dot(a.astype(bf16), b.astype(bf16), preferred_element_type=f32)

    def ln(x, g, b, eps=1e-5):
        mu = jnp.mean(x, axis=-1, keepdims=True)
        var = jnp.mean((x - mu) * (x - mu), axis=-1, keepdims=True)
        return (x - mu) * jax.lax.rsqrt(var + eps) * g + b

    # ---- unpack packed parameters (static slices, done once per call) ----
    w0_lo = vec_ref[0:8, 0:64]        # conv0 taps that hit frame r   (even|odd pair outputs)
    w0_hi = vec_ref[8:16, 0:64]       # conv0 taps that hit frame r+1
    b0p = vec_ref[16:17, 0:64]
    b1c = vec_ref[17:18, 0:32]
    fp_g = vec_ref[18:19, 0:32]
    fp_b = vec_ref[19:20, 0:32]
    fp_bias = vec_ref[20:21, 0:32]
    bq = vec_ref[21:22, 0:32]
    bk = vec_ref[22:23, 0:32]
    bv = vec_ref[23:24, 0:32]
    bo = vec_ref[24:25, 0:32]
    g1 = vec_ref[25:26, 0:32]
    b1 = vec_ref[26:27, 0:32]
    fb1 = vec_ref[27:28, 0:FFN]
    fb2 = vec_ref[28:29, 0:32]
    g2 = vec_ref[29:30, 0:32]
    b2 = vec_ref[30:31, 0:32]

    w_ffn1 = encw_ref[:, 0:128]
    fp_w = encw_ref[:, 128:160]
    wq = encw_ref[:, 160:192]         # 1/sqrt(H) already folded in host-side
    wk = encw_ref[:, 192:224]
    wv = encw_ref[:, 224:256]
    wo = encw_ref[:, 256:288]
    w1_cur = w128_ref[0:64, 0:32]     # conv1 taps j=0,1 (pair row t)
    w1_nxt = w128_ref[64:128, 0:32]   # conv1 taps j=2,3 (pair row t+1)
    w_ffn2 = w128_ref[:, 32:64]

    # ---- frozen conv feature extractor, entirely in VMEM ----
    # conv0 (Cin=1, K=8, S=4): frame r (8 samples) + frame r+1 -> outputs l=2r (lanes 0:32)
    # and l=2r+1 (lanes 32:64) in one frame-pair row.
    lo = jnp.concatenate([af_ref[b * NF: b * NF + NR0, :] for b in range(B)], axis=0)
    hi = jnp.concatenate([af_ref[b * NF + 1: b * NF + 1 + NR0, :] for b in range(B)], axis=0)
    h0 = jax.nn.gelu(mm(lo, w0_lo) + mm(hi, w0_hi) + b0p)          # [B*NR0, 64]
    # TODO(synk): tanh-approx GELU used; HF Wav2Vec2 uses exact erf GELU.
    # TODO(synk): HF feature-extractor group/layer norms and dropout are omitted.

    # conv1 (Cin=32, K=4, S=2): output t contracts frame-pair rows t and t+1
    cur = jnp.concatenate([h0[b * NR0: b * NR0 + Tp, :] for b in range(B)], axis=0)
    nxt = jnp.concatenate([h0[b * NR0 + 1: b * NR0 + 1 + Tp, :] for b in range(B)], axis=0)
    feats = jax.nn.gelu(mm(cur, w1_cur) + mm(nxt, w1_nxt) + b1c)   # [B*Tp, C_FEAT]

    # ---- masks rebuilt in-kernel from prefetched per-batch lengths (no mask DMAs) ----
    tcol = jax.lax.broadcasted_iota(jnp.int32, (Tp, 1), 0)
    row_mask = jnp.concatenate(
        [(tcol < lens_ref[b]).astype(f32) for b in range(B)], axis=0)   # [B*Tp, 1]

    # ---- feature projection (LayerNorm + linear), padded rows zeroed (HF behavior) ----
    x = ln(feats, fp_g, fp_b)
    x = (mm(x, fp_w) + fp_bias) * row_mask                              # [B*Tp, HID]

    # ---- single-head self-attention (scale folded into wq/bq) ----
    q = mm(x, wq) + bq
    k = mm(x, wk) + bk
    v = mm(x, wv) + bv
    krow = jax.lax.broadcasted_iota(jnp.int32, (1, Tp), 1)
    ctxs = []
    for b in range(B):
        qb = q[b * Tp:(b + 1) * Tp, :]
        kb = k[b * Tp:(b + 1) * Tp, :]
        vb = v[b * Tp:(b + 1) * Tp, :]
        s = jax.lax.dot_general(qb.astype(bf16), kb.astype(bf16),
                                (((1,), (1,)), ((), ())),
                                preferred_element_type=f32)             # [Tp, Tp]
        s = s + jnp.where(krow < lens_ref[b], 0.0, -1e30).astype(f32)   # mask folded into logits
        p = jnp.exp(s - jnp.max(s, axis=-1, keepdims=True))
        denom = jnp.sum(p, axis=-1, keepdims=True)
        ctx = mm(p, vb)                                                 # prob matmul in bf16
        ctxs.append(ctx * pl.reciprocal(denom, approx=True))            # normalize after p@v
    attn = mm(jnp.concatenate(ctxs, axis=0), wo) + bo

    # ---- post-LN transformer block (residuals/LNs stay in VMEM) ----
    # TODO(synk): real HF encoders stack many layers (+ positional conv emb + dropout);
    # one representative layer with synthetic weights is implemented here.
    x = ln(x + attn, g1, b1)
    h = jax.nn.gelu(mm(x, w_ffn1) + fb1)
    x = ln(x + mm(h, w_ffn2) + fb2, g2, b2)                             # [B*Tp, HID]

    # ---- store transposed, lane-dense over the time axis: [B, HID, Tp] ----
    for b in range(B):
        o_ref[b] = x[b * Tp:(b + 1) * Tp, :].T.astype(o_ref.dtype)


def encoder_last_hidden_t(prep, audio, feat_len, t_feat):
    """Runs the whole encoder in ONE fused Pallas kernel.
    Returns last_hidden_state already transposed: [B, HID, Tp] (time padded to 128)."""
    B, T = audio.shape
    Tp = _rup(max(t_feat, 1), 128)
    NF = _rup(max(Tp + 10, -(-T // 8)), 8)          # frames of 8 samples per batch
    a = jnp.pad(audio.astype(jnp.float32), ((0, 0), (0, 8 * NF - T)))
    a = a.reshape(B * NF, 8)                        # free view: frame r = samples [8r, 8r+8)

    kern = functools.partial(_encoder_kernel, B=B, Tp=Tp, NF=NF)
    grid_spec = pltpu.PrefetchScalarGridSpec(
        num_scalar_prefetch=1,
        grid=(1,),                                  # single grid step: whole batch at once
        in_specs=[
            pl.BlockSpec((B * NF, 8), lambda i, lens: (0, 0)),
            pl.BlockSpec(prep["encw"].shape, lambda i, lens: (0, 0)),
            pl.BlockSpec(prep["w128"].shape, lambda i, lens: (0, 0)),
            pl.BlockSpec(prep["vec"].shape, lambda i, lens: (0, 0)),
        ],
        out_specs=pl.BlockSpec((B, HID, Tp), lambda i, lens: (0, 0, 0)),
    )
    # TODO(synk): on v7x (2 TensorCores) a 2-way "parallel" grid split over B*Tp would feed
    # both cores; a single step is optimal on single-TC v5e/v6e.
    return pl.pallas_call(
        kern,
        out_shape=jax.ShapeDtypeStruct((B, HID, Tp), jnp.float32),
        grid_spec=grid_spec,
        compiler_params=pltpu.CompilerParams(dimension_semantics=("arbitrary",)),
    )(feat_len.astype(jnp.int32), a, prep["encw"], prep["w128"], prep["vec"])


# ------------------------------ adapter forward -------------------------------
@functools.partial(jax.jit, static_argnames=("mask_input",))
def huggingface_encoder_adapt_forward(prep, audio, audio_lengths, mask_input=True):
    B, T = audio.shape
    t_feat = feat_extract_output_lengths(T)                       # static python int
    if mask_input:
        # lengths_to_mask(audio_lengths, T) summed over time is just audio_lengths again, so
        # the per-batch feature lengths are computed directly - no [B, T] mask tensor is
        # materialized or DMA'd; the kernel rebuilds row/key masks from these scalars.
        feat_len = feat_extract_output_lengths(audio_lengths.astype(jnp.int32))
    else:
        feat_len = jnp.full((B,), t_feat, jnp.int32)              # only mask artificial pad frames
    hidden_t = encoder_last_hidden_t(prep, audio, feat_len, t_feat)
    out_correct_shape = hidden_t[:, :, :t_feat]                   # == last_hidden_state.transpose(-1,-2)
    return out_correct_shape, feat_extract_output_lengths(audio_lengths.astype(jnp.int32))


# ------------------------ one-time host-side weight packing -------------------
def prepare_params(params):
    """Hoisted out of the jitted forward: packs all weights into 3 lane-friendly arrays."""
    f32 = jnp.float32
    scale = 1.0 / math.sqrt(HID)
    w0 = jnp.transpose(params["conv0_w"].astype(f32), (2, 1, 0)).reshape(_K0, C_FEAT)        # [K0, C]
    w1 = jnp.transpose(params["conv1_w"].astype(f32), (2, 1, 0)).reshape(_K1 * C_FEAT, C_FEAT)  # [K1*C, C]

    # conv0 "pair" weights over frame r (w0_lo) and frame r+1 (w0_hi):
    #   lanes  0:32 -> output l=2r   (taps 0..7 = frame samples 0..7)
    #   lanes 32:64 -> output l=2r+1 (taps 0..3 = frame samples 4..7, taps 4..7 = next frame 0..3)
    w0_lo = jnp.zeros((8, 2 * C_FEAT), f32)
    w0_lo = w0_lo.at[:, 0:C_FEAT].set(w0)
    w0_lo = w0_lo.at[4:8, C_FEAT:2 * C_FEAT].set(w0[0:4])
    w0_hi = jnp.zeros((8, 2 * C_FEAT), f32)
    w0_hi = w0_hi.at[0:4, C_FEAT:2 * C_FEAT].set(w0[4:8])

    encw = jnp.concatenate(
        [params["ffn_w1"], params["fp_w"], params["wq"] * scale,
         params["wk"], params["wv"], params["wo"]], axis=1).astype(f32)                       # [32, 288]
    w128 = jnp.concatenate([w1, params["ffn_w2"].astype(f32)], axis=1)                        # [128, 64]

    vec = jnp.zeros((32, 128), f32)
    vec = vec.at[0:8, 0:64].set(w0_lo)
    vec = vec.at[8:16, 0:64].set(w0_hi)
    vec = vec.at[16, 0:64].set(jnp.tile(params["conv0_b"].astype(f32), 2))
    vec = vec.at[17, 0:32].set(params["conv1_b"])
    vec = vec.at[18, 0:32].set(params["fp_ln_g"])
    vec = vec.at[19, 0:32].set(params["fp_ln_b"])
    vec = vec.at[20, 0:32].set(params["fp_b"])
    vec = vec.at[21, 0:32].set(params["bq"] * scale)
    vec = vec.at[22, 0:32].set(params["bk"])
    vec = vec.at[23, 0:32].set(params["bv"])
    vec = vec.at[24, 0:32].set(params["bo"])
    vec = vec.at[25, 0:32].set(params["ln1_g"])
    vec = vec.at[26, 0:32].set(params["ln1_b"])
    vec = vec.at[27, 0:FFN].set(params["ffn_b1"])
    vec = vec.at[28, 0:32].set(params["ffn_b2"])
    vec = vec.at[29, 0:32].set(params["ln2_g"])
    vec = vec.at[30, 0:32].set(params["ln2_b"])
    return {"encw": encw, "w128": w128, "vec": vec}


# ------------------------------ synthetic parameters --------------------------
def init_params(key):
    keys = jax.random.split(key, 16)
    s = 0.02
    return {
        "conv0_w": jax.random.normal(keys[0], (C_FEAT, 1, _K0), jnp.float32) * s,
        "conv0_b": jnp.zeros((C_FEAT,), jnp.float32),
        "conv1_w": jax.random.normal(keys[1], (C_FEAT, C_FEAT, _K1), jnp.float32) * s,
        "conv1_b": jnp.zeros((C_FEAT,), jnp.float32),
        "fp_ln_g": jnp.ones((C_FEAT,), jnp.float32),
        "fp_ln_b": jnp.zeros((C_FEAT,), jnp.float32),
        "fp_w": jax.random.normal(keys[2], (C_FEAT, HID), jnp.float32) * s,
        "fp_b": jnp.zeros((HID,), jnp.float32),
        "wq": jax.random.normal(keys[3], (HID, HID), jnp.float32) * s,
        "bq": jnp.zeros((HID,), jnp.float32),
        "wk": jax.random.normal(keys[4], (HID, HID), jnp.float32) * s,
        "bk": jnp.zeros((HID,), jnp.float32),
        "wv": jax.random.normal(keys[5], (HID, HID), jnp.float32) * s,
        "bv": jnp.zeros((HID,), jnp.float32),
        "wo": jax.random.normal(keys[6], (HID, HID), jnp.float32) * s,
        "bo": jnp.zeros((HID,), jnp.float32),
        "ln1_g": jnp.ones((HID,), jnp.float32),
        "ln1_b": jnp.zeros((HID,), jnp.float32),
        "ffn_w1": jax.random.normal(keys[7], (HID, FFN), jnp.float32) * s,
        "ffn_b1": jnp.zeros((FFN,), jnp.float32),
        "ffn_w2": jax.random.normal(keys[8], (FFN, HID), jnp.float32) * s,
        "ffn_b2": jnp.zeros((HID,), jnp.float32),
        "ln2_g": jnp.ones((HID,), jnp.float32),
        "ln2_b": jnp.zeros((HID,), jnp.float32),
    }


# --------------------------------- main ---------------------------------------
if __name__ == "__main__":
    params = init_params(jax.random.PRNGKey(0))
    prep = prepare_params(params)                                  # one-time weight packing

    B, T = 2, 1024
    key_audio = jax.random.fold_in(jax.random.PRNGKey(0), 1)
    audio = jax.random.normal(key_audio, (B, T), jnp.float32)
    audio_lengths = jnp.array([1024, 800], jnp.int32)

    out, out_lengths = huggingface_encoder_adapt_forward(
        prep, audio, audio_lengths, mask_input=True)
    jax.block_until_ready(out)
    jax.block_until_ready(out_lengths)

    t_feat = feat_extract_output_lengths(T)
    assert out.shape == (B, HID, t_feat), out.shape
    assert out_lengths.shape == (B,), out_lengths.shape
    assert bool(jnp.all(jnp.isfinite(out)))
    print("KERNEL_OK")
</pallas_src>

<mosaic_0001>
module attributes {stable_mosaic.version = 11 : i64} {
  func.func @_encoder_kernel(%arg0: i32, %arg1: memref<2xi32, #tpu.memory_space<smem>>, %arg2: memref<288x8xf32, #tpu.memory_space<vmem>>, %arg3: memref<32x288xf32, #tpu.memory_space<vmem>>, %arg4: memref<128x64xf32, #tpu.memory_space<vmem>>, %arg5: memref<32x128xf32, #tpu.memory_space<vmem>>, %arg6: memref<2x32x128xf32, #tpu.memory_space<vmem>>) attributes {dimension_semantics = [#tpu.dimension_semantics<arbitrary>], iteration_bounds = array<i64: 1>, scalar_prefetch = 1 : i64, scratch_operands = 0 : i64, tpu.core_type = #tpu.core_type<tc>, window_params = [{pipeline_mode = #tpu.pipeline_mode<synchronous>, transform_indices = @transform_0, window_bounds = array<i64: 288, 8>}, {pipeline_mode = #tpu.pipeline_mode<synchronous>, transform_indices = @transform_1, window_bounds = array<i64: 32, 288>}, {pipeline_mode = #tpu.pipeline_mode<synchronous>, transform_indices = @transform_2, window_bounds = array<i64: 128, 64>}, {pipeline_mode = #tpu.pipeline_mode<synchronous>, transform_indices = @transform_3, window_bounds = array<i64: 32, 128>}, {pipeline_mode = #tpu.pipeline_mode<synchronous>, transform_indices = @transform_4, window_bounds = array<i64: 2, 32, 128>}]} {
    %c0 = arith.constant 0 : index
    %c0_0 = arith.constant 0 : index
    %0 = vector.load %arg5[%c0, %c0_0] : memref<32x128xf32, #tpu.memory_space<vmem>>, vector<8x64xf32>
    %c8 = arith.constant 8 : index
    %c0_1 = arith.constant 0 : index
    %1 = vector.load %arg5[%c8, %c0_1] : memref<32x128xf32, #tpu.memory_space<vmem>>, vector<8x64xf32>
    %c16 = arith.constant 16 : index
    %c0_2 = arith.constant 0 : index
    %2 = vector.load %arg5[%c16, %c0_2] : memref<32x128xf32, #tpu.memory_space<vmem>>, vector<1x64xf32>
    %c17 = arith.constant 17 : index
    %c0_3 = arith.constant 0 : index
    %3 = vector.load %arg5[%c17, %c0_3] : memref<32x128xf32, #tpu.memory_space<vmem>>, vector<1x32xf32>
    %c18 = arith.constant 18 : index
    %c0_4 = arith.constant 0 : index
    %4 = vector.load %arg5[%c18, %c0_4] : memref<32x128xf32, #tpu.memory_space<vmem>>, vector<1x32xf32>
    %c19 = arith.constant 19 : index
    %c0_5 = arith.constant 0 : index
    %5 = vector.load %arg5[%c19, %c0_5] : memref<32x128xf32, #tpu.memory_space<vmem>>, vector<1x32xf32>
    %c20 = arith.constant 20 : index
    %c0_6 = arith.constant 0 : index
    %6 = vector.load %arg5[%c20, %c0_6] : memref<32x128xf32, #tpu.memory_space<vmem>>, vector<1x32xf32>
    %c21 = arith.constant 21 : index
    %c0_7 = arith.constant 0 : index
    %7 = vector.load %arg5[%c21, %c0_7] : memref<32x128xf32, #tpu.memory_space<vmem>>, vector<1x32xf32>
    %c22 = arith.constant 22 : index
    %c0_8 = arith.constant 0 : index
    %8 = vector.load %arg5[%c22, %c0_8] : memref<32x128xf32, #tpu.memory_space<vmem>>, vector<1x32xf32>
    %c23 = arith.constant 23 : index
    %c0_9 = arith.constant 0 : index
    %9 = vector.load %arg5[%c23, %c0_9] : memref<32x128xf32, #tpu.memory_space<vmem>>, vector<1x32xf32>
    %c24 = arith.constant 24 : index
    %c0_10 = arith.constant 0 : index
    %10 = vector.load %arg5[%c24, %c0_10] : memref<32x128xf32, #tpu.memory_space<vmem>>, vector<1x32xf32>
    %c25 = arith.constant 25 : index
    %c0_11 = arith.constant 0 : index
    %11 = vector.load %arg5[%c25, %c0_11] : memref<32x128xf32, #tpu.memory_space<vmem>>, vector<1x32xf32>
    %c26 = arith.constant 26 : index
    %c0_12 = arith.constant 0 : index
    %12 = vector.load %arg5[%c26, %c0_12] : memref<32x128xf32, #tpu.memory_space<vmem>>, vector<1x32xf32>
    %c27 = arith.constant 27 : index
    %c0_13 = arith.constant 0 : index
    %13 = vector.load %arg5[%c27, %c0_13] : memref<32x128xf32, #tpu.memory_space<vmem>>, vector<1x128xf32>
    %c28 = arith.constant 28 : index
    %c0_14 = arith.constant 0 : index
    %14 = vector.load %arg5[%c28, %c0_14] : memref<32x128xf32, #tpu.memory_space<vmem>>, vector<1x32xf32>
    %c29 = arith.constant 29 : index
    %c0_15 = arith.constant 0 : index
    %15 = vector.load %arg5[%c29, %c0_15] : memref<32x128xf32, #tpu.memory_space<vmem>>, vector<1x32xf32>
    %c30 = arith.constant 30 : index
    %c0_16 = arith.constant 0 : index
    %16 = vector.load %arg5[%c30, %c0_16] : memref<32x128xf32, #tpu.memory_space<vmem>>, vector<1x32xf32>
    %c0_17 = arith.constant 0 : index
    %c0_18 = arith.constant 0 : index
    %17 = vector.load %arg3[%c0_17, %c0_18] : memref<32x288xf32, #tpu.memory_space<vmem>>, vector<32x128xf32>
    %c0_19 = arith.constant 0 : index
    %c128 = arith.constant 128 : index
    %18 = vector.load %arg3[%c0_19, %c128] : memref<32x288xf32, #tpu.memory_space<vmem>>, vector<32x32xf32>
    %c0_20 = arith.constant 0 : index
    %c160 = arith.constant 160 : index
    %19 = vector.load %arg3[%c0_20, %c160] : memref<32x288xf32, #tpu.memory_space<vmem>>, vector<32x32xf32>
    %c0_21 = arith.constant 0 : index
    %c192 = arith.constant 192 : index
    %20 = vector.load %arg3[%c0_21, %c192] : memref<32x288xf32, #tpu.memory_space<vmem>>, vector<32x32xf32>
    %c0_22 = arith.constant 0 : index
    %c224 = arith.constant 224 : index
    %21 = vector.load %arg3[%c0_22, %c224] : memref<32x288xf32, #tpu.memory_space<vmem>>, vector<32x32xf32>
    %c0_23 = arith.constant 0 : index
    %c256 = arith.constant 256 : index
    %22 = vector.load %arg3[%c0_23, %c256] : memref<32x288xf32, #tpu.memory_space<vmem>>, vector<32x32xf32>
    %c0_24 = arith.constant 0 : index
    %c0_25 = arith.constant 0 : index
    %23 = vector.load %arg4[%c0_24, %c0_25] : memref<128x64xf32, #tpu.memory_space<vmem>>, vector<64x32xf32>
    %c64 = arith.constant 64 : index
    %c0_26 = arith.constant 0 : index
    %24 = vector.load %arg4[%c64, %c0_26] : memref<128x64xf32, #tpu.memory_space<vmem>>, vector<64x32xf32>
    %c0_27 = arith.constant 0 : index
    %c32 = arith.constant 32 : index
    %25 = vector.load %arg4[%c0_27, %c32] : memref<128x64xf32, #tpu.memory_space<vmem>>, vector<128x32xf32>
    %c0_28 = arith.constant 0 : index
    %c0_29 = arith.constant 0 : index
    %26 = vector.load %arg2[%c0_28, %c0_29] : memref<288x8xf32, #tpu.memory_space<vmem>>, vector<136x8xf32>
    %c144 = arith.constant 144 : index
    %c0_30 = arith.constant 0 : index
    %27 = vector.load %arg2[%c144, %c0_30] : memref<288x8xf32, #tpu.memory_space<vmem>>, vector<136x8xf32>
    %28 = tpu.concatenate %26, %27 in 0 : vector<136x8xf32>, vector<136x8xf32> -> vector<272x8xf32>
    %c1 = arith.constant 1 : index
    %c0_31 = arith.constant 0 : index
    %29 = vector.load %arg2[%c1, %c0_31] : memref<288x8xf32, #tpu.memory_space<vmem>>, vector<136x8xf32>
    %c145 = arith.constant 145 : index
    %c0_32 = arith.constant 0 : index
    %30 = vector.load %arg2[%c145, %c0_32] : memref<288x8xf32, #tpu.memory_space<vmem>>, vector<136x8xf32>
    %31 = tpu.concatenate %29, %30 in 0 : vector<136x8xf32>, vector<136x8xf32> -> vector<272x8xf32>
    %32 = arith.truncf %28 : vector<272x8xf32> to vector<272x8xbf16>
    %33 = arith.truncf %0 : vector<8x64xf32> to vector<8x64xbf16>
    %cst = arith.constant dense<0.000000e+00> : vector<272x64xf32>
    %34 = tpu.matmul %32, %33, %cst {dimension_numbers = #tpu.dot_dimension_numbers<[1], [0], [0], [1], [0, 0, 1, 1], [], []>} : vector<272x8xbf16>, vector<8x64xbf16>, vector<272x64xf32> -> vector<272x64xf32>
    %35 = arith.truncf %31 : vector<272x8xf32> to vector<272x8xbf16>
    %36 = arith.truncf %1 : vector<8x64xf32> to vector<8x64xbf16>
    %cst_33 = arith.constant dense<0.000000e+00> : vector<272x64xf32>
    %37 = tpu.matmul %35, %36, %cst_33 {dimension_numbers = #tpu.dot_dimension_numbers<[1], [0], [0], [1], [0, 0, 1, 1], [], []>} : vector<272x8xbf16>, vector<8x64xbf16>, vector<272x64xf32> -> vector<272x64xf32>
    %38 = arith.addf %34, %37 : vector<272x64xf32>
    %39 = vector.broadcast %2 : vector<1x64xf32> to vector<272x64xf32>
    %40 = arith.addf %38, %39 : vector<272x64xf32>
    %41 = arith.mulf %40, %40 : vector<272x64xf32>
    %42 = arith.mulf %40, %41 : vector<272x64xf32>
    %cst_34 = arith.constant 4.471500e-02 : f32
    %43 = vector.broadcast %cst_34 : f32 to vector<272x64xf32>
    %44 = arith.mulf %43, %42 : vector<272x64xf32>
    %45 = arith.addf %40, %44 : vector<272x64xf32>
    %cst_35 = arith.constant 0.797884583 : f32
    %46 = vector.broadcast %cst_35 : f32 to vector<272x64xf32>
    %47 = arith.mulf %46, %45 : vector<272x64xf32>
    %48 = math.tanh %47 : vector<272x64xf32>
    %cst_36 = arith.constant 1.000000e+00 : f32
    %49 = vector.broadcast %cst_36 : f32 to vector<272x64xf32>
    %50 = arith.addf %49, %48 : vector<272x64xf32>
    %cst_37 = arith.constant 5.000000e-01 : f32
    %51 = vector.broadcast %cst_37 : f32 to vector<272x64xf32>
    %52 = arith.mulf %51, %50 : vector<272x64xf32>
    %53 = arith.mulf %40, %52 : vector<272x64xf32>
    %54 = vector.extract_strided_slice %53 {offsets = [0, 0], sizes = [128, 64], strides = [1, 1]} : vector<272x64xf32> to vector<128x64xf32>
    %55 = vector.extract_strided_slice %53 {offsets = [136, 0], sizes = [128, 64], strides = [1, 1]} : vector<272x64xf32> to vector<128x64xf32>
    %56 = tpu.concatenate %54, %55 in 0 : vector<128x64xf32>, vector<128x64xf32> -> vector<256x64xf32>
    %57 = vector.extract_strided_slice %53 {offsets = [1, 0], sizes = [128, 64], strides = [1, 1]} : vector<272x64xf32> to vector<128x64xf32>
    %58 = vector.extract_strided_slice %53 {offsets = [137, 0], sizes = [128, 64], strides = [1, 1]} : vector<272x64xf32> to vector<128x64xf32>
    %59 = tpu.concatenate %57, %58 in 0 : vector<128x64xf32>, vector<128x64xf32> -> vector<256x64xf32>
    %60 = arith.truncf %56 : vector<256x64xf32> to vector<256x64xbf16>
    %61 = arith.truncf %23 : vector<64x32xf32> to vector<64x32xbf16>
    %cst_38 = arith.constant dense<0.000000e+00> : vector<256x32xf32>
    %62 = tpu.matmul %60, %61, %cst_38 {dimension_numbers = #tpu.dot_dimension_numbers<[1], [0], [0], [1], [0, 0, 1, 1], [], []>} : vector<256x64xbf16>, vector<64x32xbf16>, vector<256x32xf32> -> vector<256x32xf32>
    %63 = arith.truncf %59 : vector<256x64xf32> to vector<256x64xbf16>
    %64 = arith.truncf %24 : vector<64x32xf32> to vector<64x32xbf16>
    %cst_39 = arith.constant dense<0.000000e+00> : vector<256x32xf32>
    %65 = tpu.matmul %63, %64, %cst_39 {dimension_numbers = #tpu.dot_dimension_numbers<[1], [0], [0], [1], [0, 0, 1, 1], [], []>} : vector<256x64xbf16>, vector<64x32xbf16>, vector<256x32xf32> -> vector<256x32xf32>
    %66 = arith.addf %62, %65 : vector<256x32xf32>
    %67 = vector.broadcast %3 : vector<1x32xf32> to vector<256x32xf32>
    %68 = arith.addf %66, %67 : vector<256x32xf32>
    %69 = arith.mulf %68, %68 : vector<256x32xf32>
    %70 = arith.mulf %68, %69 : vector<256x32xf32>
    %cst_40 = arith.constant 4.471500e-02 : f32
    %71 = vector.broadcast %cst_40 : f32 to vector<256x32xf32>
    %72 = arith.mulf %71, %70 : vector<256x32xf32>
    %73 = arith.addf %68, %72 : vector<256x32xf32>
    %cst_41 = arith.constant 0.797884583 : f32
    %74 = vector.broadcast %cst_41 : f32 to vector<256x32xf32>
    %75 = arith.mulf %74, %73 : vector<256x32xf32>
    %76 = math.tanh %75 : vector<256x32xf32>
    %cst_42 = arith.constant 1.000000e+00 : f32
    %77 = vector.broadcast %cst_42 : f32 to vector<256x32xf32>
    %78 = arith.addf %77, %76 : vector<256x32xf32>
    %cst_43 = arith.constant 5.000000e-01 : f32
    %79 = vector.broadcast %cst_43 : f32 to vector<256x32xf32>
    %80 = arith.mulf %79, %78 : vector<256x32xf32>
    %81 = arith.mulf %68, %80 : vector<256x32xf32>
    %82 = tpu.iota {dimensions = array<i32: 0>} : vector<128x1xi32>
    %c0_44 = arith.constant 0 : index
    %83 = memref.load %arg1[%c0_44] : memref<2xi32, #tpu.memory_space<smem>>
    %84 = vector.broadcast %83 : i32 to vector<128x1xi32>
    %85 = arith.cmpi slt, %82, %84 : vector<128x1xi32>
    %86 = arith.extui %85 : vector<128x1xi1> to vector<128x1xi32>
    %87 = arith.sitofp %86 : vector<128x1xi32> to vector<128x1xf32>
    %c1_45 = arith.constant 1 : index
    %88 = memref.load %arg1[%c1_45] : memref<2xi32, #tpu.memory_space<smem>>
    %89 = vector.broadcast %88 : i32 to vector<128x1xi32>
    %90 = arith.cmpi slt, %82, %89 : vector<128x1xi32>
    %91 = arith.extui %90 : vector<128x1xi1> to vector<128x1xi32>
    %92 = arith.sitofp %91 : vector<128x1xi32> to vector<128x1xf32>
    %93 = tpu.concatenate %87, %92 in 0 : vector<128x1xf32>, vector<128x1xf32> -> vector<256x1xf32>
    %cst_46 = arith.constant dense<0.000000e+00> : vector<256xf32>
    %94 = vector.multi_reduction <add>, %81, %cst_46 [1] : vector<256x32xf32> to vector<256xf32>
    %95 = vector.shape_cast %94 : vector<256xf32> to vector<256x1xf32>
    %cst_47 = arith.constant 3.200000e+01 : f32
    %96 = vector.broadcast %cst_47 : f32 to vector<256x1xf32>
    %97 = arith.divf %95, %96 : vector<256x1xf32>
    %98 = vector.broadcast %97 : vector<256x1xf32> to vector<256x32xf32>
    %99 = arith.subf %81, %98 : vector<256x32xf32>
    %100 = vector.broadcast %97 : vector<256x1xf32> to vector<256x32xf32>
    %101 = arith.subf %81, %100 : vector<256x32xf32>
    %102 = arith.mulf %99, %101 : vector<256x32xf32>
    %cst_48 = arith.constant dense<0.000000e+00> : vector<256xf32>
    %103 = vector.multi_reduction <add>, %102, %cst_48 [1] : vector<256x32xf32> to vector<256xf32>
    %104 = vector.shape_cast %103 : vector<256xf32> to vector<256x1xf32>
    %cst_49 = arith.constant 3.200000e+01 : f32
    %105 = vector.broadcast %cst_49 : f32 to vector<256x1xf32>
    %106 = arith.divf %104, %105 : vector<256x1xf32>
    %107 = vector.broadcast %97 : vector<256x1xf32> to vector<256x32xf32>
    %108 = arith.subf %81, %107 : vector<256x32xf32>
    %cst_50 = arith.constant 9.99999974E-6 : f32
    %109 = vector.broadcast %cst_50 : f32 to vector<256x1xf32>
    %110 = arith.addf %106, %109 : vector<256x1xf32>
    %111 = math.rsqrt %110 : vector<256x1xf32>
    %112 = vector.broadcast %111 : vector<256x1xf32> to vector<256x32xf32>
    %113 = arith.mulf %108, %112 : vector<256x32xf32>
    %114 = vector.broadcast %4 : vector<1x32xf32> to vector<256x32xf32>
    %115 = arith.mulf %113, %114 : vector<256x32xf32>
    %116 = vector.broadcast %5 : vector<1x32xf32> to vector<256x32xf32>
    %117 = arith.addf %115, %116 : vector<256x32xf32>
    %118 = arith.truncf %117 : vector<256x32xf32> to vector<256x32xbf16>
    %119 = arith.truncf %18 : vector<32x32xf32> to vector<32x32xbf16>
    %cst_51 = arith.constant dense<0.000000e+00> : vector<256x32xf32>
    %120 = tpu.matmul %118, %119, %cst_51 {dimension_numbers = #tpu.dot_dimension_numbers<[1], [0], [0], [1], [0, 0, 1, 1], [], []>} : vector<256x32xbf16>, vector<32x32xbf16>, vector<256x32xf32> -> vector<256x32xf32>
    %121 = vector.broadcast %6 : vector<1x32xf32> to vector<256x32xf32>
    %122 = arith.addf %120, %121 : vector<256x32xf32>
    %123 = vector.broadcast %93 : vector<256x1xf32> to vector<256x32xf32>
    %124 = arith.mulf %122, %123 : vector<256x32xf32>
    %125 = arith.truncf %124 : vector<256x32xf32> to vector<256x32xbf16>
    %126 = arith.truncf %19 : vector<32x32xf32> to vector<32x32xbf16>
    %cst_52 = arith.constant dense<0.000000e+00> : vector<256x32xf32>
    %127 = tpu.matmul %125, %126, %cst_52 {dimension_numbers = #tpu.dot_dimension_numbers<[1], [0], [0], [1], [0, 0, 1, 1], [], []>} : vector<256x32xbf16>, vector<32x32xbf16>, vector<256x32xf32> -> vector<256x32xf32>
    %128 = vector.broadcast %7 : vector<1x32xf32> to vector<256x32xf32>
    %129 = arith.addf %127, %128 : vector<256x32xf32>
    %130 = arith.truncf %124 : vector<256x32xf32> to vector<256x32xbf16>
    %131 = arith.truncf %20 : vector<32x32xf32> to vector<32x32xbf16>
    %cst_53 = arith.constant dense<0.000000e+00> : vector<256x32xf32>
    %132 = tpu.matmul %130, %131, %cst_53 {dimension_numbers = #tpu.dot_dimension_numbers<[1], [0], [0], [1], [0, 0, 1, 1], [], []>} : vector<256x32xbf16>, vector<32x32xbf16>, vector<256x32xf32> -> vector<256x32xf32>
    %133 = vector.broadcast %8 : vector<1x32xf32> to vector<256x32xf32>
    %134 = arith.addf %132, %133 : vector<256x32xf32>
    %135 = arith.truncf %124 : vector<256x32xf32> to vector<256x32xbf16>
    %136 = arith.truncf %21 : vector<32x32xf32> to vector<32x32xbf16>
    %cst_54 = arith.constant dense<0.000000e+00> : vector<256x32xf32>
    %137 = tpu.matmul %135, %136, %cst_54 {dimension_numbers = #tpu.dot_dimension_numbers<[1], [0], [0], [1], [0, 0, 1, 1], [], []>} : vector<256x32xbf16>, vector<32x32xbf16>, vector<256x32xf32> -> vector<256x32xf32>
    %138 = vector.broadcast %9 : vector<1x32xf32> to vector<256x32xf32>
    %139 = arith.addf %137, %138 : vector<256x32xf32>
    %140 = tpu.iota {dimensions = array<i32: 1>} : vector<1x128xi32>
    %141 = vector.extract_strided_slice %129 {offsets = [0, 0], sizes = [128, 32], strides = [1, 1]} : vector<256x32xf32> to vector<128x32xf32>
    %142 = vector.extract_strided_slice %134 {offsets = [0, 0], sizes = [128, 32], strides = [1, 1]} : vector<256x32xf32> to vector<128x32xf32>
    %143 = vector.extract_strided_slice %139 {offsets = [0, 0], sizes = [128, 32], strides = [1, 1]} : vector<256x32xf32> to vector<128x32xf32>
    %144 = arith.truncf %141 : vector<128x32xf32> to vector<128x32xbf16>
    %145 = arith.truncf %142 : vector<128x32xf32> to vector<128x32xbf16>
    %cst_55 = arith.constant dense<0.000000e+00> : vector<128x128xf32>
    %146 = tpu.matmul %144, %145, %cst_55 {dimension_numbers = #tpu.dot_dimension_numbers<[1], [1], [0], [0], [0, 0, 1, 0], [], []>} : vector<128x32xbf16>, vector<128x32xbf16>, vector<128x128xf32> -> vector<128x128xf32>
    %c0_56 = arith.constant 0 : index
    %147 = memref.load %arg1[%c0_56] : memref<2xi32, #tpu.memory_space<smem>>
    %148 = vector.broadcast %147 : i32 to vector<1x128xi32>
    %149 = arith.cmpi slt, %140, %148 : vector<1x128xi32>
    %cst_57 = arith.constant 0.000000e+00 : f32
    %cst_58 = arith.constant -1.000000e+30 : f32
    %150 = vector.broadcast %cst_57 : f32 to vector<1x128xf32>
    %151 = vector.broadcast %cst_58 : f32 to vector<1x128xf32>
    %152 = arith.select %149, %150, %151 : vector<1x128xi1>, vector<1x128xf32>
    %153 = vector.broadcast %152 : vector<1x128xf32> to vector<128x128xf32>
    %154 = arith.addf %146, %153 : vector<128x128xf32>
    %cst_59 = arith.constant dense<0xFF800000> : vector<128xf32>
    %155 = vector.multi_reduction <maximumf>, %154, %cst_59 [1] : vector<128x128xf32> to vector<128xf32>
    %156 = vector.shape_cast %155 : vector<128xf32> to vector<128x1xf32>
    %157 = vector.broadcast %156 : vector<128x1xf32> to vector<128x128xf32>
    %158 = arith.subf %154, %157 : vector<128x128xf32>
    %159 = math.exp %158 : vector<128x128xf32>
    %cst_60 = arith.constant dense<0.000000e+00> : vector<128xf32>
    %160 = vector.multi_reduction <add>, %159, %cst_60 [1] : vector<128x128xf32> to vector<128xf32>
    %161 = vector.shape_cast %160 : vector<128xf32> to vector<128x1xf32>
    %162 = arith.truncf %159 : vector<128x128xf32> to vector<128x128xbf16>
    %163 = arith.truncf %143 : vector<128x32xf32> to vector<128x32xbf16>
    %cst_61 = arith.constant dense<0.000000e+00> : vector<128x32xf32>
    %164 = tpu.matmul %162, %163, %cst_61 {dimension_numbers = #tpu.dot_dimension_numbers<[1], [0], [0], [1], [0, 0, 1, 1], [], []>} : vector<128x128xbf16>, vector<128x32xbf16>, vector<128x32xf32> -> vector<128x32xf32>
    %165 = tpu.reciprocal %161 {approx = true} : vector<128x1xf32> -> vector<128x1xf32>
    %166 = vector.broadcast %165 : vector<128x1xf32> to vector<128x32xf32>
    %167 = arith.mulf %164, %166 : vector<128x32xf32>
    %168 = vector.extract_strided_slice %129 {offsets = [128, 0], sizes = [128, 32], strides = [1, 1]} : vector<256x32xf32> to vector<128x32xf32>
    %169 = vector.extract_strided_slice %134 {offsets = [128, 0], sizes = [128, 32], strides = [1, 1]} : vector<256x32xf32> to vector<128x32xf32>
    %170 = vector.extract_strided_slice %139 {offsets = [128, 0], sizes = [128, 32], strides = [1, 1]} : vector<256x32xf32> to vector<128x32xf32>
    %171 = arith.truncf %168 : vector<128x32xf32> to vector<128x32xbf16>
    %172 = arith.truncf %169 : vector<128x32xf32> to vector<128x32xbf16>
    %cst_62 = arith.constant dense<0.000000e+00> : vector<128x128xf32>
    %173 = tpu.matmul %171, %172, %cst_62 {dimension_numbers = #tpu.dot_dimension_numbers<[1], [1], [0], [0], [0, 0, 1, 0], [], []>} : vector<128x32xbf16>, vector<128x32xbf16>, vector<128x128xf32> -> vector<128x128xf32>
    %c1_63 = arith.constant 1 : index
    %174 = memref.load %arg1[%c1_63] : memref<2xi32, #tpu.memory_space<smem>>
    %175 = vector.broadcast %174 : i32 to vector<1x128xi32>
    %176 = arith.cmpi slt, %140, %175 : vector<1x128xi32>
    %cst_64 = arith.constant 0.000000e+00 : f32
    %cst_65 = arith.constant -1.000000e+30 : f32
    %177 = vector.broadcast %cst_64 : f32 to vector<1x128xf32>
    %178 = vector.broadcast %cst_65 : f32 to vector<1x128xf32>
    %179 = arith.select %176, %177, %178 : vector<1x128xi1>, vector<1x128xf32>
    %180 = vector.broadcast %179 : vector<1x128xf32> to vector<128x128xf32>
    %181 = arith.addf %173, %180 : vector<128x128xf32>
    %cst_66 = arith.constant dense<0xFF800000> : vector<128xf32>
    %182 = vector.multi_reduction <maximumf>, %181, %cst_66 [1] : vector<128x128xf32> to vector<128xf32>
    %183 = vector.shape_cast %182 : vector<128xf32> to vector<128x1xf32>
    %184 = vector.broadcast %183 : vector<128x1xf32> to vector<128x128xf32>
    %185 = arith.subf %181, %184 : vector<128x128xf32>
    %186 = math.exp %185 : vector<128x128xf32>
    %cst_67 = arith.constant dense<0.000000e+00> : vector<128xf32>
    %187 = vector.multi_reduction <add>, %186, %cst_67 [1] : vector<128x128xf32> to vector<128xf32>
    %188 = vector.shape_cast %187 : vector<128xf32> to vector<128x1xf32>
    %189 = arith.truncf %186 : vector<128x128xf32> to vector<128x128xbf16>
    %190 = arith.truncf %170 : vector<128x32xf32> to vector<128x32xbf16>
    %cst_68 = arith.constant dense<0.000000e+00> : vector<128x32xf32>
    %191 = tpu.matmul %189, %190, %cst_68 {dimension_numbers = #tpu.dot_dimension_numbers<[1], [0], [0], [1], [0, 0, 1, 1], [], []>} : vector<128x128xbf16>, vector<128x32xbf16>, vector<128x32xf32> -> vector<128x32xf32>
    %192 = tpu.reciprocal %188 {approx = true} : vector<128x1xf32> -> vector<128x1xf32>
    %193 = vector.broadcast %192 : vector<128x1xf32> to vector<128x32xf32>
    %194 = arith.mulf %191, %193 : vector<128x32xf32>
    %195 = tpu.concatenate %167, %194 in 0 : vector<128x32xf32>, vector<128x32xf32> -> vector<256x32xf32>
    %196 = arith.truncf %195 : vector<256x32xf32> to vector<256x32xbf16>
    %197 = arith.truncf %22 : vector<32x32xf32> to vector<32x32xbf16>
    %cst_69 = arith.constant dense<0.000000e+00> : vector<256x32xf32>
    %198 = tpu.matmul %196, %197, %cst_69 {dimension_numbers = #tpu.dot_dimension_numbers<[1], [0], [0], [1], [0, 0, 1, 1], [], []>} : vector<256x32xbf16>, vector<32x32xbf16>, vector<256x32xf32> -> vector<256x32xf32>
    %199 = vector.broadcast %10 : vector<1x32xf32> to vector<256x32xf32>
    %200 = arith.addf %198, %199 : vector<256x32xf32>
    %201 = arith.addf %124, %200 : vector<256x32xf32>
    %cst_70 = arith.constant dense<0.000000e+00> : vector<256xf32>
    %202 = vector.multi_reduction <add>, %201, %cst_70 [1] : vector<256x32xf32> to vector<256xf32>
    %203 = vector.shape_cast %202 : vector<256xf32> to vector<256x1xf32>
    %cst_71 = arith.constant 3.200000e+01 : f32
    %204 = vector.broadcast %cst_71 : f32 to vector<256x1xf32>
    %205 = arith.divf %203, %204 : vector<256x1xf32>
    %206 = vector.broadcast %205 : vector<256x1xf32> to vector<256x32xf32>
    %207 = arith.subf %201, %206 : vector<256x32xf32>
    %208 = vector.broadcast %205 : vector<256x1xf32> to vector<256x32xf32>
    %209 = arith.subf %201, %208 : vector<256x32xf32>
    %210 = arith.mulf %207, %209 : vector<256x32xf32>
    %cst_72 = arith.constant dense<0.000000e+00> : vector<256xf32>
    %211 = vector.multi_reduction <add>, %210, %cst_72 [1] : vector<256x32xf32> to vector<256xf32>
    %212 = vector.shape_cast %211 : vector<256xf32> to vector<256x1xf32>
    %cst_73 = arith.constant 3.200000e+01 : f32
    %213 = vector.broadcast %cst_73 : f32 to vector<256x1xf32>
    %214 = arith.divf %212, %213 : vector<256x1xf32>
    %215 = vector.broadcast %205 : vector<256x1xf32> to vector<256x32xf32>
    %216 = arith.subf %201, %215 : vector<256x32xf32>
    %cst_74 = arith.constant 9.99999974E-6 : f32
    %217 = vector.broadcast %cst_74 : f32 to vector<256x1xf32>
    %218 = arith.addf %214, %217 : vector<256x1xf32>
    %219 = math.rsqrt %218 : vector<256x1xf32>
    %220 = vector.broadcast %219 : vector<256x1xf32> to vector<256x32xf32>
    %221 = arith.mulf %216, %220 : vector<256x32xf32>
    %222 = vector.broadcast %11 : vector<1x32xf32> to vector<256x32xf32>
    %223 = arith.mulf %221, %222 : vector<256x32xf32>
    %224 = vector.broadcast %12 : vector<1x32xf32> to vector<256x32xf32>
    %225 = arith.addf %223, %224 : vector<256x32xf32>
    %226 = arith.truncf %225 : vector<256x32xf32> to vector<256x32xbf16>
    %227 = arith.truncf %17 : vector<32x128xf32> to vector<32x128xbf16>
    %cst_75 = arith.constant dense<0.000000e+00> : vector<256x128xf32>
    %228 = tpu.matmul %226, %227, %cst_75 {dimension_numbers = #tpu.dot_dimension_numbers<[1], [0], [0], [1], [0, 0, 1, 1], [], []>} : vector<256x32xbf16>, vector<32x128xbf16>, vector<256x128xf32> -> vector<256x128xf32>
    %229 = vector.broadcast %13 : vector<1x128xf32> to vector<256x128xf32>
    %230 = arith.addf %228, %229 : vector<256x128xf32>
    %231 = arith.mulf %230, %230 : vector<256x128xf32>
    %232 = arith.mulf %230, %231 : vector<256x128xf32>
    %cst_76 = arith.constant 4.471500e-02 : f32
    %233 = vector.broadcast %cst_76 : f32 to vector<256x128xf32>
    %234 = arith.mulf %233, %232 : vector<256x128xf32>
    %235 = arith.addf %230, %234 : vector<256x128xf32>
    %cst_77 = arith.constant 0.797884583 : f32
    %236 = vector.broadcast %cst_77 : f32 to vector<256x128xf32>
    %237 = arith.mulf %236, %235 : vector<256x128xf32>
    %238 = math.tanh %237 : vector<256x128xf32>
    %cst_78 = arith.constant 1.000000e+00 : f32
    %239 = vector.broadcast %cst_78 : f32 to vector<256x128xf32>
    %240 = arith.addf %239, %238 : vector<256x128xf32>
    %cst_79 = arith.constant 5.000000e-01 : f32
    %241 = vector.broadcast %cst_79 : f32 to vector<256x128xf32>
    %242 = arith.mulf %241, %240 : vector<256x128xf32>
    %243 = arith.mulf %230, %242 : vector<256x128xf32>
    %244 = arith.truncf %243 : vector<256x128xf32> to vector<256x128xbf16>
    %245 = arith.truncf %25 : vector<128x32xf32> to vector<128x32xbf16>
    %cst_80 = arith.constant dense<0.000000e+00> : vector<256x32xf32>
    %246 = tpu.matmul %244, %245, %cst_80 {dimension_numbers = #tpu.dot_dimension_numbers<[1], [0], [0], [1], [0, 0, 1, 1], [], []>} : vector<256x128xbf16>, vector<128x32xbf16>, vector<256x32xf32> -> vector<256x32xf32>
    %247 = arith.addf %225, %246 : vector<256x32xf32>
    %248 = vector.broadcast %14 : vector<1x32xf32> to vector<256x32xf32>
    %249 = arith.addf %247, %248 : vector<256x32xf32>
    %cst_81 = arith.constant dense<0.000000e+00> : vector<256xf32>
    %250 = vector.multi_reduction <add>, %249, %cst_81 [1] : vector<256x32xf32> to vector<256xf32>
    %251 = vector.shape_cast %250 : vector<256xf32> to vector<256x1xf32>
    %cst_82 = arith.constant 3.200000e+01 : f32
    %252 = vector.broadcast %cst_82 : f32 to vector<256x1xf32>
    %253 = arith.divf %251, %252 : vector<256x1xf32>
    %254 = vector.broadcast %253 : vector<256x1xf32> to vector<256x32xf32>
    %255 = arith.subf %249, %254 : vector<256x32xf32>
    %256 = vector.broadcast %253 : vector<256x1xf32> to vector<256x32xf32>
    %257 = arith.subf %249, %256 : vector<256x32xf32>
    %258 = arith.mulf %255, %257 : vector<256x32xf32>
    %cst_83 = arith.constant dense<0.000000e+00> : vector<256xf32>
    %259 = vector.multi_reduction <add>, %258, %cst_83 [1] : vector<256x32xf32> to vector<256xf32>
    %260 = vector.shape_cast %259 : vector<256xf32> to vector<256x1xf32>
    %cst_84 = arith.constant 3.200000e+01 : f32
    %261 = vector.broadcast %cst_84 : f32 to vector<256x1xf32>
    %262 = arith.divf %260, %261 : vector<256x1xf32>
    %263 = vector.broadcast %253 : vector<256x1xf32> to vector<256x32xf32>
    %264 = arith.subf %249, %263 : vector<256x32xf32>
    %cst_85 = arith.constant 9.99999974E-6 : f32
    %265 = vector.broadcast %cst_85 : f32 to vector<256x1xf32>
    %266 = arith.addf %262, %265 : vector<256x1xf32>
    %267 = math.rsqrt %266 : vector<256x1xf32>
    %268 = vector.broadcast %267 : vector<256x1xf32> to vector<256x32xf32>
    %269 = arith.mulf %264, %268 : vector<256x32xf32>
    %270 = vector.broadcast %15 : vector<1x32xf32> to vector<256x32xf32>
    %271 = arith.mulf %269, %270 : vector<256x32xf32>
    %272 = vector.broadcast %16 : vector<1x32xf32> to vector<256x32xf32>
    %273 = arith.addf %271, %272 : vector<256x32xf32>
    %274 = vector.extract_strided_slice %273 {offsets = [0, 0], sizes = [128, 32], strides = [1, 1]} : vector<256x32xf32> to vector<128x32xf32>
    %275 = tpu.transpose %274, [1, 0] : vector<128x32xf32> -> vector<32x128xf32>
    %c0_86 = arith.constant 0 : index
    %c0_87 = arith.constant 0 : index
    %c0_88 = arith.constant 0 : index
    %276 = vector.load %arg6[%c0_86, %c0_87, %c0_88] : memref<2x32x128xf32, #tpu.memory_space<vmem>>, vector<1x32x128xf32>
    %277 = vector.shape_cast %276 : vector<1x32x128xf32> to vector<32x128xf32>
    %278 = vector.shape_cast %275 : vector<32x128xf32> to vector<1x32x128xf32>
    tpu.vector_store %arg6[%c0_86, %c0_87, %c0_88], %278 {strides = array<i32>} : memref<2x32x128xf32, #tpu.memory_space<vmem>>, vector<1x32x128xf32>,
    %279 = vector.extract_strided_slice %273 {offsets = [128, 0], sizes = [128, 32], strides = [1, 1]} : vector<256x32xf32> to vector<128x32xf32>
    %280 = tpu.transpose %279, [1, 0] : vector<128x32xf32> -> vector<32x128xf32>
    %c1_89 = arith.constant 1 : index
    %c0_90 = arith.constant 0 : index
    %c0_91 = arith.constant 0 : index
    %281 = vector.load %arg6[%c1_89, %c0_90, %c0_91] : memref<2x32x128xf32, #tpu.memory_space<vmem>>, vector<1x32x128xf32>
    %282 = vector.shape_cast %281 : vector<1x32x128xf32> to vector<32x128xf32>
    %283 = vector.shape_cast %280 : vector<32x128xf32> to vector<1x32x128xf32>
    tpu.vector_store %arg6[%c1_89, %c0_90, %c0_91], %283 {strides = array<i32>} : memref<2x32x128xf32, #tpu.memory_space<vmem>>, vector<1x32x128xf32>,
    return
  }
  func.func @transform_0(%arg0: i32, %arg1: memref<2xi32, #tpu.memory_space<smem>>) -> (i32, i32) {
    %c0_i32 = arith.constant 0 : i32
    %c0_i32_0 = arith.constant 0 : i32
    %c0_i32_1 = arith.constant 0 : i32
    return %c0_i32, %c0_i32_0 : i32, i32
  }
  func.func @transform_1(%arg0: i32, %arg1: memref<2xi32, #tpu.memory_space<smem>>) -> (i32, i32) {
    %c0_i32 = arith.constant 0 : i32
    %c0_i32_0 = arith.constant 0 : i32
    %c0_i32_1 = arith.constant 0 : i32
    return %c0_i32, %c0_i32_0 : i32, i32
  }
  func.func @transform_2(%arg0: i32, %arg1: memref<2xi32, #tpu.memory_space<smem>>) -> (i32, i32) {
    %c0_i32 = arith.constant 0 : i32
    %c0_i32_0 = arith.constant 0 : i32
    %c0_i32_1 = arith.constant 0 : i32
    return %c0_i32, %c0_i32_0 : i32, i32
  }
  func.func @transform_3(%arg0: i32, %arg1: memref<2xi32, #tpu.memory_space<smem>>) -> (i32, i32) {
    %c0_i32 = arith.constant 0 : i32
    %c0_i32_0 = arith.constant 0 : i32
    %c0_i32_1 = arith.constant 0 : i32
    return %c0_i32, %c0_i32_0 : i32, i32
  }
  func.func @transform_4(%arg0: i32, %arg1: memref<2xi32, #tpu.memory_space<smem>>) -> (i32, i32, i32) {
    %c0_i32 = arith.constant 0 : i32
    %c0_i32_0 = arith.constant 0 : i32
    %c0_i32_1 = arith.constant 0 : i32
    %c0_i32_2 = arith.constant 0 : i32
    return %c0_i32, %c0_i32_0, %c0_i32_1 : i32, i32, i32
  }
}

</mosaic_0001>

<bundles_post_ra>
// kernel: huggingface_encoder_adapt_forward.1
= control target key start
LH: loop header
LB: loop body
LE: loop exit
PB: predicated region body
PF: predicated region fallthrough
CT: control target
= control target key end

     0   :  { %s12599_s0 = inlined_call_operand.vmem [shape: s32[2], index: 0, kind: input, shape index: {}]   ;;  %s12600_s1 = inlined_call_operand.vmem [shape: f32[288,8], index: 1, kind: input, shape index: {}]   ;;  %s12601_s2 = inlined_call_operand.vmem [shape: f32[32,288], index: 2, kind: input, shape index: {}]   ;;  %s12602_s3 = inlined_call_operand.vmem [shape: f32[128,64], index: 3, kind: input, shape index: {}]   ;;  %s12603_s4 = inlined_call_operand.vmem [shape: f32[32,128], index: 4, kind: input, shape index: {}]   ;;  %s12604_s5 = inlined_call_operand.hbm [shape: f32[2,32,128], index: 5, kind: output, shape index: {}]  }
   0x1   :  { %s10_s20 = sshll.u32 %s12599_s0, 4  ;;  %s11_s20 = int_to_ptr.vmem [resolvable:$true] %s10_s20 }
   0x2   :  { %s8196_s21 = scalar_lea.vmem %s11_s20, 16  ;;  %p8201_p1 = scmp.lt.s32.totalorder %s11_s20, %s11_s20 }
   0x3   :  { %p8197_p0 = scmp.ne.s32.totalorder %s11_s20, %s8196_s21  ;;  %p8202_p2 = scmp.lt.s32.totalorder %s8196_s21, %s8196_s21 }
   0x5   :  { %p8203_p3 = por %p8202_p2, %p8201_p1 }
   0x7   :  { %p8204_p4 = pnand %p8203_p3, %p8197_p0 }
   0x9   :  { %8207 = shalt.err (!%p8204_p4)  }
   0xa   :  { %s8232_s22 = smov [#allocation3]  }
   0xb   :  { %13 = dma.vmem_to_smem %s11_s20, 16, %s8232_s22, [#allocation2] }
   0xc   :  { %8228 = dma.done.wait [#allocation2], 16 }
   0xd   :  { %8229 = vsyncadd [#allocation2], 4294967280 }
   0xe   :  { %15 = sfence }
   0xf   :  { %v26_v0 = vld [vmem:[%s12603_s4] sm:$0xff]  ;;  %v27_v1 = vld [vmem:[%s12603_s4 + $0x8] sm:$0xff]  ;;  %vm227_vm0 = vcmask 1043456   ;;  %v12605_v3 = vmov 0.0   ;;  %vm8234_vm1 = vmmov 0   ;;  %vm175_vm2 = vcmask 64512  }
  0x10   :  { %v105_v2 = vld [vmem:[%s12600_s1 + $0x1] sm:$0xff]  ;;  %6956 = vmatprep.subr.bf16.mxu0 %v12605_v3  ;;  %v156_v4 = vpack.c.bf16 %v26_v0, %v26_v0  ;;  %v174_v5 = vpack.c.bf16 %v27_v1, %v27_v1  ;;  %6958 = vmatprep.mubr.msk.bf16.mxu0 %vm8234_vm1, %v12605_v3  ;;  %v106_v6 = vld [vmem:[%s12600_s1 + $0x9] sm:$0xff]  ;;  %v107_v13 = vld [vmem:[%s12600_s1 + $0x11] sm:$0xff] }
  0x11   :  { %7568 = vmatprep.subr.bf16.mxu1 %v12605_v3  ;;  %7036 = vmatprep.mubr.msk.bf16.mxu1 %vm8234_vm1, %v12605_v3  ;;  %v75_v7 = vld [vmem:[%s12600_s1 + $0x20] sm:$0xff]  ;;  %v157_v10 = vpack.c.bf16 %v106_v6, %v105_v2  ;;  %v76_v11 = vld [vmem:[%s12600_s1 + $0x28] sm:$0xff]  ;;  %v77_v15 = vld [vmem:[%s12600_s1 + $0x30] sm:$0xff] }
  0x12   :  { %v229_v8 = vsel %vm227_vm0, %v174_v5, 0  ;;  %v452_v9 = vsel %vm227_vm0, %v156_v4, 0  ;;  %v141_v12 = vpack.c.bf16 %v76_v11, %v75_v7  ;;  %v108_v14 = vld [vmem:[%s12600_s1 + $0x19] sm:$0xff]  ;;  %v109_v19 = vld [vmem:[%s12600_s1 + $0x21] sm:$0xff]  ;;  %v110_v20 = vld [vmem:[%s12600_s1 + $0x29] sm:$0xff] }
  0x13   :  { %6957 = vmatpush3.bf16.msra.mxu0 %v229_v8  ;;  %7569 = vmatpush3.bf16.msra.mxu1 %v452_v9  ;;  %v78_v16 = vld [vmem:[%s12600_s1 + $0x38] sm:$0xff]  ;;  %v158_v17 = vpack.c.bf16 %v108_v14, %v107_v13  ;;  %v79_v21 = vld [vmem:[%s12600_s1 + $0x40] sm:$0xff]  ;;  %v80_v22 = vld [vmem:[%s12600_s1 + $0x48] sm:$0xff]  ;;  %v159_v23 = vpack.c.bf16 %v110_v20, %v109_v19 }
  0x14   :  { %7026 = vmatprep.subr.bf16.mxu0 %v12605_v3  ;;  %v142_v18 = vpack.c.bf16 %v78_v16, %v77_v15  ;;  %v143_v24 = vpack.c.bf16 %v80_v22, %v79_v21  ;;  %v111_v25 = vld [vmem:[%s12600_s1 + $0x31] sm:$0xff] }
  0x16   :  { %6959 = vmatmul.mubr.msk.bf16.vlgmr.msra.gmra.mxu0 %vm175_vm2, %v157_v10  ;;  %7037 = vmatmul.mubr.msk.bf16.vlgmr.msra.gmra.mxu1 %vm175_vm2, %v141_v12 }
  0x17   :  { %7027 = vmatpush3.bf16.msra.mxu0 %v452_v9  ;;  %6962 = vmatprep.mubr.msk.bf16.mxu0 %vm8234_vm1, %v12605_v3 }
  0x18   :  { %7040 = vmatprep.mubr.msk.bf16.mxu1 %vm8234_vm1, %v12605_v3 }
  0x1e   :  { %6963 = vmatmul.mubr.msk.bf16.gmra.mxu0 %vm175_vm2, %v158_v17  ;;  %7041 = vmatmul.mubr.msk.bf16.gmra.mxu1 %vm175_vm2, %v142_v18 }
  0x1f   :  { %6966 = vmatprep.mubr.msk.bf16.mxu0 %vm8234_vm1, %v12605_v3  ;;  %7044 = vmatprep.mubr.msk.bf16.mxu1 %vm8234_vm1, %v12605_v3 }
  0x26   :  { %6967 = vmatmul.mubr.msk.bf16.gmra.mxu0 %vm175_vm2, %v159_v23  ;;  %7045 = vmatmul.mubr.msk.bf16.gmra.mxu1 %vm175_vm2, %v143_v24 }
  0x27   :  { %16 = vsyncpa [#allocation5], 0  ;;  %6970 = vmatprep.mubr.msk.bf16.mxu0 %vm8234_vm1, %v12605_v3  ;;  %v112_v26 = vld [vmem:[%s12600_s1 + $0x39] sm:$0xff]  ;;  %7048 = vmatprep.mubr.msk.bf16.mxu1 %vm8234_vm1, %v12605_v3  ;;  %v81_v27 = vld [vmem:[%s12600_s1 + $0x50] sm:$0xff]  ;;  %vm984_vm3 = vcmask 1046528   ;;  %vm1140_vm4 = vcmask 523264  }
  0x28   :  { %v82_v28 = vld [vmem:[%s12600_s1 + $0x58] sm:$0xff]  ;;  %v160_v29 = vpack.c.bf16 %v112_v26, %v111_v25  ;;  %v113_v31 = vld [vmem:[%s12600_s1 + $0x41] sm:$0xff]  ;;  %v114_v32 = vld [vmem:[%s12600_s1 + $0x49] sm:$0xff]  ;;  %vm2000_vm5 = vcmask 261120   ;;  %s1900_s26 = sld [smem:[#allocation3]]  ;;  %s8236_s29 = smov 64  }
  0x29   :  { %v144_v30 = vpack.c.bf16 %v82_v28, %v81_v27  ;;  %v83_v33 = vld [vmem:[%s12600_s1 + $0x60] sm:$0xff]  ;;  %v84_v34 = vld [vmem:[%s12600_s1 + $0x68] sm:$0xff]  ;;  %v161_v35 = vpack.c.bf16 %v114_v32, %v113_v31  ;;  %v115_v37 = vld [vmem:[%s12600_s1 + $0x51] sm:$0xff]  ;;  %s10072_s28 = sld [smem:[#allocation3 + $0x1]]  ;;  %s8237_s30 = smov 96  }
  0x2a   :  { %v145_v36 = vpack.c.bf16 %v84_v34, %v83_v33  ;;  %v116_v38 = vld [vmem:[%s12600_s1 + $0x59] sm:$0xff]  ;;  %v85_v39 = vld [vmem:[%s12600_s1 + $0x70] sm:$0xff]  ;;  %v117_v43 = vld [vmem:[%s12600_s1 + $0x61] sm:$0xff]  ;;  %s8238_s6 = smov 32  }
  0x2b   :  { %v86_v40 = vld [vmem:[%s12600_s1 + $0x78] sm:$0xff]  ;;  %v162_v41 = vpack.c.bf16 %v116_v38, %v115_v37  ;;  %v118_v44 = vld [vmem:[%s12600_s1 + $0x69] sm:$0xff]  ;;  %v87_v45 = vld [vmem:[%s12600_s1 + $0x80] sm:$0xff] }
  0x2c   :  { %v146_v42 = vpack.c.bf16 %v86_v40, %v85_v39  ;;  %v88_v46 = vld [vmem:[%s12600_s1 + $0x90] sm:$0xff]  ;;  %v163_v47 = vpack.c.bf16 %v118_v44, %v117_v43  ;;  %v120_v50 = vld [vmem:[%s12600_s1 + $0x79] sm:$0xff]  ;;  %v121_v55 = vld [vmem:[%s12600_s1 + $0x81] sm:$0xff] }
  0x2d   :  { %v147_v48 = vpack.c.bf16 %v88_v46, %v87_v45  ;;  %v119_v49 = vld [vmem:[%s12600_s1 + $0x71] sm:$0xff]  ;;  %v90_v52 = vld [vmem:[%s12600_s1 + $0xa0] sm:$0xff]  ;;  %v91_v57 = vld [vmem:[%s12600_s1 + $0xa8] sm:$0xff] }
  0x2e   :  { %6971 = vmatmul.mubr.msk.bf16.gmra.mxu0 %vm175_vm2, %v160_v29  ;;  %7049 = vmatmul.mubr.msk.bf16.gmra.mxu1 %vm175_vm2, %v144_v30  ;;  %v89_v51 = vld [vmem:[%s12600_s1 + $0x98] sm:$0xff]  ;;  %v164_v53 = vpack.c.bf16 %v120_v50, %v119_v49  ;;  %v92_v58 = vld [vmem:[%s12600_s1 + $0xb0] sm:$0xff]  ;;  %v124_v62 = vld [vmem:[%s12600_s1 + $0xa1] sm:$0xff] }
  0x2f   :  { %6974 = vmatprep.mubr.msk.bf16.mxu0 %vm8234_vm1, %v12605_v3  ;;  %7052 = vmatprep.mubr.msk.bf16.mxu1 %vm8234_vm1, %v12605_v3  ;;  %v148_v54 = vpack.c.bf16 %v90_v52, %v89_v51  ;;  %v122_v56 = vld [vmem:[%s12600_s1 + $0x91] sm:$0xff]  ;;  %v149_v60 = vpack.c.bf16 %v92_v58, %v91_v57  ;;  %v123_v61 = vld [vmem:[%s12600_s1 + $0x99] sm:$0xff]  ;;  %v125_v4 = vld [vmem:[%s12600_s1 + $0xa9] sm:$0xff] }
  0x30   :  { %v165_v59 = vpack.c.bf16 %v122_v56, %v121_v55  ;;  %v93_v63 = vld [vmem:[%s12600_s1 + $0xb8] sm:$0xff]  ;;  %v94_v0 = vld [vmem:[%s12600_s1 + $0xc0] sm:$0xff]  ;;  %v166_v1 = vpack.c.bf16 %v124_v62, %v123_v61  ;;  %v95_v6 = vld [vmem:[%s12600_s1 + $0xc8] sm:$0xff] }
  0x31   :  { %v150_v2 = vpack.c.bf16 %v94_v0, %v93_v63  ;;  %v126_v5 = vld [vmem:[%s12600_s1 + $0xb1] sm:$0xff]  ;;  %v127_v10 = vld [vmem:[%s12600_s1 + $0xb9] sm:$0xff]  ;;  %v128_v11 = vld [vmem:[%s12600_s1 + $0xc1] sm:$0xff] }
  0x32   :  { %v96_v7 = vld [vmem:[%s12600_s1 + $0xd0] sm:$0xff]  ;;  %v167_v8 = vpack.c.bf16 %v126_v5, %v125_v4  ;;  %v97_v12 = vld [vmem:[%s12600_s1 + $0xd8] sm:$0xff]  ;;  %v98_v13 = vld [vmem:[%s12600_s1 + $0xe0] sm:$0xff]  ;;  %v168_v14 = vpack.c.bf16 %v128_v11, %v127_v10 }
  0x33   :  { %v151_v9 = vpack.c.bf16 %v96_v7, %v95_v6  ;;  %v152_v15 = vpack.c.bf16 %v98_v13, %v97_v12  ;;  %v129_v16 = vld [vmem:[%s12600_s1 + $0xc9] sm:$0xff]  ;;  %v130_v17 = vld [vmem:[%s12600_s1 + $0xd1] sm:$0xff]  ;;  %v131_v22 = vld [vmem:[%s12600_s1 + $0xd9] sm:$0xff] }
  0x34   :  { %v99_v18 = vld [vmem:[%s12600_s1 + $0xe8] sm:$0xff]  ;;  %v100_v19 = vld [vmem:[%s12600_s1 + $0xf0] sm:$0xff]  ;;  %v169_v20 = vpack.c.bf16 %v130_v17, %v129_v16  ;;  %v101_v24 = vld [vmem:[%s12600_s1 + $0xf8] sm:$0xff] }
  0x35   :  { %v153_v21 = vpack.c.bf16 %v100_v19, %v99_v18  ;;  %v132_v23 = vld [vmem:[%s12600_s1 + $0xe1] sm:$0xff]  ;;  %v133_v28 = vld [vmem:[%s12600_s1 + $0xe9] sm:$0xff]  ;;  %v134_v29 = vld [vmem:[%s12600_s1 + $0xf1] sm:$0xff] }
  0x36   :  { %6975 = vmatmul.mubr.msk.bf16.gmra.mxu0 %vm175_vm2, %v161_v35  ;;  %7053 = vmatmul.mubr.msk.bf16.gmra.mxu1 %vm175_vm2, %v145_v36  ;;  %v102_v25 = vld [vmem:[%s12600_s1 + $0x100] sm:$0xff]  ;;  %v170_v26 = vpack.c.bf16 %v132_v23, %v131_v22  ;;  %v103_v30 = vld [vmem:[%s12600_s1 + $0x108] sm:$0xff]  ;;  %v104_v31 = vld [vmem:[%s12600_s1 + $0x110] sm:$0xff]  ;;  %v171_v32 = vpack.c.bf16 %v134_v29, %v133_v28 }
  0x37   :  { %6978 = vmatprep.mubr.msk.bf16.mxu0 %vm8234_vm1, %v12605_v3  ;;  %7056 = vmatprep.mubr.msk.bf16.mxu1 %vm8234_vm1, %v12605_v3  ;;  %v154_v27 = vpack.c.bf16 %v102_v25, %v101_v24  ;;  %v155_v33 = vpack.c.bf16 %v104_v31, %v103_v30  ;;  %v135_v34 = vld [vmem:[%s12600_s1 + $0xf9] sm:$0xff]  ;;  %v136_v35 = vld [vmem:[%s12600_s1 + $0x101] sm:$0xff]  ;;  %v137_v37 = vld [vmem:[%s12600_s1 + $0x109] sm:$0xff] }
  0x38   :  { %v172_v36 = vpack.c.bf16 %v136_v35, %v135_v34  ;;  %v138_v38 = vld [vmem:[%s12600_s1 + $0x111] sm:$0xff]  ;;  %v71_v40 = vld [vmem:[%s12600_s1] sm:$0xff]  ;;  %v60_v50 = vld [vmem:[%s12602_s3 + $0x28] sm:$0xff] }
  0x39   :  { %v173_v39 = vpack.c.bf16 %v138_v38, %v137_v37  ;;  %v73_v43 = vld [vmem:[%s12600_s1 + $0x10] sm:$0xff]  ;;  %v74_v44 = vld [vmem:[%s12600_s1 + $0x18] sm:$0xff]  ;;  %v59_v49 = vld [vmem:[%s12602_s3 + $0x20] sm:$0xff] }
  0x3a   :  { %v140_v45 = vpack.c.bf16 %v74_v44, %v73_v43  ;;  %v61_v46 = vld [vmem:[%s12602_s3 + $0x30] sm:$0xff] }
  0x3b   :  { %v8622_v6 = vld [vmem:[%s12603_s4 + $0x10] ss:$0 sm:$0xff] }
  0x3e   :  { %6979 = vmatmul.mubr.msk.bf16.gmra.mxu0 %vm175_vm2, %v162_v41  ;;  %7057 = vmatmul.mubr.msk.bf16.gmra.mxu1 %vm175_vm2, %v146_v42  ;;  %v72_v41 = vld [vmem:[%s12600_s1 + $0x8] sm:$0xff] }
  0x3f   :  { %6982 = vmatprep.mubr.msk.bf16.mxu0 %vm8234_vm1, %v12605_v3  ;;  %7060 = vmatprep.mubr.msk.bf16.mxu1 %vm8234_vm1, %v12605_v3  ;;  %v139_v42 = vpack.c.bf16 %v72_v41, %v71_v40  ;;  %v57_v41 = vld [vmem:[%s12602_s3 + $0x10] sm:$0xff] }
  0x46   :  { %6983 = vmatmul.mubr.msk.bf16.gmra.mxu0 %vm175_vm2, %v163_v47  ;;  %7061 = vmatmul.mubr.msk.bf16.gmra.mxu1 %vm175_vm2, %v147_v48  ;;  %v62_v47 = vld [vmem:[%s12602_s3 + $0x38] sm:$0xff] }
  0x47   :  { %6986 = vmatprep.mubr.msk.bf16.mxu0 %vm8234_vm1, %v12605_v3  ;;  %7064 = vmatprep.mubr.msk.bf16.mxu1 %vm8234_vm1, %v12605_v3  ;;  %v8597_v48 = vpack.c.bf16 %v62_v47, %v61_v46 }
  0x49   :  { %12660 = vst [vmem:[#allocation8_spill] sm:$0xff] %v8597_v48  ;;  %7136 = vmatprep.subr.bf16.mxu1 %v8597_v48 }
  0x4a   :  { %7137 = vmatpush3.bf16.msra.mxu1 %v8597_v48 }
  0x4e   :  { %6987 = vmatmul.mubr.msk.bf16.gmra.mxu0 %vm175_vm2, %v164_v53  ;;  %7065 = vmatmul.mubr.msk.bf16.gmra.mxu1 %vm175_vm2, %v148_v54  ;;  %v8609_v53 = vpack.c.bf16 %v60_v50, %v59_v49 }
  0x4f   :  { %6990 = vmatprep.mubr.msk.bf16.mxu0 %vm8234_vm1, %v12605_v3  ;;  %7068 = vmatprep.mubr.msk.bf16.mxu1 %vm8234_vm1, %v12605_v3 }
  0x50   :  { %12661 = vst [vmem:[#allocation9_spill] sm:$0xff] %v8609_v53  ;;  %7138 = vmatprep.subr.bf16.mxu1 %v8609_v53 }
  0x51   :  { %7139 = vmatpush3.bf16.msra.mxu1 %v8609_v53 }
  0x56   :  { %6991 = vmatmul.mubr.msk.bf16.gmra.mxu0 %vm175_vm2, %v165_v59  ;;  %7069 = vmatmul.mubr.msk.bf16.gmra.mxu1 %vm175_vm2, %v149_v60 }
  0x57   :  { %6994 = vmatprep.mubr.msk.bf16.mxu0 %vm8234_vm1, %v12605_v3  ;;  %7072 = vmatprep.mubr.msk.bf16.mxu1 %vm8234_vm1, %v12605_v3 }
  0x5e   :  { %6995 = vmatmul.mubr.msk.bf16.gmra.mxu0 %vm175_vm2, %v166_v1  ;;  %7073 = vmatmul.mubr.msk.bf16.gmra.mxu1 %vm175_vm2, %v150_v2 }
  0x5f   :  { %6998 = vmatprep.mubr.msk.bf16.mxu0 %vm8234_vm1, %v12605_v3  ;;  %7076 = vmatprep.mubr.msk.bf16.mxu1 %vm8234_vm1, %v12605_v3 }
  0x66   :  { %6999 = vmatmul.mubr.msk.bf16.gmra.mxu0 %vm175_vm2, %v167_v8  ;;  %7077 = vmatmul.mubr.msk.bf16.gmra.mxu1 %vm175_vm2, %v151_v9 }
  0x67   :  { %7002 = vmatprep.mubr.msk.bf16.mxu0 %vm8234_vm1, %v12605_v3  ;;  %7080 = vmatprep.mubr.msk.bf16.mxu1 %vm8234_vm1, %v12605_v3 }
  0x6e   :  { %7003 = vmatmul.mubr.msk.bf16.gmra.mxu0 %vm175_vm2, %v168_v14  ;;  %7081 = vmatmul.mubr.msk.bf16.gmra.mxu1 %vm175_vm2, %v152_v15 }
  0x6f   :  { %7006 = vmatprep.mubr.msk.bf16.mxu0 %vm8234_vm1, %v12605_v3  ;;  %7084 = vmatprep.mubr.msk.bf16.mxu1 %vm8234_vm1, %v12605_v3 }
  0x76   :  { %7007 = vmatmul.mubr.msk.bf16.gmra.mxu0 %vm175_vm2, %v169_v20  ;;  %7085 = vmatmul.mubr.msk.bf16.gmra.mxu1 %vm175_vm2, %v153_v21 }
  0x77   :  { %7010 = vmatprep.mubr.msk.bf16.mxu0 %vm8234_vm1, %v12605_v3  ;;  %7088 = vmatprep.mubr.msk.bf16.mxu1 %vm8234_vm1, %v12605_v3 }
  0x7e   :  { %7011 = vmatmul.mubr.msk.bf16.gmra.mxu0 %vm175_vm2, %v170_v26  ;;  %7089 = vmatmul.mubr.msk.bf16.gmra.mxu1 %vm175_vm2, %v154_v27 }
  0x7f   :  { %7014 = vmatprep.mubr.msk.bf16.mxu0 %vm8234_vm1, %v12605_v3  ;;  %7092 = vmatprep.mubr.msk.bf16.mxu1 %vm8234_vm1, %v12605_v3 }
  0x86   :  { %7015 = vmatmul.mubr.msk.bf16.gmra.mxu0 %vm175_vm2, %v171_v32  ;;  %7093 = vmatmul.mubr.msk.bf16.gmra.mxu1 %vm175_vm2, %v155_v33 }
  0x87   :  { %7018 = vmatprep.mubr.msk.bf16.mxu0 %vm8234_vm1, %v12605_v3 }
  0x8e   :  { %7019 = vmatmul.mubr.msk.bf16.gmra.mxu0 %vm175_vm2, %v172_v36 }
  0x8f   :  { %7022 = vmatprep.mubr.msk.bf16.mxu0 %vm8234_vm1, %v12605_v3 }
  0x96   :  { %7023 = vmatmul.mubr.msk.bf16.gmra.mxu0 %vm175_vm2, %v173_v39 }
  0x97   :  { %7028 = vmatprep.mubr.msk.bf16.mxu0 %vm8234_vm1, %v12605_v3 }
  0x9e   :  { %7029 = vmatmul.mubr.msk.bf16.vlgmr.msra.gmra.mxu0 %vm175_vm2, %v139_v42  ;;  %v58_v42 = vld [vmem:[%s12602_s3 + $0x18] sm:$0xff] }
  0x9f   :  { %7032 = vmatprep.mubr.msk.bf16.mxu0 %vm8234_vm1, %v12605_v3 }
  0xa6   :  { %7033 = vmatmul.mubr.msk.bf16.gmra.mxu0 %vm175_vm2, %v140_v45  ;;  %v8655_v45 = vpack.c.bf16 %v58_v42, %v57_v41 }
  0xa8   :  { %12662 = vst [vmem:[#allocation10_spill] sm:$0xff] %v8655_v45  ;;  %7140 = vmatprep.subr.bf16.mxu1 %v8655_v45 }
  0xa9   :  { %7141 = vmatpush3.bf16.msra.mxu1 %v8655_v45 }
  0xd6   :  { %v8607_v51 = vpop.f32.mrf.mxu0  ;;  %v504_v52 = vpop.f32.mrf.mxu1 }
  0xd8   :  { %v6960_v54 = vpop.f32.mrf.mxu0  ;;  %v7038_v55 = vpop.f32.mrf.mxu1 }
  0xda   :  { %v8613_v56 = vpop.f32.mrf.mxu0  ;;  %v507_v57 = vpop.f32.mrf.mxu1 }
  0xdc   :  { %v6961_v58 = vpop.f32.mrf.mxu0  ;;  %v7039_v59 = vpop.f32.mrf.mxu1 }
  0xde   :  { %v8615_v60 = vpop.f32.mrf.mxu0  ;;  %v512_v61 = vpop.f32.mrf.mxu1 }
  0xe0   :  { %v6964_v62 = vpop.f32.mrf.mxu0  ;;  %v7042_v63 = vpop.f32.mrf.mxu1 }
  0xe2   :  { %v8617_v0 = vpop.f32.mrf.mxu0  ;;  %v515_v1 = vpop.f32.mrf.mxu1 }
  0xe4   :  { %v6965_v2 = vpop.f32.mrf.mxu0  ;;  %v7043_v4 = vpop.f32.mrf.mxu1 }
  0xe6   :  { %v281_v5 = vpop.f32.mrf.mxu0  ;;  %v520_v7 = vpop.f32.mrf.mxu1 }
  0xe7   :  { %v505_v8 = vadd.f32 %v504_v52, %v281_v5 }
  0xe8   :  { %v6968_v9 = vpop.f32.mrf.mxu0  ;;  %v7046_v10 = vpop.f32.mrf.mxu1 }
  0xe9   :  { %v8625_v11 = vadd.f32 %v8622_v6, %v505_v8 }
  0xea   :  { %v284_v12 = vpop.f32.mrf.mxu0  ;;  %v523_v13 = vpop.f32.mrf.mxu1 }
  0xeb   :  { %v665_v14 = vmul.f32 %v8625_v11, %v8625_v11  ;;  %v508_v15 = vadd.f32 %v507_v57, %v284_v12 }
  0xec   :  { %v6969_v16 = vpop.f32.mrf.mxu0  ;;  %v7047_v17 = vpop.f32.mrf.mxu1 }
  0xed   :  { %v699_v18 = vmul.f32 %v665_v14, %v8625_v11  ;;  %v8631_v19 = vadd.f32 %v8622_v6, %v508_v15 }
  0xee   :  { %v289_v20 = vpop.f32.mrf.mxu0  ;;  %v528_v21 = vpop.f32.mrf.mxu1 }
  0xef   :  { %v733_v22 = vmul.f32 0.044715, %v699_v18  ;;  %v666_v23 = vmul.f32 %v8631_v19, %v8631_v19  ;;  %v513_v24 = vadd.f32 %v512_v61, %v289_v20  ;;  %v69_v20 = vld [vmem:[%s12602_s3 + $0x70] sm:$0xff] }
  0xf0   :  { %v6972_v25 = vpop.f32.mrf.mxu0  ;;  %v7050_v26 = vpop.f32.mrf.mxu1 }
  0xf1   :  { %v767_v27 = vadd.f32 %v733_v22, %v8625_v11  ;;  %v700_v28 = vmul.f32 %v666_v23, %v8631_v19  ;;  %v8638_v29 = vadd.f32 %v8622_v6, %v513_v24  ;;  %v70_v22 = vld [vmem:[%s12602_s3 + $0x78] sm:$0xff] }
  0xf2   :  { %v292_v30 = vpop.f32.mrf.mxu0  ;;  %v531_v31 = vpop.f32.mrf.mxu1 }
  0xf3   :  { %v801_v32 = vmul.f32 0.7978846, %v767_v27  ;;  %v734_v33 = vmul.f32 0.044715, %v700_v28  ;;  %v667_v34 = vmul.f32 %v8638_v29, %v8638_v29  ;;  %v516_v35 = vadd.f32 %v515_v1, %v292_v30 }
  0xf4   :  { %v6973_v36 = vpop.f32.mrf.mxu0  ;;  %v7051_v37 = vpop.f32.mrf.mxu1  ;;  %v8692_v28 = vpack.c.bf16 %v70_v22, %v69_v20 }
  0xf5   :  { %7679 = vtanh.f32 %v801_v32  ;;  %v768_v38 = vadd.f32 %v734_v33, %v8631_v19  ;;  %v701_v39 = vmul.f32 %v667_v34, %v8638_v29  ;;  %v8645_v40 = vadd.f32 %v8622_v6, %v516_v35  ;;  %v67_v37 = vld [vmem:[%s12602_s3 + $0x60] sm:$0xff] }
  0xf6   :  { %v297_v43 = vpop.f32.mrf.mxu0  ;;  %v8653_v44 = vpop.f32.mrf.mxu1  ;;  %12663 = vst [vmem:[#allocation11_spill] sm:$0xff] %v8692_v28  ;;  %7096 = vmatprep.subr.bf16.mxu0 %v8692_v28 }
  0xf7   :  { %v802_v46 = vmul.f32 0.7978846, %v768_v38  ;;  %v735_v47 = vmul.f32 0.044715, %v701_v39  ;;  %v668_v49 = vmul.f32 %v8645_v40, %v8645_v40  ;;  %v521_v50 = vadd.f32 %v520_v7, %v297_v43  ;;  %v68_v38 = vld [vmem:[%s12602_s3 + $0x68] sm:$0xff]  ;;  %7097 = vmatpush3.bf16.msra.mxu0 %v8692_v28 }
  0xf8   :  { %v6976_v52 = vpop.f32.mrf.mxu0  ;;  %v7054_v54 = vpop.f32.mrf.mxu1 }
  0xf9   :  { %7681 = vtanh.f32 %v802_v46  ;;  %v769_v55 = vadd.f32 %v735_v47, %v8638_v29  ;;  %v702_v57 = vmul.f32 %v668_v49, %v8645_v40  ;;  %v8663_v58 = vadd.f32 %v8622_v6, %v521_v50 }
  0xfa   :  { %v300_v59 = vpop.f32.mrf.mxu0  ;;  %v8666_v61 = vpop.f32.mrf.mxu1  ;;  %v8711_v49 = vpack.c.bf16 %v68_v38, %v67_v37 }
  0xfb   :  { %v803_v62 = vmul.f32 0.7978846, %v769_v55  ;;  %v736_v63 = vmul.f32 0.044715, %v702_v57  ;;  %v669_v1 = vmul.f32 %v8663_v58, %v8663_v58  ;;  %v524_v2 = vadd.f32 %v523_v13, %v300_v59 }
  0xfc   :  { %v6977_v4 = vpop.f32.mrf.mxu0  ;;  %v7055_v5 = vpop.f32.mrf.mxu1  ;;  %12664 = vst [vmem:[#allocation12_spill] sm:$0xff] %v8711_v49  ;;  %7098 = vmatprep.subr.bf16.mxu0 %v8711_v49 }
  0xfd   :  { %7683 = vtanh.f32 %v803_v62  ;;  %v770_v7 = vadd.f32 %v736_v63, %v8645_v40  ;;  %v703_v8 = vmul.f32 %v669_v1, %v8663_v58  ;;  %v8673_v9 = vadd.f32 %v8622_v6, %v524_v2  ;;  %v65_v63 = vld [vmem:[%s12602_s3 + $0x50] sm:$0xff]  ;;  %v66_v1 = vld [vmem:[%s12602_s3 + $0x58] sm:$0xff]  ;;  %7099 = vmatpush3.bf16.msra.mxu0 %v8711_v49 }
  0xfe   :  { %v305_v10 = vpop.f32.mrf.mxu0  ;;  %v8675_v12 = vpop.f32.mrf.mxu1 }
  0xff   :  { %v804_v14 = vmul.f32 0.7978846, %v770_v7  ;;  %v737_v15 = vmul.f32 0.044715, %v703_v8  ;;  %v670_v16 = vmul.f32 %v8673_v9, %v8673_v9  ;;  %v529_v17 = vadd.f32 %v528_v21, %v305_v10  ;;  %v55_v8 = vld [vmem:[%s12602_s3] sm:$0xff]  ;;  %v56_v10 = vld [vmem:[%s12602_s3 + $0x8] sm:$0xff] }
 0x100   :  { %v6980_v13 = vpop.f32.mrf.mxu0  ;;  %v7058_v18 = vpop.f32.mrf.mxu1 }
 0x101   :  { %7685 = vtanh.f32 %v804_v14  ;;  %v771_v23 = vadd.f32 %v737_v15, %v8663_v58  ;;  %v704_v24 = vmul.f32 %v670_v16, %v8673_v9  ;;  %v8688_v25 = vadd.f32 %v8622_v6, %v529_v17 }
 0x102   :  { %v7680_v26 = vpop.eup %7679  ;;  %v308_v21 = vpop.f32.mrf.mxu0  ;;  %v8740_v16 = vpack.c.bf16 %v56_v10, %v55_v8  ;;  %v8742_v17 = vpack.c.bf16 %v66_v1, %v65_v63 }
 0x103   :  { %v8690_v27 = vpop.f32.mrf.mxu1  ;;  %v805_v30 = vmul.f32 0.7978846, %v771_v23  ;;  %v738_v32 = vmul.f32 0.044715, %v704_v24  ;;  %v671_v33 = vmul.f32 %v8688_v25, %v8688_v25  ;;  %v532_v34 = vadd.f32 %v531_v31, %v308_v21 }
 0x104   :  { %v6981_v35 = vpop.f32.mrf.mxu0  ;;  %v869_v39 = vadd.f32 1.0, %v7680_v26  ;;  %12665 = vst [vmem:[#allocation13_spill] sm:$0xff] %v8740_v16  ;;  %12666 = vst [vmem:[#allocation14_spill] sm:$0xff] %v8742_v17  ;;  %7142 = vmatprep.subr.bf16.mxu1 %v8740_v16  ;;  %7100 = vmatprep.subr.bf16.mxu0 %v8742_v17 }
 0x105   :  { %v7059_v36 = vpop.f32.mrf.mxu1  ;;  %7687 = vtanh.f32 %v805_v30  ;;  %v772_v41 = vadd.f32 %v738_v32, %v8673_v9  ;;  %v705_v42 = vmul.f32 %v671_v33, %v8688_v25  ;;  %v8706_v31 = vadd.f32 %v8622_v6, %v532_v34  ;;  %v63_v30 = vld [vmem:[%s12602_s3 + $0x40] sm:$0xff]  ;;  %v64_v32 = vld [vmem:[%s12602_s3 + $0x48] sm:$0xff]  ;;  %7143 = vmatpush3.bf16.msra.mxu1 %v8740_v16  ;;  %7101 = vmatpush3.bf16.msra.mxu0 %v8742_v17 }
 0x106   :  { %v7682_v43 = vpop.eup %7681  ;;  %v313_v46 = vpop.f32.mrf.mxu0  ;;  %v903_v50 = vmul.f32 0.5, %v869_v39 }
 0x107   :  { %v8709_v47 = vpop.f32.mrf.mxu1  ;;  %v806_v52 = vmul.f32 0.7978846, %v772_v41  ;;  %v739_v54 = vmul.f32 0.044715, %v705_v42  ;;  %v672_v55 = vmul.f32 %v8706_v31, %v8706_v31  ;;  %v537_v57 = vadd.f32 %v8653_v44, %v313_v46 }
 0x108   :  { %v6984_v59 = vpop.f32.mrf.mxu0  ;;  %v870_v2 = vadd.f32 1.0, %v7682_v43  ;;  %v8724_v4 = vmul.f32 %v903_v50, %v8625_v11 }
 0x109   :  { %v7062_v62 = vpop.f32.mrf.mxu1  ;;  %7689 = vtanh.f32 %v806_v52  ;;  %v773_v5 = vadd.f32 %v739_v54, %v8688_v25  ;;  %v706_v44 = vmul.f32 %v672_v55, %v8706_v31  ;;  %v8729_v7 = vadd.f32 %v8622_v6, %v537_v57 }
 0x10a   :  { %v7684_v11 = vpop.eup %7683  ;;  %v316_v14 = vpop.f32.mrf.mxu0  ;;  %v904_v13 = vmul.f32 0.5, %v870_v2 }
 0x10b   :  { %v8738_v15 = vpop.f32.mrf.mxu1  ;;  %v871_v18 = vadd.f32 1.0, %v7684_v11  ;;  %v807_v20 = vmul.f32 0.7978846, %v773_v5  ;;  %v740_v22 = vmul.f32 0.044715, %v706_v44  ;;  %v673_v23 = vmul.f32 %v8729_v7, %v8729_v7 }
 0x10c   :  { %v540_v24 = vadd.f32 %v8666_v61, %v316_v14  ;;  %v6985_v26 = vpop.f32.mrf.mxu0  ;;  %v8756_v33 = vmul.f32 %v904_v13, %v8631_v19  ;;  %v12607_v61 = vrot.slane %v8724_v4, 1  ;;  %v8768_v19 = vpack.c.bf16 %v64_v32, %v63_v30 }
 0x10d   :  { %v7063_v21 = vpop.f32.mrf.mxu1  ;;  %v905_v34 = vmul.f32 0.5, %v871_v18  ;;  %7691 = vtanh.f32 %v807_v20  ;;  %v774_v35 = vadd.f32 %v740_v22, %v8706_v31  ;;  %v707_v36 = vmul.f32 %v673_v23, %v8729_v7 }
 0x10e   :  { %v7686_v37 = vpop.eup %7685  ;;  %v8764_v38 = vadd.f32 %v8622_v6, %v540_v24  ;;  %v321_v39 = vpop.f32.mrf.mxu0  ;;  %12667 = vst [vmem:[#allocation15_spill] sm:$0xff] %v8768_v19  ;;  %v994_v42 = vrot.slane %v8756_v33, 1  ;;  %7102 = vmatprep.subr.bf16.mxu0 %v8768_v19 }
 0x10f   :  { %v8766_v41 = vpop.f32.mrf.mxu1  ;;  %v8774_v46 = vmul.f32 %v905_v34, %v8638_v29  ;;  %v808_v50 = vmul.f32 0.7978846, %v774_v35  ;;  %v741_v52 = vmul.f32 0.044715, %v707_v36  ;;  %v545_v54 = vadd.f32 %v8675_v12, %v321_v39  ;;  %7103 = vmatpush3.bf16.msra.mxu0 %v8768_v19 }
 0x110   :  { %v674_v55 = vmul.f32 %v8764_v38, %v8764_v38  ;;  %v6988_v57 = vpop.f32.mrf.mxu0  ;;  %v8783_v62 = vsel %vm984_vm3, %v12607_v61, %v994_v42  ;;  %v872_v63 = vadd.f32 1.0, %v7686_v37 }
 0x111   :  { %v7066_v59 = vpop.f32.mrf.mxu1  ;;  %v996_v29 = vrot.slane %v8774_v46, 1  ;;  %7693 = vtanh.f32 %v808_v50  ;;  %v775_v1 = vadd.f32 %v741_v52, %v8729_v7  ;;  %v8788_v12 = vadd.f32 %v8622_v6, %v545_v54 }
 0x112   :  { %v7688_v2 = vpop.eup %7687  ;;  %v708_v5 = vmul.f32 %v674_v55, %v8764_v38  ;;  %v324_v44 = vpop.f32.mrf.mxu0  ;;  %v906_v10 = vmul.f32 0.5, %v872_v63 }
 0x113   :  { %v8792_v8 = vpop.f32.mrf.mxu1  ;;  %v809_v11 = vmul.f32 0.7978846, %v775_v1  ;;  %v675_v14 = vmul.f32 %v8788_v12, %v8788_v12  ;;  %v548_v13 = vadd.f32 %v8690_v27, %v324_v44  ;;  %v8798_v18 = vsel %vm984_vm3, %v994_v42, %v996_v29 }
 0x114   :  { %v742_v20 = vmul.f32 0.044715, %v708_v5  ;;  %v6989_v22 = vpop.f32.mrf.mxu0  ;;  %v8803_v26 = vmul.f32 %v906_v10, %v8645_v40  ;;  %v873_v21 = vadd.f32 1.0, %v7688_v2 }
 0x115   :  { %v7067_v23 = vpop.f32.mrf.mxu1  ;;  %7695 = vtanh.f32 %v809_v11  ;;  %v709_v30 = vmul.f32 %v675_v14, %v8788_v12  ;;  %v8807_v32 = vadd.f32 %v8622_v6, %v548_v13 }
 0x116   :  { %v7690_v27 = vpop.eup %7689  ;;  %v776_v34 = vadd.f32 %v742_v20, %v8764_v38  ;;  %v329_v35 = vpop.f32.mrf.mxu0  ;;  %v998_v37 = vrot.slane %v8803_v26, 1  ;;  %v907_v40 = vmul.f32 0.5, %v873_v21 }
 0x117   :  { %v8810_v36 = vpop.f32.mrf.mxu1  ;;  %v743_v42 = vmul.f32 0.044715, %v709_v30  ;;  %v676_v50 = vmul.f32 %v8807_v32, %v8807_v32  ;;  %v553_v52 = vadd.f32 %v8709_v47, %v329_v35  ;;  %v874_v54 = vadd.f32 1.0, %v7690_v27 }
 0x118   :  { %v810_v55 = vmul.f32 0.7978846, %v776_v34  ;;  %v6992_v57 = vpop.f32.mrf.mxu0  ;;  %v8819_v63 = vmul.f32 %v907_v40, %v8663_v58  ;;  %v8822_v1 = vsel %vm984_vm3, %v996_v29, %v998_v37 }
 0x119   :  { %v7070_v59 = vpop.f32.mrf.mxu1  ;;  %v777_v2 = vadd.f32 %v743_v42, %v8788_v12  ;;  %v710_v5 = vmul.f32 %v676_v50, %v8807_v32  ;;  %v8827_v44 = vadd.f32 %v8622_v6, %v553_v52  ;;  %v908_v10 = vmul.f32 0.5, %v874_v54 }
 0x11a   :  { %v7692_v11 = vpop.eup %7691  ;;  %7697 = vtanh.f32 %v810_v55  ;;  %v332_v47 = vpop.f32.mrf.mxu0  ;;  %v1000_v13 = vrot.slane %v8819_v63, 1 }
 0x11b   :  { %v8829_v14 = vpop.f32.mrf.mxu1  ;;  %v875_v58 = vadd.f32 1.0, %v7692_v11  ;;  %v811_v20 = vmul.f32 0.7978846, %v777_v2  ;;  %v744_v22 = vmul.f32 0.044715, %v710_v5  ;;  %v677_v29 = vmul.f32 %v8827_v44, %v8827_v44 }
 0x11c   :  { %v556_v23 = vadd.f32 %v8738_v15, %v332_v47  ;;  %v6993_v21 = vpop.f32.mrf.mxu0  ;;  %v8836_v27 = vmul.f32 %v908_v10, %v8673_v9  ;;  %v8839_v34 = vsel %vm984_vm3, %v998_v37, %v1000_v13 }
 0x11d   :  { %v7071_v30 = vpop.f32.mrf.mxu1  ;;  %v909_v35 = vmul.f32 0.5, %v875_v58  ;;  %7699 = vtanh.f32 %v811_v20  ;;  %v778_v40 = vadd.f32 %v744_v22, %v8807_v32  ;;  %v711_v42 = vmul.f32 %v677_v29, %v8827_v44 }
 0x11e   :  { %v7694_v50 = vpop.eup %7693  ;;  %v8844_v52 = vadd.f32 %v8622_v6, %v556_v23  ;;  %v337_v54 = vpop.f32.mrf.mxu0  ;;  %v1002_v55 = vrot.slane %v8836_v27, 1 }
 0x11f   :  { %v8846_v15 = vpop.f32.mrf.mxu1  ;;  %v8854_v57 = vmul.f32 %v909_v35, %v8688_v25  ;;  %v812_v59 = vmul.f32 0.7978846, %v778_v40  ;;  %v745_v2 = vmul.f32 0.044715, %v711_v42  ;;  %v561_v5 = vadd.f32 %v8766_v41, %v337_v54 }
 0x120   :  { %v678_v10 = vmul.f32 %v8844_v52, %v8844_v52  ;;  %v6996_v11 = vpop.f32.mrf.mxu0  ;;  %v8860_v58 = vsel %vm984_vm3, %v1000_v13, %v1002_v55  ;;  %v876_v20 = vadd.f32 1.0, %v7694_v50 }
 0x121   :  { %v7074_v47 = vpop.f32.mrf.mxu1  ;;  %v1004_v22 = vrot.slane %v8854_v57, 1  ;;  %7701 = vtanh.f32 %v812_v59  ;;  %v779_v29 = vadd.f32 %v745_v2, %v8827_v44  ;;  %v8865_v25 = vadd.f32 %v8622_v6, %v561_v5 }
 0x122   :  { %v7696_v23 = vpop.eup %7695  ;;  %v712_v41 = vmul.f32 %v678_v10, %v8844_v52  ;;  %v340_v21 = vpop.f32.mrf.mxu0  ;;  %v910_v35 = vmul.f32 0.5, %v876_v20 }
 0x123   :  { %v8868_v30 = vpop.f32.mrf.mxu1  ;;  %v813_v40 = vmul.f32 0.7978846, %v779_v29  ;;  %v679_v13 = vmul.f32 %v8865_v25, %v8865_v25  ;;  %v564_v42 = vadd.f32 %v8792_v8, %v340_v21  ;;  %v8874_v50 = vsel %vm984_vm3, %v1002_v55, %v1004_v22 }
 0x124   :  { %v746_v54 = vmul.f32 0.044715, %v712_v41  ;;  %v6997_v59 = vpop.f32.mrf.mxu0  ;;  %v8879_v10 = vmul.f32 %v910_v35, %v8706_v31  ;;  %v877_v11 = vadd.f32 1.0, %v7696_v23 }
 0x125   :  { %v7075_v2 = vpop.f32.mrf.mxu1  ;;  %7703 = vtanh.f32 %v813_v40  ;;  %v713_v47 = vmul.f32 %v679_v13, %v8865_v25  ;;  %v8883_v20 = vadd.f32 %v8622_v6, %v564_v42 }
 0x126   :  { %v780_v8 = vadd.f32 %v746_v54, %v8844_v52  ;;  %v345_v55 = vpop.f32.mrf.mxu0  ;;  %v1006_v41 = vrot.slane %v8879_v10, 1  ;;  %v911_v59 = vmul.f32 0.5, %v877_v11 }
 0x127   :  { %v8886_v29 = vpop.f32.mrf.mxu1  ;;  %v7698_v31 = vpop.eup %7697  ;;  %v747_v35 = vmul.f32 0.044715, %v713_v47  ;;  %v680_v23 = vmul.f32 %v8883_v20, %v8883_v20  ;;  %v569_v40 = vadd.f32 %v8810_v36, %v345_v55 }
 0x128   :  { %v814_v13 = vmul.f32 0.7978846, %v780_v8  ;;  %v7000_v42 = vpop.f32.mrf.mxu0  ;;  %v878_v54 = vadd.f32 1.0, %v7698_v31  ;;  %v8895_v3 = vmul.f32 %v911_v59, %v8729_v7  ;;  %v8898_v5 = vsel %vm984_vm3, %v1004_v22, %v1006_v41 }
 0x129   :  { %v7078_v2 = vpop.f32.mrf.mxu1  ;;  %v781_v21 = vadd.f32 %v747_v35, %v8865_v25  ;;  %v714_v11 = vmul.f32 %v680_v23, %v8883_v20  ;;  %v8903_v47 = vadd.f32 %v8622_v6, %v569_v40 }
 0x12a   :  { %v7700_v37 = vpop.eup %7699  ;;  %7705 = vtanh.f32 %v814_v13  ;;  %v348_v36 = vpop.f32.mrf.mxu0  ;;  %v912_v55 = vmul.f32 0.5, %v878_v54  ;;  %v1008_v31 = vrot.slane %v8895_v3, 1 }
 0x12b   :  { %v8905_v8 = vpop.f32.mrf.mxu1  ;;  %v879_v7 = vadd.f32 1.0, %v7700_v37  ;;  %v815_v59 = vmul.f32 0.7978846, %v781_v21  ;;  %v748_v42 = vmul.f32 0.044715, %v714_v11  ;;  %v681_v22 = vmul.f32 %v8903_v47, %v8903_v47 }
 0x12c   :  { %v572_v35 = vadd.f32 %v8829_v14, %v348_v36  ;;  %v7001_v23 = vpop.f32.mrf.mxu0  ;;  %v8912_v40 = vmul.f32 %v912_v55, %v8764_v38  ;;  %v8915_v13 = vsel %vm984_vm3, %v1006_v41, %v1008_v31 }
 0x12d   :  { %v7079_v2 = vpop.f32.mrf.mxu1  ;;  %v913_v9 = vmul.f32 0.5, %v879_v7  ;;  %7707 = vtanh.f32 %v815_v59  ;;  %v782_v54 = vadd.f32 %v748_v42, %v8883_v20  ;;  %v715_v37 = vmul.f32 %v681_v22, %v8903_v47 }
 0x12e   :  { %v7702_v21 = vpop.eup %7701  ;;  %v8920_v11 = vadd.f32 %v8622_v6, %v572_v35  ;;  %v353_v39 = vpop.f32.mrf.mxu0  ;;  %v1010_v36 = vrot.slane %v8912_v40, 1 }
 0x12f   :  { %v8922_v14 = vpop.f32.mrf.mxu1  ;;  %v8930_v55 = vmul.f32 %v913_v9, %v8788_v12  ;;  %v816_v7 = vmul.f32 0.7978846, %v782_v54  ;;  %v749_v59 = vmul.f32 0.044715, %v715_v37  ;;  %v577_v42 = vadd.f32 %v8846_v15, %v353_v39 }
 0x130   :  { %v682_v22 = vmul.f32 %v8920_v11, %v8920_v11  ;;  %v7004_v35 = vpop.f32.mrf.mxu0  ;;  %v8936_v2 = vsel %vm984_vm3, %v1008_v31, %v1010_v36  ;;  %v880_v24 = vadd.f32 1.0, %v7702_v21 }
 0x131   :  { %v7082_v23 = vpop.f32.mrf.mxu1  ;;  %v1012_v38 = vrot.slane %v8930_v55, 1  ;;  %7709 = vtanh.f32 %v816_v7  ;;  %v783_v41 = vadd.f32 %v749_v59, %v8903_v47  ;;  %v8941_v12 = vadd.f32 %v8622_v6, %v577_v42 }
 0x132   :  { %v7704_v9 = vpop.eup %7703  ;;  %v716_v39 = vmul.f32 %v682_v22, %v8920_v11  ;;  %v356_v15 = vpop.f32.mrf.mxu0  ;;  %v914_v37 = vmul.f32 0.5, %v880_v24 }
 0x133   :  { %v8944_v54 = vpop.f32.mrf.mxu1  ;;  %v881_v35 = vadd.f32 1.0, %v7704_v9  ;;  %v817_v23 = vmul.f32 0.7978846, %v783_v41  ;;  %v683_v31 = vmul.f32 %v8941_v12, %v8941_v12  ;;  %v580_v21 = vadd.f32 %v8868_v30, %v356_v15 }
 0x134   :  { %v750_v7 = vmul.f32 0.044715, %v716_v39  ;;  %v7005_v43 = vpop.f32.mrf.mxu0  ;;  %v8950_v42 = vsel %vm984_vm3, %v1010_v36, %v1012_v38  ;;  %v8953_v61 = vmul.f32 %v914_v37, %v8807_v32 }
 0x135   :  { %v7083_v59 = vpop.f32.mrf.mxu1  ;;  %v915_v22 = vmul.f32 0.5, %v881_v35  ;;  %7711 = vtanh.f32 %v817_v23  ;;  %v717_v24 = vmul.f32 %v683_v31, %v8941_v12  ;;  %v8957_v41 = vadd.f32 %v8622_v6, %v580_v21 }
 0x136   :  { %v784_v9 = vadd.f32 %v750_v7, %v8920_v11  ;;  %v361_v16 = vpop.f32.mrf.mxu0  ;;  %v1014_v36 = vrot.slane %v8953_v61, 1 }
 0x137   :  { %v8960_v30 = vpop.f32.mrf.mxu1  ;;  %v7706_v39 = vpop.eup %7705  ;;  %v949_v15 = vmul.f32 %v915_v22, %v8827_v44  ;;  %v751_v37 = vmul.f32 0.044715, %v717_v24  ;;  %v684_v35 = vmul.f32 %v8957_v41, %v8957_v41  ;;  %v585_v23 = vadd.f32 %v8886_v29, %v361_v16 }
 0x138   :  { %v818_v31 = vmul.f32 0.7978846, %v784_v9  ;;  %v7008_v21 = vpop.f32.mrf.mxu0  ;;  %v882_v59 = vadd.f32 1.0, %v7706_v39  ;;  %v8972_v43 = vsel %vm984_vm3, %v1012_v38, %v1014_v36 }
 0x139   :  { %v7086_v7 = vpop.f32.mrf.mxu1  ;;  %12668 = vst [vmem:[#allocation16_spill] sm:$0xff] %v8972_v43  ;;  %v1016_v45 = vrot.slane %v949_v15, 1  ;;  %v785_v53 = vadd.f32 %v751_v37, %v8941_v12  ;;  %v718_v32 = vmul.f32 %v684_v35, %v8957_v41  ;;  %v8977_v44 = vadd.f32 %v8622_v6, %v585_v23 }
 0x13a   :  { %v7708_v22 = vpop.eup %7707  ;;  %7713 = vtanh.f32 %v818_v31  ;;  %v364_v24 = vpop.f32.mrf.mxu0  ;;  %v916_v16 = vmul.f32 0.5, %v882_v59 }
 0x13b   :  { %v8979_v48 = vpop.f32.mrf.mxu1  ;;  %v819_v29 = vmul.f32 0.7978846, %v785_v53  ;;  %v752_v9 = vmul.f32 0.044715, %v718_v32  ;;  %v685_v38 = vmul.f32 %v8977_v44, %v8977_v44  ;;  %v588_v39 = vadd.f32 %v8905_v8, %v364_v24 }
 0x13c   :  { %v7009_v15 = vpop.f32.mrf.mxu0  ;;  %v883_v21 = vadd.f32 1.0, %v7708_v22  ;;  %v8985_v35 = vsel %vm984_vm3, %v1014_v36, %v1016_v45  ;;  %v8995_v8 = vmul.f32 %v916_v16, %v8844_v52 }
 0x13d   :  { %v7087_v37 = vpop.f32.mrf.mxu1  ;;  %7715 = vtanh.f32 %v819_v29  ;;  %v786_v23 = vadd.f32 %v752_v9, %v8957_v41  ;;  %v719_v31 = vmul.f32 %v685_v38, %v8977_v44  ;;  %v8990_v7 = vadd.f32 %v8622_v6, %v588_v39 }
 0x13e   :  { %v7710_v53 = vpop.eup %7709  ;;  %v369_v32 = vpop.f32.mrf.mxu0  ;;  %v917_v19 = vmul.f32 0.5, %v883_v21 }
 0x13f   :  { %v8992_v59 = vpop.f32.mrf.mxu1  ;;  %v884_v36 = vadd.f32 1.0, %v7710_v53  ;;  %v820_v22 = vmul.f32 0.7978846, %v786_v23  ;;  %v753_v24 = vmul.f32 0.044715, %v719_v31  ;;  %v686_v29 = vmul.f32 %v8990_v7, %v8990_v7 }
 0x140   :  { %v593_v9 = vadd.f32 %v8922_v14, %v369_v32  ;;  %v7012_v38 = vpop.f32.mrf.mxu0  ;;  %v9003_v15 = vmul.f32 %v917_v19, %v8865_v25  ;;  %v1051_v14 = vrot.slane %v8995_v8, 1 }
 0x141   :  { %v7090_v39 = vpop.f32.mrf.mxu1  ;;  %v918_v37 = vmul.f32 0.5, %v884_v36  ;;  %7717 = vtanh.f32 %v820_v22  ;;  %v787_v52 = vadd.f32 %v753_v24, %v8977_v44  ;;  %v720_v16 = vmul.f32 %v686_v29, %v8990_v7 }
 0x142   :  { %v7712_v21 = vpop.eup %7711  ;;  %v9008_v23 = vadd.f32 %v8622_v6, %v593_v9  ;;  %v372_v31 = vpop.f32.mrf.mxu0  ;;  %v1052_v32 = vrot.slane %v9003_v15, 1 }
 0x143   :  { %v9010_v53 = vpop.f32.mrf.mxu1  ;;  %v9017_v25 = vmul.f32 %v918_v37, %v8883_v20  ;;  %v821_v36 = vmul.f32 0.7978846, %v787_v52  ;;  %v754_v22 = vmul.f32 0.044715, %v720_v16  ;;  %v596_v24 = vadd.f32 %v8944_v54, %v372_v31 }
 0x144   :  { %v687_v29 = vmul.f32 %v9008_v23, %v9008_v23  ;;  %v7013_v9 = vpop.f32.mrf.mxu0  ;;  %v9023_v39 = vsel %vm984_vm3, %v1051_v14, %v1052_v32  ;;  %v885_v45 = vadd.f32 1.0, %v7712_v21 }
 0x145   :  { %12669 = vst [vmem:[#allocation17_spill] sm:$0xff] %v9017_v25  ;;  %v7091_v38 = vpop.f32.mrf.mxu1  ;;  %12670 = vst [vmem:[#allocation18_spill] sm:$0xff] %v9023_v39  ;;  %v1054_v17 = vrot.slane %v9017_v25, 1  ;;  %7719 = vtanh.f32 %v821_v36  ;;  %v788_v19 = vadd.f32 %v754_v22, %v8990_v7  ;;  %v9028_v20 = vadd.f32 %v8622_v6, %v596_v24 }
 0x146   :  { %v721_v37 = vmul.f32 %v687_v29, %v9008_v23  ;;  %v377_v54 = vpop.f32.mrf.mxu0  ;;  %v919_v16 = vmul.f32 0.5, %v885_v45 }
 0x147   :  { %v9031_v52 = vpop.f32.mrf.mxu1  ;;  %v7714_v31 = vpop.eup %7713  ;;  %v822_v9 = vmul.f32 0.7978846, %v788_v19  ;;  %v688_v14 = vmul.f32 %v9028_v20, %v9028_v20  ;;  %v601_v21 = vadd.f32 %v8960_v30, %v377_v54  ;;  %v9037_v36 = vsel %vm984_vm3, %v1052_v32, %v1054_v17 }
 0x148   :  { %12671 = vst [vmem:[#allocation19_spill] sm:$0xff] %v9037_v36  ;;  %v755_v22 = vmul.f32 0.044715, %v721_v37  ;;  %v7016_v38 = vpop.f32.mrf.mxu0  ;;  %v9042_v28 = vmul.f32 %v919_v16, %v8903_v47  ;;  %v886_v45 = vadd.f32 1.0, %v7714_v31 }
 0x149   :  { %v7094_v24 = vpop.f32.mrf.mxu1  ;;  %7721 = vtanh.f32 %v822_v9  ;;  %v722_v19 = vmul.f32 %v688_v14, %v9028_v20  ;;  %v9046_v49 = vadd.f32 %v8622_v6, %v601_v21 }
 0x14a   :  { %v7716_v30 = vpop.eup %7715  ;;  %v789_v32 = vadd.f32 %v755_v22, %v9008_v23  ;;  %v380_v54 = vpop.f32.mrf.mxu0  ;;  %v1056_v38 = vrot.slane %v9042_v28, 1  ;;  %v920_v47 = vmul.f32 0.5, %v886_v45 }
 0x14b   :  { %v9049_v37 = vpop.f32.mrf.mxu1  ;;  %v756_v16 = vmul.f32 0.044715, %v722_v19  ;;  %v689_v31 = vmul.f32 %v9046_v49, %v9046_v49  ;;  %v604_v9 = vadd.f32 %v8979_v48, %v380_v54  ;;  %v887_v14 = vadd.f32 1.0, %v7716_v30 }
 0x14c   :  { %v823_v21 = vmul.f32 0.7978846, %v789_v32  ;;  %v7017_v29 = vpop.f32.mrf.mxu0  ;;  %v9058_v22 = vmul.f32 %v920_v47, %v8920_v11  ;;  %v9061_v39 = vsel %vm984_vm3, %v1054_v17, %v1056_v38 }
 0x14d   :  { %v7095_v36 = vpop.f32.mrf.mxu1  ;;  %v790_v43 = vadd.f32 %v756_v16, %v9028_v20  ;;  %v723_v45 = vmul.f32 %v689_v31, %v9046_v49  ;;  %v9066_v19 = vadd.f32 %v8622_v6, %v604_v9  ;;  %v921_v24 = vmul.f32 0.5, %v887_v14 }
 0x14e   :  { %v7718_v25 = vpop.eup %7717  ;;  %7723 = vtanh.f32 %v823_v21  ;;  %v385_v48 = vpop.f32.mrf.mxu0  ;;  %v1058_v29 = vrot.slane %v9058_v22, 1 }
 0x14f   :  { %v888_v30 = vadd.f32 1.0, %v7718_v25  ;;  %v824_v11 = vmul.f32 0.7978846, %v790_v43  ;;  %v757_v32 = vmul.f32 0.044715, %v723_v45  ;;  %v690_v17 = vmul.f32 %v9066_v19, %v9066_v19 }
 0x150   :  { %v609_v36 = vadd.f32 %v8992_v59, %v385_v48  ;;  %v7020_v54 = vpop.f32.mrf.mxu0  ;;  %v9073_v47 = vmul.f32 %v921_v24, %v8941_v12  ;;  %v9076_v16 = vsel %vm984_vm3, %v1056_v38, %v1058_v29 }
 0x151   :  { %v922_v31 = vmul.f32 0.5, %v888_v30  ;;  %7725 = vtanh.f32 %v824_v11  ;;  %v791_v9 = vadd.f32 %v757_v32, %v9046_v49  ;;  %v724_v25 = vmul.f32 %v690_v17, %v9066_v19 }
 0x152   :  { %v7720_v43 = vpop.eup %7719  ;;  %v9081_v14 = vadd.f32 %v8622_v6, %v609_v36  ;;  %v388_v21 = vpop.f32.mrf.mxu0  ;;  %v1060_v59 = vrot.slane %v9073_v47, 1 }
 0x153   :  { %v9089_v24 = vmul.f32 %v922_v31, %v8957_v41  ;;  %v825_v45 = vmul.f32 0.7978846, %v791_v9  ;;  %v758_v48 = vmul.f32 0.044715, %v724_v25  ;;  %v612_v30 = vadd.f32 %v9010_v53, %v388_v21 }
 0x154   :  { %v691_v11 = vmul.f32 %v9081_v14, %v9081_v14  ;;  %v7021_v32 = vpop.f32.mrf.mxu0  ;;  %v9095_v17 = vsel %vm984_vm3, %v1058_v29, %v1060_v59  ;;  %v889_v36 = vadd.f32 1.0, %v7720_v43 }
 0x155   :  { %12672 = vst [vmem:[#allocation20_spill] sm:$0xff] %v9089_v24  ;;  %12673 = vst [vmem:[#allocation21_spill] sm:$0xff] %v9095_v17  ;;  %v1062_v54 = vrot.slane %v9089_v24, 1  ;;  %7727 = vtanh.f32 %v825_v45  ;;  %v792_v38 = vadd.f32 %v758_v48, %v9066_v19  ;;  %v9100_v41 = vadd.f32 %v8622_v6, %v612_v30 }
 0x156   :  { %v7722_v31 = vpop.eup %7721  ;;  %v725_v9 = vmul.f32 %v691_v11, %v9081_v14  ;;  %v393_v53 = vpop.f32.mrf.mxu0  ;;  %v923_v25 = vmul.f32 0.5, %v889_v36 }
 0x157   :  { %v826_v21 = vmul.f32 0.7978846, %v792_v38  ;;  %v692_v32 = vmul.f32 %v9100_v41, %v9100_v41  ;;  %v617_v29 = vadd.f32 %v9031_v52, %v393_v53  ;;  %v9107_v43 = vsel %vm984_vm3, %v1060_v59, %v1062_v54 }
 0x158   :  { %v759_v45 = vmul.f32 0.044715, %v725_v9  ;;  %v7024_v12 = vpop.f32.mrf.mxu0  ;;  %v9112_v30 = vmul.f32 %v923_v25, %v8977_v44  ;;  %v890_v11 = vadd.f32 1.0, %v7722_v31 }
 0x159   :  { %7729 = vtanh.f32 %v826_v21  ;;  %v726_v38 = vmul.f32 %v692_v32, %v9100_v41  ;;  %v9116_v36 = vadd.f32 %v8622_v6, %v617_v29 }
 0x15a   :  { %12674 = vst [vmem:[#allocation22_spill] sm:$0xff] %v9112_v30  ;;  %v793_v52 = vadd.f32 %v759_v45, %v9081_v14  ;;  %v396_v53 = vpop.f32.mrf.mxu0  ;;  %v1064_v59 = vrot.slane %v9112_v30, 1  ;;  %v924_v9 = vmul.f32 0.5, %v890_v11 }
 0x15b   :  { %v7724_v48 = vpop.eup %7723  ;;  %v760_v17 = vmul.f32 0.044715, %v726_v38  ;;  %v693_v44 = vmul.f32 %v9116_v36, %v9116_v36  ;;  %v620_v31 = vadd.f32 %v9049_v37, %v396_v53  ;;  %v9136_v38 = vld [vmem:[%s12603_s4 + $0x10] ss:$0 sm:$0xff] }
 0x15c   :  { %v827_v25 = vmul.f32 0.7978846, %v793_v52  ;;  %v7025_v21 = vpop.f32.mrf.mxu0  ;;  %v891_v6 = vadd.f32 1.0, %v7724_v48  ;;  %v9126_v32 = vmul.f32 %v924_v9, %v8990_v7  ;;  %v9129_v29 = vsel %vm984_vm3, %v1062_v54, %v1064_v59 }
 0x15d   :  { %12675 = vst [vmem:[#allocation23_spill] sm:$0xff] %v9129_v29  ;;  %v794_v45 = vadd.f32 %v760_v17, %v9100_v41  ;;  %v727_v11 = vmul.f32 %v693_v44, %v9116_v36  ;;  %v9139_v37 = vadd.f32 %v9136_v38, %v620_v31 }
 0x15e   :  { %v7726_v52 = vpop.eup %7725  ;;  %7731 = vtanh.f32 %v827_v25  ;;  %v488_v48 = vpop.f32.mrf.mxu0  ;;  %v925_v7 = vmul.f32 0.5, %v891_v6  ;;  %v1066_v53 = vrot.slane %v9126_v32, 1 }
 0x15f   :  { %v892_v54 = vadd.f32 1.0, %v7726_v52  ;;  %v828_v9 = vmul.f32 0.7978846, %v794_v45  ;;  %v761_v21 = vmul.f32 0.044715, %v727_v11  ;;  %v694_v17 = vmul.f32 %v9139_v37, %v9139_v37 }
 0x160   :  { %v489_v44 = vadd.f32 %v488_v48, %v8607_v51  ;;  %v7030_v12 = vpop.f32.mrf.mxu0  ;;  %v9146_v24 = vmul.f32 %v925_v7, %v9008_v23  ;;  %v9149_v31 = vsel %vm984_vm3, %v1064_v59, %v1066_v53 }
 0x161   :  { %v926_v25 = vmul.f32 0.5, %v892_v54  ;;  %7733 = vtanh.f32 %v828_v9  ;;  %v795_v6 = vadd.f32 %v761_v21, %v9116_v36  ;;  %v728_v52 = vmul.f32 %v694_v17, %v9139_v37 }
 0x162   :  { %v7728_v45 = vpop.eup %7727  ;;  %v9154_v11 = vadd.f32 %v9136_v38, %v489_v44  ;;  %v491_v30 = vpop.f32.mrf.mxu0  ;;  %v1068_v51 = vrot.slane %v9146_v24, 1 }
 0x163   :  { %v9162_v12 = vmul.f32 %v926_v25, %v9028_v20  ;;  %v829_v48 = vmul.f32 0.7978846, %v795_v6  ;;  %v762_v7 = vmul.f32 0.044715, %v728_v52  ;;  %v492_v54 = vadd.f32 %v491_v30, %v8613_v56 }
 0x164   :  { %v661_v9 = vmul.f32 %v9154_v11, %v9154_v11  ;;  %v7031_v21 = vpop.f32.mrf.mxu0  ;;  %v9168_v17 = vsel %vm984_vm3, %v1066_v53, %v1068_v51  ;;  %v893_v44 = vadd.f32 1.0, %v7728_v45 }
 0x165   :  { %12676 = vst [vmem:[#allocation24_spill] sm:$0xff] %v9162_v12  ;;  %12677 = vst [vmem:[#allocation25_spill] sm:$0xff] %v9168_v17  ;;  %v1070_v23 = vrot.slane %v9162_v12, 1  ;;  %7735 = vtanh.f32 %v829_v48  ;;  %v796_v59 = vadd.f32 %v762_v7, %v9139_v37  ;;  %v9173_v20 = vadd.f32 %v9136_v38, %v492_v54 }
 0x166   :  { %v7730_v25 = vpop.eup %7729  ;;  %v695_v6 = vmul.f32 %v661_v9, %v9154_v11  ;;  %v496_v56 = vpop.f32.mrf.mxu0  ;;  %v927_v30 = vmul.f32 0.5, %v893_v44 }
 0x167   :  { %v830_v52 = vmul.f32 0.7978846, %v796_v59  ;;  %v662_v21 = vmul.f32 %v9173_v20, %v9173_v20  ;;  %v497_v53 = vadd.f32 %v496_v56, %v8615_v60  ;;  %v9180_v45 = vsel %vm984_vm3, %v1068_v51, %v1070_v23 }
 0x168   :  { %12678 = vst [vmem:[#allocation26_spill] sm:$0xff] %v9180_v45  ;;  %v729_v48 = vmul.f32 0.044715, %v695_v6  ;;  %v7034_v29 = vpop.f32.mrf.mxu0  ;;  %v9185_v54 = vmul.f32 %v927_v30, %v9046_v49  ;;  %v894_v9 = vadd.f32 1.0, %v7730_v25 }
 0x169   :  { %7737 = vtanh.f32 %v830_v52  ;;  %v696_v59 = vmul.f32 %v662_v21, %v9173_v20  ;;  %v9189_v44 = vadd.f32 %v9136_v38, %v497_v53 }
 0x16a   :  { %v763_v60 = vadd.f32 %v729_v48, %v9154_v11  ;;  %v499_v56 = vpop.f32.mrf.mxu0  ;;  %v1072_v51 = vrot.slane %v9185_v54, 1  ;;  %v928_v6 = vmul.f32 0.5, %v894_v9 }
 0x16b   :  { %v7732_v7 = vpop.eup %7731  ;;  %v730_v17 = vmul.f32 0.044715, %v696_v59  ;;  %v663_v49 = vmul.f32 %v9189_v44, %v9189_v44  ;;  %v500_v25 = vadd.f32 %v499_v56, %v8617_v0 }
 0x16c   :  { %v797_v30 = vmul.f32 0.7978846, %v763_v60  ;;  %v7035_v52 = vpop.f32.mrf.mxu0  ;;  %v895_v21 = vadd.f32 1.0, %v7732_v7  ;;  %v9199_v53 = vmul.f32 %v928_v6, %v9066_v19  ;;  %v9202_v48 = vsel %vm984_vm3, %v1070_v23, %v1072_v51 }
 0x16d   :  { %v764_v45 = vadd.f32 %v730_v17, %v9173_v20  ;;  %v697_v9 = vmul.f32 %v663_v49, %v9189_v44  ;;  %v9207_v59 = vadd.f32 %v9136_v38, %v500_v25 }
 0x16e   :  { %v7734_v29 = vpop.eup %7733  ;;  %7739 = vtanh.f32 %v797_v30  ;;  %v929_v12 = vmul.f32 0.5, %v895_v21  ;;  %v1074_v0 = vrot.slane %v9199_v53, 1 }
 0x16f   :  { %v896_v60 = vadd.f32 1.0, %v7734_v29  ;;  %v798_v7 = vmul.f32 0.7978846, %v764_v45  ;;  %v731_v56 = vmul.f32 0.044715, %v697_v9  ;;  %v664_v19 = vmul.f32 %v9207_v59, %v9207_v59 }
 0x170   :  { %v9213_v23 = vmul.f32 %v929_v12, %v9081_v14  ;;  %v9216_v17 = vsel %vm984_vm3, %v1072_v51, %v1074_v0 }
 0x171   :  { %v930_v6 = vmul.f32 0.5, %v896_v60  ;;  %7741 = vtanh.f32 %v798_v7  ;;  %v765_v38 = vadd.f32 %v731_v56, %v9189_v44  ;;  %v698_v49 = vmul.f32 %v664_v19, %v9207_v59 }
 0x172   :  { %v7736_v25 = vpop.eup %7735  ;;  %v1076_v29 = vrot.slane %v9213_v23, 1 }
 0x173   :  { %v9226_v14 = vmul.f32 %v930_v6, %v9100_v41  ;;  %v799_v12 = vmul.f32 0.7978846, %v765_v38  ;;  %v732_v51 = vmul.f32 0.044715, %v698_v49  ;;  %v897_v52 = vadd.f32 1.0, %v7736_v25 }
 0x174   :  { %v9229_v21 = vsel %vm984_vm3, %v1074_v0, %v1076_v29 }
 0x175   :  { %12679 = vst [vmem:[#allocation27_spill] sm:$0xff] %v9226_v14  ;;  %12680 = vst [vmem:[#allocation28_spill] sm:$0xff] %v9229_v21  ;;  %v1078_v9 = vrot.slane %v9226_v14, 1  ;;  %7743 = vtanh.f32 %v799_v12  ;;  %v766_v60 = vadd.f32 %v732_v51, %v9207_v59  ;;  %v931_v7 = vmul.f32 0.5, %v897_v52 }
 0x176   :  { %v7738_v56 = vpop.eup %7737 }
 0x177   :  { %v898_v19 = vadd.f32 1.0, %v7738_v56  ;;  %v800_v45 = vmul.f32 0.7978846, %v766_v60  ;;  %v9234_v30 = vsel %vm984_vm3, %v1076_v29, %v1078_v9  ;;  %v9237_v41 = vmul.f32 %v931_v7, %v9116_v36 }
 0x179   :  { %v932_v0 = vmul.f32 0.5, %v898_v19  ;;  %7745 = vtanh.f32 %v800_v45  ;;  %v1080_v38 = vrot.slane %v9237_v41, 1 }
 0x17b   :  { %v7740_v25 = vpop.eup %7739  ;;  %v966_v12 = vmul.f32 %v932_v0, %v9139_v37  ;;  %v9246_v51 = vsel %vm984_vm3, %v1078_v9, %v1080_v38 }
 0x17c   :  { %v865_v29 = vadd.f32 1.0, %v7740_v25 }
 0x17d   :  { %v1082_v52 = vrot.slane %v966_v12, 1 }
 0x17e   :  { %v7742_v36 = vpop.eup %7741  ;;  %v899_v7 = vmul.f32 0.5, %v865_v29 }
 0x17f   :  { %v866_v60 = vadd.f32 1.0, %v7742_v36  ;;  %v1083_v56 = vsel %vm984_vm3, %v1080_v38, %v1082_v52 }
 0x180   :  { %v1135_v45 = vpack.c.bf16 %v1083_v56, %v9246_v51  ;;  %v933_v49 = vmul.f32 %v899_v7, %v9154_v11  ;;  %v12683_v56 = vpack.c.bf16 %v8798_v18, %v8783_v62  ;;  %v12689_v62 = vpack.c.bf16 %v8912_v40, %v8895_v3  ;;  %v12703_v40 = vld [vmem:[#allocation21_spill] sm:$0xff] }
 0x181   :  { %v900_v19 = vmul.f32 0.5, %v866_v60  ;;  %v12690_v18 = vpack.c.bf16 %v8915_v13, %v8898_v5  ;;  %v12693_v3 = vpack.c.bf16 %v9003_v15, %v8995_v8  ;;  %v12701_v5 = vpack.c.bf16 %v9073_v47, %v9058_v22  ;;  %v12711_v15 = vld [vmem:[#allocation26_spill] sm:$0xff]  ;;  %v12714_v47 = vld [vmem:[#allocation24_spill] sm:$0xff] }
 0x182   :  { %v7744_v6 = vpop.eup %7743  ;;  %v985_v51 = vrot.slane %v933_v49, 1  ;;  %v12704_v13 = vpack.c.bf16 %v9107_v43, %v12703_v40  ;;  %v12717_v43 = vpack.c.bf16 %v9216_v17, %v9202_v48  ;;  %v9376_v48 = vld [vmem:[%s12603_s4 + $0x11] ss:$0 sm:$0xff] }
 0x183   :  { %v867_v21 = vadd.f32 1.0, %v7744_v6  ;;  %v934_v14 = vmul.f32 %v900_v19, %v9173_v20  ;;  %v12684_v19 = vpack.c.bf16 %v8803_v26, %v8774_v46  ;;  %v12688_v46 = vpack.c.bf16 %v8879_v10, %v8854_v57  ;;  %v12697_v57 = vld [vmem:[#allocation18_spill] sm:$0xff] }
 0x184   :  { %v12691_v26 = vpack.c.bf16 %v8950_v42, %v8936_v2  ;;  %v12702_v10 = vpack.c.bf16 %v9076_v16, %v9061_v39  ;;  %v12706_v2 = vld [vmem:[#allocation20_spill] sm:$0xff]  ;;  %v12708_v42 = vpack.c.bf16 %v9146_v24, %v9126_v32  ;;  %v12712_v39 = vld [vmem:[#allocation25_spill] sm:$0xff]  ;;  %v12715_v16 = vpack.c.bf16 %v9185_v54, %v12714_v47 }
 0x185   :  { %v901_v37 = vmul.f32 0.5, %v867_v21  ;;  %v1100_v9 = vpack.c.bf16 %v934_v14, %v933_v49  ;;  %v986_v36 = vrot.slane %v934_v14, 1  ;;  %v12681_v14 = vrot.slane %v8724_v4, 1  ;;  %v12718_v32 = vld [vmem:[#allocation28_spill] sm:$0xff] }
 0x186   :  { %v7746_v0 = vpop.eup %7745  ;;  %v12713_v22 = vpack.c.bf16 %v12711_v15, %v12712_v39  ;;  %v12716_v24 = vpack.c.bf16 %v9213_v23, %v9199_v53 }
 0x187   :  { %v935_v25 = vmul.f32 %v901_v37, %v9189_v44  ;;  %v868_v12 = vadd.f32 1.0, %v7746_v0  ;;  %7144 = vmatprep.mubr.msk.bf16.mxu1 %vm1140_vm4, %v1100_v9  ;;  %v987_v6 = vsel %vm984_vm3, %v985_v51, %v986_v36  ;;  %v12685_v37 = vpack.c.bf16 %v8836_v27, %v8819_v63  ;;  %v12720_v9 = vld [vmem:[#allocation27_spill] sm:$0xff] }
 0x188   :  { %v12692_v63 = vpack.c.bf16 %v8953_v61, %v8930_v55  ;;  %v12705_v55 = vld [vmem:[#allocation22_spill] sm:$0xff]  ;;  %v12721_v54 = vpack.c.bf16 %v9237_v41, %v12720_v9 }
 0x189   :  { %v988_v38 = vrot.slane %v935_v25, 1  ;;  %v902_v29 = vmul.f32 0.5, %v868_v12 }
 0x18b   :  { %v936_v52 = vmul.f32 %v902_v29, %v9207_v59  ;;  %v989_v11 = vsel %vm984_vm3, %v986_v36, %v988_v38  ;;  %v12682_v59 = vpack.c.bf16 %v8756_v33, %v8724_v4  ;;  %v12686_v4 = vpack.c.bf16 %v8839_v34, %v8822_v1  ;;  %v12694_v1 = vld [vmem:[#allocation16_spill] sm:$0xff]  ;;  %v12696_v34 = vld [vmem:[#allocation19_spill] sm:$0xff] }
 0x18c   :  { %v1120_v20 = vpack.c.bf16 %v989_v11, %v987_v6  ;;  %v12687_v33 = vpack.c.bf16 %v8874_v50, %v8860_v58  ;;  %v12695_v27 = vpack.c.bf16 %v8985_v35, %v12694_v1  ;;  %v12698_v58 = vpack.c.bf16 %v12696_v34, %v12697_v57  ;;  %v12699_v50 = vld [vmem:[#allocation17_spill] sm:$0xff]  ;;  %v12709_v35 = vld [vmem:[#allocation23_spill] sm:$0xff] }
 0x18d   :  { %v990_v60 = vrot.slane %v936_v52, 1  ;;  %v1101_v21 = vpack.c.bf16 %v936_v52, %v935_v25  ;;  %v12700_v61 = vpack.c.bf16 %v9042_v28, %v12699_v50  ;;  %v12707_v28 = vpack.c.bf16 %v12705_v55, %v12706_v2 }
 0x18e   :  { %7104 = vmatprep.mubr.msk.bf16.mxu0 %vm1140_vm4, %v1120_v20  ;;  %v12710_v8 = vpack.c.bf16 %v9149_v31, %v12709_v35  ;;  %v12719_v31 = vpack.c.bf16 %v9234_v30, %v12718_v32 }
 0x18f   :  { %v991_v44 = vsel %vm984_vm3, %v988_v38, %v990_v60  ;;  %7145 = vmatmul.mubr.msk.bf16.vlgmr.msra.gmra.mxu1 %vm1140_vm4, %v1101_v21  ;;  %v993_v7 = vsel %vm984_vm3, %v990_v60, %v12681_v14 }
 0x190   :  { %v1121_v49 = vpack.c.bf16 %v993_v7, %v991_v44  ;;  %7148 = vmatprep.mubr.msk.bf16.mxu1 %vm1140_vm4, %v12682_v59 }
 0x192   :  { %7105 = vmatmul.mubr.msk.bf16.vlgmr.msra.gmra.mxu0 %vm1140_vm4, %v1121_v49 }
 0x193   :  { %7108 = vmatprep.mubr.msk.bf16.mxu0 %vm1140_vm4, %v12683_v56 }
 0x197   :  { %7149 = vmatmul.mubr.msk.bf16.gmra.mxu1 %vm1140_vm4, %v12684_v19 }
 0x198   :  { %7152 = vmatprep.mubr.msk.bf16.mxu1 %vm1140_vm4, %v12685_v37 }
 0x19a   :  { %7109 = vmatmul.mubr.msk.bf16.gmra.mxu0 %vm1140_vm4, %v12686_v4 }
 0x19b   :  { %7112 = vmatprep.mubr.msk.bf16.mxu0 %vm1140_vm4, %v12687_v33 }
 0x19f   :  { %7153 = vmatmul.mubr.msk.bf16.gmra.mxu1 %vm1140_vm4, %v12688_v46 }
 0x1a0   :  { %7156 = vmatprep.mubr.msk.bf16.mxu1 %vm1140_vm4, %v12689_v62 }
 0x1a2   :  { %7113 = vmatmul.mubr.msk.bf16.gmra.mxu0 %vm1140_vm4, %v12690_v18 }
 0x1a3   :  { %7116 = vmatprep.mubr.msk.bf16.mxu0 %vm1140_vm4, %v12691_v26 }
 0x1a7   :  { %7157 = vmatmul.mubr.msk.bf16.gmra.mxu1 %vm1140_vm4, %v12692_v63 }
 0x1a8   :  { %7160 = vmatprep.mubr.msk.bf16.mxu1 %vm1140_vm4, %v12693_v3 }
 0x1aa   :  { %7117 = vmatmul.mubr.msk.bf16.gmra.mxu0 %vm1140_vm4, %v12695_v27 }
 0x1ab   :  { %7120 = vmatprep.mubr.msk.bf16.mxu0 %vm1140_vm4, %v12698_v58 }
 0x1af   :  { %7161 = vmatmul.mubr.msk.bf16.gmra.mxu1 %vm1140_vm4, %v12700_v61 }
 0x1b0   :  { %7164 = vmatprep.mubr.msk.bf16.mxu1 %vm1140_vm4, %v12701_v5 }
 0x1b2   :  { %7121 = vmatmul.mubr.msk.bf16.gmra.mxu0 %vm1140_vm4, %v12702_v10 }
 0x1b3   :  { %7124 = vmatprep.mubr.msk.bf16.mxu0 %vm1140_vm4, %v12704_v13 }
 0x1b7   :  { %7165 = vmatmul.mubr.msk.bf16.gmra.mxu1 %vm1140_vm4, %v12707_v28 }
 0x1b8   :  { %7168 = vmatprep.mubr.msk.bf16.mxu1 %vm1140_vm4, %v12708_v42 }
 0x1ba   :  { %7125 = vmatmul.mubr.msk.bf16.gmra.mxu0 %vm1140_vm4, %v12710_v8 }
 0x1bb   :  { %7128 = vmatprep.mubr.msk.bf16.mxu0 %vm1140_vm4, %v12713_v22 }
 0x1bf   :  { %7169 = vmatmul.mubr.msk.bf16.gmra.mxu1 %vm1140_vm4, %v12715_v16 }
 0x1c0   :  { %7172 = vmatprep.mubr.msk.bf16.mxu1 %vm1140_vm4, %v12716_v24 }
 0x1c2   :  { %7129 = vmatmul.mubr.msk.bf16.gmra.mxu0 %vm1140_vm4, %v12717_v43 }
 0x1c3   :  { %7132 = vmatprep.mubr.msk.bf16.mxu0 %vm1140_vm4, %v12719_v31 }
 0x1c7   :  { %7173 = vmatmul.mubr.msk.bf16.gmra.mxu1 %vm1140_vm4, %v12721_v54 }
 0x1ca   :  { %7133 = vmatmul.mubr.msk.bf16.gmra.mxu0 %vm1140_vm4, %v1135_v45 }
 0x24f   :  { %v7146_v53 = vpop.f32.mrf.mxu1 }
 0x251   :  { %v1432_v23 = vpop.f32.mrf.mxu1 }
 0x252   :  { %v7106_v17 = vpop.f32.mrf.mxu0 }
 0x253   :  { %v1441_v0 = vadd.f32 %v7146_v53, %v7106_v17  ;;  %v7147_v25 = vpop.f32.mrf.mxu1 }
 0x254   :  { %v1223_v30 = vpop.f32.mrf.mxu0 }
 0x255   :  { %v9379_v12 = vadd.f32 %v9376_v48, %v1441_v0  ;;  %v1433_v36 = vadd.f32 %v1432_v23, %v1223_v30  ;;  %v1435_v41 = vpop.f32.mrf.mxu1 }
 0x256   :  { %v7107_v38 = vpop.f32.mrf.mxu0 }
 0x257   :  { %v1597_v45 = vmul.f32 %v9379_v12, %v9379_v12  ;;  %v9384_v29 = vadd.f32 %v9376_v48, %v1433_v36  ;;  %v1444_v51 = vadd.f32 %v7147_v25, %v7107_v38  ;;  %v7150_v52 = vpop.f32.mrf.mxu1 }
 0x258   :  { %v1226_v6 = vpop.f32.mrf.mxu0 }
 0x259   :  { %v1629_v11 = vmul.f32 %v1597_v45, %v9379_v12  ;;  %v1595_v20 = vmul.f32 %v9384_v29, %v9384_v29  ;;  %v9390_v60 = vadd.f32 %v9376_v48, %v1444_v51  ;;  %v1436_v21 = vadd.f32 %v1435_v41, %v1226_v6  ;;  %v1448_v44 = vpop.f32.mrf.mxu1 }
 0x25a   :  { %v7110_v14 = vpop.f32.mrf.mxu0 }
 0x25b   :  { %v1627_v7 = vmul.f32 %v1595_v20, %v9384_v29  ;;  %v1598_v49 = vmul.f32 %v9390_v60, %v9390_v60  ;;  %v9396_v59 = vadd.f32 %v9376_v48, %v1436_v21  ;;  %v1457_v56 = vadd.f32 %v7150_v52, %v7110_v14  ;;  %v7151_v19 = vpop.f32.mrf.mxu1 }
 0x25c   :  { %v1239_v37 = vpop.f32.mrf.mxu0  ;;  %v1661_v4 = vmul.f32 0.044715, %v1629_v11 }
 0x25d   :  { %v1630_v33 = vmul.f32 %v1598_v49, %v9390_v60  ;;  %v1596_v46 = vmul.f32 %v9396_v59, %v9396_v59  ;;  %v9402_v62 = vadd.f32 %v9376_v48, %v1457_v56  ;;  %v1449_v18 = vadd.f32 %v1448_v44, %v1239_v37  ;;  %v1451_v26 = vpop.f32.mrf.mxu1 }
 0x25e   :  { %v7111_v63 = vpop.f32.mrf.mxu0  ;;  %v1693_v3 = vadd.f32 %v1661_v4, %v9379_v12  ;;  %v1659_v1 = vmul.f32 0.044715, %v1627_v7 }
 0x25f   :  { %v1662_v27 = vmul.f32 0.044715, %v1630_v33  ;;  %v1628_v34 = vmul.f32 %v1596_v46, %v9396_v59  ;;  %v1601_v57 = vmul.f32 %v9402_v62, %v9402_v62  ;;  %v9409_v58 = vadd.f32 %v9376_v48, %v1449_v18  ;;  %v7154_v50 = vpop.f32.mrf.mxu1 }
 0x260   :  { %v1460_v61 = vadd.f32 %v7151_v19, %v7111_v63  ;;  %v1242_v5 = vpop.f32.mrf.mxu0  ;;  %v1725_v10 = vmul.f32 0.7978846, %v1693_v3  ;;  %v1691_v40 = vadd.f32 %v1659_v1, %v9384_v29 }
 0x261   :  { %v1633_v13 = vmul.f32 %v1601_v57, %v9402_v62  ;;  %v1599_v55 = vmul.f32 %v9409_v58, %v9409_v58  ;;  %v1452_v2 = vadd.f32 %v1451_v26, %v1242_v5  ;;  %v1464_v28 = vpop.f32.mrf.mxu1  ;;  %v1694_v42 = vadd.f32 %v1662_v27, %v9390_v60 }
 0x262   :  { %v9417_v35 = vadd.f32 %v9376_v48, %v1460_v61  ;;  %v7114_v8 = vpop.f32.mrf.mxu0  ;;  %7747 = vtanh.f32 %v1725_v10  ;;  %v1723_v15 = vmul.f32 0.7978846, %v1691_v40  ;;  %v1660_v39 = vmul.f32 0.044715, %v1628_v34 }
 0x263   :  { %v1665_v22 = vmul.f32 0.044715, %v1633_v13  ;;  %v1631_v47 = vmul.f32 %v1599_v55, %v9409_v58  ;;  %v9421_v16 = vadd.f32 %v9376_v48, %v1452_v2  ;;  %v1473_v24 = vadd.f32 %v7154_v50, %v7114_v8  ;;  %v7155_v43 = vpop.f32.mrf.mxu1 }
 0x264   :  { %v1602_v32 = vmul.f32 %v9417_v35, %v9417_v35  ;;  %v1255_v31 = vpop.f32.mrf.mxu0  ;;  %7749 = vtanh.f32 %v1723_v15  ;;  %v1726_v9 = vmul.f32 0.7978846, %v1694_v42  ;;  %v1692_v54 = vadd.f32 %v1660_v39, %v9396_v59 }
 0x265   :  { %v1663_v53 = vmul.f32 0.044715, %v1631_v47  ;;  %v1600_v23 = vmul.f32 %v9421_v16, %v9421_v16  ;;  %v9429_v17 = vadd.f32 %v9376_v48, %v1473_v24  ;;  %v1465_v0 = vadd.f32 %v1464_v28, %v1255_v31  ;;  %v1467_v25 = vpop.f32.mrf.mxu1 }
 0x266   :  { %v1634_v30 = vmul.f32 %v1602_v32, %v9417_v35  ;;  %v7115_v36 = vpop.f32.mrf.mxu0  ;;  %7751 = vtanh.f32 %v1726_v9  ;;  %v1724_v41 = vmul.f32 0.7978846, %v1692_v54  ;;  %v1697_v38 = vadd.f32 %v1665_v22, %v9402_v62 }
 0x267   :  { %v1632_v45 = vmul.f32 %v1600_v23, %v9421_v16  ;;  %v1605_v51 = vmul.f32 %v9429_v17, %v9429_v17  ;;  %v9437_v52 = vadd.f32 %v9376_v48, %v1465_v0  ;;  %v1476_v6 = vadd.f32 %v7155_v43, %v7115_v36  ;;  %v7158_v11 = vpop.f32.mrf.mxu1 }
 0x268   :  { %v1666_v20 = vmul.f32 0.044715, %v1634_v30  ;;  %v1258_v21 = vpop.f32.mrf.mxu0  ;;  %7753 = vtanh.f32 %v1724_v41  ;;  %v1695_v44 = vadd.f32 %v1663_v53, %v9409_v58  ;;  %v1729_v14 = vmul.f32 0.7978846, %v1697_v38 }
 0x269   :  { %v1637_v7 = vmul.f32 %v1605_v51, %v9429_v17  ;;  %v1603_v49 = vmul.f32 %v9437_v52, %v9437_v52  ;;  %v9444_v56 = vadd.f32 %v9376_v48, %v1476_v6  ;;  %v1468_v19 = vadd.f32 %v1467_v25, %v1258_v21  ;;  %v1480_v37 = vpop.f32.mrf.mxu1 }
 0x26a   :  { %v7118_v4 = vpop.f32.mrf.mxu0  ;;  %v1727_v33 = vmul.f32 0.7978846, %v1695_v44  ;;  %7755 = vtanh.f32 %v1729_v14  ;;  %v1664_v46 = vmul.f32 0.044715, %v1632_v45  ;;  %v1698_v18 = vadd.f32 %v1666_v20, %v9417_v35 }
 0x26b   :  { %v1635_v26 = vmul.f32 %v1603_v49, %v9437_v52  ;;  %v1606_v63 = vmul.f32 %v9444_v56, %v9444_v56  ;;  %v9451_v3 = vadd.f32 %v9376_v48, %v1468_v19  ;;  %v7159_v1 = vpop.f32.mrf.mxu1  ;;  %v1669_v27 = vmul.f32 0.044715, %v1637_v7 }
 0x26c   :  { %v1489_v34 = vadd.f32 %v7158_v11, %v7118_v4  ;;  %v1271_v57 = vpop.f32.mrf.mxu0  ;;  %7757 = vtanh.f32 %v1727_v33  ;;  %v1696_v50 = vadd.f32 %v1664_v46, %v9421_v16  ;;  %v1730_v10 = vmul.f32 0.7978846, %v1698_v18 }
 0x26d   :  { %v1481_v61 = vadd.f32 %v1480_v37, %v1271_v57  ;;  %v1483_v5 = vpop.f32.mrf.mxu1  ;;  %v1638_v40 = vmul.f32 %v1606_v63, %v9444_v56  ;;  %v1667_v42 = vmul.f32 0.044715, %v1635_v26  ;;  %v1604_v8 = vmul.f32 %v9451_v3, %v9451_v3 }
 0x26e   :  { %v9456_v13 = vadd.f32 %v9376_v48, %v1489_v34  ;;  %v7119_v55 = vpop.f32.mrf.mxu0  ;;  %v1728_v2 = vmul.f32 0.7978846, %v1696_v50  ;;  %v1701_v43 = vadd.f32 %v1669_v27, %v9429_v17 }
 0x26f   :  { %v7748_v28 = vpop.eup %7747  ;;  %v9461_v15 = vadd.f32 %v9376_v48, %v1481_v61  ;;  %v1492_v39 = vadd.f32 %v7159_v1, %v7119_v55  ;;  %v7162_v22 = vpop.f32.mrf.mxu1  ;;  %v9469_v23 = vmul.f32 0.044715, %v1638_v40  ;;  %v9472_v41 = vmul.f32 %v1604_v8, %v9451_v3 }
 0x270   :  { %v1274_v47 = vpop.f32.mrf.mxu0  ;;  %v1789_v24 = vadd.f32 1.0, %v7748_v28  ;;  %7759 = vtanh.f32 %v1728_v2  ;;  %v1609_v31 = vmul.f32 %v9456_v13, %v9456_v13  ;;  %v1699_v6 = vadd.f32 %v1667_v42, %v9437_v52 }
 0x271   :  { %v7750_v32 = vpop.eup %7749  ;;  %v9467_v9 = vadd.f32 %v9376_v48, %v1492_v39  ;;  %v1484_v54 = vadd.f32 %v1483_v5, %v1274_v47  ;;  %v1496_v53 = vpop.f32.mrf.mxu1  ;;  %7761 = vtanh.f32 %v1730_v10  ;;  %v1607_v38 = vmul.f32 %v9461_v15, %v9461_v15 }
 0x272   :  { %v7122_v0 = vpop.f32.mrf.mxu0  ;;  %v1821_v25 = vmul.f32 0.5, %v1789_v24  ;;  %v1787_v30 = vadd.f32 1.0, %v7750_v32  ;;  %v9480_v14 = vmul.f32 0.7978846, %v1701_v43  ;;  %v1641_v49 = vmul.f32 %v1609_v31, %v9456_v13 }
 0x273   :  { %v7752_v36 = vpop.eup %7751  ;;  %v1505_v45 = vadd.f32 %v7162_v22, %v7122_v0  ;;  %v7163_v51 = vpop.f32.mrf.mxu1  ;;  %v1610_v19 = vmul.f32 %v9467_v9, %v9467_v9  ;;  %v9486_v37 = vadd.f32 %v9376_v48, %v1484_v54  ;;  %v1639_v27 = vmul.f32 %v1607_v38, %v9461_v15 }
 0x274   :  { %v1287_v11 = vpop.f32.mrf.mxu0  ;;  %v9478_v20 = vmul.f32 %v1821_v25, %v9379_v12  ;;  %v1819_v21 = vmul.f32 0.5, %v1787_v30  ;;  %v1790_v44 = vadd.f32 1.0, %v7752_v36  ;;  %v1731_v61 = vmul.f32 0.7978846, %v1699_v6 }
 0x275   :  { %v7754_v7 = vpop.eup %7753  ;;  %v9489_v4 = vadd.f32 %v9376_v48, %v1505_v45  ;;  %v1499_v33 = vpop.f32.mrf.mxu1  ;;  %v1497_v46 = vadd.f32 %v1496_v53, %v1287_v11  ;;  %v1642_v28 = vmul.f32 %v1610_v19, %v9467_v9  ;;  %v1608_v47 = vmul.f32 %v9486_v37, %v9486_v37 }
 0x276   :  { %v2007_v12 = vsel %vm2000_vm5, %v9478_v20, 0.0  ;;  %v7123_v18 = vpop.f32.mrf.mxu0  ;;  %v9494_v26 = vmul.f32 %v1819_v21, %v9384_v29  ;;  %v1822_v63 = vmul.f32 0.5, %v1790_v44  ;;  %v1788_v55 = vadd.f32 1.0, %v7754_v7 }
 0x277   :  { %v7756_v1 = vpop.eup %7755  ;;  %v1613_v34 = vmul.f32 %v9489_v4, %v9489_v4  ;;  %2008 = vadd.xlane.f32.xlu1 %v2007_v12  ;;  %v1508_v57 = vadd.f32 %v7163_v51, %v7123_v18  ;;  %v7166_v50 = vpop.f32.mrf.mxu1  ;;  %v9500_v5 = vadd.f32 %v9376_v48, %v1497_v46  ;;  %v9515_v31 = vmul.f32 0.044715, %v1641_v49 }
 0x278   :  { %v2001_v10 = vsel %vm2000_vm5, %v9494_v26, 0.0  ;;  %v1290_v40 = vpop.f32.mrf.mxu0  ;;  %v9505_v29 = vmul.f32 %v1822_v63, %v9390_v60  ;;  %v1793_v22 = vadd.f32 1.0, %v7756_v1  ;;  %v1820_v60 = vmul.f32 0.5, %v1788_v55 }
 0x279   :  { %v7758_v2 = vpop.eup %7757  ;;  %v9509_v42 = vadd.f32 %v9376_v48, %v1508_v57  ;;  %2002 = vadd.xlane.f32.xlu0 %v2001_v10  ;;  %v1500_v8 = vadd.f32 %v1499_v33, %v1290_v40  ;;  %v1512_v39 = vpop.f32.mrf.mxu1  ;;  %v1645_v54 = vmul.f32 %v1613_v34, %v9489_v4  ;;  %v1611_v53 = vmul.f32 %v9500_v5, %v9500_v5 }
 0x27a   :  { %v2010_v24 = vsel %vm2000_vm5, %v9505_v29, 0.0  ;;  %v7126_v43 = vpop.f32.mrf.mxu0  ;;  %v1791_v32 = vadd.f32 1.0, %v7758_v2  ;;  %v9520_v30 = vmul.f32 0.044715, %v1639_v27  ;;  %v9525_v38 = vmul.f32 %v1820_v60, %v9396_v59 }
 0x27b   :  { %2011 = vadd.xlane.f32.xlu1 %v2010_v24  ;;  %v1521_v0 = vadd.f32 %v7166_v50, %v7126_v43  ;;  %v7167_v25 = vpop.f32.mrf.mxu1  ;;  %v1614_v36 = vmul.f32 %v9509_v42, %v9509_v42  ;;  %v9528_v11 = vadd.f32 %v9376_v48, %v1500_v8  ;;  %v1825_v49 = vmul.f32 0.5, %v1793_v22 }
 0x27c   :  { %v1303_v45 = vpop.f32.mrf.mxu0  ;;  %v1823_v51 = vmul.f32 0.5, %v1791_v32  ;;  %v9533_v33 = vmul.f32 0.044715, %v1642_v28  ;;  %v1640_v46 = vmul.f32 %v1608_v47, %v9486_v37  ;;  %v2004_v59 = vsel %vm2000_vm5, %v9525_v38, 0.0 }
 0x27d   :  { %v7760_v6 = vpop.eup %7759  ;;  %v9531_v21 = vadd.f32 %v9376_v48, %v1521_v0  ;;  %v1513_v44 = vadd.f32 %v1512_v39, %v1303_v45  ;;  %v1515_v7 = vpop.f32.mrf.mxu1  ;;  %v9541_v63 = vmul.f32 0.044715, %v1645_v54  ;;  %v1643_v1 = vmul.f32 %v1611_v53, %v9500_v5  ;;  %2005 = vadd.xlane.f32.xlu0 %v2004_v59 }
 0x27e   :  { %v7762_v19 = vpop.eup %7761  ;;  %v7127_v12 = vpop.f32.mrf.mxu0  ;;  %v9539_v18 = vmul.f32 %v1823_v51, %v9409_v58  ;;  %v1646_v50 = vmul.f32 %v1614_v36, %v9509_v42  ;;  %v1792_v55 = vadd.f32 1.0, %v7760_v6  ;;  %v1612_v2 = vmul.f32 %v9528_v11, %v9528_v11 }
 0x27f   :  { %v1617_v27 = vmul.f32 %v9531_v21, %v9531_v21  ;;  %v9547_v34 = vadd.f32 %v9376_v48, %v1513_v44  ;;  %v7170_v57 = vpop.f32.mrf.mxu1  ;;  %v1524_v10 = vadd.f32 %v7167_v25, %v7127_v12  ;;  %v9555_v39 = vmul.f32 %v1825_v49, %v9402_v62 }
 0x280   :  { %v2013_v40 = vsel %vm2000_vm5, %v9539_v18, 0.0  ;;  %v1306_v58 = vpop.f32.mrf.mxu0  ;;  %v1794_v22 = vadd.f32 1.0, %v7762_v19  ;;  %v1824_v43 = vmul.f32 0.5, %v1792_v55  ;;  %7763 = vtanh.f32 %v1731_v61 }
 0x281   :  { %v1516_v28 = vadd.f32 %v1515_v7, %v1306_v58  ;;  %v1528_v8 = vpop.f32.mrf.mxu1  ;;  %v9558_v47 = vadd.f32 %v9376_v48, %v1524_v10  ;;  %v1668_v60 = vmul.f32 0.044715, %v9472_v41  ;;  %v1649_v32 = vmul.f32 %v1617_v27, %v9531_v21  ;;  %2014 = vadd.xlane.f32.xlu0 %v2013_v40 }
 0x282   :  { %v7130_v24 = vpop.f32.mrf.mxu0  ;;  %v1615_v54 = vmul.f32 %v9547_v34, %v9547_v34  ;;  %v9570_v36 = vmul.f32 %v1824_v43, %v9421_v16  ;;  %v1826_v45 = vmul.f32 0.5, %v1794_v22  ;;  %7765 = vtanh.f32 %v9480_v14 }
 0x283   :  { %v9565_v53 = vadd.f32 %v9376_v48, %v1516_v28  ;;  %v1537_v62 = vadd.f32 %v7170_v57, %v7130_v24  ;;  %v7171_v0 = vpop.f32.mrf.mxu1  ;;  %v1618_v25 = vmul.f32 %v9558_v47, %v9558_v47  ;;  %v9573_v41 = vmul.f32 0.044715, %v1643_v1 }
 0x284   :  { %v1319_v61 = vpop.f32.mrf.mxu0  ;;  %v9575_v51 = vmul.f32 0.044715, %v1646_v50  ;;  %v9578_v6 = vmul.f32 %v1612_v2, %v9528_v11  ;;  %v2019_v49 = vsel %vm2000_vm5, %v9555_v39, 0.0  ;;  %v2016_v16 = vsel %vm2000_vm5, %v9570_v36, 0.0 }
 0x285   :  { %v1529_v44 = vadd.f32 %v1528_v8, %v1319_v61  ;;  %v1531_v7 = vpop.f32.mrf.mxu1  ;;  %v9585_v59 = vmul.f32 %v1826_v45, %v9417_v35  ;;  %v1700_v14 = vadd.f32 %v1668_v60, %v9451_v3  ;;  %v9588_v12 = vmul.f32 0.044715, %v1649_v32  ;;  %2020 = vadd.xlane.f32.xlu0 %v2019_v49  ;;  %2017 = vadd.xlane.f32.xlu1 %v2016_v16 }
 0x286   :  { %v7131_v19 = vpop.f32.mrf.mxu0  ;;  %v1647_v1 = vmul.f32 %v1615_v54, %v9547_v34  ;;  %v9592_v27 = vadd.f32 %v9376_v48, %v1537_v62  ;;  %v1650_v10 = vmul.f32 %v1618_v25, %v9558_v47  ;;  %v1616_v35 = vmul.f32 %v9565_v53, %v9565_v53 }
 0x287   :  { %v9595_v57 = vadd.f32 %v9376_v48, %v1529_v44  ;;  %v7174_v50 = vpop.f32.mrf.mxu1  ;;  %v1540_v40 = vadd.f32 %v7171_v0, %v7131_v19  ;;  %v1732_v55 = vmul.f32 0.7978846, %v1700_v14  ;;  %v2022_v2 = vsel %vm2000_vm5, %v9585_v59, 0.0 }
 0x288   :  { %v1322_v58 = vpop.f32.mrf.mxu0  ;;  %v1702_v22 = vadd.f32 %v9469_v23, %v9444_v56  ;;  %v1672_v24 = vmul.f32 0.044715, %v1640_v46  ;;  %v1703_v32 = vadd.f32 %v9520_v30, %v9461_v15  ;;  %v1705_v54 = vadd.f32 %v9515_v31, %v9456_v13 }
 0x289   :  { %v1532_v28 = vadd.f32 %v1531_v7, %v1322_v58  ;;  %v1544_v8 = vpop.f32.mrf.mxu1  ;;  %v9605_v43 = vadd.f32 %v9376_v48, %v1540_v40  ;;  %7767 = vtanh.f32 %v1732_v55  ;;  %v9611_v62 = vmul.f32 0.044715, %v1647_v1  ;;  %2023 = vadd.xlane.f32.xlu1 %v2022_v2 }
 0x28a   :  { %v7134_v60 = vpop.f32.mrf.mxu0  ;;  %v1621_v0 = vmul.f32 %v9592_v27, %v9592_v27  ;;  %v1619_v23 = vmul.f32 %v9595_v57, %v9595_v57  ;;  %v9618_v25 = vmul.f32 %v1616_v35, %v9565_v53  ;;  %v1734_v44 = vmul.f32 0.7978846, %v1702_v22 }
 0x28b   :  { %v1553_v46 = vadd.f32 %v7174_v50, %v7134_v60  ;;  %v9621_v61 = vadd.f32 %v9376_v48, %v1532_v28  ;;  %v7175_v30 = vpop.f32.mrf.mxu1  ;;  %v1735_v31 = vmul.f32 0.7978846, %v1703_v32  ;;  %v1682_v7 = vmul.f32 0.044715, %v1650_v10 }
 0x28c   :  { %v1335_v45 = vpop.f32.mrf.mxu0  ;;  %v1622_v49 = vmul.f32 %v9605_v43, %v9605_v43  ;;  %7769 = vtanh.f32 %v1734_v44  ;;  %v1737_v1 = vmul.f32 0.7978846, %v1705_v54  ;;  %v1704_v50 = vadd.f32 %v1672_v24, %v9486_v37 }
 0x28d   :  { %v9626_v16 = vadd.f32 %v9376_v48, %v1553_v46  ;;  %v1545_v19 = vadd.f32 %v1544_v8, %v1335_v45  ;;  %v1706_v35 = vadd.f32 %v9533_v33, %v9467_v9  ;;  %v7764_v40 = vpop.eup %7763  ;;  %v1653_v58 = vmul.f32 %v1621_v0, %v9592_v27  ;;  %v1547_v22 = vpop.f32.mrf.mxu1 }
 0x28e   :  { %v7135_v14 = vpop.f32.mrf.mxu0  ;;  %v1651_v10 = vmul.f32 %v1619_v23, %v9595_v57  ;;  %v1795_v28 = vadd.f32 1.0, %v7764_v40  ;;  %v1620_v8 = vmul.f32 %v9621_v61, %v9621_v61  ;;  %7771 = vtanh.f32 %v1735_v31 }
 0x28f   :  { %v9634_v55 = vadd.f32 %v9376_v48, %v1545_v19  ;;  %v1556_v2 = vadd.f32 %v7175_v30, %v7135_v14  ;;  %v1736_v24 = vmul.f32 0.7978846, %v1704_v50  ;;  %v7766_v32 = vpop.eup %7765  ;;  %v1654_v33 = vmul.f32 %v1622_v49, %v9605_v43 }
 0x290   :  { %v1338_v60 = vpop.f32.mrf.mxu0  ;;  %v1827_v46 = vmul.f32 0.5, %v1795_v28  ;;  %v1797_v30 = vadd.f32 1.0, %v7766_v32  ;;  %7773 = vtanh.f32 %v1737_v1  ;;  %v1738_v45 = vmul.f32 0.7978846, %v1706_v35 }
 0x291   :  { %v1623_v54 = vmul.f32 %v9634_v55, %v9634_v55  ;;  %v9642_v0 = vadd.f32 %v9376_v48, %v1556_v2  ;;  %v1548_v23 = vadd.f32 %v1547_v22, %v1338_v60  ;;  %v1685_v44 = vmul.f32 0.044715, %v1653_v58 }
 0x292   :  { %v1683_v19 = vmul.f32 0.044715, %v1651_v10  ;;  %v9649_v49 = vmul.f32 %v1827_v46, %v9437_v52  ;;  %v1829_v50 = vmul.f32 0.5, %v1797_v30  ;;  %7775 = vtanh.f32 %v1736_v24 }
 0x293   :  { %v1655_v31 = vmul.f32 %v1623_v54, %v9634_v55  ;;  %v9646_v14 = vadd.f32 %v9376_v48, %v1548_v23  ;;  %v1709_v40 = vadd.f32 %v9541_v63, %v9489_v4  ;;  %v1686_v2 = vmul.f32 0.044715, %v1654_v33 }
 0x294   :  { %v1652_v28 = vmul.f32 %v1620_v8, %v9621_v61  ;;  %7777 = vtanh.f32 %v1738_v45  ;;  %v2025_v35 = vsel %vm2000_vm5, %v9649_v49, 0.0  ;;  %v9659_v48 = vmul.f32 %v1829_v50, %v9429_v17 }
 0x295   :  { %v1624_v1 = vmul.f32 %v9646_v14, %v9646_v14  ;;  %v1741_v52 = vmul.f32 0.7978846, %v1709_v40  ;;  %v1707_v58 = vadd.f32 %v9573_v41, %v9500_v5  ;;  %2026 = vadd.xlane.f32.xlu0 %v2025_v35  ;;  %v1687_v63 = vmul.f32 0.044715, %v1655_v31 }
 0x296   :  { %v7768_v10 = vpop.eup %7767  ;;  %v1710_v8 = vadd.f32 %v9575_v51, %v9509_v42  ;;  %v1676_v60 = vmul.f32 0.044715, %v9578_v6  ;;  %v2031_v24 = vsel %vm2000_vm5, %v9659_v48, 0.0  ;;  %v1713_v54 = vadd.f32 %v9588_v12, %v9531_v21 }
 0x297   :  { %v9664_v22 = vmul.f32 %v1624_v1, %v9646_v14  ;;  %v1796_v17 = vadd.f32 1.0, %v7768_v10  ;;  %7779 = vtanh.f32 %v1741_v52  ;;  %v1739_v32 = vmul.f32 0.7978846, %v1707_v58 }
 0x298   :  { %v1742_v33 = vmul.f32 0.7978846, %v1710_v8  ;;  %v1708_v41 = vadd.f32 %v1676_v60, %v9528_v11  ;;  %v1711_v23 = vadd.f32 %v9611_v62, %v9547_v34  ;;  %v1714_v51 = vadd.f32 %v1682_v7, %v9558_v47 }
 0x299   :  { %v1828_v46 = vmul.f32 0.5, %v1796_v17  ;;  %7781 = vtanh.f32 %v1739_v32  ;;  %v1680_v6 = vmul.f32 0.044715, %v9618_v25  ;;  %v7770_v30 = vpop.eup %7769  ;;  %2032 = vadd.xlane.f32.xlu0 %v2031_v24  ;;  %v1745_v31 = vmul.f32 0.7978846, %v1713_v54 }
 0x29a   :  { %7783 = vtanh.f32 %v1742_v33  ;;  %v1740_v45 = vmul.f32 0.7978846, %v1708_v41  ;;  %v1743_v50 = vmul.f32 0.7978846, %v1711_v23  ;;  %v1798_v1 = vadd.f32 1.0, %v7770_v30 }
 0x29b   :  { %v9679_v40 = vmul.f32 %v1828_v46, %v9451_v3  ;;  %v1746_v12 = vmul.f32 0.7978846, %v1714_v51  ;;  %v1712_v35 = vadd.f32 %v1680_v6, %v9565_v53  ;;  %v7772_v62 = vpop.eup %7771  ;;  %v1717_v52 = vadd.f32 %v1685_v44, %v9592_v27 }
 0x29c   :  { %7785 = vtanh.f32 %v1740_v45  ;;  %v1715_v7 = vadd.f32 %v1683_v19, %v9595_v57  ;;  %v1718_v25 = vadd.f32 %v1686_v2, %v9605_v43  ;;  %v1830_v10 = vmul.f32 0.5, %v1798_v1 }
 0x29d   :  { %v2028_v58 = vsel %vm2000_vm5, %v9679_v40, 0.0  ;;  %v1799_v8 = vadd.f32 1.0, %v7772_v62  ;;  %7787 = vtanh.f32 %v1745_v31  ;;  %v7774_v3 = vpop.eup %7773  ;;  %v1744_v60 = vmul.f32 0.7978846, %v1712_v35 }
 0x29e   :  { %2029 = vadd.xlane.f32.xlu1 %v2028_v58  ;;  %7789 = vtanh.f32 %v1743_v50  ;;  %v1749_v24 = vmul.f32 0.7978846, %v1717_v52  ;;  %v1747_v17 = vmul.f32 0.7978846, %v1715_v7  ;;  %v9688_v32 = vmul.f32 %v1830_v10, %v9444_v56 }
 0x29f   :  { %v1831_v44 = vmul.f32 0.5, %v1799_v8  ;;  %v1801_v33 = vadd.f32 1.0, %v7774_v3  ;;  %7791 = vtanh.f32 %v1746_v12  ;;  %v7776_v19 = vpop.eup %7775  ;;  %v1750_v2 = vmul.f32 0.7978846, %v1718_v25 }
 0x2a0   :  { %7793 = vtanh.f32 %v1744_v60  ;;  %v1684_v41 = vmul.f32 0.044715, %v1652_v28  ;;  %v1719_v54 = vadd.f32 %v1687_v63, %v9634_v55  ;;  %v2034_v46 = vsel %vm2000_vm5, %v9688_v32, 0.0 }
 0x2a1   :  { %v7778_v23 = vpop.eup %7777  ;;  %v9694_v51 = vmul.f32 %v1831_v44, %v9461_v15  ;;  %v1833_v6 = vmul.f32 0.5, %v1801_v33  ;;  %v1800_v30 = vadd.f32 1.0, %v7776_v19  ;;  %7795 = vtanh.f32 %v1749_v24 }
 0x2a2   :  { %2035 = vadd.xlane.f32.xlu1 %v2034_v46  ;;  %v1802_v56 = vadd.f32 1.0, %v7778_v23  ;;  %v1716_v45 = vadd.f32 %v1684_v41, %v9621_v61  ;;  %v1751_v31 = vmul.f32 0.7978846, %v1719_v54  ;;  %7797 = vtanh.f32 %v1747_v17 }
 0x2a3   :  { %v2037_v28 = vsel %vm2000_vm5, %v9694_v51, 0.0  ;;  %v9700_v63 = vmul.f32 %v1833_v6, %v9456_v13  ;;  %v1832_v50 = vmul.f32 0.5, %v1800_v30  ;;  %7799 = vtanh.f32 %v1750_v2 }
 0x2a4   :  { %v7780_v1 = vpop.eup %7779  ;;  %2038 = vadd.xlane.f32.xlu0 %v2037_v28  ;;  %v1834_v15 = vmul.f32 0.5, %v1802_v56  ;;  %v1748_v12 = vmul.f32 0.7978846, %v1716_v45  ;;  %v1688_v35 = vmul.f32 0.044715, %v9664_v22  ;;  %7801 = vtanh.f32 %v1751_v31 }
 0x2a5   :  { %v9704_v62 = vmul.f32 %v1832_v50, %v9486_v37  ;;  %v1805_v52 = vadd.f32 1.0, %v7780_v1  ;;  %v2043_v25 = vsel %vm2000_vm5, %v9700_v63, 0.0 }
 0x2a6   :  { %v7782_v7 = vpop.eup %7781  ;;  %v9709_v13 = vmul.f32 %v1834_v15, %v9467_v9  ;;  %v1720_v58 = vadd.f32 %v1688_v35, %v9646_v14  ;;  %7803 = vtanh.f32 %v1748_v12 }
 0x2a7   :  { %v7784_v10 = vpop.eup %7783  ;;  %v2040_v8 = vsel %vm2000_vm5, %v9704_v62, 0.0  ;;  %v1837_v3 = vmul.f32 0.5, %v1805_v52  ;;  %v1803_v22 = vadd.f32 1.0, %v7782_v7 }
 0x2a8   :  { %2044 = vadd.xlane.f32.xlu0 %v2043_v25  ;;  %2041 = vadd.xlane.f32.xlu1 %v2040_v8  ;;  %v1806_v37 = vadd.f32 1.0, %v7784_v10  ;;  %v1752_v60 = vmul.f32 0.7978846, %v1720_v58  ;;  %v2046_v41 = vsel %vm2000_vm5, %v9709_v13, 0.0 }
 0x2a9   :  { %v7786_v24 = vpop.eup %7785  ;;  %v9715_v17 = vmul.f32 %v1837_v3, %v9489_v4  ;;  %v1835_v44 = vmul.f32 0.5, %v1803_v22 }
 0x2aa   :  { %v7788_v9 = vpop.eup %7787  ;;  %v1838_v33 = vmul.f32 0.5, %v1806_v37  ;;  %v1804_v19 = vadd.f32 1.0, %v7786_v24  ;;  %7805 = vtanh.f32 %v1752_v60 }
 0x2ab   :  { %v7790_v2 = vpop.eup %7789  ;;  %v2055_v54 = vsel %vm2000_vm5, %v9715_v17, 0.0  ;;  %v9722_v23 = vmul.f32 %v1835_v44, %v9500_v5  ;;  %v1809_v46 = vadd.f32 1.0, %v7788_v9 }
 0x2ac   :  { %v7792_v6 = vpop.eup %7791  ;;  %2047 = vadd.xlane.f32.xlu1 %v2046_v41  ;;  %2056 = vadd.xlane.f32.xlu0 %v2055_v54  ;;  %v9725_v4 = vmul.f32 %v1838_v33, %v9509_v42  ;;  %v1836_v30 = vmul.f32 0.5, %v1804_v19  ;;  %v1807_v56 = vadd.f32 1.0, %v7790_v2 }
 0x2ad   :  { %v7794_v45 = vpop.eup %7793  ;;  %v1841_v31 = vmul.f32 0.5, %v1809_v46  ;;  %v1810_v28 = vadd.f32 1.0, %v7792_v6  ;;  %v2049_v5 = vsel %vm2000_vm5, %v9722_v23, 0.0 }
 0x2ae   :  { %v9728_v50 = vmul.f32 %v1836_v30, %v9528_v11  ;;  %v1839_v1 = vmul.f32 0.5, %v1807_v56  ;;  %v1808_v15 = vadd.f32 1.0, %v7794_v45  ;;  %v7796_v12 = vpop.eup %7795  ;;  %v2058_v35 = vsel %vm2000_vm5, %v9725_v4, 0.0 }
 0x2af   :  { %v9735_v42 = vmul.f32 %v1841_v31, %v9531_v21  ;;  %v1842_v52 = vmul.f32 0.5, %v1810_v28  ;;  %v7798_v7 = vpop.eup %7797  ;;  %v1813_v25 = vadd.f32 1.0, %v7796_v12 }
 0x2b0   :  { %2050 = vadd.xlane.f32.xlu0 %v2049_v5  ;;  %2059 = vadd.xlane.f32.xlu1 %v2058_v35  ;;  %v7800_v58 = vpop.eup %7799  ;;  %v2052_v10 = vsel %vm2000_vm5, %v9728_v50, 0.0  ;;  %v9740_v8 = vmul.f32 %v1839_v1, %v9547_v34  ;;  %v1840_v22 = vmul.f32 0.5, %v1808_v15  ;;  %v1811_v60 = vadd.f32 1.0, %v7798_v7 }
 0x2b1   :  { %v7802_v11 = vpop.eup %7801  ;;  %v9743_v3 = vmul.f32 %v1842_v52, %v9558_v47  ;;  %v2067_v21 = vsel %vm2000_vm5, %v9735_v42, 0.0  ;;  %v1845_v37 = vmul.f32 0.5, %v1813_v25  ;;  %v1814_v24 = vadd.f32 1.0, %v7800_v58 }
 0x2b2   :  { %v1815_v9 = vadd.f32 1.0, %v7802_v11  ;;  %v2061_v33 = vsel %vm2000_vm5, %v9740_v8, 0.0  ;;  %v9752_v47 = vmul.f32 %v1840_v22, %v9565_v53  ;;  %v1843_v41 = vmul.f32 0.5, %v1811_v60 }
 0x2b3   :  { %v7804_v44 = vpop.eup %7803  ;;  %v2070_v34 = vsel %vm2000_vm5, %v9743_v3, 0.0  ;;  %v9755_v2 = vmul.f32 %v1845_v37, %v9592_v27  ;;  %v1846_v54 = vmul.f32 0.5, %v1814_v24  ;;  %v1626_v7 = vmul.f32 %v9642_v0, %v9642_v0 }
 0x2b4   :  { %2053 = vadd.xlane.f32.xlu1 %v2052_v10  ;;  %2068 = vadd.xlane.f32.xlu0 %v2067_v21  ;;  %v1812_v46 = vadd.f32 1.0, %v7804_v44  ;;  %v1847_v6 = vmul.f32 0.5, %v1815_v9  ;;  %v2064_v56 = vsel %vm2000_vm5, %v9752_v47, 0.0  ;;  %v9762_v53 = vmul.f32 %v1843_v41, %v9595_v57 }
 0x2b5   :  { %v2079_v45 = vsel %vm2000_vm5, %v9755_v2, 0.0  ;;  %v9765_v31 = vmul.f32 %v1846_v54, %v9605_v43 }
 0x2b6   :  { %v1844_v27 = vmul.f32 0.5, %v1812_v46  ;;  %v9768_v28 = vmul.f32 %v1847_v6, %v9634_v55  ;;  %v2073_v15 = vsel %vm2000_vm5, %v9762_v53, 0.0 }
 0x2b7   :  { %v7806_v19 = vpop.eup %7805  ;;  %v2082_v12 = vsel %vm2000_vm5, %v9765_v31, 0.0 }
 0x2b8   :  { %2062 = vadd.xlane.f32.xlu0 %v2061_v33  ;;  %2071 = vadd.xlane.f32.xlu1 %v2070_v34  ;;  %v1816_v30 = vadd.f32 1.0, %v7806_v19  ;;  %v9775_v5 = vmul.f32 %v1844_v27, %v9621_v61  ;;  %v2085_v57 = vsel %vm2000_vm5, %v9768_v28, 0.0  ;;  %v1625_v61 = vmul.f32 %v9626_v16, %v9626_v16 }
 0x2ba   :  { %v1848_v1 = vmul.f32 0.5, %v1816_v30  ;;  %v2076_v55 = vsel %vm2000_vm5, %v9775_v5, 0.0  ;;  %v1657_v52 = vmul.f32 %v1625_v61, %v9626_v16 }
 0x2bc   :  { %2065 = vadd.xlane.f32.xlu1 %v2064_v56  ;;  %2080 = vadd.xlane.f32.xlu0 %v2079_v45  ;;  %v9780_v43 = vmul.f32 %v1848_v1, %v9646_v14  ;;  %v1689_v25 = vmul.f32 0.044715, %v1657_v52  ;;  %v1658_v14 = vmul.f32 %v1626_v7, %v9642_v0 }
 0x2be   :  { %v2088_v35 = vsel %vm2000_vm5, %v9780_v43, 0.0  ;;  %v1690_v58 = vmul.f32 0.044715, %v1658_v14  ;;  %v1721_v11 = vadd.f32 %v1689_v25, %v9626_v16 }
 0x2c0   :  { %2074 = vadd.xlane.f32.xlu0 %v2073_v15  ;;  %2083 = vadd.xlane.f32.xlu1 %v2082_v12  ;;  %v1753_v10 = vmul.f32 0.7978846, %v1721_v11  ;;  %v1722_v22 = vadd.f32 %v1690_v58, %v9642_v0 }
 0x2c2   :  { %7807 = vtanh.f32 %v1753_v10  ;;  %v1754_v24 = vmul.f32 0.7978846, %v1722_v22 }
 0x2c4   :  { %2077 = vadd.xlane.f32.xlu1 %v2076_v55  ;;  %2086 = vadd.xlane.f32.xlu0 %v2085_v57  ;;  %7809 = vtanh.f32 %v1754_v24 }
 0x2c8   :  { %2089 = vadd.xlane.f32.xlu1 %v2088_v35 }
 0x2cf   :  { %v7808_v15 = vpop.eup %7807 }
 0x2d1   :  { %v7810_v52 = vpop.eup %7809 }
 0x300   :  { %v2009_v21 = vpop.xlane.xlu1 %2008 }
 0x301   :  { %v2100_v37 = vmul.f32 0.03125, %v2009_v21  ;;  %v1818_v21 = vadd.f32 1.0, %v7810_v52 }
 0x302   :  { %v2003_v60 = vpop.xlane.xlu0 %2002 }
 0x303   :  { %v9795_v44 = vsub.f32 %v9478_v20, %v2100_v37  ;;  %v2098_v9 = vmul.f32 0.03125, %v2003_v60 }
 0x304   :  { %v2012_v33 = vpop.xlane.xlu1 %2011 }
 0x305   :  { %v9798_v34 = vsub.f32 %v9494_v26, %v2098_v9  ;;  %v2101_v19 = vmul.f32 0.03125, %v2012_v33  ;;  %v2164_v41 = vmul.f32 %v9795_v44, %v9795_v44  ;;  %v1850_v9 = vmul.f32 0.5, %v1818_v21 }
 0x306   :  { %v2006_v20 = vpop.xlane.xlu0 %2005 }
 0x307   :  { %v9803_v54 = vsub.f32 %v9505_v29, %v2101_v19  ;;  %v2200_v46 = vsel %vm2000_vm5, %v2164_v41, 0.0  ;;  %v2162_v6 = vmul.f32 %v9798_v34, %v9798_v34  ;;  %v2099_v30 = vmul.f32 0.03125, %v2006_v20 }
 0x308   :  { %2201 = vadd.xlane.f32.xlu0 %v2200_v46 }
 0x309   :  { %v2165_v26 = vmul.f32 %v9803_v54, %v9803_v54  ;;  %v9811_v56 = vsub.f32 %v9525_v38, %v2099_v30  ;;  %v2194_v45 = vsel %vm2000_vm5, %v2162_v6, 0.0  ;;  %v1817_v38 = vadd.f32 1.0, %v7808_v15 }
 0x30a   :  { %v2015_v29 = vpop.xlane.xlu0 %2014  ;;  %v9848_v6 = vmul.f32 %v1850_v9, %v9642_v0 }
 0x30b   :  { %v2203_v27 = vsel %vm2000_vm5, %v2165_v26, 0.0  ;;  %v2163_v1 = vmul.f32 %v9811_v56, %v9811_v56  ;;  %v2102_v12 = vmul.f32 0.03125, %v2015_v29  ;;  %v1849_v22 = vmul.f32 0.5, %v1817_v38 }
 0x30c   :  { %2195 = vadd.xlane.f32.xlu0 %v2194_v45  ;;  %2204 = vadd.xlane.f32.xlu1 %v2203_v27  ;;  %v2094_v26 = vsel %vm2000_vm5, %v9848_v6, 0.0 }
 0x30d   :  { %v2197_v57 = vsel %vm2000_vm5, %v2163_v1, 0.0  ;;  %v9819_v7 = vsub.f32 %v9539_v18, %v2102_v12 }
 0x30e   :  { %v2021_v55 = vpop.xlane.xlu0 %2020  ;;  %v2018_v35 = vpop.xlane.xlu1 %2017 }
 0x30f   :  { %v2104_v61 = vmul.f32 0.03125, %v2021_v55  ;;  %v2103_v14 = vmul.f32 0.03125, %v2018_v35 }
 0x310   :  { %2198 = vadd.xlane.f32.xlu1 %v2197_v57 }
 0x311   :  { %v9822_v25 = vsub.f32 %v9555_v39, %v2104_v61  ;;  %v9827_v37 = vsub.f32 %v9570_v36, %v2103_v14  ;;  %v2166_v39 = vmul.f32 %v9819_v7, %v9819_v7  ;;  %v9840_v36 = vmul.f32 %v1849_v22, %v9626_v16 }
 0x312   :  { %v2024_v58 = vpop.xlane.xlu1 %2023 }
 0x313   :  { %v2105_v11 = vmul.f32 0.03125, %v2024_v58  ;;  %v2168_v10 = vmul.f32 %v9822_v25, %v9822_v25  ;;  %v2206_v33 = vsel %vm2000_vm5, %v2166_v39, 0.0  ;;  %v2091_v41 = vsel %vm2000_vm5, %v9840_v36, 0.0 }
 0x315   :  { %v9830_v60 = vsub.f32 %v9585_v59, %v2105_v11  ;;  %v2212_v18 = vsel %vm2000_vm5, %v2168_v10, 0.0  ;;  %v2167_v59 = vmul.f32 %v9827_v37, %v9827_v37 }
 0x316   :  { %2213 = vadd.xlane.f32.xlu0 %v2212_v18 }
 0x317   :  { %v2169_v24 = vmul.f32 %v9830_v60, %v9830_v60  ;;  %v2209_v46 = vsel %vm2000_vm5, %v2167_v59, 0.0 }
 0x319   :  { %v2215_v19 = vsel %vm2000_vm5, %v2169_v24, 0.0 }
 0x31a   :  { %2207 = vadd.xlane.f32.xlu0 %v2206_v33  ;;  %2216 = vadd.xlane.f32.xlu1 %v2215_v19 }
 0x31e   :  { %v2027_v20 = vpop.xlane.xlu0 %2026  ;;  %2092 = vadd.xlane.f32.xlu0 %v2091_v41  ;;  %2210 = vadd.xlane.f32.xlu1 %v2209_v46 }
 0x31f   :  { %v2106_v30 = vmul.f32 0.03125, %v2027_v20 }
 0x321   :  { %v9851_v16 = vsub.f32 %v9649_v49, %v2106_v30 }
 0x322   :  { %v2033_v45 = vpop.xlane.xlu0 %2032  ;;  %2095 = vadd.xlane.f32.xlu1 %v2094_v26  ;;  %v49_v26 = vld [vmem:[%s12601_s2 + $0x38] sm:$0xff] }
 0x323   :  { %v2108_v27 = vmul.f32 0.03125, %v2033_v45  ;;  %v2170_v29 = vmul.f32 %v9851_v16, %v9851_v16  ;;  %v50_v45 = vld [vmem:[%s12601_s2 + $0x50] sm:$0xff] }
 0x325   :  { %v9858_v1 = vsub.f32 %v9659_v48, %v2108_v27  ;;  %v2218_v0 = vsel %vm2000_vm5, %v2170_v29, 0.0 }
 0x326   :  { %2219 = vadd.xlane.f32.xlu0 %v2218_v0  ;;  %v9903_v0 = vpack.c.bf16 %v50_v45, %v49_v26 }
 0x327   :  { %v2030_v15 = vpop.xlane.xlu1 %2029  ;;  %v2172_v49 = vmul.f32 %v9858_v1, %v9858_v1 }
 0x328   :  { %v2107_v12 = vmul.f32 0.03125, %v2030_v15  ;;  %7176 = vmatprep.subr.bf16.mxu0 %v9903_v0 }
 0x329   :  { %v2224_v55 = vsel %vm2000_vm5, %v2172_v49, 0.0  ;;  %7177 = vmatpush3.bf16.msra.mxu0 %v9903_v0 }
 0x32a   :  { %v9864_v57 = vsub.f32 %v9679_v40, %v2107_v12  ;;  %2225 = vadd.xlane.f32.xlu0 %v2224_v55 }
 0x32b   :  { %v2036_v35 = vpop.xlane.xlu1 %2035 }
 0x32c   :  { %v2109_v61 = vmul.f32 0.03125, %v2036_v35  ;;  %v2171_v48 = vmul.f32 %v9864_v57, %v9864_v57 }
 0x32d   :  { %v2039_v38 = vpop.xlane.xlu0 %2038 }
 0x32e   :  { %v9870_v52 = vsub.f32 %v9688_v32, %v2109_v61  ;;  %v2110_v14 = vmul.f32 0.03125, %v2039_v38  ;;  %v2221_v58 = vsel %vm2000_vm5, %v2171_v48, 0.0 }
 0x32f   :  { %2222 = vadd.xlane.f32.xlu1 %v2221_v58 }
 0x330   :  { %v9874_v11 = vsub.f32 %v9694_v51, %v2110_v14  ;;  %v2173_v40 = vmul.f32 %v9870_v52, %v9870_v52 }
 0x331   :  { %v2045_v10 = vpop.xlane.xlu0 %2044  ;;  %v2042_v22 = vpop.xlane.xlu1 %2041 }
 0x332   :  { %v2112_v21 = vmul.f32 0.03125, %v2045_v10  ;;  %v2111_v18 = vmul.f32 0.03125, %v2042_v22  ;;  %v2174_v39 = vmul.f32 %v9874_v11, %v9874_v11  ;;  %v2227_v32 = vsel %vm2000_vm5, %v2173_v40, 0.0 }
 0x333   :  { %2228 = vadd.xlane.f32.xlu1 %v2227_v32 }
 0x334   :  { %v9882_v24 = vsub.f32 %v9700_v63, %v2112_v21  ;;  %v9885_v9 = vsub.f32 %v9704_v62, %v2111_v18  ;;  %v2230_v51 = vsel %vm2000_vm5, %v2174_v39, 0.0 }
 0x335   :  { %v2048_v33 = vpop.xlane.xlu1 %2047  ;;  %v2057_v19 = vpop.xlane.xlu0 %2056  ;;  %2231 = vadd.xlane.f32.xlu0 %v2230_v51 }
 0x336   :  { %v2113_v59 = vmul.f32 0.03125, %v2048_v33  ;;  %v2176_v41 = vmul.f32 %v9882_v24, %v9882_v24  ;;  %v2175_v46 = vmul.f32 %v9885_v9, %v9885_v9  ;;  %v2116_v20 = vmul.f32 0.03125, %v2057_v19 }
 0x338   :  { %v9893_v30 = vsub.f32 %v9709_v13, %v2113_v59  ;;  %v2236_v63 = vsel %vm2000_vm5, %v2176_v41, 0.0  ;;  %v2233_v62 = vsel %vm2000_vm5, %v2175_v46, 0.0  ;;  %v9908_v12 = vsub.f32 %v9715_v17, %v2116_v20  ;;  %v47_v46 = vld [vmem:[%s12601_s2 + $0x8] sm:$0xff] }
 0x339   :  { %v2051_v27 = vpop.xlane.xlu0 %2050  ;;  %v2060_v29 = vpop.xlane.xlu1 %2059  ;;  %2237 = vadd.xlane.f32.xlu0 %v2236_v63  ;;  %2234 = vadd.xlane.f32.xlu1 %v2233_v62 }
 0x33a   :  { %v2114_v13 = vmul.f32 0.03125, %v2051_v27  ;;  %v2177_v15 = vmul.f32 %v9893_v30, %v9893_v30  ;;  %v2117_v55 = vmul.f32 0.03125, %v2060_v29  ;;  %v2180_v17 = vmul.f32 %v9908_v12, %v9908_v12 }
 0x33c   :  { %v9912_v49 = vsub.f32 %v9722_v23, %v2114_v13  ;;  %v2239_v35 = vsel %vm2000_vm5, %v2177_v15, 0.0  ;;  %v9921_v58 = vsub.f32 %v9725_v4, %v2117_v55  ;;  %v2248_v51 = vsel %vm2000_vm5, %v2180_v17, 0.0 }
 0x33d   :  { %v2054_v61 = vpop.xlane.xlu1 %2053  ;;  %v2069_v48 = vpop.xlane.xlu0 %2068  ;;  %2240 = vadd.xlane.f32.xlu1 %v2239_v35 }
 0x33e   :  { %v2115_v38 = vmul.f32 0.03125, %v2054_v61  ;;  %v2178_v14 = vmul.f32 %v9912_v49, %v9912_v49  ;;  %v2120_v40 = vmul.f32 0.03125, %v2069_v48  ;;  %v2181_v19 = vmul.f32 %v9921_v58, %v9921_v58 }
 0x340   :  { %v9924_v23 = vsub.f32 %v9728_v50, %v2115_v38  ;;  %v2242_v10 = vsel %vm2000_vm5, %v2178_v14, 0.0  ;;  %v9931_v33 = vsub.f32 %v9735_v42, %v2120_v40  ;;  %v48_v42 = vld [vmem:[%s12601_s2 + $0x20] sm:$0xff]  ;;  %v2251_v29 = vsel %vm2000_vm5, %v2181_v19, 0.0 }
 0x341   :  { %v2063_v22 = vpop.xlane.xlu0 %2062  ;;  %v2072_v21 = vpop.xlane.xlu1 %2071  ;;  %2243 = vadd.xlane.f32.xlu0 %v2242_v10  ;;  %v9950_v26 = vpack.c.bf16 %v48_v42, %v47_v46 }
 0x342   :  { %v2118_v18 = vmul.f32 0.03125, %v2063_v22  ;;  %v2179_v39 = vmul.f32 %v9924_v23, %v9924_v23  ;;  %v2121_v32 = vmul.f32 0.03125, %v2072_v21  ;;  %v2184_v13 = vmul.f32 %v9931_v33, %v9931_v33 }
 0x343   :  { %7178 = vmatprep.subr.bf16.mxu0 %v9950_v26 }
 0x344   :  { %v9934_v4 = vsub.f32 %v9740_v8, %v2118_v18  ;;  %v2245_v50 = vsel %vm2000_vm5, %v2179_v39, 0.0  ;;  %v9948_v63 = vsub.f32 %v9743_v3, %v2121_v32  ;;  %7179 = vmatpush3.bf16.msra.mxu0 %v9950_v26  ;;  %v2260_v14 = vsel %vm2000_vm5, %v2184_v13, 0.0 }
 0x345   :  { %v2066_v59 = vpop.xlane.xlu1 %2065  ;;  %v2081_v41 = vpop.xlane.xlu0 %2080  ;;  %2249 = vadd.xlane.f32.xlu0 %v2248_v51  ;;  %2246 = vadd.xlane.f32.xlu1 %v2245_v50 }
 0x346   :  { %v2119_v20 = vmul.f32 0.03125, %v2066_v59  ;;  %v2182_v8 = vmul.f32 %v9934_v4, %v9934_v4  ;;  %v2124_v62 = vmul.f32 0.03125, %v2081_v41  ;;  %v2185_v61 = vmul.f32 %v9948_v63, %v9948_v63 }
 0x348   :  { %v9953_v45 = vsub.f32 %v9752_v47, %v2119_v20  ;;  %v2254_v27 = vsel %vm2000_vm5, %v2182_v8, 0.0  ;;  %v9963_v47 = vsub.f32 %v9755_v2, %v2124_v62  ;;  %v2263_v18 = vsel %vm2000_vm5, %v2185_v61, 0.0 }
 0x349   :  { %v2075_v15 = vpop.xlane.xlu0 %2074  ;;  %v2084_v55 = vpop.xlane.xlu1 %2083  ;;  %2255 = vadd.xlane.f32.xlu0 %v2254_v27  ;;  %2252 = vadd.xlane.f32.xlu1 %v2251_v29  ;;  %v8235_v27 = vmov 0  }
 0x34a   :  { %v2122_v35 = vmul.f32 0.03125, %v2075_v15  ;;  %v2183_v3 = vmul.f32 %v9953_v45, %v9953_v45  ;;  %v2125_v38 = vmul.f32 0.03125, %v2084_v55  ;;  %7603 = vset.pattern.permute.xlu1 %v8235_v27  ;;  %7597 = vset.pattern.permute.xlu0 %v8235_v27  ;;  %v10010_v27 = vld [vmem:[%s12603_s4 + $0x12] ss:$0 sm:$0xff] }
 0x34c   :  { %v9969_v48 = vsub.f32 %v9762_v53, %v2122_v35  ;;  %v2257_v17 = vsel %vm2000_vm5, %v2183_v3, 0.0  ;;  %v2188_v53 = vmul.f32 %v9963_v47, %v9963_v47  ;;  %v9979_v39 = vsub.f32 %v9765_v31, %v2125_v38 }
 0x34d   :  { %v2078_v40 = vpop.xlane.xlu1 %2077  ;;  %v2087_v10 = vpop.xlane.xlu0 %2086  ;;  %2261 = vadd.xlane.f32.xlu0 %v2260_v14  ;;  %2258 = vadd.xlane.f32.xlu1 %v2257_v17 }
 0x34e   :  { %v2123_v22 = vmul.f32 0.03125, %v2078_v40  ;;  %v2126_v2 = vmul.f32 0.03125, %v2087_v10  ;;  %v2186_v21 = vmul.f32 %v9969_v48, %v9969_v48  ;;  %v2272_v46 = vsel %vm2000_vm5, %v2188_v53, 0.0 }
 0x34f   :  { %v2189_v42 = vmul.f32 %v9979_v39, %v9979_v39 }
 0x350   :  { %v9982_v32 = vsub.f32 %v9775_v5, %v2123_v22  ;;  %v9985_v51 = vsub.f32 %v9768_v28, %v2126_v2  ;;  %v2266_v50 = vsel %vm2000_vm5, %v2186_v21, 0.0 }
 0x351   :  { %v2090_v19 = vpop.xlane.xlu1 %2089  ;;  %2267 = vadd.xlane.f32.xlu0 %v2266_v50  ;;  %2264 = vadd.xlane.f32.xlu1 %v2263_v18  ;;  %v2275_v8 = vsel %vm2000_vm5, %v2189_v42, 0.0 }
 0x352   :  { %v2127_v59 = vmul.f32 0.03125, %v2090_v19  ;;  %v2187_v41 = vmul.f32 %v9982_v32, %v9982_v32  ;;  %v2190_v28 = vmul.f32 %v9985_v51, %v9985_v51 }
 0x354   :  { %v9992_v31 = vsub.f32 %v9780_v43, %v2127_v59  ;;  %v2269_v5 = vsel %vm2000_vm5, %v2187_v41, 0.0  ;;  %v2278_v20 = vsel %vm2000_vm5, %v2190_v28, 0.0 }
 0x355   :  { %2273 = vadd.xlane.f32.xlu0 %v2272_v46  ;;  %2270 = vadd.xlane.f32.xlu1 %v2269_v5 }
 0x356   :  { %v2191_v62 = vmul.f32 %v9992_v31, %v9992_v31 }
 0x358   :  { %v2281_v43 = vsel %vm2000_vm5, %v2191_v62, 0.0 }
 0x359   :  { %2279 = vadd.xlane.f32.xlu0 %v2278_v20  ;;  %2276 = vadd.xlane.f32.xlu1 %v2275_v8 }
 0x35d   :  { %2282 = vadd.xlane.f32.xlu1 %v2281_v43 }
 0x391   :  { %v2202_v29 = vpop.xlane.xlu0 %2201 }
 0x392   :  { %v2292_v13 = vmul.f32 0.03125, %v2202_v29 }
 0x394   :  { %v2324_v15 = vadd.f32 1e-05, %v2292_v13 }
 0x395   :  { %v2196_v55 = vpop.xlane.xlu0 %2195  ;;  %v2205_v35 = vpop.xlane.xlu1 %2204 }
 0x396   :  { %v2290_v3 = vmul.f32 0.03125, %v2196_v55  ;;  %v2293_v61 = vmul.f32 0.03125, %v2205_v35  ;;  %7811 = vrsqrt.f32 %v2324_v15 }
 0x398   :  { %v2322_v38 = vadd.f32 1e-05, %v2290_v3  ;;  %v2325_v14 = vadd.f32 1e-05, %v2293_v61 }
 0x399   :  { %v2199_v17 = vpop.xlane.xlu1 %2198 }
 0x39a   :  { %7813 = vrsqrt.f32 %v2322_v38  ;;  %v2291_v40 = vmul.f32 0.03125, %v2199_v17  ;;  %v12629_v38 = vlaneseq }
 0x39b   :  { %7815 = vrsqrt.f32 %v2325_v14 }
 0x39c   :  { %v2323_v10 = vadd.f32 1e-05, %v2291_v40 }
 0x39e   :  { %7817 = vrsqrt.f32 %v2323_v10 }
 0x39f   :  { %v2214_v22 = vpop.xlane.xlu0 %2213 }
 0x3a0   :  { %v2296_v2 = vmul.f32 0.03125, %v2214_v22 }
 0x3a2   :  { %v2328_v21 = vadd.f32 1e-05, %v2296_v2 }
 0x3a3   :  { %v2208_v18 = vpop.xlane.xlu0 %2207  ;;  %v2217_v53 = vpop.xlane.xlu1 %2216 }
 0x3a4   :  { %v7812_v50 = vpop.eup %7811  ;;  %v2294_v19 = vmul.f32 0.03125, %v2208_v18  ;;  %v2297_v59 = vmul.f32 0.03125, %v2217_v53  ;;  %7819 = vrsqrt.f32 %v2328_v21 }
 0x3a5   :  { %v2388_v20 = vmul.f32 %v7812_v50, %v9795_v44  ;;  %v10036_v50 = vshrl.u32 %v12629_v38, 7 }
 0x3a6   :  { %v2326_v5 = vadd.f32 1e-05, %v2294_v19  ;;  %v2329_v28 = vadd.f32 1e-05, %v2297_v59 }
 0x3a7   :  { %v7814_v41 = vpop.eup %7813  ;;  %v2093_v62 = vpop.xlane.xlu0 %2092  ;;  %v2424_v3 = vmul.f32 %v10010_v27, %v2388_v20  ;;  %v10051_v20 = vstv %s1900_s26 }
 0x3a8   :  { %v7816_v46 = vpop.eup %7815  ;;  %v2386_v42 = vmul.f32 %v7814_v41, %v9798_v34  ;;  %v2211_v43 = vpop.xlane.xlu1 %2210  ;;  %7821 = vrsqrt.f32 %v2326_v5  ;;  %v2128_v29 = vmul.f32 0.03125, %v2093_v62  ;;  %v10044_v5 = vadd.s32 32, %v10036_v50 }
 0x3a9   :  { %v2389_v8 = vmul.f32 %v7816_v46, %v9803_v54  ;;  %v2295_v13 = vmul.f32 0.03125, %v2211_v43  ;;  %7823 = vrsqrt.f32 %v2329_v28  ;;  %v10041_v46 = vadd.s32 16, %v10036_v50 }
 0x3aa   :  { %v10014_v34 = vsub.f32 %v9840_v36, %v2128_v29  ;;  %v2422_v35 = vmul.f32 %v10010_v27, %v2386_v42  ;;  %v10024_v36 = vld [vmem:[%s12603_s4 + $0x13] ss:$0 sm:$0xff]  ;;  %v10049_v42 = vadd.s32 24, %v10036_v50  ;;  %vm1906_vm8 = vcmp.lt.s32.totalorder %v10044_v5, %v10051_v20 }
 0x3ab   :  { %v7818_v15 = vpop.eup %7817  ;;  %v2425_v55 = vmul.f32 %v10010_v27, %v2389_v8  ;;  %v2327_v44 = vadd.f32 1e-05, %v2295_v13  ;;  %v2460_v53 = vadd.f32 %v10024_v36, %v2424_v3  ;;  %v10054_v8 = vadd.s32 40, %v10036_v50 }
 0x3ac   :  { %12722 = vst [vmem:[#allocation16_spill] sm:$0xff] %v10014_v34  ;;  %v2387_v54 = vmul.f32 %v7818_v15, %v9811_v56  ;;  %v2096_v61 = vpop.xlane.xlu1 %2095  ;;  %v2192_v17 = vmul.f32 %v10014_v34, %v10014_v34  ;;  %v2458_v2 = vadd.f32 %v10024_v36, %v2422_v35  ;;  %vm1904_vm6 = vcmp.lt.s32.totalorder %v10041_v46, %v10051_v20 }
 0x3ad   :  { %7825 = vrsqrt.f32 %v2327_v44  ;;  %v2129_v14 = vmul.f32 0.03125, %v2096_v61  ;;  %v2461_v56 = vadd.f32 %v10024_v36, %v2425_v55  ;;  %vm1905_vm7 = vcmp.lt.s32.totalorder %v10049_v42, %v10051_v20 }
 0x3ae   :  { %v2423_v40 = vmul.f32 %v10010_v27, %v2387_v54  ;;  %v2284_v22 = vsel %vm2000_vm5, %v2192_v17, 0.0  ;;  %v10062_v15 = vadd.s32 8, %v10036_v50  ;;  %v10067_v44 = vadd.s32 48, %v10036_v50 }
 0x3af   :  { %v10029_v10 = vsub.f32 %v9848_v6, %v2129_v14  ;;  %v2220_v18 = vpop.xlane.xlu0 %2219  ;;  %2285 = vadd.xlane.f32.xlu0 %v2284_v22  ;;  %v2491_v6 = vpack.c.bf16 %v2461_v56, %v2460_v53  ;;  %v10070_v54 = vadd.s32 56, %v10036_v50  ;;  %v12724_v14 = vmov 0.0  }
 0x3b0   :  { %v2459_v21 = vadd.f32 %v10024_v36, %v2423_v40  ;;  %v2298_v19 = vmul.f32 0.03125, %v2220_v18  ;;  %v10076_v17 = vsel %vm1904_vm6, 1.0, %v12724_v14  ;;  %vm1907_vm9 = vcmp.lt.s32.totalorder %v10054_v8, %v10051_v20 }
 0x3b1   :  { %12723 = vst [vmem:[#allocation19_spill] sm:$0xff] %v10029_v10  ;;  %v2193_v59 = vmul.f32 %v10029_v10, %v10029_v10  ;;  %v7820_v29 = vpop.eup %7819  ;;  %vm1902_vm10 = vcmp.lt.s32.totalorder %v10036_v50, %v10051_v20  ;;  %vm1903_vm11 = vcmp.lt.s32.totalorder %v10062_v15, %v10051_v20  ;;  %v10095_v18 = vadd.s32 112, %v10036_v50 }
 0x3b2   :  { %v2490_v41 = vpack.c.bf16 %v2459_v21, %v2458_v2  ;;  %v2330_v62 = vadd.f32 1e-05, %v2298_v19  ;;  %v2392_v40 = vmul.f32 %v7820_v29, %v9822_v25  ;;  %v6529_v2 = vsel %vm1905_vm7, 1.0, %v12724_v14 }
 0x3b3   :  { %v2287_v28 = vsel %vm2000_vm5, %v2193_v59, 0.0  ;;  %v2226_v43 = vpop.xlane.xlu0 %2225  ;;  %v10098_v53 = vadd.s32 120, %v10036_v50  ;;  %v6527_v29 = vsel %vm1903_vm11, 1.0, %v12724_v14  ;;  %vm1908_vm12 = vcmp.lt.s32.totalorder %v10067_v44, %v10051_v20 }
 0x3b4   :  { %7180 = vmatprep.mubr.msk.bf16.mxu0 %vm2000_vm5, %v2490_v41  ;;  %2288 = vadd.xlane.f32.xlu1 %v2287_v28  ;;  %v2300_v13 = vmul.f32 0.03125, %v2226_v43  ;;  %7827 = vrsqrt.f32 %v2330_v62  ;;  %v2428_v62 = vmul.f32 %v10010_v27, %v2392_v40  ;;  %v6526_v43 = vsel %vm1902_vm10, 1.0, %v12724_v14 }
 0x3b5   :  { %7181 = vmatmul.mubr.msk.bf16.vlgmr.msra.gmra.mxu0 %vm2000_vm5, %v2491_v6  ;;  %v7822_v55 = vpop.eup %7821  ;;  %v10106_v6 = vsel %vm1907_vm9, 1.0, %v12724_v14  ;;  %vm1909_vm13 = vcmp.lt.s32.totalorder %v10070_v54, %v10051_v20  ;;  %vm1916_vm14 = vcmp.lt.s32.totalorder %v10095_v18, %v10051_v20  ;;  %vm1917_vm15 = vcmp.lt.s32.totalorder %v10098_v53, %v10051_v20 }
 0x3b6   :  { %v7824_v35 = vpop.eup %7823  ;;  %v2332_v3 = vadd.f32 1e-05, %v2300_v13  ;;  %v2390_v61 = vmul.f32 %v7822_v55, %v9819_v7  ;;  %v10087_v7 = vsel %vm1906_vm8, 1.0, %v12724_v14 }
 0x3b7   :  { %v2393_v56 = vmul.f32 %v7824_v35, %v9830_v60 }
 0x3b8   :  { %v2223_v22 = vpop.xlane.xlu1 %2222  ;;  %7829 = vrsqrt.f32 %v2332_v3  ;;  %v2426_v41 = vmul.f32 %v10010_v27, %v2390_v61  ;;  %v10122_v3 = vstv %s10072_s28 }
 0x3b9   :  { %v2299_v21 = vmul.f32 0.03125, %v2223_v22  ;;  %v2429_v60 = vmul.f32 %v10010_v27, %v2393_v56  ;;  %vm1954_vm0 = vcmp.lt.s32.totalorder %v10041_v46, %v10122_v3  ;;  %vm1955_vm1 = vcmp.lt.s32.totalorder %v10049_v42, %v10122_v3 }
 0x3ba   :  { %v7826_v25 = vpop.eup %7825  ;;  %v2462_v56 = vadd.f32 %v10024_v36, %v2426_v41  ;;  %v10138_v41 = vsel %vm1909_vm13, 1.0, %v12724_v14  ;;  %v1894_v42 = vadd.s32 80, %v10036_v50  ;;  %vm1958_vm2 = vcmp.lt.s32.totalorder %v10067_v44, %v10122_v3 }
 0x3bb   :  { %v2331_v19 = vadd.f32 1e-05, %v2299_v21  ;;  %v2391_v59 = vmul.f32 %v7826_v25, %v9827_v37  ;;  %v2465_v35 = vadd.f32 %v10024_v36, %v2429_v60  ;;  %v2464_v21 = vadd.f32 %v10024_v36, %v2428_v62 }
 0x3bc   :  { %v2229_v28 = vpop.xlane.xlu1 %2228  ;;  %v7604_v25 = vpack.i.bf16 %v6529_v2, %v10076_v17  ;;  %v10132_v60 = vsel %vm1908_vm12, 1.0, %v12724_v14  ;;  %v6540_v17 = vsel %vm1916_vm14, 1.0, %v12724_v14  ;;  %v6541_v2 = vsel %vm1917_vm15, 1.0, %v12724_v14 }
 0x3bd   :  { %7831 = vrsqrt.f32 %v2331_v19  ;;  %v2301_v37 = vmul.f32 0.03125, %v2229_v28  ;;  %v2427_v13 = vmul.f32 %v10010_v27, %v2391_v59  ;;  %v7598_v19 = vpack.i.bf16 %v6527_v29, %v6526_v43 }
 0x3be   :  { %v2232_v55 = vpop.xlane.xlu0 %2231  ;;  %vm1959_vm3 = vcmp.lt.s32.totalorder %v10070_v54, %v10122_v3  ;;  %v10179_v46 = vadd.s32 96, %v10036_v50  ;;  %vm1912_vm7 = vcmp.lt.s32.totalorder %v1894_v42, %v10051_v20  ;;  %vm1962_vm8 = vcmp.lt.s32.totalorder %v1894_v42, %v10122_v3 }
 0x3bf   :  { %v2302_v61 = vmul.f32 0.03125, %v2232_v55  ;;  %v2333_v40 = vadd.f32 1e-05, %v2301_v37  ;;  %v2463_v22 = vadd.f32 %v10024_v36, %v2427_v13  ;;  %v2493_v13 = vpack.c.bf16 %v2465_v35, %v2464_v21 }
 0x3c0   :  { %v10162_v21 = vadd.s32 72, %v10036_v50  ;;  %vm1914_vm11 = vcmp.lt.s32.totalorder %v10179_v46, %v10051_v20  ;;  %vm1952_vm13 = vcmp.lt.s32.totalorder %v10036_v50, %v10122_v3  ;;  %vm1953_vm14 = vcmp.lt.s32.totalorder %v10062_v15, %v10122_v3 }
 0x3c1   :  { %v2334_v59 = vadd.f32 1e-05, %v2302_v61  ;;  %7833 = vrsqrt.f32 %v2333_v40  ;;  %v2492_v28 = vpack.c.bf16 %v2463_v22, %v2462_v56  ;;  %v10159_v61 = vadd.s32 64, %v10036_v50  ;;  %v7828_v40 = vpop.eup %7827 }
 0x3c2   :  { %v2238_v37 = vpop.xlane.xlu0 %2237  ;;  %v2235_v62 = vpop.xlane.xlu1 %2234  ;;  %vm1911_vm6 = vcmp.lt.s32.totalorder %v10162_v21, %v10051_v20  ;;  %vm1956_vm15 = vcmp.lt.s32.totalorder %v10044_v5, %v10122_v3 }
 0x3c3   :  { %7835 = vrsqrt.f32 %v2334_v59  ;;  %v2304_v43 = vmul.f32 0.03125, %v2238_v37  ;;  %v2303_v29 = vmul.f32 0.03125, %v2235_v62  ;;  %7184 = vmatprep.mubr.msk.bf16.mxu0 %vm2000_vm5, %v2492_v28  ;;  %v7634_v28 = vpack.i.bf16 %v6541_v2, %v6540_v17 }
 0x3c4   :  { %7185 = vmatmul.mubr.msk.bf16.gmra.mxu0 %vm2000_vm5, %v2493_v13  ;;  %v6545_v37 = vsel %vm1954_vm0, 1.0, %v12724_v14  ;;  %v6546_v62 = vsel %vm1955_vm1, 1.0, %v12724_v14  ;;  %v1895_v13 = vadd.s32 88, %v10036_v50  ;;  %vm1910_vm4 = vcmp.lt.s32.totalorder %v10159_v61, %v10051_v20 }
 0x3c5   :  { %v2336_v56 = vadd.f32 1e-05, %v2304_v43  ;;  %v2335_v22 = vadd.f32 1e-05, %v2303_v29  ;;  %7605 = vperm.xlu1 %7603, %v7604_v25   ;;  %7599 = vperm.xlu0 %7597, %v7598_v19   ;;  %v7830_v43 = vpop.eup %7829  ;;  %v2394_v19 = vmul.f32 %v7828_v40, %v9851_v16  ;;  %v7644_v2 = vpack.i.bf16 %v6546_v62, %v6545_v37 }
 0x3c6   :  { %v2241_v59 = vpop.xlane.xlu1 %2240  ;;  %v6549_v40 = vsel %vm1958_vm2, 1.0, %v12724_v14  ;;  %vm1963_vm9 = vcmp.lt.s32.totalorder %v1895_v13, %v10122_v3  ;;  %v10202_v44 = vsel %vm1910_vm4, 1.0, %v12724_v14  ;;  %v10208_v54 = vsel %vm1911_vm6, 1.0, %v12724_v14 }
 0x3c7   :  { %7837 = vrsqrt.f32 %v2336_v56  ;;  %v2305_v25 = vmul.f32 0.03125, %v2241_v59  ;;  %v2396_v56 = vmul.f32 %v7830_v43, %v9858_v1  ;;  %v2430_v1 = vmul.f32 %v10010_v27, %v2394_v19 }
 0x3c8   :  { %7839 = vrsqrt.f32 %v2335_v22  ;;  %v6550_v22 = vsel %vm1959_vm3, 1.0, %v12724_v14  ;;  %vm1913_vm10 = vcmp.lt.s32.totalorder %v1895_v13, %v10051_v20  ;;  %v10216_v62 = vsel %vm1912_vm7, 1.0, %v12724_v14 }
 0x3c9   :  { %v2337_v17 = vadd.f32 1e-05, %v2305_v25  ;;  %3156 = vrot.lane.b32.xlu1 %v9903_v0, %s8236_s29  ;;  %7635 = vperm.xlu0 %7597, %v7634_v28   ;;  %v10219_v43 = vadd.s32 104, %v10036_v50  ;;  %v2466_v34 = vadd.f32 %v10024_v36, %v2430_v1  ;;  %vm1957_vm0 = vcmp.lt.s32.totalorder %v10054_v8, %v10122_v3 }
 0x3ca   :  { %v7832_v29 = vpop.eup %7831  ;;  %v2244_v16 = vpop.xlane.xlu0 %2243  ;;  %vm1960_vm1 = vcmp.lt.s32.totalorder %v10159_v61, %v10122_v3  ;;  %vm1961_vm2 = vcmp.lt.s32.totalorder %v10162_v21, %v10122_v3  ;;  %vm1964_vm3 = vcmp.lt.s32.totalorder %v10179_v46, %v10122_v3  ;;  %vm1966_vm6 = vcmp.lt.s32.totalorder %v10095_v18, %v10122_v3 }
 0x3cb   :  { %v2306_v59 = vmul.f32 0.03125, %v2244_v16  ;;  %7841 = vrsqrt.f32 %v2337_v17  ;;  %v2395_v37 = vmul.f32 %v7832_v29, %v9864_v57  ;;  %v2432_v29 = vmul.f32 %v10010_v27, %v2396_v56 }
 0x3cc   :  { %v7654_v16 = vpack.i.bf16 %v6550_v22, %v6549_v40  ;;  %v12725_v22 = vpack.i.bf16 %v10106_v6, %v10087_v7  ;;  %vm1915_vm12 = vcmp.lt.s32.totalorder %v10219_v43, %v10051_v20  ;;  %v7619_v7 = vpack.i.bf16 %v10208_v54, %v10202_v44 }
 0x3cd   :  { %v2338_v28 = vadd.f32 1e-05, %v2306_v59  ;;  %v2431_v57 = vmul.f32 %v10010_v27, %v2395_v37  ;;  %3154 = vrot.lane.b32.xlu1 %v9950_v26, %s8236_s29  ;;  %7645 = vperm.xlu0 %7597, %v7644_v2   ;;  %v6553_v59 = vsel %vm1962_vm8, 1.0, %v12724_v14  ;;  %v6554_v37 = vsel %vm1963_vm9, 1.0, %v12724_v14 }
 0x3ce   :  { %v7834_v25 = vpop.eup %7833  ;;  %v2250_v19 = vpop.xlane.xlu0 %2249  ;;  %v10234_v2 = vsel %vm1913_vm10, 1.0, %v12724_v14  ;;  %v2468_v13 = vadd.f32 %v10024_v36, %v2432_v29  ;;  %v12726_v44 = vpack.i.bf16 %v10138_v41, %v10132_v60  ;;  %v6551_v8 = vsel %vm1960_vm1, 1.0, %v12724_v14 }
 0x3cf   :  { %v2247_v17 = vpop.xlane.xlu1 %2246  ;;  %v2397_v38 = vmul.f32 %v7834_v25, %v9870_v52  ;;  %7843 = vrsqrt.f32 %v2338_v28  ;;  %v2308_v35 = vmul.f32 0.03125, %v2250_v19  ;;  %v2467_v56 = vadd.f32 %v10024_v36, %v2431_v57 }
 0x3d0   :  { %v2307_v55 = vmul.f32 0.03125, %v2247_v17  ;;  %v7836_v10 = vpop.eup %7835  ;;  %v7664_v19 = vpack.i.bf16 %v6554_v37, %v6553_v59  ;;  %v6552_v21 = vsel %vm1961_vm2, 1.0, %v12724_v14  ;;  %vm1965_vm4 = vcmp.lt.s32.totalorder %v10219_v43, %v10122_v3 }
 0x3d1   :  { %v2340_v42 = vadd.f32 1e-05, %v2308_v35  ;;  %v2433_v52 = vmul.f32 %v10010_v27, %v2397_v38  ;;  %7610 = vperm.xlu1 %7603, %v12725_v22   ;;  %v2494_v57 = vpack.c.bf16 %v2467_v56, %v2466_v34  ;;  %v2398_v25 = vmul.f32 %v7836_v10, %v9874_v11  ;;  %7655 = vperm.xlu0 %7597, %v7654_v16  }
 0x3d2   :  { %v2339_v40 = vadd.f32 1e-05, %v2307_v55  ;;  %v2256_v1 = vpop.xlane.xlu0 %2255  ;;  %v10254_v34 = vsel %vm1914_vm11, 1.0, %v12724_v14  ;;  %v10260_v11 = vsel %vm1915_vm12, 1.0, %v12724_v14  ;;  %v6556_v43 = vsel %vm1965_vm4, 1.0, %v12724_v14 }
 0x3d3   :  { %v2253_v28 = vpop.xlane.xlu1 %2252  ;;  %7845 = vrsqrt.f32 %v2340_v42  ;;  %v2310_v55 = vmul.f32 0.03125, %v2256_v1  ;;  %v2469_v38 = vadd.f32 %v10024_v36, %v2433_v52  ;;  %7188 = vmatprep.mubr.msk.bf16.mxu0 %vm2000_vm5, %v2494_v57  ;;  %v2434_v42 = vmul.f32 %v10010_v27, %v2398_v25 }
 0x3d4   :  { %v2309_v35 = vmul.f32 0.03125, %v2253_v28  ;;  %v7838_v17 = vpop.eup %7837  ;;  %7847 = vrsqrt.f32 %v2339_v40  ;;  %v7624_v40 = vpack.i.bf16 %v10234_v2, %v10216_v62  ;;  %v7629_v62 = vpack.i.bf16 %v10260_v11, %v10254_v34 }
 0x3d5   :  { %v7840_v10 = vpop.eup %7839  ;;  %v2400_v6 = vmul.f32 %v7838_v17, %v9882_v24  ;;  %v2342_v29 = vadd.f32 1e-05, %v2310_v55  ;;  %v2495_v59 = vpack.c.bf16 %v2469_v38, %v2468_v13  ;;  %7615 = vperm.xlu1 %7603, %v12726_v44   ;;  %7665 = vperm.xlu0 %7597, %v7664_v19   ;;  %v6543_v1 = vsel %vm1952_vm13, 1.0, %v12724_v14 }
 0x3d6   :  { %v2341_v16 = vadd.f32 1e-05, %v2309_v35  ;;  %v2262_v54 = vpop.xlane.xlu0 %2261  ;;  %v2399_v56 = vmul.f32 %v7840_v10, %v9885_v9  ;;  %v2470_v15 = vadd.f32 %v10024_v36, %v2434_v42  ;;  %v6544_v25 = vsel %vm1953_vm14, 1.0, %v12724_v14 }
 0x3d7   :  { %v2259_v37 = vpop.xlane.xlu1 %2258  ;;  %7849 = vrsqrt.f32 %v2342_v29  ;;  %v2312_v24 = vmul.f32 0.03125, %v2262_v54  ;;  %7189 = vmatmul.mubr.msk.bf16.gmra.mxu0 %vm2000_vm5, %v2495_v59  ;;  %v2436_v41 = vmul.f32 %v10010_v27, %v2400_v6  ;;  %vm1967_vm7 = vcmp.lt.s32.totalorder %v10098_v53, %v10122_v3 }
 0x3d8   :  { %v2311_v52 = vmul.f32 0.03125, %v2259_v37  ;;  %v7842_v60 = vpop.eup %7841  ;;  %7851 = vrsqrt.f32 %v2341_v16  ;;  %v2435_v9 = vmul.f32 %v10010_v27, %v2399_v56  ;;  %v7639_v37 = vpack.i.bf16 %v6544_v25, %v6543_v1 }
 0x3d9   :  { %v2401_v2 = vmul.f32 %v7842_v60, %v9893_v30  ;;  %v2344_v50 = vadd.f32 1e-05, %v2312_v24  ;;  %7620 = vperm.xlu1 %7603, %v7619_v7   ;;  %2937 = vrot.lane.b32.xlu0 %v9903_v0, %s8237_s30  ;;  %v2472_v17 = vadd.f32 %v10024_v36, %v2436_v41  ;;  %v6548_v56 = vsel %vm1957_vm0, 1.0, %v12724_v14 }
 0x3da   :  { %v2343_v22 = vadd.f32 1e-05, %v2311_v52  ;;  %v2268_v28 = vpop.xlane.xlu0 %2267  ;;  %v2471_v13 = vadd.f32 %v10024_v36, %v2435_v9 }
 0x3db   :  { %v2265_v57 = vpop.xlane.xlu1 %2264  ;;  %7853 = vrsqrt.f32 %v2344_v50  ;;  %v2314_v30 = vmul.f32 0.03125, %v2268_v28  ;;  %v2437_v55 = vmul.f32 %v10010_v27, %v2401_v2 }
 0x3dc   :  { %v2313_v19 = vmul.f32 0.03125, %v2265_v57  ;;  %v7844_v35 = vpop.eup %7843  ;;  %7855 = vrsqrt.f32 %v2343_v22  ;;  %v2496_v38 = vpack.c.bf16 %v2471_v13, %v2470_v15 }
 0x3dd   :  { %v2346_v7 = vadd.f32 1e-05, %v2314_v30  ;;  %v2473_v11 = vadd.f32 %v10024_v36, %v2437_v55  ;;  %v2402_v10 = vmul.f32 %v7844_v35, %v9912_v49  ;;  %7625 = vperm.xlu1 %7603, %v7624_v40   ;;  %2935 = vrot.lane.b32.xlu0 %v9950_v26, %s8237_s30  ;;  %v6547_v49 = vsel %vm1956_vm15, 1.0, %v12724_v14 }
 0x3de   :  { %v2345_v34 = vadd.f32 1e-05, %v2313_v19  ;;  %v2274_v6 = vpop.xlane.xlu0 %2273  ;;  %7192 = vmatprep.mubr.msk.bf16.mxu0 %vm2000_vm5, %v2496_v38  ;;  %v7649_v22 = vpack.i.bf16 %v6548_v56, %v6547_v49  ;;  %v7659_v19 = vpack.i.bf16 %v6552_v21, %v6551_v8  ;;  %v6555_v55 = vsel %vm1964_vm3, 1.0, %v12724_v14 }
 0x3df   :  { %v2271_v29 = vpop.xlane.xlu1 %2270  ;;  %7857 = vrsqrt.f32 %v2346_v7  ;;  %v2316_v16 = vmul.f32 0.03125, %v2274_v6  ;;  %v2497_v44 = vpack.c.bf16 %v2473_v11, %v2472_v17  ;;  %v2438_v52 = vmul.f32 %v10010_v27, %v2402_v10 }
 0x3e0   :  { %v2315_v59 = vmul.f32 0.03125, %v2271_v29  ;;  %v7846_v54 = vpop.eup %7845  ;;  %7859 = vrsqrt.f32 %v2345_v34  ;;  %v7669_v53 = vpack.i.bf16 %v6556_v43, %v6555_v55 }
 0x3e1   :  { %v7848_v42 = vpop.eup %7847  ;;  %v2348_v40 = vadd.f32 1e-05, %v2316_v16  ;;  %7193 = vmatmul.mubr.msk.bf16.gmra.mxu0 %vm2000_vm5, %v2497_v44  ;;  %7630 = vperm.xlu1 %7603, %v7629_v62   ;;  %v2404_v60 = vmul.f32 %v7846_v54, %v9908_v12  ;;  %v2474_v57 = vadd.f32 %v10024_v36, %v2438_v52  ;;  %v6557_v44 = vsel %vm1966_vm6, 1.0, %v12724_v14 }
 0x3e2   :  { %v2347_v24 = vadd.f32 1e-05, %v2315_v59  ;;  %v2280_v5 = vpop.xlane.xlu0 %2279  ;;  %v2403_v41 = vmul.f32 %v7848_v42, %v9924_v23  ;;  %v6558_v54 = vsel %vm1967_vm7, 1.0, %v12724_v14  ;;  %3325 = vrot.lane.b32.xlu0 %v9950_v26, %s8238_s6 }
 0x3e3   :  { %v2277_v9 = vpop.xlane.xlu1 %2276  ;;  %7861 = vrsqrt.f32 %v2348_v40  ;;  %v2318_v2 = vmul.f32 0.03125, %v2280_v5  ;;  %v2440_v25 = vmul.f32 %v10010_v27, %v2404_v60  ;;  %v7674_v5 = vpack.i.bf16 %v6558_v54, %v6557_v44 }
 0x3e4   :  { %v2317_v50 = vmul.f32 0.03125, %v2277_v9  ;;  %v7850_v1 = vpop.eup %7849  ;;  %7863 = vrsqrt.f32 %v2347_v24  ;;  %v2439_v62 = vmul.f32 %v10010_v27, %v2403_v41 }
 0x3e5   :  { %v7852_v12 = vpop.eup %7851  ;;  %v2350_v23 = vadd.f32 1e-05, %v2318_v2  ;;  %7640 = vperm.xlu1 %7603, %v7639_v37   ;;  %v2406_v30 = vmul.f32 %v7850_v1, %v9934_v4  ;;  %v2476_v4 = vadd.f32 %v10024_v36, %v2440_v25 }
 0x3e6   :  { %v2349_v28 = vadd.f32 1e-05, %v2317_v50  ;;  %v2405_v61 = vmul.f32 %v7852_v12, %v9921_v58  ;;  %v2475_v13 = vadd.f32 %v10024_v36, %v2439_v62 }
 0x3e7   :  { %v2283_v15 = vpop.xlane.xlu1 %2282  ;;  %7865 = vrsqrt.f32 %v2350_v23  ;;  %v2442_v6 = vmul.f32 %v10010_v27, %v2406_v30 }
 0x3e8   :  { %v2319_v46 = vmul.f32 0.03125, %v2283_v15  ;;  %v7854_v35 = vpop.eup %7853  ;;  %7867 = vrsqrt.f32 %v2349_v28  ;;  %v2498_v38 = vpack.c.bf16 %v2475_v13, %v2474_v57  ;;  %v2441_v17 = vmul.f32 %v10010_v27, %v2405_v61 }
 0x3e9   :  { %v7856_v58 = vpop.eup %7855  ;;  %v2408_v7 = vmul.f32 %v7854_v35, %v9931_v33  ;;  %7650 = vperm.xlu1 %7603, %v7649_v22  }
 0x3ea   :  { %v2351_v34 = vadd.f32 1e-05, %v2319_v46  ;;  %7196 = vmatprep.mubr.msk.bf16.mxu0 %vm2000_vm5, %v2498_v38  ;;  %v2477_v11 = vadd.f32 %v10024_v36, %v2441_v17  ;;  %v2407_v10 = vmul.f32 %v7856_v58, %v9953_v45  ;;  %v2478_v45 = vadd.f32 %v10024_v36, %v2442_v6 }
 0x3eb   :  { %v2444_v18 = vmul.f32 %v10010_v27, %v2408_v7 }
 0x3ec   :  { %7869 = vrsqrt.f32 %v2351_v34  ;;  %v7858_v33 = vpop.eup %7857  ;;  %v2499_v29 = vpack.c.bf16 %v2477_v11, %v2476_v4  ;;  %v2443_v16 = vmul.f32 %v10010_v27, %v2407_v10  ;;  %v12727_v10 = vld [vmem:[#allocation16_spill] sm:$0xff] }
 0x3ed   :  { %v7860_v59 = vpop.eup %7859  ;;  %7660 = vperm.xlu1 %7603, %v7659_v19   ;;  %v2410_v56 = vmul.f32 %v7858_v33, %v9969_v48  ;;  %v2480_v60 = vadd.f32 %v10024_v36, %v2444_v18 }
 0x3ee   :  { %v2409_v37 = vmul.f32 %v7860_v59, %v9948_v63  ;;  %7197 = vmatmul.mubr.msk.bf16.gmra.mxu0 %vm2000_vm5, %v2499_v29  ;;  %v2479_v49 = vadd.f32 %v10024_v36, %v2443_v16  ;;  %v12728_v16 = vld [vmem:[#allocation19_spill] sm:$0xff] }
 0x3ef   :  { %v2446_v41 = vmul.f32 %v10010_v27, %v2410_v56 }
 0x3f0   :  { %v7862_v42 = vpop.eup %7861  ;;  %v2500_v40 = vpack.c.bf16 %v2479_v49, %v2478_v45  ;;  %v2445_v24 = vmul.f32 %v10010_v27, %v2409_v37 }
 0x3f1   :  { %v7864_v52 = vpop.eup %7863  ;;  %7670 = vperm.xlu1 %7603, %v7669_v53   ;;  %v2412_v14 = vmul.f32 %v7862_v42, %v9963_v47  ;;  %v2482_v47 = vadd.f32 %v10024_v36, %v2446_v41  ;;  %v10395_v42 = vld [vmem:[%s12603_s4 + $0x14] ss:$0 sm:$0xff] }
 0x3f2   :  { %7200 = vmatprep.mubr.msk.bf16.mxu0 %vm2000_vm5, %v2500_v40  ;;  %v2481_v63 = vadd.f32 %v10024_v36, %v2445_v24  ;;  %v2411_v9 = vmul.f32 %v7864_v52, %v9982_v32 }
 0x3f3   :  { %v2448_v32 = vmul.f32 %v10010_v27, %v2412_v14 }
 0x3f4   :  { %v7866_v48 = vpop.eup %7865  ;;  %v2501_v8 = vpack.c.bf16 %v2481_v63, %v2480_v60  ;;  %v2447_v2 = vmul.f32 %v10010_v27, %v2411_v9 }
 0x3f5   :  { %v7868_v50 = vpop.eup %7867  ;;  %v2414_v22 = vmul.f32 %v7866_v48, %v9985_v51  ;;  %7675 = vperm.xlu1 %7603, %v7674_v5  }
 0x3f6   :  { %v2413_v1 = vmul.f32 %v7868_v50, %v9979_v39  ;;  %7201 = vmatmul.mubr.msk.bf16.gmra.mxu0 %vm2000_vm5, %v2501_v8  ;;  %v2483_v62 = vadd.f32 %v10024_v36, %v2447_v2  ;;  %v2484_v39 = vadd.f32 %v10024_v36, %v2448_v32 }
 0x3f7   :  { %v2450_v57 = vmul.f32 %v10010_v27, %v2414_v22 }
 0x3f8   :  { %v2502_v12 = vpack.c.bf16 %v2483_v62, %v2482_v47  ;;  %v2449_v23 = vmul.f32 %v10010_v27, %v2413_v1 }
 0x3f9   :  { %v7870_v21 = vpop.eup %7869  ;;  %v2486_v13 = vadd.f32 %v10024_v36, %v2450_v57  ;;  %3327 = vrot.lane.b32.xlu1 %v9903_v0, %s8238_s6 }
 0x3fa   :  { %v2415_v28 = vmul.f32 %v7870_v21, %v9992_v31  ;;  %7204 = vmatprep.mubr.msk.bf16.mxu0 %vm2000_vm5, %v2502_v12  ;;  %v2485_v51 = vadd.f32 %v10024_v36, %v2449_v23 }
 0x3fc   :  { %v2451_v61 = vmul.f32 %v10010_v27, %v2415_v28  ;;  %v2503_v15 = vpack.c.bf16 %v2485_v51, %v2484_v39 }
 0x3fe   :  { %v2487_v25 = vadd.f32 %v10024_v36, %v2451_v61  ;;  %7205 = vmatmul.mubr.msk.bf16.gmra.mxu0 %vm2000_vm5, %v2503_v15 }
 0x400   :  { %v2504_v30 = vpack.c.bf16 %v2487_v25, %v2486_v13 }
 0x402   :  { %7208 = vmatprep.mubr.msk.bf16.mxu0 %vm2000_vm5, %v2504_v30 }
 0x438   :  { %v2286_v31 = vpop.xlane.xlu0 %2285 }
 0x439   :  { %v2320_v46 = vmul.f32 0.03125, %v2286_v31 }
 0x43b   :  { %v2352_v19 = vadd.f32 1e-05, %v2320_v46 }
 0x43d   :  { %v2289_v55 = vpop.xlane.xlu1 %2288  ;;  %7871 = vrsqrt.f32 %v2352_v19 }
 0x43e   :  { %v2321_v35 = vmul.f32 0.03125, %v2289_v55 }
 0x440   :  { %v2353_v38 = vadd.f32 1e-05, %v2321_v35  ;;  %v7600_v43 = vpop.permute.xlu0 %7599 }
 0x441   :  { %v7606_v17 = vpop.permute.xlu1 %7605  ;;  %v7602_v24 = vunpack.i.h.bf16 %v7600_v43 }
 0x442   :  { %7873 = vrsqrt.f32 %v2353_v38  ;;  %v7607_v5 = vunpack.i.l.bf16 %v7606_v17 }
 0x444   :  { %v10377_v7 = vpop.permute.xlu0 %7635 }
 0x445   :  { %v3157_v58 = vpop.permute.xlu1 %3156 }
 0x446   :  { %7248 = vmatprep.subr.bf16.mxu0 %v3157_v58 }
 0x447   :  { %7249 = vmatpush3.bf16.msra.mxu0 %v3157_v58 }
 0x448   :  { %v10379_v4 = vpop.permute.xlu0 %7645 }
 0x449   :  { %v3155_v34 = vpop.permute.xlu1 %3154 }
 0x44a   :  { %7250 = vmatprep.subr.bf16.mxu0 %v3155_v34  ;;  %v7872_v11 = vpop.eup %7871 }
 0x44b   :  { %7251 = vmatpush3.bf16.msra.mxu0 %v3155_v34  ;;  %v2416_v6 = vmul.f32 %v7872_v11, %v12727_v10 }
 0x44c   :  { %v10382_v33 = vpop.permute.xlu0 %7655 }
 0x44d   :  { %v2452_v26 = vmul.f32 %v10010_v27, %v2416_v6  ;;  %v7611_v1 = vpop.permute.xlu1 %7610 }
 0x44e   :  { %v7613_v23 = vunpack.i.h.bf16 %v7611_v1  ;;  %v7612_v28 = vunpack.i.l.bf16 %v7611_v1  ;;  %v7637_v1 = vunpack.i.l.bf16 %v10377_v7 }
 0x44f   :  { %v7874_v29 = vpop.eup %7873  ;;  %v2488_v53 = vadd.f32 %v10024_v36, %v2452_v26 }
 0x450   :  { %v2417_v0 = vmul.f32 %v7874_v29, %v12728_v16  ;;  %v10386_v59 = vpop.permute.xlu0 %7665 }
 0x451   :  { %v7616_v32 = vpop.permute.xlu1 %7615 }
 0x452   :  { %v2453_v18 = vmul.f32 %v10010_v27, %v2417_v0  ;;  %v7608_v27 = vunpack.i.h.bf16 %v7606_v17  ;;  %v7618_v21 = vunpack.i.h.bf16 %v7616_v32  ;;  %v7617_v51 = vunpack.i.l.bf16 %v7616_v32 }
 0x454   :  { %v2489_v44 = vadd.f32 %v10024_v36, %v2453_v18  ;;  %v2938_v54 = vpop.permute.xlu0 %2937  ;;  %v7601_v36 = vunpack.i.l.bf16 %v7600_v43 }
 0x455   :  { %7212 = vmatprep.subr.bf16.mxu1 %v2938_v54  ;;  %v7621_v35 = vpop.permute.xlu1 %7620 }
 0x456   :  { %v2505_v37 = vpack.c.bf16 %v2489_v44, %v2488_v53  ;;  %7213 = vmatpush3.bf16.msra.mxu1 %v2938_v54  ;;  %v7623_v11 = vunpack.i.h.bf16 %v7621_v35  ;;  %v7622_v10 = vunpack.i.l.bf16 %v7621_v35 }
 0x458   :  { %7209 = vmatmul.mubr.msk.bf16.gmra.mxu0 %vm2000_vm5, %v2505_v37  ;;  %v2936_v45 = vpop.permute.xlu0 %2935 }
 0x459   :  { %7214 = vmatprep.subr.bf16.mxu1 %v2936_v45  ;;  %v7626_v17 = vpop.permute.xlu1 %7625 }
 0x45a   :  { %7215 = vmatpush3.bf16.msra.mxu1 %v2936_v45  ;;  %v7628_v58 = vunpack.i.h.bf16 %v7626_v17  ;;  %v7627_v0 = vunpack.i.l.bf16 %v7626_v17 }
 0x45d   :  { %v7631_v6 = vpop.permute.xlu1 %7630 }
 0x461   :  { %v7641_v54 = vpop.permute.xlu1 %7640 }
 0x462   :  { %v7643_v17 = vunpack.i.h.bf16 %v7641_v54 }
 0x475   :  { %v7182_v49 = vpop.f32.mrf.mxu0 }
 0x476   :  { %v2603_v14 = vadd.f32 %v7182_v49, %v10395_v42 }
 0x477   :  { %v2594_v56 = vpop.f32.mrf.mxu0 }
 0x478   :  { %v2595_v52 = vadd.f32 %v10395_v42, %v2594_v56  ;;  %v10407_v2 = vmul.f32 %v7607_v5, %v2603_v14  ;;  %v7633_v5 = vunpack.i.h.bf16 %v7631_v6  ;;  %v7632_v14 = vunpack.i.l.bf16 %v7631_v6 }
 0x479   :  { %v7183_v40 = vpop.f32.mrf.mxu0 }
 0x47a   :  { %v2606_v60 = vadd.f32 %v7183_v40, %v10395_v42  ;;  %v10403_v48 = vmul.f32 %v7601_v36, %v2595_v52  ;;  %v10473_v36 = vpop.permute.xlu1 %7650  ;;  %v7638_v52 = vunpack.i.h.bf16 %v10377_v7 }
 0x47b   :  { %v2597_v63 = vpop.f32.mrf.mxu0 }
 0x47c   :  { %v2598_v9 = vadd.f32 %v10395_v42, %v2597_v63  ;;  %v10401_v41 = vmul.f32 %v7608_v27, %v2606_v60 }
 0x47e   :  { %v10405_v8 = vmul.f32 %v7602_v24, %v2598_v9  ;;  %v10415_v22 = vpack.c.bf16 %v10401_v41, %v10407_v2  ;;  %v10488_v32 = vpop.permute.xlu1 %7660 }
 0x480   :  { %v10411_v50 = vpack.c.bf16 %v10405_v8, %v10403_v48 }
 0x482   :  { %7216 = vmatprep.mubr.msk.bf16.mxu1 %vm2000_vm5, %v10411_v50  ;;  %7252 = vmatprep.mubr.msk.bf16.mxu0 %vm2000_vm5, %v10411_v50 }
 0x483   :  { %7217 = vmatmul.mubr.msk.bf16.vlgmr.msra.gmra.mxu1 %vm2000_vm5, %v10415_v22  ;;  %7253 = vmatmul.mubr.msk.bf16.vlgmr.msra.gmra.mxu0 %vm2000_vm5, %v10415_v22 }
 0x484   :  { %v7186_v47 = vpop.f32.mrf.mxu0 }
 0x485   :  { %v2619_v61 = vadd.f32 %v7186_v47, %v10395_v42 }
 0x486   :  { %v2610_v62 = vpop.f32.mrf.mxu0 }
 0x487   :  { %v2611_v57 = vadd.f32 %v10395_v42, %v2610_v62  ;;  %v10435_v46 = vmul.f32 %v7617_v51, %v2619_v61 }
 0x488   :  { %v7187_v12 = vpop.f32.mrf.mxu0 }
 0x489   :  { %v2622_v39 = vadd.f32 %v7187_v12, %v10395_v42  ;;  %v10431_v30 = vmul.f32 %v7612_v28, %v2611_v57 }
 0x48a   :  { %v2613_v15 = vpop.f32.mrf.mxu0 }
 0x48b   :  { %v2614_v13 = vadd.f32 %v10395_v42, %v2613_v15  ;;  %v10429_v25 = vmul.f32 %v7618_v21, %v2622_v39  ;;  %v10499_v39 = vpop.permute.xlu1 %7670 }
 0x48d   :  { %v10433_v31 = vmul.f32 %v7613_v23, %v2614_v13  ;;  %v10443_v55 = vpack.c.bf16 %v10429_v25, %v10435_v46  ;;  %v7648_v13 = vunpack.i.h.bf16 %v10379_v4 }
 0x48f   :  { %v10439_v19 = vpack.c.bf16 %v10433_v31, %v10431_v30  ;;  %v10518_v35 = vpop.permute.xlu1 %7675 }
 0x491   :  { %7220 = vmatprep.mubr.msk.bf16.mxu1 %vm2000_vm5, %v10439_v19  ;;  %7256 = vmatprep.mubr.msk.bf16.mxu0 %vm2000_vm5, %v10439_v19 }
 0x492   :  { %7221 = vmatmul.mubr.msk.bf16.gmra.mxu1 %vm2000_vm5, %v10443_v55  ;;  %7257 = vmatmul.mubr.msk.bf16.gmra.mxu0 %vm2000_vm5, %v10443_v55 }
 0x497   :  { %v7190_v38 = vpop.f32.mrf.mxu0 }
 0x498   :  { %v2635_v26 = vadd.f32 %v7190_v38, %v10395_v42 }
 0x499   :  { %v2626_v43 = vpop.f32.mrf.mxu0 }
 0x49a   :  { %v2627_v29 = vadd.f32 %v10395_v42, %v2626_v43  ;;  %v10463_v49 = vmul.f32 %v7627_v0, %v2635_v26  ;;  %v7642_v43 = vunpack.i.l.bf16 %v7641_v54  ;;  %v3328_v26 = vpop.permute.xlu1 %3327  ;;  %v3326_v54 = vpop.permute.xlu0 %3325 }
 0x49b   :  { %v7191_v34 = vpop.f32.mrf.mxu0  ;;  %7284 = vmatprep.subr.bf16.mxu1 %v3328_v26 }
 0x49c   :  { %v2638_v16 = vadd.f32 %v7191_v34, %v10395_v42  ;;  %v10459_v37 = vmul.f32 %v7622_v10, %v2627_v29  ;;  %7285 = vmatpush3.bf16.msra.mxu1 %v3328_v26  ;;  %v7667_v26 = vunpack.i.l.bf16 %v10386_v59 }
 0x49d   :  { %v2629_v18 = vpop.f32.mrf.mxu0  ;;  %7286 = vmatprep.subr.bf16.mxu1 %v3326_v54 }
 0x49e   :  { %v2630_v53 = vadd.f32 %v10395_v42, %v2629_v18  ;;  %v10457_v44 = vmul.f32 %v7628_v58, %v2638_v16 }
 0x4a0   :  { %v10461_v45 = vmul.f32 %v7623_v11, %v2630_v53  ;;  %v10471_v40 = vpack.c.bf16 %v10457_v44, %v10463_v49  ;;  %v7647_v11 = vunpack.i.l.bf16 %v10379_v4  ;;  %7287 = vmatpush3.bf16.msra.mxu1 %v3326_v54 }
 0x4a1   :  { %v7194_v56 = vpop.f32.mrf.mxu0 }
 0x4a2   :  { %v10467_v27 = vpack.c.bf16 %v10461_v45, %v10459_v37  ;;  %v2651_v47 = vadd.f32 %v7194_v56, %v10395_v42 }
 0x4a3   :  { %v2642_v24 = vpop.f32.mrf.mxu0 }
 0x4a4   :  { %7224 = vmatprep.mubr.msk.bf16.mxu1 %vm2000_vm5, %v10467_v27  ;;  %7260 = vmatprep.mubr.msk.bf16.mxu0 %vm2000_vm5, %v10467_v27  ;;  %v2643_v63 = vadd.f32 %v10395_v42, %v2642_v24  ;;  %v10497_v57 = vmul.f32 %v7637_v1, %v2651_v47  ;;  %v7657_v47 = vunpack.i.l.bf16 %v10382_v33 }
 0x4a5   :  { %v7195_v60 = vpop.f32.mrf.mxu0  ;;  %7225 = vmatmul.mubr.msk.bf16.gmra.mxu1 %vm2000_vm5, %v10471_v40  ;;  %7261 = vmatmul.mubr.msk.bf16.gmra.mxu0 %vm2000_vm5, %v10471_v40 }
 0x4a6   :  { %v2654_v9 = vadd.f32 %v7195_v60, %v10395_v42  ;;  %v10493_v23 = vmul.f32 %v7632_v14, %v2643_v63  ;;  %12731 = vst [vmem:[#allocation21_spill] sm:$0xff] %v10497_v57  ;;  %v7653_v14 = vunpack.i.h.bf16 %v10473_v36  ;;  %v7652_v63 = vunpack.i.l.bf16 %v10473_v36 }
 0x4a7   :  { %v2645_v62 = vpop.f32.mrf.mxu0 }
 0x4a8   :  { %v2646_v21 = vadd.f32 %v10395_v42, %v2645_v62  ;;  %v10491_v12 = vmul.f32 %v7638_v52, %v2654_v9  ;;  %v7658_v52 = vunpack.i.h.bf16 %v10382_v33 }
 0x4aa   :  { %12729 = vst [vmem:[#allocation18_spill] sm:$0xff] %v10491_v12  ;;  %v10495_v28 = vmul.f32 %v7633_v5, %v2646_v21  ;;  %v10507_v51 = vpack.c.bf16 %v10491_v12, %v10497_v57 }
 0x4ac   :  { %12730 = vst [vmem:[#allocation17_spill] sm:$0xff] %v10495_v28  ;;  %v10503_v7 = vpack.c.bf16 %v10495_v28, %v10493_v23 }
 0x4ae   :  { %v7198_v61 = vpop.f32.mrf.mxu0  ;;  %7228 = vmatprep.mubr.msk.bf16.mxu1 %vm2000_vm5, %v10503_v7  ;;  %7264 = vmatprep.mubr.msk.bf16.mxu0 %vm2000_vm5, %v10503_v7 }
 0x4af   :  { %7229 = vmatmul.mubr.msk.bf16.gmra.mxu1 %vm2000_vm5, %v10507_v51  ;;  %7265 = vmatmul.mubr.msk.bf16.gmra.mxu0 %vm2000_vm5, %v10507_v51  ;;  %v2667_v10 = vadd.f32 %v7198_v61, %v10395_v42 }
 0x4b0   :  { %v2658_v15 = vpop.f32.mrf.mxu0 }
 0x4b1   :  { %v2659_v58 = vadd.f32 %v10395_v42, %v2658_v15  ;;  %v10531_v56 = vmul.f32 %v7647_v11, %v2667_v10  ;;  %v7663_v10 = vunpack.i.h.bf16 %v10488_v32 }
 0x4b2   :  { %v7199_v38 = vpop.f32.mrf.mxu0 }
 0x4b3   :  { %v2670_v34 = vadd.f32 %v7199_v38, %v10395_v42  ;;  %v10527_v18 = vmul.f32 %v7642_v43, %v2659_v58  ;;  %12735 = vst [vmem:[#allocation26_spill] sm:$0xff] %v10531_v56  ;;  %v7668_v58 = vunpack.i.h.bf16 %v10386_v59 }
 0x4b4   :  { %v2661_v6 = vpop.f32.mrf.mxu0 }
 0x4b5   :  { %v2662_v29 = vadd.f32 %v10395_v42, %v2661_v6  ;;  %v10525_v16 = vmul.f32 %v7648_v13, %v2670_v34  ;;  %12733 = vst [vmem:[#allocation20_spill] sm:$0xff] %v10527_v18  ;;  %v7662_v6 = vunpack.i.l.bf16 %v10488_v32 }
 0x4b6   :  { %v7202_v0 = vpop.f32.mrf.mxu0 }
 0x4b7   :  { %12732 = vst [vmem:[#allocation22_spill] sm:$0xff] %v10525_v16  ;;  %v10529_v53 = vmul.f32 %v7643_v17, %v2662_v29  ;;  %v10540_v60 = vpack.c.bf16 %v10525_v16, %v10531_v56  ;;  %v2683_v62 = vadd.f32 %v7202_v0, %v10395_v42 }
 0x4b8   :  { %v2674_v24 = vpop.f32.mrf.mxu0 }
 0x4b9   :  { %12734 = vst [vmem:[#allocation23_spill] sm:$0xff] %v10529_v53  ;;  %v10535_v4 = vpack.c.bf16 %v10529_v53, %v10527_v18  ;;  %v2675_v9 = vadd.f32 %v10395_v42, %v2674_v24  ;;  %v10563_v33 = vmul.f32 %v7657_v47, %v2683_v62 }
 0x4ba   :  { %v7203_v5 = vpop.f32.mrf.mxu0 }
 0x4bb   :  { %v2686_v1 = vadd.f32 %v7203_v5, %v10395_v42  ;;  %7232 = vmatprep.mubr.msk.bf16.mxu1 %vm2000_vm5, %v10535_v4  ;;  %7268 = vmatprep.mubr.msk.bf16.mxu0 %vm2000_vm5, %v10535_v4  ;;  %v10559_v13 = vmul.f32 %v7652_v63, %v2675_v9  ;;  %12739 = vst [vmem:[#allocation27_spill] sm:$0xff] %v10563_v33 }
 0x4bc   :  { %v2677_v21 = vpop.f32.mrf.mxu0  ;;  %7233 = vmatmul.mubr.msk.bf16.gmra.mxu1 %vm2000_vm5, %v10540_v60  ;;  %7269 = vmatmul.mubr.msk.bf16.gmra.mxu0 %vm2000_vm5, %v10540_v60 }
 0x4bd   :  { %v2678_v36 = vadd.f32 %v10395_v42, %v2677_v21  ;;  %v10557_v61 = vmul.f32 %v7658_v52, %v2686_v1  ;;  %12737 = vst [vmem:[#allocation24_spill] sm:$0xff] %v10559_v13 }
 0x4be   :  { %v7206_v15 = vpop.f32.mrf.mxu0 }
 0x4bf   :  { %12736 = vst [vmem:[#allocation25_spill] sm:$0xff] %v10557_v61  ;;  %v10561_v38 = vmul.f32 %v7653_v14, %v2678_v36  ;;  %v10572_v34 = vpack.c.bf16 %v10557_v61, %v10563_v33  ;;  %v2699_v54 = vadd.f32 %v7206_v15, %v10395_v42  ;;  %v7678_v15 = vunpack.i.h.bf16 %v10518_v35 }
 0x4c0   :  { %v2690_v17 = vpop.f32.mrf.mxu0 }
 0x4c1   :  { %12738 = vst [vmem:[#allocation28_spill] sm:$0xff] %v10561_v38  ;;  %v10567_v43 = vpack.c.bf16 %v10561_v38, %v10559_v13  ;;  %v2691_v29 = vadd.f32 %v10395_v42, %v2690_v17  ;;  %v10595_v63 = vmul.f32 %v7667_v26, %v2699_v54 }
 0x4c2   :  { %v7207_v11 = vpop.f32.mrf.mxu0 }
 0x4c3   :  { %v2702_v0 = vadd.f32 %v7207_v11, %v10395_v42  ;;  %7236 = vmatprep.mubr.msk.bf16.mxu1 %vm2000_vm5, %v10567_v43  ;;  %7272 = vmatprep.mubr.msk.bf16.mxu0 %vm2000_vm5, %v10567_v43  ;;  %v10591_v5 = vmul.f32 %v7662_v6, %v2691_v29  ;;  %12743 = vst [vmem:[#allocation30_spill] sm:$0xff] %v10595_v63  ;;  %v7673_v11 = vunpack.i.h.bf16 %v10499_v39  ;;  %v7677_v29 = vunpack.i.l.bf16 %v10518_v35 }
 0x4c4   :  { %v2693_v24 = vpop.f32.mrf.mxu0  ;;  %7237 = vmatmul.mubr.msk.bf16.gmra.mxu1 %vm2000_vm5, %v10572_v34  ;;  %7273 = vmatmul.mubr.msk.bf16.gmra.mxu0 %vm2000_vm5, %v10572_v34 }
 0x4c5   :  { %v2694_v32 = vadd.f32 %v10395_v42, %v2693_v24  ;;  %v10589_v52 = vmul.f32 %v7668_v58, %v2702_v0  ;;  %12741 = vst [vmem:[#allocation19_spill] sm:$0xff] %v10591_v5 }
 0x4c7   :  { %12740 = vst [vmem:[#allocation16_spill] sm:$0xff] %v10589_v52  ;;  %v10593_v14 = vmul.f32 %v7663_v10, %v2694_v32  ;;  %v10603_v9 = vpack.c.bf16 %v10589_v52, %v10595_v63  ;;  %v7672_v10 = vunpack.i.l.bf16 %v10499_v39 }
 0x4c9   :  { %12742 = vst [vmem:[#allocation29_spill] sm:$0xff] %v10593_v14  ;;  %v10599_v59 = vpack.c.bf16 %v10593_v14, %v10591_v5 }
 0x4cb   :  { %7240 = vmatprep.mubr.msk.bf16.mxu1 %vm2000_vm5, %v10599_v59  ;;  %7276 = vmatprep.mubr.msk.bf16.mxu0 %vm2000_vm5, %v10599_v59 }
 0x4cc   :  { %7241 = vmatmul.mubr.msk.bf16.gmra.mxu1 %vm2000_vm5, %v10603_v9  ;;  %7277 = vmatmul.mubr.msk.bf16.gmra.mxu0 %vm2000_vm5, %v10603_v9 }
 0x518   :  { %v7210_v1 = vpop.f32.mrf.mxu0 }
 0x519   :  { %v2715_v17 = vadd.f32 %v7210_v1, %v10395_v42 }
 0x51a   :  { %v2706_v47 = vpop.f32.mrf.mxu0 }
 0x51b   :  { %v2707_v21 = vadd.f32 %v10395_v42, %v2706_v47  ;;  %v10627_v24 = vmul.f32 %v7677_v29, %v2715_v17 }
 0x51c   :  { %v7211_v62 = vpop.f32.mrf.mxu0 }
 0x51d   :  { %v2718_v36 = vadd.f32 %v7211_v62, %v10395_v42  ;;  %v10623_v26 = vmul.f32 %v7672_v10, %v2707_v21  ;;  %12747 = vst [vmem:[#allocation34_spill] sm:$0xff] %v10627_v24 }
 0x51e   :  { %v2709_v58 = vpop.f32.mrf.mxu0 }
 0x51f   :  { %v2710_v6 = vadd.f32 %v10395_v42, %v2709_v58  ;;  %v10621_v0 = vmul.f32 %v7678_v15, %v2718_v36  ;;  %12745 = vst [vmem:[#allocation32_spill] sm:$0xff] %v10623_v26 }
 0x521   :  { %12744 = vst [vmem:[#allocation31_spill] sm:$0xff] %v10621_v0  ;;  %v10625_v54 = vmul.f32 %v7673_v11, %v2710_v6  ;;  %v2928_v1 = vpack.c.bf16 %v10621_v0, %v10627_v24 }
 0x523   :  { %12746 = vst [vmem:[#allocation33_spill] sm:$0xff] %v10625_v54  ;;  %v2927_v32 = vpack.c.bf16 %v10625_v54, %v10623_v26 }
 0x525   :  { %7244 = vmatprep.mubr.msk.bf16.mxu1 %vm2000_vm5, %v2927_v32  ;;  %7280 = vmatprep.mubr.msk.bf16.mxu0 %vm2000_vm5, %v2927_v32 }
 0x526   :  { %7245 = vmatmul.mubr.msk.bf16.gmra.mxu1 %vm2000_vm5, %v2928_v1  ;;  %7281 = vmatmul.mubr.msk.bf16.gmra.mxu0 %vm2000_vm5, %v2928_v1 }
 0x527   :  { %7288 = vmatprep.mubr.msk.bf16.mxu1 %vm2000_vm5, %v10411_v50 }
 0x52e   :  { %7289 = vmatmul.mubr.msk.bf16.vlgmr.msra.gmra.mxu1 %vm2000_vm5, %v10415_v22  ;;  %v10654_v22 = vld [vmem:[%s12603_s4 + $0x15] ss:$0 sm:$0xff] }
 0x52f   :  { %7292 = vmatprep.mubr.msk.bf16.mxu1 %vm2000_vm5, %v10439_v19  ;;  %v10659_v19 = vld [vmem:[%s12603_s4 + $0x16] ss:$0 sm:$0xff] }
 0x536   :  { %7293 = vmatmul.mubr.msk.bf16.gmra.mxu1 %vm2000_vm5, %v10443_v55 }
 0x537   :  { %7296 = vmatprep.mubr.msk.bf16.mxu1 %vm2000_vm5, %v10467_v27 }
 0x53e   :  { %7297 = vmatmul.mubr.msk.bf16.gmra.mxu1 %vm2000_vm5, %v10471_v40 }
 0x53f   :  { %7300 = vmatprep.mubr.msk.bf16.mxu1 %vm2000_vm5, %v10503_v7 }
 0x543   :  { %v7218_v42 = vpop.f32.mrf.mxu1  ;;  %v7254_v50 = vpop.f32.mrf.mxu0 }
 0x544   :  { %v10664_v7 = vadd.f32 %v7218_v42, %v10654_v22  ;;  %v3203_v35 = vadd.f32 %v7254_v50, %v10659_v19 }
 0x545   :  { %v3023_v55 = vpop.f32.mrf.mxu1  ;;  %v3194_v27 = vpop.f32.mrf.mxu0 }
 0x546   :  { %7301 = vmatmul.mubr.msk.bf16.gmra.mxu1 %vm2000_vm5, %v10507_v51  ;;  %v3024_v21 = vadd.f32 %v10654_v22, %v3023_v55  ;;  %v3195_v36 = vadd.f32 %v10659_v19, %v3194_v27 }
 0x547   :  { %v7219_v40 = vpop.f32.mrf.mxu1  ;;  %v7255_v39 = vpop.f32.mrf.mxu0  ;;  %7304 = vmatprep.mubr.msk.bf16.mxu1 %vm2000_vm5, %v10535_v4 }
 0x548   :  { %v10670_v47 = vadd.f32 %v7219_v40, %v10654_v22  ;;  %v3206_v62 = vadd.f32 %v7255_v39, %v10659_v19 }
 0x549   :  { %v3026_v51 = vpop.f32.mrf.mxu1  ;;  %v3197_v15 = vpop.f32.mrf.mxu0 }
 0x54a   :  { %v10677_v58 = vpack.c.bf16 %v3206_v62, %v3203_v35  ;;  %v3027_v11 = vadd.f32 %v10654_v22, %v3026_v51  ;;  %v3198_v4 = vadd.f32 %v10659_v19, %v3197_v15 }
 0x54c   :  { %v3494_v10 = vpack.c.bf16 %v3027_v11, %v3024_v21  ;;  %v10681_v6 = vpack.c.bf16 %v3198_v4, %v3195_v36 }
 0x54e   :  { %7336 = vmatprep.mubr.msk.bf16.mxu0 %vm2000_vm5, %v3494_v10  ;;  %7305 = vmatmul.mubr.msk.bf16.gmra.mxu1 %vm2000_vm5, %v10540_v60 }
 0x54f   :  { %7308 = vmatprep.mubr.msk.bf16.mxu1 %vm2000_vm5, %v10567_v43 }
 0x552   :  { %v10690_v29 = vpop.f32.mrf.mxu1  ;;  %v10692_v42 = vpop.f32.mrf.mxu0 }
 0x554   :  { %v10696_v50 = vpop.f32.mrf.mxu1  ;;  %v10698_v55 = vpop.f32.mrf.mxu0 }
 0x556   :  { %7309 = vmatmul.mubr.msk.bf16.gmra.mxu1 %vm2000_vm5, %v10572_v34  ;;  %v10702_v60 = vpop.f32.mrf.mxu1  ;;  %v10704_v43 = vpop.f32.mrf.mxu0 }
 0x557   :  { %7312 = vmatprep.mubr.msk.bf16.mxu1 %vm2000_vm5, %v10599_v59 }
 0x558   :  { %v10707_v34 = vpop.f32.mrf.mxu1  ;;  %v10709_v27 = vpop.f32.mrf.mxu0 }
 0x55e   :  { %7313 = vmatmul.mubr.msk.bf16.gmra.mxu1 %vm2000_vm5, %v10603_v9 }
 0x55f   :  { %7316 = vmatprep.mubr.msk.bf16.mxu1 %vm2000_vm5, %v2927_v32 }
 0x565   :  { %v10711_v40 = vpop.f32.mrf.mxu1  ;;  %v7262_v59 = vpop.f32.mrf.mxu0 }
 0x566   :  { %7317 = vmatmul.mubr.msk.bf16.gmra.mxu1 %vm2000_vm5, %v2928_v1  ;;  %v3235_v61 = vadd.f32 %v7262_v59, %v10659_v19 }
 0x567   :  { %v10714_v39 = vpop.f32.mrf.mxu1  ;;  %v3226_v35 = vpop.f32.mrf.mxu0 }
 0x569   :  { %v10716_v62 = vpop.f32.mrf.mxu1  ;;  %v7263_v9 = vpop.f32.mrf.mxu0 }
 0x56b   :  { %v10718_v21 = vpop.f32.mrf.mxu1  ;;  %v3229_v36 = vpop.f32.mrf.mxu0 }
 0x56f   :  { %v10720_v51 = vpop.f32.mrf.mxu1  ;;  %v7266_v32 = vpop.f32.mrf.mxu0 }
 0x570   :  { %v3251_v10 = vadd.f32 %v7266_v32, %v10659_v19  ;;  %v3238_v32 = vadd.f32 %v7263_v9, %v10659_v19 }
 0x571   :  { %v10722_v15 = vpop.f32.mrf.mxu1  ;;  %v3242_v11 = vpop.f32.mrf.mxu0 }
 0x572   :  { %v3243_v54 = vadd.f32 %v10659_v19, %v3242_v11 }
 0x573   :  { %v7267_v4 = vpop.f32.mrf.mxu0  ;;  %v10725_v17 = vpop.f32.mrf.mxu1 }
 0x574   :  { %v3254_v1 = vadd.f32 %v7267_v4, %v10659_v19 }
 0x575   :  { %v3245_v0 = vpop.f32.mrf.mxu0  ;;  %v10730_v52 = vpop.f32.mrf.mxu1 }
 0x576   :  { %v3509_v24 = vpack.c.bf16 %v3254_v1, %v3251_v10  ;;  %v3246_v26 = vadd.f32 %v10659_v19, %v3245_v0  ;;  %v3507_v0 = vpack.c.bf16 %v3238_v32, %v3235_v61 }
 0x578   :  { %v3508_v14 = vpack.c.bf16 %v3246_v26, %v3243_v54  ;;  %7570 = vmatprep.subr.msk.bf16.mxu0 %vm2000_vm5, %v3509_v24  ;;  %v3558_v63 = vsel %vm2000_vm5, %v3509_v24, 0 }
 0x579   :  { %7321 = vmatpush3.bf16.xpose.msra.mxu0 %v3558_v63 }
 0x57a   :  { %7571 = vmatprep.subr.msk.bf16.mxu0 %vm2000_vm5, %v3508_v14  ;;  %v3555_v26 = vsel %vm2000_vm5, %v3508_v14, 0 }
 0x57c   :  { %v7234_v5 = vpop.f32.mrf.mxu1  ;;  %v7270_v4 = vpop.f32.mrf.mxu0 }
 0x57d   :  { %v10741_v54 = vadd.f32 %v7234_v5, %v10654_v22  ;;  %v3267_v63 = vadd.f32 %v7270_v4, %v10659_v19  ;;  %v3230_v4 = vadd.f32 %v10659_v19, %v3229_v36  ;;  %v3222_v36 = vadd.f32 %v10704_v43, %v10659_v19 }
 0x57e   :  { %v10737_v11 = vpop.f32.mrf.mxu1  ;;  %v3258_v10 = vpop.f32.mrf.mxu0 }
 0x57f   :  { %v3259_v61 = vadd.f32 %v10659_v19, %v3258_v10  ;;  %v3552_v10 = vsel %vm2000_vm5, %v3507_v0, 0 }
 0x580   :  { %v7235_v1 = vpop.f32.mrf.mxu1  ;;  %v7271_v38 = vpop.f32.mrf.mxu0 }
 0x581   :  { %v10745_v24 = vadd.f32 %v7235_v1, %v10654_v22  ;;  %v3270_v9 = vadd.f32 %v7271_v38, %v10659_v19  ;;  %7323 = vmatpush3.bf16.xpose.msra.mxu0 %v3555_v26  ;;  %v3227_v38 = vadd.f32 %v10659_v19, %v3226_v35 }
 0x582   :  { %v10748_v59 = vpop.f32.mrf.mxu1  ;;  %v3261_v33 = vpop.f32.mrf.mxu0  ;;  %7572 = vmatprep.subr.msk.bf16.mxu0 %vm2000_vm5, %v3507_v0  ;;  %v3219_v0 = vadd.f32 %v10692_v42, %v10659_v19  ;;  %v3214_v42 = vadd.f32 %v10659_v19, %v10709_v27  ;;  %v3043_v27 = vadd.f32 %v10654_v22, %v10707_v34  ;;  %v3048_v34 = vadd.f32 %v10690_v29, %v10654_v22 }
 0x583   :  { %v10754_v5 = vpack.c.bf16 %v3270_v9, %v3267_v63  ;;  %v3262_v32 = vadd.f32 %v10659_v19, %v3261_v33  ;;  %v3506_v16 = vpack.c.bf16 %v3230_v4, %v3227_v38  ;;  %v3072_v29 = vadd.f32 %v10654_v22, %v10722_v15 }
 0x584   :  { %v7238_v1 = vpop.f32.mrf.mxu1  ;;  %v3088_v15 = vadd.f32 %v10654_v22, %v10737_v11 }
 0x585   :  { %v10758_v13 = vpack.c.bf16 %v3262_v32, %v3259_v61  ;;  %v10765_v56 = vadd.f32 %v7238_v1, %v10654_v22  ;;  %v3505_v32 = vpack.c.bf16 %v3222_v36, %v3219_v0  ;;  %v3549_v4 = vsel %vm2000_vm5, %v3506_v16, 0 }
 0x586   :  { %v10761_v26 = vpop.f32.mrf.mxu1  ;;  %v3540_v0 = vsel %vm2000_vm5, %v10677_v58, 0 }
 0x588   :  { %v7239_v53 = vpop.f32.mrf.mxu1 }
 0x589   :  { %v10768_v63 = vadd.f32 %v7239_v53, %v10654_v22  ;;  %7325 = vmatpush3.bf16.xpose.msra.mxu0 %v3552_v10  ;;  %v3211_v10 = vadd.f32 %v10659_v19, %v10698_v55  ;;  %v3537_v55 = vsel %vm2000_vm5, %v10681_v6, 0 }
 0x58a   :  { %v10770_v33 = vpop.f32.mrf.mxu1  ;;  %7573 = vmatprep.subr.msk.bf16.mxu0 %vm2000_vm5, %v3506_v16  ;;  %v3546_v16 = vsel %vm2000_vm5, %v3505_v32, 0 }
 0x58b   :  { %v3504_v36 = vpack.c.bf16 %v3214_v42, %v3211_v10 }
 0x58c   :  { %v7242_v9 = vpop.f32.mrf.mxu1 }
 0x58d   :  { %v10783_v1 = vadd.f32 %v7242_v9, %v10654_v22  ;;  %v3543_v9 = vsel %vm2000_vm5, %v3504_v36, 0 }
 0x58e   :  { %v10779_v61 = vpop.f32.mrf.mxu1 }
 0x590   :  { %v7243_v53 = vpop.f32.mrf.mxu1 }
 0x591   :  { %v10786_v38 = vadd.f32 %v7243_v53, %v10654_v22  ;;  %7327 = vmatpush3.bf16.xpose.msra.mxu0 %v3549_v4  ;;  %v12748_v4 = vpack.c.bf16 %v10670_v47, %v10664_v7  ;;  %v3067_v7 = vadd.f32 %v10716_v62, %v10654_v22  ;;  %v3075_v47 = vadd.f32 %v10654_v22, %v10730_v52 }
 0x592   :  { %7574 = vmatprep.subr.msk.bf16.mxu0 %vm2000_vm5, %v3505_v32  ;;  %v3040_v32 = vadd.f32 %v10654_v22, %v10696_v50  ;;  %v3056_v50 = vadd.f32 %v10654_v22, %v10714_v39  ;;  %v3083_v62 = vadd.f32 %v10725_v17, %v10654_v22  ;;  %v3091_v52 = vadd.f32 %v10654_v22, %v10748_v59  ;;  %v10849_v59 = vpop.f32.mrf.mxu1 }
 0x593   :  { %v3500_v39 = vpack.c.bf16 %v3075_v47, %v3072_v29 }
 0x594   :  { %v3496_v53 = vpack.c.bf16 %v3043_v27, %v3040_v32 }
 0x599   :  { %7329 = vmatpush3.bf16.xpose.msra.mxu0 %v3546_v16 }
 0x59a   :  { %7575 = vmatprep.subr.msk.bf16.mxu0 %vm2000_vm5, %v3504_v36  ;;  %v10833_v36 = vpop.f32.mrf.mxu0 }
 0x59c   :  { %v10843_v16 = vpop.f32.mrf.mxu0 }
 0x5a1   :  { %7331 = vmatpush3.bf16.xpose.msra.mxu0 %v3543_v9 }
 0x5a2   :  { %7576 = vmatprep.subr.msk.bf16.mxu0 %vm2000_vm5, %v10677_v58  ;;  %v3051_v58 = vadd.f32 %v10702_v60, %v10654_v22  ;;  %v3064_v60 = vadd.f32 %v10711_v40, %v10654_v22  ;;  %v3080_v40 = vadd.f32 %v10720_v51, %v10654_v22 }
 0x5a4   :  { %v3497_v42 = vpack.c.bf16 %v3051_v58, %v3048_v34  ;;  %v3501_v9 = vpack.c.bf16 %v3083_v62, %v3080_v40 }
 0x5a9   :  { %7333 = vmatpush3.bf16.xpose.msra.mxu0 %v3540_v0  ;;  %v3914_v0 = vpack.c.bf16 %v3091_v52, %v3088_v15 }
 0x5aa   :  { %7577 = vmatprep.subr.msk.bf16.mxu0 %vm2000_vm5, %v10681_v6  ;;  %v3059_v6 = vadd.f32 %v10654_v22, %v10718_v21  ;;  %v3499_v21 = vpack.c.bf16 %v3067_v7, %v3064_v60 }
 0x5ac   :  { %v3498_v10 = vpack.c.bf16 %v3059_v6, %v3056_v50 }
 0x5b1   :  { %7335 = vmatpush3.bf16.xpose.msra.mxu0 %v3537_v55  ;;  %v7275_v55 = vpop.f32.mrf.mxu0 }
 0x5b3   :  { %v3277_v27 = vpop.f32.mrf.mxu0 }
 0x5b5   :  { %v7278_v17 = vpop.f32.mrf.mxu0 }
 0x5b7   :  { %v3290_v32 = vpop.f32.mrf.mxu0 }
 0x5b8   :  { %7337 = vmatmul.mubr.msk.bf16.vlgmr.msra.gmra.mxu0 %vm2000_vm5, %v12748_v4 }
 0x5b9   :  { %7340 = vmatprep.mubr.msk.bf16.mxu0 %vm2000_vm5, %v3496_v53  ;;  %v7279_v53 = vpop.f32.mrf.mxu0 }
 0x5bb   :  { %v3293_v4 = vpop.f32.mrf.mxu0 }
 0x5c0   :  { %7341 = vmatmul.mubr.msk.bf16.gmra.mxu0 %vm2000_vm5, %v3497_v42 }
 0x5c1   :  { %7344 = vmatprep.mubr.msk.bf16.mxu0 %vm2000_vm5, %v3498_v10 }
 0x5c8   :  { %7345 = vmatmul.mubr.msk.bf16.gmra.mxu0 %vm2000_vm5, %v3499_v21 }
 0x5c9   :  { %7348 = vmatprep.mubr.msk.bf16.mxu0 %vm2000_vm5, %v3500_v39 }
 0x5d0   :  { %7349 = vmatmul.mubr.msk.bf16.gmra.mxu0 %vm2000_vm5, %v3501_v9 }
 0x5d1   :  { %7400 = vmatprep.mubr.msk.bf16.mxu0 %vm2000_vm5, %v3914_v0 }
 0x5e6   :  { %v7246_v51 = vpop.f32.mrf.mxu1  ;;  %v7282_v58 = vpop.f32.mrf.mxu0 }
 0x5e7   :  { %v10854_v42 = vadd.f32 %v7246_v51, %v10654_v22  ;;  %v3315_v10 = vadd.f32 %v7282_v58, %v10659_v19  ;;  %v3302_v58 = vadd.f32 %v7279_v53, %v10659_v19  ;;  %v3291_v53 = vadd.f32 %v10659_v19, %v3290_v32 }
 0x5e8   :  { %v10851_v6 = vpop.f32.mrf.mxu1  ;;  %v3306_v34 = vpop.f32.mrf.mxu0 }
 0x5e9   :  { %v3307_v21 = vadd.f32 %v10659_v19, %v3306_v34 }
 0x5ea   :  { %v7247_v11 = vpop.f32.mrf.mxu1  ;;  %v7283_v50 = vpop.f32.mrf.mxu0 }
 0x5eb   :  { %v10858_v7 = vadd.f32 %v7247_v11, %v10654_v22  ;;  %v3318_v47 = vadd.f32 %v7283_v50, %v10659_v19  ;;  %v3299_v11 = vadd.f32 %v7278_v17, %v10659_v19 }
 0x5ec   :  { %v10861_v60 = vpop.f32.mrf.mxu1  ;;  %v3309_v29 = vpop.f32.mrf.mxu0 }
 0x5ed   :  { %v3929_v62 = vpack.c.bf16 %v3318_v47, %v3315_v10  ;;  %v3310_v52 = vadd.f32 %v10659_v19, %v3309_v29  ;;  %v3927_v10 = vpack.c.bf16 %v3302_v58, %v3299_v11  ;;  %v3286_v58 = vadd.f32 %v7275_v55, %v10659_v19 }
 0x5ee   :  { %v10867_v40 = vpop.f32.mrf.mxu1 }
 0x5ef   :  { %v3928_v15 = vpack.c.bf16 %v3310_v52, %v3307_v21  ;;  %7578 = vmatprep.subr.msk.bf16.mxu0 %vm2000_vm5, %v3929_v62  ;;  %v3978_v9 = vsel %vm2000_vm5, %v3929_v62, 0  ;;  %v3294_v62 = vadd.f32 %v10659_v19, %v3293_v4  ;;  %v3972_v17 = vsel %vm2000_vm5, %v3927_v10, 0 }
 0x5f0   :  { %v10871_v0 = vpop.f32.mrf.mxu1  ;;  %7385 = vmatpush3.bf16.xpose.msra.mxu0 %v3978_v9 }
 0x5f1   :  { %7579 = vmatprep.subr.msk.bf16.mxu0 %vm2000_vm5, %v3928_v15  ;;  %v3975_v47 = vsel %vm2000_vm5, %v3928_v15, 0  ;;  %v3926_v39 = vpack.c.bf16 %v3294_v62, %v3291_v53  ;;  %v10901_v62 = vld [vmem:[%s12603_s4 + $0x17] ss:$0 sm:$0xff] }
 0x5f2   :  { %v10874_v51 = vpop.f32.mrf.mxu1 }
 0x5f3   :  { %v3969_v14 = vsel %vm2000_vm5, %v3926_v39, 0 }
 0x5f4   :  { %v10877_v34 = vpop.f32.mrf.mxu1 }
 0x5f6   :  { %v10880_v50 = vpop.f32.mrf.mxu1 }
 0x5f8   :  { %v10883_v29 = vpop.f32.mrf.mxu1  ;;  %7387 = vmatpush3.bf16.xpose.msra.mxu0 %v3975_v47  ;;  %v3283_v47 = vadd.f32 %v10833_v36, %v10659_v19 }
 0x5f9   :  { %7580 = vmatprep.subr.msk.bf16.mxu0 %vm2000_vm5, %v3927_v10  ;;  %v3278_v10 = vadd.f32 %v10659_v19, %v3277_v27 }
 0x5fa   :  { %v7295_v21 = vpop.f32.mrf.mxu1  ;;  %v3925_v35 = vpack.c.bf16 %v3286_v58, %v3283_v47 }
 0x5fc   :  { %v10887_v52 = vpop.f32.mrf.mxu1 }
 0x5fe   :  { %v7298_v9 = vpop.f32.mrf.mxu1 }
 0x600   :  { %v3397_v43 = vpop.f32.mrf.mxu1  ;;  %7389 = vmatpush3.bf16.xpose.msra.mxu0 %v3972_v17  ;;  %v3275_v17 = vadd.f32 %v10659_v19, %v10843_v16  ;;  %v3406_v19 = vadd.f32 %v7298_v9, %v10901_v62 }
 0x601   :  { %7581 = vmatprep.subr.msk.bf16.mxu0 %vm2000_vm5, %v3926_v39 }
 0x602   :  { %v7299_v15 = vpop.f32.mrf.mxu1  ;;  %v3924_v27 = vpack.c.bf16 %v3278_v10, %v3275_v17 }
 0x603   :  { %v3409_v12 = vadd.f32 %v7299_v15, %v10901_v62 }
 0x604   :  { %v3400_v11 = vpop.f32.mrf.mxu1 }
 0x605   :  { %v3782_v10 = vpack.c.bf16 %v3409_v12, %v3406_v19  ;;  %v3401_v15 = vadd.f32 %v10901_v62, %v3400_v11  ;;  %v3382_v19 = vadd.f32 %v10901_v62, %v10883_v29  ;;  %v3374_v29 = vadd.f32 %v10867_v40, %v10901_v62 }
 0x606   :  { %v7302_v4 = vpop.f32.mrf.mxu1 }
 0x607   :  { %v3422_v53 = vadd.f32 %v7302_v4, %v10901_v62  ;;  %v3966_v4 = vsel %vm2000_vm5, %v3925_v35, 0 }
 0x608   :  { %v3413_v32 = vpop.f32.mrf.mxu1  ;;  %7391 = vmatpush3.bf16.xpose.msra.mxu0 %v3969_v14 }
 0x609   :  { %7582 = vmatprep.subr.msk.bf16.mxu0 %vm2000_vm5, %v3925_v35  ;;  %v3414_v14 = vadd.f32 %v10901_v62, %v3413_v32  ;;  %v3398_v35 = vadd.f32 %v10901_v62, %v3397_v43 }
 0x60a   :  { %v7303_v55 = vpop.f32.mrf.mxu1 }
 0x60b   :  { %v3425_v36 = vadd.f32 %v7303_v55, %v10901_v62 }
 0x60c   :  { %v3416_v39 = vpop.f32.mrf.mxu1 }
 0x60d   :  { %v3784_v58 = vpack.c.bf16 %v3425_v36, %v3422_v53  ;;  %v3417_v47 = vadd.f32 %v10901_v62, %v3416_v39  ;;  %v3963_v39 = vsel %vm2000_vm5, %v3924_v27, 0 }
 0x60e   :  { %v7306_v18 = vpop.f32.mrf.mxu1 }
 0x60f   :  { %v3783_v28 = vpack.c.bf16 %v3417_v47, %v3414_v14  ;;  %v3438_v57 = vadd.f32 %v7306_v18, %v10901_v62  ;;  %7352 = vmatprep.subr.bf16.mxu1 %v3784_v58  ;;  %v3393_v14 = vadd.f32 %v7295_v21, %v10901_v62  ;;  %v3385_v21 = vadd.f32 %v10901_v62, %v10887_v52 }
 0x610   :  { %v3429_v55 = vpop.f32.mrf.mxu1  ;;  %7353 = vmatpush3.bf16.msra.mxu1 %v3784_v58  ;;  %7393 = vmatpush3.bf16.xpose.msra.mxu0 %v3966_v4  ;;  %v3781_v58 = vpack.c.bf16 %v3401_v15, %v3398_v35  ;;  %v3377_v15 = vadd.f32 %v10874_v51, %v10901_v62  ;;  %v3369_v51 = vadd.f32 %v10901_v62, %v10877_v34 }
 0x611   :  { %v3430_v16 = vadd.f32 %v10901_v62, %v3429_v55  ;;  %7354 = vmatprep.subr.bf16.mxu1 %v3783_v28  ;;  %7583 = vmatprep.subr.msk.bf16.mxu0 %vm2000_vm5, %v3924_v27  ;;  %v3779_v52 = vpack.c.bf16 %v3385_v21, %v3382_v19  ;;  %v3104_v19 = vadd.f32 %v10654_v22, %v10761_v26 }
 0x612   :  { %v7307_v32 = vpop.f32.mrf.mxu1  ;;  %v3123_v26 = vadd.f32 %v10654_v22, %v10849_v59  ;;  %v12751_v59 = vpack.c.bf16 %v10786_v38, %v10783_v1 }
 0x613   :  { %v3441_v53 = vadd.f32 %v7307_v32, %v10901_v62 }
 0x614   :  { %v3432_v18 = vpop.f32.mrf.mxu1  ;;  %7355 = vmatpush3.bf16.msra.mxu1 %v3783_v28  ;;  %v3390_v28 = vadd.f32 %v10880_v50, %v10901_v62 }
 0x615   :  { %v10918_v36 = vpack.c.bf16 %v3441_v53, %v3438_v57  ;;  %v3433_v17 = vadd.f32 %v10901_v62, %v3432_v18  ;;  %7356 = vmatprep.subr.bf16.mxu1 %v3782_v10 }
 0x616   :  { %v7310_v9 = vpop.f32.mrf.mxu1  ;;  %v3780_v27 = vpack.c.bf16 %v3393_v14, %v3390_v28 }
 0x617   :  { %v10923_v12 = vpack.c.bf16 %v3433_v17, %v3430_v16  ;;  %v3454_v11 = vadd.f32 %v7310_v9, %v10901_v62  ;;  %v3778_v9 = vpack.c.bf16 %v3377_v15, %v3374_v29  ;;  %v8239_v29 = vmov -1e+30  }
 0x618   :  { %v3445_v47 = vpop.f32.mrf.mxu1  ;;  %7357 = vmatpush3.bf16.msra.mxu1 %v3782_v10  ;;  %7395 = vmatpush3.bf16.xpose.msra.mxu0 %v3963_v39  ;;  %v3960_v10 = vsel %vm2000_vm5, %v10754_v5, 0 }
 0x619   :  { %v3446_v57 = vadd.f32 %v10901_v62, %v3445_v47  ;;  %7358 = vmatprep.subr.bf16.mxu1 %v3781_v58  ;;  %7584 = vmatprep.subr.msk.bf16.mxu0 %vm2000_vm5, %v10754_v5 }
 0x61a   :  { %v7311_v43 = vpop.f32.mrf.mxu1 }
 0x61b   :  { %v3457_v4 = vadd.f32 %v7311_v43, %v10901_v62  ;;  %v3957_v43 = vsel %vm2000_vm5, %v10758_v13, 0 }
 0x61c   :  { %v3448_v55 = vpop.f32.mrf.mxu1  ;;  %7359 = vmatpush3.bf16.msra.mxu1 %v3781_v58  ;;  %v3366_v58 = vadd.f32 %v10901_v62, %v10871_v0  ;;  %v3107_v0 = vadd.f32 %v10654_v22, %v10770_v33  ;;  %v12749_v33 = vpack.c.bf16 %v10745_v24, %v10741_v54  ;;  %v3139_v54 = vadd.f32 %v10654_v22, %v10861_v60 }
 0x61d   :  { %v10936_v16 = vpack.c.bf16 %v3457_v4, %v3454_v11  ;;  %v3449_v50 = vadd.f32 %v10901_v62, %v3448_v55  ;;  %7360 = vmatprep.subr.bf16.mxu1 %v3780_v27  ;;  %v3136_v24 = vadd.f32 %v10654_v22, %v10851_v6 }
 0x61e   :  { %v7314_v32 = vpop.f32.mrf.mxu1  ;;  %v3777_v28 = vpack.c.bf16 %v3369_v51, %v3366_v58 }
 0x61f   :  { %v10943_v53 = vpack.c.bf16 %v3449_v50, %v3446_v57  ;;  %v3470_v18 = vadd.f32 %v7314_v32, %v10901_v62 }
 0x620   :  { %v3461_v35 = vpop.f32.mrf.mxu1  ;;  %7361 = vmatpush3.bf16.msra.mxu1 %v3780_v27  ;;  %7397 = vmatpush3.bf16.xpose.msra.mxu0 %v3960_v10  ;;  %v3916_v10 = vpack.c.bf16 %v3107_v0, %v3104_v19 }
 0x621   :  { %v3462_v17 = vadd.f32 %v10901_v62, %v3461_v35  ;;  %7362 = vmatprep.subr.bf16.mxu1 %v3779_v52  ;;  %7585 = vmatprep.subr.msk.bf16.mxu0 %vm2000_vm5, %v10758_v13  ;;  %v3920_v35 = vpack.c.bf16 %v3139_v54, %v3136_v24 }
 0x622   :  { %v7315_v5 = vpop.f32.mrf.mxu1 }
 0x623   :  { %v3473_v39 = vadd.f32 %v7315_v5, %v10901_v62 }
 0x624   :  { %v3464_v14 = vpop.f32.mrf.mxu1  ;;  %7363 = vmatpush3.bf16.msra.mxu1 %v3779_v52  ;;  %v3120_v52 = vadd.f32 %v10654_v22, %v10779_v61 }
 0x625   :  { %v10956_v11 = vpack.c.bf16 %v3473_v39, %v3470_v18  ;;  %v3465_v40 = vadd.f32 %v10901_v62, %v3464_v14  ;;  %7364 = vmatprep.subr.bf16.mxu1 %v3778_v9 }
 0x626   :  { %v7318_v47 = vpop.f32.mrf.mxu1  ;;  %v3918_v18 = vpack.c.bf16 %v3123_v26, %v3120_v52 }
 0x627   :  { %v10959_v57 = vpack.c.bf16 %v3465_v40, %v3462_v17  ;;  %v3486_v4 = vadd.f32 %v7318_v47, %v10901_v62 }
 0x628   :  { %v3477_v34 = vpop.f32.mrf.mxu1  ;;  %7365 = vmatpush3.bf16.msra.mxu1 %v3778_v9  ;;  %7399 = vmatpush3.bf16.xpose.msra.mxu0 %v3957_v43 }
 0x629   :  { %v3478_v27 = vadd.f32 %v10901_v62, %v3477_v34  ;;  %7366 = vmatprep.subr.bf16.mxu1 %v3777_v28 }
 0x62a   :  { %v7319_v21 = vpop.f32.mrf.mxu1 }
 0x62b   :  { %v3489_v55 = vadd.f32 %v7319_v21, %v10901_v62 }
 0x62c   :  { %v3480_v50 = vpop.f32.mrf.mxu1  ;;  %7367 = vmatpush3.bf16.msra.mxu1 %v3777_v28 }
 0x62d   :  { %v10970_v13 = vpack.c.bf16 %v3489_v55, %v3486_v4  ;;  %v3481_v32 = vadd.f32 %v10901_v62, %v3480_v50  ;;  %v12750_v62 = vpack.c.bf16 %v10768_v63, %v10765_v56  ;;  %v12752_v56 = vpack.c.bf16 %v10858_v7, %v10854_v42 }
 0x62e   :  { %v12753_v63 = vlaneseq }
 0x62f   :  { %v10973_v15 = vpack.c.bf16 %v3481_v32, %v3478_v27  ;;  %7401 = vmatmul.mubr.msk.bf16.vlgmr.msra.gmra.mxu0 %vm2000_vm5, %v12749_v33  ;;  %7416 = vmatprep.subr.bf16.mxu1 %v10970_v13 }
 0x630   :  { %7404 = vmatprep.mubr.msk.bf16.mxu0 %vm2000_vm5, %v3916_v10  ;;  %v3493_v61 = vand.u32 127, %v12753_v63 }
 0x632   :  { %vm3510_vm8 = vcmp.lt.s32.totalorder %v3493_v61, %v10051_v20  ;;  %vm3930_vm9 = vcmp.lt.s32.totalorder %v3493_v61, %v10122_v3 }
 0x633   :  { %v3511_v22 = vsel %vm3510_vm8, 0.0, %v8239_v29  ;;  %v11054_v54 = vsel %vm3930_vm9, 0.0, %v8239_v29 }
 0x637   :  { %7405 = vmatmul.mubr.msk.bf16.gmra.mxu0 %vm2000_vm5, %v12750_v62 }
 0x638   :  { %7408 = vmatprep.mubr.msk.bf16.mxu0 %vm2000_vm5, %v3918_v18 }
 0x63f   :  { %7409 = vmatmul.mubr.msk.bf16.gmra.mxu0 %vm2000_vm5, %v12751_v59 }
 0x640   :  { %7412 = vmatprep.mubr.msk.bf16.mxu0 %vm2000_vm5, %v3920_v35 }
 0x647   :  { %7413 = vmatmul.mubr.msk.bf16.gmra.mxu0 %vm2000_vm5, %v12752_v56 }
 0x678   :  { %v7338_v60 = vpop.f32.mrf.mxu0 }
 0x679   :  { %v11014_v7 = vadd.f32 %v7338_v60, %v3511_v22 }
 0x67a   :  { %v3594_v6 = vpop.f32.mrf.mxu0 }
 0x67b   :  { %v11005_v17 = vadd.f32 %v3594_v6, %v3511_v22 }
 0x67c   :  { %v7339_v1 = vpop.f32.mrf.mxu0 }
 0x67d   :  { %3657 = vmax.xlane.f32.xlu1 %v11005_v17  ;;  %v11008_v5 = vadd.f32 %v7339_v1, %v3511_v22 }
 0x67e   :  { %v3597_v38 = vpop.f32.mrf.mxu0 }
 0x67f   :  { %v11010_v9 = vadd.f32 %v3597_v38, %v3511_v22 }
 0x680   :  { %v7342_v42 = vpop.f32.mrf.mxu0 }
 0x681   :  { %3659 = vmax.xlane.f32.xlu0 %v11010_v9  ;;  %3663 = vmax.xlane.f32.xlu1 %v11008_v5  ;;  %v11023_v28 = vadd.f32 %v7342_v42, %v3511_v22 }
 0x682   :  { %v3610_v20 = vpop.f32.mrf.mxu0 }
 0x683   :  { %v11017_v14 = vadd.f32 %v3610_v20, %v3511_v22 }
 0x684   :  { %v7343_v51 = vpop.f32.mrf.mxu0 }
 0x685   :  { %3661 = vmax.xlane.f32.xlu0 %v11014_v7  ;;  %v11025_v43 = vadd.f32 %v7343_v51, %v3511_v22 }
 0x686   :  { %v3613_v39 = vpop.f32.mrf.mxu0 }
 0x687   :  { %v11019_v58 = vadd.f32 %v3613_v39, %v3511_v22 }
 0x688   :  { %v7346_v40 = vpop.f32.mrf.mxu0 }
 0x689   :  { %3665 = vmax.xlane.f32.xlu0 %v11017_v14  ;;  %3667 = vmax.xlane.f32.xlu1 %v11019_v58  ;;  %v11035_v19 = vadd.f32 %v7346_v40, %v3511_v22 }
 0x68a   :  { %v3626_v47 = vpop.f32.mrf.mxu0 }
 0x68b   :  { %v11029_v0 = vadd.f32 %v3626_v47, %v3511_v22 }
 0x68c   :  { %v7347_v34 = vpop.f32.mrf.mxu0 }
 0x68d   :  { %3669 = vmax.xlane.f32.xlu0 %v11023_v28  ;;  %3671 = vmax.xlane.f32.xlu1 %v11025_v43  ;;  %v11037_v50 = vadd.f32 %v7347_v34, %v3511_v22 }
 0x68e   :  { %v3629_v27 = vpop.f32.mrf.mxu0 }
 0x68f   :  { %v11031_v21 = vadd.f32 %v3629_v27, %v3511_v22 }
 0x690   :  { %v7350_v4 = vpop.f32.mrf.mxu0 }
 0x691   :  { %3673 = vmax.xlane.f32.xlu0 %v11029_v0  ;;  %3675 = vmax.xlane.f32.xlu1 %v11031_v21  ;;  %v11047_v52 = vadd.f32 %v7350_v4, %v3511_v22 }
 0x692   :  { %v3642_v55 = vpop.f32.mrf.mxu0 }
 0x693   :  { %v11041_v33 = vadd.f32 %v3642_v55, %v3511_v22 }
 0x694   :  { %v7351_v32 = vpop.f32.mrf.mxu0 }
 0x695   :  { %3677 = vmax.xlane.f32.xlu0 %v11035_v19  ;;  %3679 = vmax.xlane.f32.xlu1 %v11037_v50  ;;  %v11049_v18 = vadd.f32 %v7351_v32, %v3511_v22 }
 0x696   :  { %v3645_v10 = vpop.f32.mrf.mxu0 }
 0x697   :  { %v11043_v26 = vadd.f32 %v3645_v10, %v3511_v22 }
 0x699   :  { %3681 = vmax.xlane.f32.xlu0 %v11041_v33  ;;  %3683 = vmax.xlane.f32.xlu1 %v11043_v26 }
 0x69d   :  { %3685 = vmax.xlane.f32.xlu0 %v11047_v52  ;;  %3687 = vmax.xlane.f32.xlu1 %v11049_v18 }
 0x6ef   :  { %v7402_v62 = vpop.f32.mrf.mxu0 }
 0x6f0   :  { %v11061_v63 = vadd.f32 %v7402_v62, %v11054_v54 }
 0x6f1   :  { %v4014_v24 = vpop.f32.mrf.mxu0 }
 0x6f2   :  { %v11057_v35 = vadd.f32 %v4014_v24, %v11054_v54 }
 0x6f3   :  { %v7403_v59 = vpop.f32.mrf.mxu0 }
 0x6f4   :  { %4077 = vmax.xlane.f32.xlu0 %v11057_v35  ;;  %v11069_v61 = vadd.f32 %v7403_v59, %v11054_v54 }
 0x6f5   :  { %v4017_v56 = vpop.f32.mrf.mxu0 }
 0x6f6   :  { %v11064_v60 = vadd.f32 %v4017_v56, %v11054_v54 }
 0x6f7   :  { %v7406_v22 = vpop.f32.mrf.mxu0 }
 0x6f8   :  { %4081 = vmax.xlane.f32.xlu0 %v11061_v63  ;;  %4079 = vmax.xlane.f32.xlu1 %v11064_v60  ;;  %v11077_v38 = vadd.f32 %v7406_v22, %v11054_v54 }
 0x6f9   :  { %v4030_v3 = vpop.f32.mrf.mxu0 }
 0x6fa   :  { %v11072_v29 = vadd.f32 %v4030_v3, %v11054_v54 }
 0x6fb   :  { %v7407_v6 = vpop.f32.mrf.mxu0 }
 0x6fc   :  { %4085 = vmax.xlane.f32.xlu0 %v11072_v29  ;;  %4083 = vmax.xlane.f32.xlu1 %v11069_v61  ;;  %v11085_v39 = vadd.f32 %v7407_v6, %v11054_v54 }
 0x6fd   :  { %v4033_v1 = vpop.f32.mrf.mxu0 }
 0x6fe   :  { %v11080_v42 = vadd.f32 %v4033_v1, %v11054_v54 }
 0x6ff   :  { %v7410_v20 = vpop.f32.mrf.mxu0 }
 0x700   :  { %4089 = vmax.xlane.f32.xlu0 %v11077_v38  ;;  %4087 = vmax.xlane.f32.xlu1 %v11080_v42  ;;  %v11093_v4 = vadd.f32 %v7410_v20, %v11054_v54 }
 0x701   :  { %v4046_v51 = vpop.f32.mrf.mxu0 }
 0x702   :  { %v11088_v40 = vadd.f32 %v4046_v51, %v11054_v54 }
 0x703   :  { %v7411_v47 = vpop.f32.mrf.mxu0 }
 0x704   :  { %4093 = vmax.xlane.f32.xlu0 %v11088_v40  ;;  %4091 = vmax.xlane.f32.xlu1 %v11085_v39  ;;  %v11102_v22 = vadd.f32 %v7411_v47, %v11054_v54 }
 0x705   :  { %v4049_v34 = vpop.f32.mrf.mxu0 }
 0x706   :  { %v3658_v27 = vpop.xlane.xlu1 %3657  ;;  %v11096_v55 = vadd.f32 %v4049_v34, %v11054_v54 }
 0x707   :  { %v3689_v32 = vsub.f32 %v11005_v17, %v3658_v27  ;;  %v7414_v10 = vpop.f32.mrf.mxu0 }
 0x708   :  { %4097 = vmax.xlane.f32.xlu0 %v11093_v4  ;;  %4095 = vmax.xlane.f32.xlu1 %v11096_v55  ;;  %v11112_v47 = vadd.f32 %v7414_v10, %v11054_v54 }
 0x709   :  { %v3705_v62 = vmul.f32 1.442695, %v3689_v32  ;;  %v4062_v24 = vpop.f32.mrf.mxu0 }
 0x70a   :  { %v3660_v59 = vpop.xlane.xlu0 %3659  ;;  %v3664_v56 = vpop.xlane.xlu1 %3663  ;;  %v11105_v3 = vadd.f32 %v4062_v24, %v11054_v54 }
 0x70b   :  { %7875 = vpow2.f32 %v3705_v62  ;;  %v3690_v6 = vsub.f32 %v11010_v9, %v3660_v59  ;;  %v3692_v17 = vsub.f32 %v11008_v5, %v3664_v56  ;;  %v7415_v1 = vpop.f32.mrf.mxu0 }
 0x70c   :  { %4101 = vmax.xlane.f32.xlu0 %v11105_v3  ;;  %4099 = vmax.xlane.f32.xlu1 %v11102_v22  ;;  %v11121_v59 = vadd.f32 %v7415_v1, %v11054_v54 }
 0x70d   :  { %v3707_v20 = vmul.f32 1.442695, %v3690_v6  ;;  %v4065_v51 = vpop.f32.mrf.mxu0  ;;  %v3711_v34 = vmul.f32 1.442695, %v3692_v17 }
 0x70e   :  { %v3662_v27 = vpop.xlane.xlu0 %3661  ;;  %v11115_v32 = vadd.f32 %v4065_v51, %v11054_v54 }
 0x70f   :  { %7877 = vpow2.f32 %v3707_v20  ;;  %v3691_v9 = vsub.f32 %v11014_v7, %v3662_v27 }
 0x710   :  { %4105 = vmax.xlane.f32.xlu0 %v11112_v47  ;;  %4103 = vmax.xlane.f32.xlu1 %v11115_v32  ;;  %7879 = vpow2.f32 %v3711_v34 }
 0x711   :  { %v3709_v5 = vmul.f32 1.442695, %v3691_v9 }
 0x712   :  { %v3666_v62 = vpop.xlane.xlu0 %3665  ;;  %v3668_v24 = vpop.xlane.xlu1 %3667 }
 0x713   :  { %7881 = vpow2.f32 %v3709_v5  ;;  %v3693_v10 = vsub.f32 %v11017_v14, %v3666_v62  ;;  %v3694_v56 = vsub.f32 %v11019_v58, %v3668_v24 }
 0x714   :  { %4107 = vmax.xlane.f32.xlu1 %v11121_v59 }
 0x715   :  { %v3713_v6 = vmul.f32 1.442695, %v3693_v10  ;;  %v3715_v7 = vmul.f32 1.442695, %v3694_v56 }
 0x716   :  { %v3670_v17 = vpop.xlane.xlu0 %3669  ;;  %v3672_v20 = vpop.xlane.xlu1 %3671 }
 0x717   :  { %7883 = vpow2.f32 %v3713_v6  ;;  %v3695_v51 = vsub.f32 %v11023_v28, %v3670_v17  ;;  %v3696_v34 = vsub.f32 %v11025_v43, %v3672_v20 }
 0x718   :  { %v7876_v27 = vpop.eup %7875  ;;  %7885 = vpow2.f32 %v3715_v7 }
 0x719   :  { %v3717_v54 = vmul.f32 1.442695, %v3695_v51  ;;  %v3719_v1 = vmul.f32 1.442695, %v3696_v34  ;;  %3737 = vadd.xlane.f32.xlu0 %v7876_v27 }
 0x71a   :  { %v3674_v9 = vpop.xlane.xlu0 %3673  ;;  %v3676_v14 = vpop.xlane.xlu1 %3675 }
 0x71b   :  { %7887 = vpow2.f32 %v3717_v54  ;;  %v3697_v58 = vsub.f32 %v11029_v0, %v3674_v9  ;;  %v3698_v5 = vsub.f32 %v11031_v21, %v3676_v14 }
 0x71c   :  { %v7878_v62 = vpop.eup %7877  ;;  %7889 = vpow2.f32 %v3719_v1 }
 0x71d   :  { %v3721_v24 = vmul.f32 1.442695, %v3697_v58  ;;  %v3723_v10 = vmul.f32 1.442695, %v3698_v5  ;;  %v3769_v56 = vpack.c.bf16 %v7878_v62, %v7876_v27  ;;  %3739 = vadd.xlane.f32.xlu1 %v7878_v62  ;;  %v7880_v6 = vpop.eup %7879 }
 0x71e   :  { %v3678_v28 = vpop.xlane.xlu0 %3677  ;;  %v3680_v43 = vpop.xlane.xlu1 %3679 }
 0x71f   :  { %7891 = vpow2.f32 %v3721_v24  ;;  %v3699_v7 = vsub.f32 %v11035_v19, %v3678_v28  ;;  %v3700_v17 = vsub.f32 %v11037_v50, %v3680_v43  ;;  %7368 = vmatprep.mubr.bf16.mxu1 %v3769_v56 }
 0x720   :  { %v7882_v20 = vpop.eup %7881  ;;  %7893 = vpow2.f32 %v3723_v10 }
 0x721   :  { %v3770_v0 = vpack.c.bf16 %v7880_v6, %v7882_v20  ;;  %v3725_v51 = vmul.f32 1.442695, %v3699_v7  ;;  %v3727_v21 = vmul.f32 1.442695, %v3700_v17  ;;  %3741 = vadd.xlane.f32.xlu0 %v7882_v20  ;;  %3743 = vadd.xlane.f32.xlu1 %v7880_v6 }
 0x722   :  { %v3682_v34 = vpop.xlane.xlu0 %3681  ;;  %v3684_v54 = vpop.xlane.xlu1 %3683 }
 0x723   :  { %7895 = vpow2.f32 %v3725_v51  ;;  %v3701_v27 = vsub.f32 %v11041_v33, %v3682_v34  ;;  %v3702_v1 = vsub.f32 %v11043_v26, %v3684_v54  ;;  %7369 = vmatmul.mubr.bf16.vlgmr.msra.gmra.mxu1 %v3770_v0 }
 0x724   :  { %v7884_v9 = vpop.eup %7883  ;;  %7897 = vpow2.f32 %v3727_v21  ;;  %7417 = vmatpush3.bf16.msra.mxu1 %v10970_v13 }
 0x725   :  { %v7886_v19 = vpop.eup %7885  ;;  %v3729_v50 = vmul.f32 1.442695, %v3701_v27  ;;  %v3731_v14 = vmul.f32 1.442695, %v3702_v1  ;;  %7418 = vmatprep.subr.bf16.mxu1 %v10973_v15  ;;  %3745 = vadd.xlane.f32.xlu0 %v7884_v9 }
 0x726   :  { %v3686_v58 = vpop.xlane.xlu0 %3685  ;;  %v3688_v5 = vpop.xlane.xlu1 %3687  ;;  %v3771_v62 = vpack.c.bf16 %v7886_v19, %v7884_v9  ;;  %3747 = vadd.xlane.f32.xlu1 %v7886_v19 }
 0x727   :  { %7899 = vpow2.f32 %v3729_v50  ;;  %v3703_v33 = vsub.f32 %v11047_v52, %v3686_v58  ;;  %v3704_v26 = vsub.f32 %v11049_v18, %v3688_v5 }
 0x728   :  { %v7888_v24 = vpop.eup %7887  ;;  %7901 = vpow2.f32 %v3731_v14  ;;  %7372 = vmatprep.mubr.bf16.mxu1 %v3771_v62  ;;  %7419 = vmatpush3.bf16.msra.mxu1 %v10973_v15 }
 0x729   :  { %v7890_v13 = vpop.eup %7889  ;;  %v3733_v10 = vmul.f32 1.442695, %v3703_v33  ;;  %v3735_v56 = vmul.f32 1.442695, %v3704_v26  ;;  %7420 = vmatprep.subr.bf16.mxu1 %v10956_v11  ;;  %3749 = vadd.xlane.f32.xlu0 %v7888_v24 }
 0x72a   :  { %v3772_v28 = vpack.c.bf16 %v7890_v13, %v7888_v24  ;;  %3751 = vadd.xlane.f32.xlu1 %v7890_v13 }
 0x72b   :  { %7903 = vpow2.f32 %v3733_v10 }
 0x72c   :  { %v7892_v43 = vpop.eup %7891  ;;  %7905 = vpow2.f32 %v3735_v56  ;;  %7373 = vmatmul.mubr.bf16.gmra.mxu1 %v3772_v28 }
 0x72d   :  { %v7894_v52 = vpop.eup %7893  ;;  %7421 = vmatpush3.bf16.msra.mxu1 %v10956_v11  ;;  %3753 = vadd.xlane.f32.xlu0 %v7892_v43 }
 0x72e   :  { %7422 = vmatprep.subr.bf16.mxu1 %v10959_v57  ;;  %v3773_v18 = vpack.c.bf16 %v7894_v52, %v7892_v43  ;;  %3755 = vadd.xlane.f32.xlu1 %v7894_v52 }
 0x730   :  { %v7896_v15 = vpop.eup %7895  ;;  %7376 = vmatprep.mubr.bf16.mxu1 %v3773_v18 }
 0x731   :  { %v7898_v6 = vpop.eup %7897  ;;  %7423 = vmatpush3.bf16.msra.mxu1 %v10959_v57  ;;  %3757 = vadd.xlane.f32.xlu0 %v7896_v15 }
 0x732   :  { %7424 = vmatprep.subr.bf16.mxu1 %v10936_v16  ;;  %v3774_v7 = vpack.c.bf16 %v7898_v6, %v7896_v15  ;;  %3759 = vadd.xlane.f32.xlu1 %v7898_v6 }
 0x734   :  { %v7900_v17 = vpop.eup %7899  ;;  %7377 = vmatmul.mubr.bf16.gmra.mxu1 %v3774_v7 }
 0x735   :  { %v7902_v20 = vpop.eup %7901  ;;  %7425 = vmatpush3.bf16.msra.mxu1 %v10936_v16  ;;  %3761 = vadd.xlane.f32.xlu0 %v7900_v17  ;;  %v53_v16 = vld [vmem:[%s12601_s2 + $0x40] sm:$0xff] }
 0x736   :  { %7426 = vmatprep.subr.bf16.mxu1 %v10943_v53  ;;  %v3775_v11 = vpack.c.bf16 %v7902_v20, %v7900_v17  ;;  %3763 = vadd.xlane.f32.xlu1 %v7902_v20 }
 0x738   :  { %v7904_v0 = vpop.eup %7903  ;;  %7380 = vmatprep.mubr.bf16.mxu1 %v3775_v11 }
 0x739   :  { %v7906_v51 = vpop.eup %7905  ;;  %7427 = vmatpush3.bf16.msra.mxu1 %v10943_v53  ;;  %3765 = vadd.xlane.f32.xlu0 %v7904_v0  ;;  %v54_v53 = vld [vmem:[%s12601_s2 + $0x58] sm:$0xff] }
 0x73a   :  { %7428 = vmatprep.subr.bf16.mxu1 %v10918_v36  ;;  %v3776_v57 = vpack.c.bf16 %v7906_v51, %v7904_v0  ;;  %3767 = vadd.xlane.f32.xlu1 %v7906_v51  ;;  %v11157_v21 = vpack.c.bf16 %v54_v53, %v53_v16 }
 0x73c   :  { %7381 = vmatmul.mubr.bf16.gmra.mxu1 %v3776_v57 }
 0x73d   :  { %7429 = vmatpush3.bf16.msra.mxu1 %v10918_v36 }
 0x73e   :  { %7430 = vmatprep.subr.bf16.mxu1 %v10923_v12 }
 0x741   :  { %7431 = vmatpush3.bf16.msra.mxu1 %v10923_v12 }
 0x742   :  { %7448 = vmatprep.subr.bf16.mxu1 %v11157_v21 }
 0x77d   :  { %v4078_v34 = vpop.xlane.xlu0 %4077 }
 0x77e   :  { %v4109_v54 = vsub.f32 %v11057_v35, %v4078_v34 }
 0x780   :  { %v4125_v36 = vmul.f32 1.442695, %v4109_v54 }
 0x781   :  { %v4082_v27 = vpop.xlane.xlu0 %4081  ;;  %v4080_v1 = vpop.xlane.xlu1 %4079 }
 0x782   :  { %7907 = vpow2.f32 %v4125_v36  ;;  %v4111_v12 = vsub.f32 %v11061_v63, %v4082_v27  ;;  %v4110_v9 = vsub.f32 %v11064_v60, %v4080_v1 }
 0x784   :  { %v4129_v19 = vmul.f32 1.442695, %v4111_v12  ;;  %v4127_v50 = vmul.f32 1.442695, %v4110_v9 }
 0x785   :  { %v4086_v14 = vpop.xlane.xlu0 %4085  ;;  %v4084_v58 = vpop.xlane.xlu1 %4083 }
 0x786   :  { %7909 = vpow2.f32 %v4129_v19  ;;  %v4113_v5 = vsub.f32 %v11072_v29, %v4086_v14  ;;  %v4112_v62 = vsub.f32 %v11069_v61, %v4084_v58 }
 0x787   :  { %7911 = vpow2.f32 %v4127_v50 }
 0x788   :  { %v4133_v33 = vmul.f32 1.442695, %v4113_v5  ;;  %v4131_v35 = vmul.f32 1.442695, %v4112_v62 }
 0x789   :  { %v4090_v26 = vpop.xlane.xlu0 %4089  ;;  %v4088_v24 = vpop.xlane.xlu1 %4087 }
 0x78a   :  { %7913 = vpow2.f32 %v4133_v33  ;;  %v4115_v13 = vsub.f32 %v11077_v38, %v4090_v26  ;;  %v4114_v63 = vsub.f32 %v11080_v42, %v4088_v24 }
 0x78b   :  { %7915 = vpow2.f32 %v4131_v35 }
 0x78c   :  { %v4137_v60 = vmul.f32 1.442695, %v4115_v13  ;;  %v4135_v10 = vmul.f32 1.442695, %v4114_v63 }
 0x78d   :  { %v4094_v56 = vpop.xlane.xlu0 %4093  ;;  %v4092_v28 = vpop.xlane.xlu1 %4091 }
 0x78e   :  { %7917 = vpow2.f32 %v4137_v60  ;;  %v4117_v29 = vsub.f32 %v11088_v40, %v4094_v56  ;;  %v4116_v61 = vsub.f32 %v11085_v39, %v4092_v28 }
 0x78f   :  { %v7908_v43 = vpop.eup %7907  ;;  %7919 = vpow2.f32 %v4135_v10 }
 0x790   :  { %v4141_v52 = vmul.f32 1.442695, %v4117_v29  ;;  %v4139_v18 = vmul.f32 1.442695, %v4116_v61  ;;  %4157 = vadd.xlane.f32.xlu0 %v7908_v43 }
 0x791   :  { %v4098_v15 = vpop.xlane.xlu0 %4097  ;;  %v4096_v6 = vpop.xlane.xlu1 %4095 }
 0x792   :  { %7921 = vpow2.f32 %v4141_v52  ;;  %v4119_v38 = vsub.f32 %v11093_v4, %v4098_v15  ;;  %v4118_v42 = vsub.f32 %v11096_v55, %v4096_v6  ;;  %v51_v4 = vld [vmem:[%s12601_s2 + $0x10] sm:$0xff]  ;;  %v52_v55 = vld [vmem:[%s12601_s2 + $0x28] sm:$0xff] }
 0x793   :  { %v7910_v7 = vpop.eup %7909  ;;  %7923 = vpow2.f32 %v4139_v18 }
 0x794   :  { %v7912_v17 = vpop.eup %7911  ;;  %v4145_v20 = vmul.f32 1.442695, %v4119_v38  ;;  %v4143_v11 = vmul.f32 1.442695, %v4118_v42  ;;  %4161 = vadd.xlane.f32.xlu0 %v7910_v7 }
 0x795   :  { %4159 = vadd.xlane.f32.xlu1 %v7912_v17  ;;  %v4102_v39 = vpop.xlane.xlu0 %4101  ;;  %v4100_v40 = vpop.xlane.xlu1 %4099  ;;  %v4189_v0 = vpack.c.bf16 %v7912_v17, %v7908_v43 }
 0x796   :  { %7925 = vpow2.f32 %v4145_v20  ;;  %v4121_v51 = vsub.f32 %v11105_v3, %v4102_v39  ;;  %v4120_v57 = vsub.f32 %v11102_v22, %v4100_v40  ;;  %v4350_v22 = vpack.c.bf16 %v52_v55, %v51_v4 }
 0x797   :  { %v7914_v16 = vpop.eup %7913  ;;  %7927 = vpow2.f32 %v4143_v11  ;;  %7432 = vmatprep.mubr.bf16.mxu1 %v4189_v0 }
 0x798   :  { %v7916_v53 = vpop.eup %7915  ;;  %v4149_v34 = vmul.f32 1.442695, %v4121_v51  ;;  %v4147_v54 = vmul.f32 1.442695, %v4120_v57  ;;  %4165 = vadd.xlane.f32.xlu0 %v7914_v16 }
 0x799   :  { %v4190_v36 = vpack.c.bf16 %v7916_v53, %v7910_v7  ;;  %4163 = vadd.xlane.f32.xlu1 %v7916_v53  ;;  %v4106_v3 = vpop.xlane.xlu0 %4105  ;;  %v4104_v27 = vpop.xlane.xlu1 %4103 }
 0x79a   :  { %7929 = vpow2.f32 %v4149_v34  ;;  %v4123_v1 = vsub.f32 %v11112_v47, %v4106_v3  ;;  %v4122_v12 = vsub.f32 %v11115_v32, %v4104_v27 }
 0x79b   :  { %v7918_v9 = vpop.eup %7917  ;;  %7931 = vpow2.f32 %v4147_v54  ;;  %7433 = vmatmul.mubr.bf16.vlgmr.msra.gmra.mxu1 %v4190_v36 }
 0x79c   :  { %v7920_v19 = vpop.eup %7919  ;;  %v4153_v50 = vmul.f32 1.442695, %v4123_v1  ;;  %v4151_v14 = vmul.f32 1.442695, %v4122_v12  ;;  %4169 = vadd.xlane.f32.xlu0 %v7918_v9  ;;  %7449 = vmatpush3.bf16.msra.mxu1 %v11157_v21 }
 0x79d   :  { %4167 = vadd.xlane.f32.xlu1 %v7920_v19  ;;  %v4108_v58 = vpop.xlane.xlu1 %4107  ;;  %v4191_v5 = vpack.c.bf16 %v7920_v19, %v7914_v16  ;;  %7450 = vmatprep.subr.bf16.mxu1 %v4350_v22 }
 0x79e   :  { %7933 = vpow2.f32 %v4153_v50  ;;  %v4124_v62 = vsub.f32 %v11121_v59, %v4108_v58 }
 0x79f   :  { %v7922_v33 = vpop.eup %7921  ;;  %7935 = vpow2.f32 %v4151_v14  ;;  %7436 = vmatprep.mubr.bf16.mxu1 %v4191_v5 }
 0x7a0   :  { %v7924_v47 = vpop.eup %7923  ;;  %v4155_v32 = vmul.f32 1.442695, %v4124_v62  ;;  %4173 = vadd.xlane.f32.xlu0 %v7922_v33  ;;  %7451 = vmatpush3.bf16.msra.mxu1 %v4350_v22 }
 0x7a1   :  { %4171 = vadd.xlane.f32.xlu1 %v7924_v47  ;;  %v4192_v35 = vpack.c.bf16 %v7924_v47, %v7918_v9 }
 0x7a2   :  { %7937 = vpow2.f32 %v4155_v32  ;;  %v3738_v43 = vpop.xlane.xlu0 %3737 }
 0x7a3   :  { %v7926_v26 = vpop.eup %7925  ;;  %7437 = vmatmul.mubr.bf16.gmra.mxu1 %v4192_v35  ;;  %7939 = vrcp.f32 %v3738_v43 }
 0x7a4   :  { %v7928_v21 = vpop.eup %7927  ;;  %4177 = vadd.xlane.f32.xlu0 %v7926_v26 }
 0x7a5   :  { %4175 = vadd.xlane.f32.xlu1 %v7928_v21  ;;  %v4193_v24 = vpack.c.bf16 %v7928_v21, %v7922_v33 }
 0x7a6   :  { %v3740_v61 = vpop.xlane.xlu1 %3739 }
 0x7a7   :  { %v7930_v13 = vpop.eup %7929  ;;  %7440 = vmatprep.mubr.bf16.mxu1 %v4193_v24 }
 0x7a8   :  { %v7932_v63 = vpop.eup %7931  ;;  %4181 = vadd.xlane.f32.xlu0 %v7930_v13 }
 0x7a9   :  { %4179 = vadd.xlane.f32.xlu1 %v7932_v63  ;;  %v4194_v59 = vpack.c.bf16 %v7932_v63, %v7926_v26 }
 0x7aa   :  { %v3744_v52 = vpop.xlane.xlu1 %3743  ;;  %v3742_v18 = vpop.xlane.xlu0 %3741 }
 0x7ab   :  { %v7934_v60 = vpop.eup %7933  ;;  %7441 = vmatmul.mubr.bf16.gmra.mxu1 %v4194_v59  ;;  %7941 = vrcp.f32 %v3744_v52 }
 0x7ac   :  { %v7936_v10 = vpop.eup %7935  ;;  %4185 = vadd.xlane.f32.xlu0 %v7934_v60  ;;  %7943 = vrcp.f32 %v3740_v61 }
 0x7ad   :  { %4183 = vadd.xlane.f32.xlu1 %v7936_v10  ;;  %v4195_v56 = vpack.c.bf16 %v7936_v10, %v7930_v13  ;;  %7945 = vrcp.f32 %v3742_v18 }
 0x7ae   :  { %v3746_v6 = vpop.xlane.xlu0 %3745 }
 0x7af   :  { %v7938_v28 = vpop.eup %7937  ;;  %7444 = vmatprep.mubr.bf16.mxu1 %v4195_v56  ;;  %v3748_v15 = vpop.xlane.xlu1 %3747  ;;  %7947 = vrcp.f32 %v3746_v6 }
 0x7b0   :  { %v4196_v29 = vpack.c.bf16 %v7938_v28, %v7934_v60  ;;  %v7940_v40 = vpop.eup %7939 }
 0x7b1   :  { %4187 = vadd.xlane.f32.xlu1 %v7938_v28 }
 0x7b2   :  { %v3750_v42 = vpop.xlane.xlu0 %3749 }
 0x7b3   :  { %7445 = vmatmul.mubr.bf16.gmra.mxu1 %v4196_v29  ;;  %v3752_v38 = vpop.xlane.xlu1 %3751 }
 0x7b4   :  { %7949 = vrcp.f32 %v3752_v38 }
 0x7b5   :  { %7951 = vrcp.f32 %v3748_v15 }
 0x7b6   :  { %v3754_v17 = vpop.xlane.xlu0 %3753  ;;  %7953 = vrcp.f32 %v3750_v42 }
 0x7b7   :  { %v3756_v7 = vpop.xlane.xlu1 %3755  ;;  %7955 = vrcp.f32 %v3754_v17 }
 0x7b8   :  { %v7942_v57 = vpop.eup %7941 }
 0x7b9   :  { %v7944_v4 = vpop.eup %7943 }
 0x7ba   :  { %v3758_v0 = vpop.xlane.xlu0 %3757  ;;  %v7946_v53 = vpop.eup %7945 }
 0x7bb   :  { %v3760_v11 = vpop.xlane.xlu1 %3759 }
 0x7bc   :  { %7957 = vrcp.f32 %v3760_v11  ;;  %v7948_v19 = vpop.eup %7947 }
 0x7bd   :  { %7959 = vrcp.f32 %v3756_v7 }
 0x7be   :  { %v3762_v1 = vpop.xlane.xlu0 %3761  ;;  %7961 = vrcp.f32 %v3758_v0 }
 0x7bf   :  { %v3764_v36 = vpop.xlane.xlu1 %3763  ;;  %7963 = vrcp.f32 %v3762_v1 }
 0x7c1   :  { %v7950_v14 = vpop.eup %7949 }
 0x7c2   :  { %v7952_v5 = vpop.eup %7951  ;;  %v3766_v32 = vpop.xlane.xlu0 %3765 }
 0x7c3   :  { %v3768_v58 = vpop.xlane.xlu1 %3767  ;;  %v7954_v47 = vpop.eup %7953 }
 0x7c4   :  { %7965 = vrcp.f32 %v3768_v58  ;;  %v7956_v60 = vpop.eup %7955 }
 0x7c5   :  { %7967 = vrcp.f32 %v3764_v36 }
 0x7c6   :  { %7969 = vrcp.f32 %v3766_v32 }
 0x7c9   :  { %v7958_v56 = vpop.eup %7957 }
 0x7ca   :  { %v7960_v28 = vpop.eup %7959 }
 0x7cb   :  { %v7962_v43 = vpop.eup %7961 }
 0x7cc   :  { %v7964_v17 = vpop.eup %7963 }
 0x7d1   :  { %v7966_v11 = vpop.eup %7965 }
 0x7e3   :  { %v7370_v20 = vpop.f32.mrf.mxu1 }
 0x7e4   :  { %v3900_v3 = vmul.f32 %v7946_v53, %v7370_v20 }
 0x7e5   :  { %v3819_v39 = vpop.f32.mrf.mxu1 }
 0x7e6   :  { %v3898_v34 = vmul.f32 %v7940_v40, %v3819_v39  ;;  %v7968_v39 = vpop.eup %7967 }
 0x7e7   :  { %v7371_v51 = vpop.f32.mrf.mxu1 }
 0x7e8   :  { %v3901_v55 = vmul.f32 %v7942_v57, %v7371_v51  ;;  %v7970_v51 = vpop.eup %7969 }
 0x7e9   :  { %v3822_v16 = vpop.f32.mrf.mxu1 }
 0x7ea   :  { %v3899_v54 = vmul.f32 %v7944_v4, %v3822_v16  ;;  %v4335_v12 = vpack.c.bf16 %v3901_v55, %v3900_v3 }
 0x7ec   :  { %v4334_v27 = vpack.c.bf16 %v3899_v54, %v3898_v34  ;;  %v7374_v22 = vpop.f32.mrf.mxu1 }
 0x7ed   :  { %v3904_v21 = vmul.f32 %v7954_v47, %v7374_v22 }
 0x7ee   :  { %v3835_v9 = vpop.f32.mrf.mxu1  ;;  %7452 = vmatprep.mubr.msk.bf16.mxu1 %vm2000_vm5, %v4334_v27 }
 0x7ef   :  { %7453 = vmatmul.mubr.msk.bf16.vlgmr.msra.gmra.mxu1 %vm2000_vm5, %v4335_v12  ;;  %v3902_v35 = vmul.f32 %v7948_v19, %v3835_v9 }
 0x7f0   :  { %v7375_v50 = vpop.f32.mrf.mxu1 }
 0x7f1   :  { %v3905_v62 = vmul.f32 %v7950_v14, %v7375_v50 }
 0x7f2   :  { %v3838_v33 = vpop.f32.mrf.mxu1 }
 0x7f3   :  { %v3903_v26 = vmul.f32 %v7952_v5, %v3838_v33  ;;  %v4337_v63 = vpack.c.bf16 %v3905_v62, %v3904_v21 }
 0x7f4   :  { %v7378_v24 = vpop.f32.mrf.mxu1 }
 0x7f5   :  { %v4336_v13 = vpack.c.bf16 %v3903_v26, %v3902_v35  ;;  %v3908_v15 = vmul.f32 %v7962_v43, %v7378_v24 }
 0x7f6   :  { %v3851_v59 = vpop.f32.mrf.mxu1 }
 0x7f7   :  { %7456 = vmatprep.mubr.msk.bf16.mxu1 %vm2000_vm5, %v4336_v13  ;;  %v3906_v52 = vmul.f32 %v7956_v60, %v3851_v59 }
 0x7f8   :  { %v7379_v10 = vpop.f32.mrf.mxu1  ;;  %7457 = vmatmul.mubr.msk.bf16.gmra.mxu1 %vm2000_vm5, %v4337_v63 }
 0x7f9   :  { %v3909_v29 = vmul.f32 %v7958_v56, %v7379_v10 }
 0x7fa   :  { %v3854_v61 = vpop.f32.mrf.mxu1 }
 0x7fb   :  { %v3907_v18 = vmul.f32 %v7960_v28, %v3854_v61  ;;  %v4339_v42 = vpack.c.bf16 %v3909_v29, %v3908_v15 }
 0x7fc   :  { %v7382_v6 = vpop.f32.mrf.mxu1 }
 0x7fd   :  { %v4338_v38 = vpack.c.bf16 %v3907_v18, %v3906_v52  ;;  %v3912_v55 = vmul.f32 %v7970_v51, %v7382_v6 }
 0x7fe   :  { %v3867_v7 = vpop.f32.mrf.mxu1 }
 0x7ff   :  { %7460 = vmatprep.mubr.msk.bf16.mxu1 %vm2000_vm5, %v4338_v38  ;;  %v3910_v57 = vmul.f32 %v7964_v17, %v3867_v7 }
 0x800   :  { %v7383_v20 = vpop.f32.mrf.mxu1  ;;  %7461 = vmatmul.mubr.msk.bf16.gmra.mxu1 %vm2000_vm5, %v4339_v42 }
 0x801   :  { %v3913_v40 = vmul.f32 %v7966_v11, %v7383_v20 }
 0x802   :  { %v3870_v0 = vpop.f32.mrf.mxu1 }
 0x803   :  { %v3911_v4 = vmul.f32 %v7968_v39, %v3870_v0  ;;  %v4341_v53 = vpack.c.bf16 %v3913_v40, %v3912_v55 }
 0x805   :  { %v4340_v16 = vpack.c.bf16 %v3911_v4, %v3910_v57 }
 0x807   :  { %7464 = vmatprep.mubr.msk.bf16.mxu1 %vm2000_vm5, %v4340_v16 }
 0x808   :  { %7465 = vmatmul.mubr.msk.bf16.gmra.mxu1 %vm2000_vm5, %v4341_v53 }
 0x819   :  { %v4158_v54 = vpop.xlane.xlu0 %4157 }
 0x81a   :  { %7971 = vrcp.f32 %v4158_v54 }
 0x81d   :  { %v4162_v3 = vpop.xlane.xlu0 %4161 }
 0x81e   :  { %v4160_v34 = vpop.xlane.xlu1 %4159 }
 0x821   :  { %v4166_v22 = vpop.xlane.xlu0 %4165 }
 0x822   :  { %v4164_v36 = vpop.xlane.xlu1 %4163 }
 0x823   :  { %7973 = vrcp.f32 %v4164_v36 }
 0x824   :  { %7975 = vrcp.f32 %v4160_v34 }
 0x825   :  { %v4170_v12 = vpop.xlane.xlu0 %4169  ;;  %7977 = vrcp.f32 %v4162_v3 }
 0x826   :  { %v4168_v27 = vpop.xlane.xlu1 %4167  ;;  %7979 = vrcp.f32 %v4166_v22 }
 0x827   :  { %v7972_v62 = vpop.eup %7971 }
 0x829   :  { %v4174_v19 = vpop.xlane.xlu0 %4173 }
 0x82a   :  { %v4172_v1 = vpop.xlane.xlu1 %4171 }
 0x82b   :  { %7981 = vrcp.f32 %v4172_v1 }
 0x82c   :  { %7983 = vrcp.f32 %v4168_v27 }
 0x82d   :  { %7985 = vrcp.f32 %v4170_v12  ;;  %v4178_v5 = vpop.xlane.xlu0 %4177 }
 0x82e   :  { %v4176_v9 = vpop.xlane.xlu1 %4175  ;;  %7987 = vrcp.f32 %v4174_v19 }
 0x830   :  { %v7974_v47 = vpop.eup %7973 }
 0x831   :  { %v7976_v32 = vpop.eup %7975  ;;  %v4182_v10 = vpop.xlane.xlu0 %4181 }
 0x832   :  { %v4180_v14 = vpop.xlane.xlu1 %4179  ;;  %v7978_v21 = vpop.eup %7977 }
 0x833   :  { %7989 = vrcp.f32 %v4180_v14  ;;  %v7980_v61 = vpop.eup %7979 }
 0x834   :  { %7991 = vrcp.f32 %v4176_v9 }
 0x835   :  { %7993 = vrcp.f32 %v4178_v5  ;;  %v4186_v7 = vpop.xlane.xlu0 %4185 }
 0x836   :  { %v4184_v24 = vpop.xlane.xlu1 %4183  ;;  %7995 = vrcp.f32 %v4182_v10 }
 0x838   :  { %v7982_v52 = vpop.eup %7981 }
 0x839   :  { %v7984_v15 = vpop.eup %7983 }
 0x83a   :  { %v4188_v18 = vpop.xlane.xlu1 %4187  ;;  %v7986_v42 = vpop.eup %7985 }
 0x83b   :  { %7997 = vrcp.f32 %v4188_v18  ;;  %v7988_v57 = vpop.eup %7987 }
 0x83c   :  { %7999 = vrcp.f32 %v4184_v24 }
 0x83d   :  { %8001 = vrcp.f32 %v4186_v7 }
 0x840   :  { %v7990_v55 = vpop.eup %7989 }
 0x841   :  { %v7992_v16 = vpop.eup %7991 }
 0x842   :  { %v7994_v54 = vpop.eup %7993 }
 0x843   :  { %v7996_v19 = vpop.eup %7995 }
 0x848   :  { %v7998_v14 = vpop.eup %7997 }
 0x85b   :  { %v7434_v50 = vpop.f32.mrf.mxu1 }
 0x85c   :  { %v4320_v59 = vmul.f32 %v7978_v21, %v7434_v50 }
 0x85d   :  { %v4239_v58 = vpop.f32.mrf.mxu1 }
 0x85e   :  { %v4318_v13 = vmul.f32 %v7972_v62, %v4239_v58  ;;  %v8000_v58 = vpop.eup %7999 }
 0x85f   :  { %v7435_v33 = vpop.f32.mrf.mxu1 }
 0x860   :  { %v4321_v35 = vmul.f32 %v7974_v47, %v7435_v33  ;;  %v8002_v33 = vpop.eup %8001 }
 0x861   :  { %v4242_v26 = vpop.f32.mrf.mxu1 }
 0x862   :  { %v4319_v63 = vmul.f32 %v7976_v32, %v4242_v26  ;;  %v4343_v28 = vpack.c.bf16 %v4321_v35, %v4320_v59 }
 0x863   :  { %v7438_v60 = vpop.f32.mrf.mxu1 }
 0x864   :  { %v4342_v56 = vpack.c.bf16 %v4319_v63, %v4318_v13  ;;  %v4324_v11 = vmul.f32 %v7986_v42, %v7438_v60  ;;  %v11202_v13 = vld [vmem:[%s12603_s4 + $0x18] ss:$0 sm:$0xff] }
 0x865   :  { %v4255_v29 = vpop.f32.mrf.mxu1 }
 0x866   :  { %7468 = vmatprep.mubr.msk.bf16.mxu1 %vm2000_vm5, %v4342_v56  ;;  %v4322_v17 = vmul.f32 %v7980_v61, %v4255_v29 }
 0x867   :  { %v7439_v43 = vpop.f32.mrf.mxu1  ;;  %7469 = vmatmul.mubr.msk.bf16.gmra.mxu1 %vm2000_vm5, %v4343_v28 }
 0x868   :  { %v4325_v6 = vmul.f32 %v7982_v52, %v7439_v43 }
 0x869   :  { %v4258_v38 = vpop.f32.mrf.mxu1 }
 0x86a   :  { %v4323_v20 = vmul.f32 %v7984_v15, %v4258_v38  ;;  %v4345_v0 = vpack.c.bf16 %v4325_v6, %v4324_v11 }
 0x86b   :  { %v7442_v39 = vpop.f32.mrf.mxu1 }
 0x86c   :  { %v4344_v40 = vpack.c.bf16 %v4323_v20, %v4322_v17  ;;  %v4328_v27 = vmul.f32 %v7994_v54, %v7442_v39 }
 0x86d   :  { %v4271_v51 = vpop.f32.mrf.mxu1 }
 0x86e   :  { %7472 = vmatprep.mubr.msk.bf16.mxu1 %vm2000_vm5, %v4344_v40  ;;  %v4326_v36 = vmul.f32 %v7988_v57, %v4271_v51 }
 0x86f   :  { %v7443_v4 = vpop.f32.mrf.mxu1  ;;  %7473 = vmatmul.mubr.msk.bf16.gmra.mxu1 %vm2000_vm5, %v4345_v0 }
 0x870   :  { %v4329_v53 = vmul.f32 %v7990_v55, %v7443_v4 }
 0x871   :  { %v4274_v34 = vpop.f32.mrf.mxu1 }
 0x872   :  { %v4327_v3 = vmul.f32 %v7992_v16, %v4274_v34  ;;  %v4347_v12 = vpack.c.bf16 %v4329_v53, %v4328_v27 }
 0x873   :  { %v7446_v22 = vpop.f32.mrf.mxu1 }
 0x874   :  { %v4346_v1 = vpack.c.bf16 %v4327_v3, %v4326_v36  ;;  %v4332_v35 = vmul.f32 %v8002_v33, %v7446_v22 }
 0x875   :  { %v4287_v9 = vpop.f32.mrf.mxu1 }
 0x876   :  { %7476 = vmatprep.mubr.msk.bf16.mxu1 %vm2000_vm5, %v4346_v1  ;;  %v4330_v47 = vmul.f32 %v7996_v19, %v4287_v9 }
 0x877   :  { %v7447_v50 = vpop.f32.mrf.mxu1  ;;  %7477 = vmatmul.mubr.msk.bf16.gmra.mxu1 %vm2000_vm5, %v4347_v12 }
 0x878   :  { %v4333_v5 = vmul.f32 %v7998_v14, %v7447_v50 }
 0x879   :  { %v4290_v62 = vpop.f32.mrf.mxu1 }
 0x87a   :  { %v4331_v32 = vmul.f32 %v8000_v58, %v4290_v62  ;;  %v4349_v21 = vpack.c.bf16 %v4333_v5, %v4332_v35  ;;  %v12754_v62 = vld [vmem:[#allocation21_spill] sm:$0xff] }
 0x87c   :  { %v4348_v26 = vpack.c.bf16 %v4331_v32, %v4330_v47 }
 0x87e   :  { %7480 = vmatprep.mubr.msk.bf16.mxu1 %vm2000_vm5, %v4348_v26  ;;  %v12755_v26 = vld [vmem:[#allocation17_spill] sm:$0xff] }
 0x87f   :  { %7481 = vmatmul.mubr.msk.bf16.gmra.mxu1 %vm2000_vm5, %v4349_v21 }
 0x8af   :  { %v7454_v24 = vpop.f32.mrf.mxu1 }
 0x8b0   :  { %v4447_v59 = vadd.f32 %v7454_v24, %v11202_v13 }
 0x8b1   :  { %v4438_v63 = vpop.f32.mrf.mxu1 }
 0x8b2   :  { %v4439_v60 = vadd.f32 %v11202_v13, %v4438_v63  ;;  %v11210_v29 = vadd.f32 %v4447_v59, %v10407_v2 }
 0x8b3   :  { %v7455_v10 = vpop.f32.mrf.mxu1 }
 0x8b4   :  { %v11207_v56 = vadd.f32 %v4439_v60, %v10403_v48  ;;  %v4450_v61 = vadd.f32 %v7455_v10, %v11202_v13  ;;  %v4603_v42 = vsel %vm2000_vm5, %v11210_v29, 0.0 }
 0x8b5   :  { %v4441_v28 = vpop.f32.mrf.mxu1 }
 0x8b6   :  { %v4442_v43 = vadd.f32 %v11202_v13, %v4441_v28  ;;  %v4597_v52 = vsel %vm2000_vm5, %v11207_v56, 0.0  ;;  %v11220_v6 = vadd.f32 %v4450_v61, %v10401_v41 }
 0x8b7   :  { %4598 = vadd.xlane.f32.xlu0 %v4597_v52 }
 0x8b8   :  { %v11217_v18 = vadd.f32 %v4442_v43, %v10405_v8  ;;  %v7458_v15 = vpop.f32.mrf.mxu1  ;;  %v4606_v11 = vsel %vm2000_vm5, %v11220_v6, 0.0 }
 0x8b9   :  { %v4463_v48 = vadd.f32 %v7458_v15, %v11202_v13  ;;  %v12757_v15 = vld [vmem:[#allocation20_spill] sm:$0xff] }
 0x8ba   :  { %v4454_v38 = vpop.f32.mrf.mxu1  ;;  %v4600_v2 = vsel %vm2000_vm5, %v11217_v18, 0.0 }
 0x8bb   :  { %v4455_v7 = vadd.f32 %v11202_v13, %v4454_v38  ;;  %4601 = vadd.xlane.f32.xlu1 %v4600_v2  ;;  %4604 = vadd.xlane.f32.xlu0 %v4603_v42  ;;  %v11232_v41 = vadd.f32 %v4463_v48, %v10435_v46  ;;  %v12758_v2 = vld [vmem:[#allocation26_spill] sm:$0xff] }
 0x8bc   :  { %v7459_v17 = vpop.f32.mrf.mxu1 }
 0x8bd   :  { %v11229_v8 = vadd.f32 %v4455_v7, %v10431_v30  ;;  %v4466_v39 = vadd.f32 %v7459_v17, %v11202_v13  ;;  %v4615_v46 = vsel %vm2000_vm5, %v11232_v41, 0.0 }
 0x8be   :  { %v4457_v20 = vpop.f32.mrf.mxu1 }
 0x8bf   :  { %v4458_v40 = vadd.f32 %v11202_v13, %v4457_v20  ;;  %4607 = vadd.xlane.f32.xlu1 %v4606_v11  ;;  %v4609_v0 = vsel %vm2000_vm5, %v11229_v8, 0.0  ;;  %v11246_v4 = vadd.f32 %v4466_v39, %v10429_v25  ;;  %v12759_v39 = vld [vmem:[#allocation23_spill] sm:$0xff] }
 0x8c0   :  { %4610 = vadd.xlane.f32.xlu0 %v4609_v0  ;;  %v7462_v51 = vpop.f32.mrf.mxu1 }
 0x8c1   :  { %v11241_v30 = vadd.f32 %v4458_v40, %v10433_v31  ;;  %v4479_v55 = vadd.f32 %v7462_v51, %v11202_v13  ;;  %v4618_v27 = vsel %vm2000_vm5, %v11246_v4, 0.0 }
 0x8c2   :  { %v4470_v57 = vpop.f32.mrf.mxu1 }
 0x8c3   :  { %v4471_v16 = vadd.f32 %v11202_v13, %v4470_v57  ;;  %v4612_v53 = vsel %vm2000_vm5, %v11241_v30, 0.0  ;;  %v11257_v3 = vadd.f32 %v4479_v55, %v10463_v49  ;;  %v12760_v57 = vld [vmem:[#allocation22_spill] sm:$0xff] }
 0x8c4   :  { %4613 = vadd.xlane.f32.xlu1 %v4612_v53  ;;  %4616 = vadd.xlane.f32.xlu0 %v4615_v46  ;;  %v7463_v34 = vpop.f32.mrf.mxu1 }
 0x8c5   :  { %v11253_v31 = vadd.f32 %v4471_v16, %v10459_v37  ;;  %v4482_v54 = vadd.f32 %v7463_v34, %v11202_v13  ;;  %v4627_v14 = vsel %vm2000_vm5, %v11257_v3, 0.0 }
 0x8c6   :  { %v4473_v36 = vpop.f32.mrf.mxu1 }
 0x8c7   :  { %v4474_v25 = vadd.f32 %v11202_v13, %v4473_v36  ;;  %v4621_v22 = vsel %vm2000_vm5, %v11253_v31, 0.0  ;;  %v11268_v12 = vadd.f32 %v4482_v54, %v10457_v44  ;;  %v12761_v54 = vld [vmem:[#allocation24_spill] sm:$0xff] }
 0x8c8   :  { %4619 = vadd.xlane.f32.xlu1 %v4618_v27  ;;  %4622 = vadd.xlane.f32.xlu0 %v4621_v22  ;;  %v7466_v1 = vpop.f32.mrf.mxu1 }
 0x8c9   :  { %v11265_v37 = vadd.f32 %v4474_v25, %v10461_v45  ;;  %v4495_v49 = vadd.f32 %v7466_v1, %v11202_v13  ;;  %v4630_v44 = vsel %vm2000_vm5, %v11268_v12, 0.0  ;;  %v12762_v25 = vld [vmem:[#allocation27_spill] sm:$0xff] }
 0x8ca   :  { %v4486_v9 = vpop.f32.mrf.mxu1 }
 0x8cb   :  { %v4487_v19 = vadd.f32 %v11202_v13, %v4486_v9  ;;  %v4624_v50 = vsel %vm2000_vm5, %v11265_v37, 0.0  ;;  %v11282_v33 = vadd.f32 %v4495_v49, %v12754_v62  ;;  %v12764_v62 = vld [vmem:[#allocation25_spill] sm:$0xff] }
 0x8cc   :  { %4625 = vadd.xlane.f32.xlu1 %v4624_v50  ;;  %4628 = vadd.xlane.f32.xlu0 %v4627_v14  ;;  %v7467_v58 = vpop.f32.mrf.mxu1  ;;  %v12763_v14 = vld [vmem:[#allocation28_spill] sm:$0xff] }
 0x8cd   :  { %v11277_v45 = vadd.f32 %v4487_v19, %v10493_v23  ;;  %v4498_v47 = vadd.f32 %v7467_v58, %v11202_v13  ;;  %v12756_v23 = vld [vmem:[#allocation18_spill] sm:$0xff]  ;;  %v4639_v59 = vsel %vm2000_vm5, %v11282_v33, 0.0 }
 0x8ce   :  { %v4489_v5 = vpop.f32.mrf.mxu1 }
 0x8cf   :  { %v4490_v32 = vadd.f32 %v11202_v13, %v4489_v5  ;;  %v4633_v35 = vsel %vm2000_vm5, %v11277_v45, 0.0  ;;  %v11292_v24 = vadd.f32 %v4498_v47, %v12756_v23 }
 0x8d0   :  { %4631 = vadd.xlane.f32.xlu1 %v4630_v44  ;;  %4634 = vadd.xlane.f32.xlu0 %v4633_v35 }
 0x8d1   :  { %v11289_v21 = vadd.f32 %v4490_v32, %v12755_v26  ;;  %v4642_v60 = vsel %vm2000_vm5, %v11292_v24, 0.0 }
 0x8d3   :  { %v4636_v63 = vsel %vm2000_vm5, %v11289_v21, 0.0 }
 0x8d4   :  { %4637 = vadd.xlane.f32.xlu1 %v4636_v63  ;;  %4640 = vadd.xlane.f32.xlu0 %v4639_v59  ;;  %v12765_v63 = vld [vmem:[#allocation19_spill] sm:$0xff] }
 0x8d8   :  { %4643 = vadd.xlane.f32.xlu1 %v4642_v60 }
 0x927   :  { %v7470_v10 = vpop.f32.mrf.mxu1 }
 0x928   :  { %v4511_v61 = vadd.f32 %v7470_v10, %v11202_v13 }
 0x929   :  { %v4502_v28 = vpop.f32.mrf.mxu1 }
 0x92a   :  { %v4503_v43 = vadd.f32 %v11202_v13, %v4502_v28  ;;  %v11306_v42 = vadd.f32 %v4511_v61, %v12758_v2  ;;  %v12766_v28 = vld [vmem:[#allocation30_spill] sm:$0xff] }
 0x92b   :  { %v7471_v52 = vpop.f32.mrf.mxu1 }
 0x92c   :  { %v11303_v48 = vadd.f32 %v4503_v43, %v12757_v15  ;;  %v4514_v7 = vadd.f32 %v7471_v52, %v11202_v13  ;;  %v4651_v53 = vsel %vm2000_vm5, %v11306_v42, 0.0 }
 0x92d   :  { %v4505_v38 = vpop.f32.mrf.mxu1 }
 0x92e   :  { %v4506_v17 = vadd.f32 %v11202_v13, %v4505_v38  ;;  %v4645_v20 = vsel %vm2000_vm5, %v11303_v48, 0.0  ;;  %v11317_v46 = vadd.f32 %v4514_v7, %v12760_v57  ;;  %v12767_v7 = vld [vmem:[#allocation29_spill] sm:$0xff] }
 0x92f   :  { %4646 = vadd.xlane.f32.xlu0 %v4645_v20  ;;  %v7474_v11 = vpop.f32.mrf.mxu1 }
 0x930   :  { %v11313_v40 = vadd.f32 %v4506_v17, %v12759_v39  ;;  %v4527_v0 = vadd.f32 %v7474_v11, %v11202_v13  ;;  %v4654_v49 = vsel %vm2000_vm5, %v11317_v46, 0.0  ;;  %v12768_v11 = vld [vmem:[#allocation16_spill] sm:$0xff] }
 0x931   :  { %v4518_v51 = vpop.f32.mrf.mxu1 }
 0x932   :  { %v4519_v55 = vadd.f32 %v11202_v13, %v4518_v51  ;;  %v4648_v16 = vsel %vm2000_vm5, %v11313_v40, 0.0  ;;  %v11328_v27 = vadd.f32 %v4527_v0, %v12762_v25  ;;  %v12769_v25 = vld [vmem:[#allocation32_spill] sm:$0xff] }
 0x933   :  { %4649 = vadd.xlane.f32.xlu1 %v4648_v16  ;;  %4652 = vadd.xlane.f32.xlu0 %v4651_v53  ;;  %v7475_v34 = vpop.f32.mrf.mxu1 }
 0x934   :  { %v11325_v36 = vadd.f32 %v4519_v55, %v12761_v54  ;;  %v4530_v1 = vadd.f32 %v7475_v34, %v11202_v13  ;;  %v4663_v44 = vsel %vm2000_vm5, %v11328_v27, 0.0 }
 0x935   :  { %v4521_v22 = vpop.f32.mrf.mxu1 }
 0x936   :  { %v4522_v9 = vadd.f32 %v11202_v13, %v4521_v22  ;;  %v4657_v19 = vsel %vm2000_vm5, %v11325_v36, 0.0  ;;  %v11342_v47 = vadd.f32 %v4530_v1, %v12764_v62 }
 0x937   :  { %4655 = vadd.xlane.f32.xlu1 %v4654_v49  ;;  %4658 = vadd.xlane.f32.xlu0 %v4657_v19  ;;  %v7478_v50 = vpop.f32.mrf.mxu1  ;;  %v12770_v49 = vld [vmem:[#allocation34_spill] sm:$0xff] }
 0x938   :  { %v11337_v58 = vadd.f32 %v4522_v9, %v12763_v14  ;;  %v4543_v32 = vadd.f32 %v7478_v50, %v11202_v13  ;;  %v4666_v52 = vsel %vm2000_vm5, %v11342_v47, 0.0 }
 0x939   :  { %v4534_v5 = vpop.f32.mrf.mxu1 }
 0x93a   :  { %v4535_v35 = vadd.f32 %v11202_v13, %v4534_v5  ;;  %v4660_v26 = vsel %vm2000_vm5, %v11337_v58, 0.0  ;;  %v11353_v61 = vadd.f32 %v4543_v32, %v12766_v28 }
 0x93b   :  { %4661 = vadd.xlane.f32.xlu1 %v4660_v26  ;;  %4664 = vadd.xlane.f32.xlu0 %v4663_v44  ;;  %v7479_v23 = vpop.f32.mrf.mxu1 }
 0x93c   :  { %v11349_v59 = vadd.f32 %v4535_v35, %v12765_v63  ;;  %v4546_v60 = vadd.f32 %v7479_v23, %v11202_v13  ;;  %v4675_v16 = vsel %vm2000_vm5, %v11353_v61, 0.0  ;;  %v12771_v35 = vld [vmem:[#allocation33_spill] sm:$0xff] }
 0x93d   :  { %v4537_v10 = vpop.f32.mrf.mxu1 }
 0x93e   :  { %v4538_v43 = vadd.f32 %v11202_v13, %v4537_v10  ;;  %v4669_v15 = vsel %vm2000_vm5, %v11349_v59, 0.0  ;;  %v11364_v39 = vadd.f32 %v4546_v60, %v12768_v11 }
 0x93f   :  { %4667 = vadd.xlane.f32.xlu1 %v4666_v52  ;;  %4670 = vadd.xlane.f32.xlu0 %v4669_v15  ;;  %v7482_v38 = vpop.f32.mrf.mxu1  ;;  %v12772_v52 = vld [vmem:[#allocation31_spill] sm:$0xff] }
 0x940   :  { %v4599_v2 = vpop.xlane.xlu0 %4598  ;;  %v11361_v17 = vadd.f32 %v4538_v43, %v12767_v7  ;;  %v4559_v0 = vadd.f32 %v7482_v38, %v11202_v13  ;;  %v4678_v14 = vsel %vm2000_vm5, %v11364_v39, 0.0 }
 0x941   :  { %v4693_v20 = vmul.f32 0.03125, %v4599_v2  ;;  %v4550_v51 = vpop.f32.mrf.mxu1 }
 0x942   :  { %v4551_v57 = vadd.f32 %v11202_v13, %v4550_v51  ;;  %v4672_v55 = vsel %vm2000_vm5, %v11361_v17, 0.0  ;;  %v11379_v19 = vadd.f32 %v4559_v0, %v12770_v49 }
 0x943   :  { %4673 = vadd.xlane.f32.xlu1 %v4672_v55  ;;  %4676 = vadd.xlane.f32.xlu0 %v4675_v16  ;;  %v7483_v53 = vpop.f32.mrf.mxu1  ;;  %v11376_v1 = vsub.f32 %v11207_v56, %v4693_v20 }
 0x944   :  { %v4605_v34 = vpop.xlane.xlu0 %4604  ;;  %v4602_v54 = vpop.xlane.xlu1 %4601  ;;  %v11373_v22 = vadd.f32 %v4551_v57, %v12769_v25  ;;  %v4562_v44 = vadd.f32 %v7483_v53, %v11202_v13  ;;  %v4687_v10 = vsel %vm2000_vm5, %v11379_v19, 0.0 }
 0x945   :  { %v4695_v9 = vmul.f32 0.03125, %v4605_v34  ;;  %v4553_v50 = vpop.f32.mrf.mxu1  ;;  %v4694_v5 = vmul.f32 0.03125, %v4602_v54 }
 0x946   :  { %v4554_v62 = vadd.f32 %v11202_v13, %v4553_v50  ;;  %v4681_v32 = vsel %vm2000_vm5, %v11373_v22, 0.0  ;;  %v4757_v13 = vmul.f32 %v11376_v1, %v11376_v1  ;;  %v11401_v15 = vadd.f32 %v4562_v44, %v12772_v52 }
 0x947   :  { %4679 = vadd.xlane.f32.xlu1 %v4678_v14  ;;  %4682 = vadd.xlane.f32.xlu0 %v4681_v32  ;;  %v11391_v23 = vsub.f32 %v11210_v29, %v4695_v9  ;;  %v11398_v28 = vsub.f32 %v11217_v18, %v4694_v5 }
 0x948   :  { %v4608_v56 = vpop.xlane.xlu1 %4607  ;;  %v11388_v26 = vadd.f32 %v4554_v62, %v12771_v35  ;;  %v4789_v18 = vsel %vm2000_vm5, %v4757_v13, 0.0  ;;  %v4690_v57 = vsel %vm2000_vm5, %v11401_v15, 0.0 }
 0x949   :  { %v4611_v63 = vpop.xlane.xlu0 %4610  ;;  %v4696_v60 = vmul.f32 0.03125, %v4608_v56  ;;  %v4759_v11 = vmul.f32 %v11391_v23, %v11391_v23  ;;  %v4758_v55 = vmul.f32 %v11398_v28, %v11398_v28 }
 0x94a   :  { %v4697_v43 = vmul.f32 0.03125, %v4611_v63  ;;  %v4684_v38 = vsel %vm2000_vm5, %v11388_v26, 0.0 }
 0x94b   :  { %4685 = vadd.xlane.f32.xlu1 %v4684_v38  ;;  %4688 = vadd.xlane.f32.xlu0 %v4687_v10  ;;  %v11409_v2 = vsub.f32 %v11220_v6, %v4696_v60  ;;  %v4795_v53 = vsel %vm2000_vm5, %v4759_v11, 0.0  ;;  %v4792_v50 = vsel %vm2000_vm5, %v4758_v55, 0.0 }
 0x94c   :  { %v11406_v29 = vsub.f32 %v11229_v8, %v4697_v43 }
 0x94d   :  { %v4617_v7 = vpop.xlane.xlu0 %4616  ;;  %v4614_v20 = vpop.xlane.xlu1 %4613  ;;  %v4760_v54 = vmul.f32 %v11409_v2, %v11409_v2 }
 0x94e   :  { %v4699_v0 = vmul.f32 0.03125, %v4617_v7  ;;  %v4698_v51 = vmul.f32 0.03125, %v4614_v20  ;;  %v4761_v34 = vmul.f32 %v11406_v29, %v11406_v29 }
 0x94f   :  { %4691 = vadd.xlane.f32.xlu1 %v4690_v57  ;;  %4790 = vadd.xlane.f32.xlu0 %v4789_v18  ;;  %v4798_v62 = vsel %vm2000_vm5, %v4760_v54, 0.0 }
 0x950   :  { %v11419_v6 = vsub.f32 %v11232_v41, %v4699_v0  ;;  %v11427_v25 = vsub.f32 %v11241_v30, %v4698_v51  ;;  %v4801_v44 = vsel %vm2000_vm5, %v4761_v34, 0.0 }
 0x951   :  { %v4623_v8 = vpop.xlane.xlu0 %4622  ;;  %v4620_v16 = vpop.xlane.xlu1 %4619 }
 0x952   :  { %v4701_v9 = vmul.f32 0.03125, %v4623_v8  ;;  %v4700_v49 = vmul.f32 0.03125, %v4620_v16  ;;  %v4763_v32 = vmul.f32 %v11419_v6, %v11419_v6  ;;  %v4762_v63 = vmul.f32 %v11427_v25, %v11427_v25 }
 0x953   :  { %4796 = vadd.xlane.f32.xlu0 %v4795_v53  ;;  %4793 = vadd.xlane.f32.xlu1 %v4792_v50 }
 0x954   :  { %v11431_v41 = vsub.f32 %v11253_v31, %v4701_v9  ;;  %v11438_v30 = vsub.f32 %v11246_v4, %v4700_v49  ;;  %v4807_v43 = vsel %vm2000_vm5, %v4763_v32, 0.0  ;;  %v4804_v7 = vsel %vm2000_vm5, %v4762_v63, 0.0  ;;  %v46_v63 = vld [vmem:[%s12601_s2 + $0x48] sm:$0xff] }
 0x955   :  { %v4629_v14 = vpop.xlane.xlu0 %4628  ;;  %v4626_v5 = vpop.xlane.xlu1 %4625 }
 0x956   :  { %v4703_v56 = vmul.f32 0.03125, %v4629_v14  ;;  %v4702_v35 = vmul.f32 0.03125, %v4626_v5  ;;  %v4765_v4 = vmul.f32 %v11431_v41, %v11431_v41  ;;  %v4764_v20 = vmul.f32 %v11438_v30, %v11438_v30 }
 0x957   :  { %4802 = vadd.xlane.f32.xlu0 %v4801_v44  ;;  %4799 = vadd.xlane.f32.xlu1 %v4798_v62 }
 0x958   :  { %v11443_v31 = vsub.f32 %v11257_v3, %v4703_v56  ;;  %v11446_v60 = vsub.f32 %v11265_v37, %v4702_v35  ;;  %v4813_v11 = vsel %vm2000_vm5, %v4765_v4, 0.0  ;;  %v4810_v16 = vsel %vm2000_vm5, %v4764_v20, 0.0  ;;  %v45_v35 = vld [vmem:[%s12601_s2 + $0x30] sm:$0xff] }
 0x959   :  { %v4635_v10 = vpop.xlane.xlu0 %4634  ;;  %v4632_v13 = vpop.xlane.xlu1 %4631 }
 0x95a   :  { %v4705_v52 = vmul.f32 0.03125, %v4635_v10  ;;  %v4704_v38 = vmul.f32 0.03125, %v4632_v13  ;;  %v4767_v0 = vmul.f32 %v11443_v31, %v11443_v31  ;;  %v4766_v51 = vmul.f32 %v11446_v60, %v11446_v60  ;;  %v43_v13 = vld [vmem:[%s12601_s2] sm:$0xff] }
 0x95b   :  { %4808 = vadd.xlane.f32.xlu0 %v4807_v43  ;;  %4805 = vadd.xlane.f32.xlu1 %v4804_v7  ;;  %v5102_v10 = vpack.c.bf16 %v46_v63, %v45_v35  ;;  %v44_v43 = vld [vmem:[%s12601_s2 + $0x18] sm:$0xff] }
 0x95c   :  { %v11455_v3 = vsub.f32 %v11277_v45, %v4705_v52  ;;  %v11463_v57 = vsub.f32 %v11268_v12, %v4704_v38  ;;  %v4819_v53 = vsel %vm2000_vm5, %v4767_v0, 0.0  ;;  %v4816_v34 = vsel %vm2000_vm5, %v4766_v51, 0.0 }
 0x95d   :  { %v4641_v37 = vpop.xlane.xlu0 %4640  ;;  %v4638_v18 = vpop.xlane.xlu1 %4637  ;;  %7484 = vmatprep.subr.bf16.mxu0 %v5102_v10  ;;  %v5101_v4 = vpack.c.bf16 %v44_v43, %v43_v13 }
 0x95e   :  { %v4707_v55 = vmul.f32 0.03125, %v4641_v37  ;;  %v4706_v8 = vmul.f32 0.03125, %v4638_v18  ;;  %v4769_v54 = vmul.f32 %v11455_v3, %v11455_v3  ;;  %v4768_v50 = vmul.f32 %v11463_v57, %v11463_v57  ;;  %7485 = vmatpush3.bf16.msra.mxu0 %v5102_v10 }
 0x95f   :  { %4814 = vadd.xlane.f32.xlu0 %v4813_v11  ;;  %4811 = vadd.xlane.f32.xlu1 %v4810_v16 }
 0x960   :  { %v11471_v9 = vsub.f32 %v11282_v33, %v4707_v55  ;;  %v11474_v12 = vsub.f32 %v11289_v21, %v4706_v8  ;;  %v4825_v14 = vsel %vm2000_vm5, %v4769_v54, 0.0  ;;  %v4822_v44 = vsel %vm2000_vm5, %v4768_v50, 0.0  ;;  %7486 = vmatprep.subr.bf16.mxu0 %v5101_v4 }
 0x961   :  { %v4644_v45 = vpop.xlane.xlu1 %4643 }
 0x962   :  { %v4708_v49 = vmul.f32 0.03125, %v4644_v45  ;;  %v4771_v33 = vmul.f32 %v11471_v9, %v11471_v9  ;;  %v4770_v21 = vmul.f32 %v11474_v12, %v11474_v12  ;;  %7487 = vmatpush3.bf16.msra.mxu0 %v5101_v4 }
 0x963   :  { %4820 = vadd.xlane.f32.xlu0 %v4819_v53  ;;  %4817 = vadd.xlane.f32.xlu1 %v4816_v34 }
 0x964   :  { %v11480_v5 = vsub.f32 %v11292_v24, %v4708_v49  ;;  %v4831_v62 = vsel %vm2000_vm5, %v4771_v33, 0.0  ;;  %v4828_v32 = vsel %vm2000_vm5, %v4770_v21, 0.0 }
 0x966   :  { %v4772_v56 = vmul.f32 %v11480_v5, %v11480_v5 }
 0x967   :  { %4826 = vadd.xlane.f32.xlu0 %v4825_v14  ;;  %4823 = vadd.xlane.f32.xlu1 %v4822_v44 }
 0x968   :  { %v4834_v24 = vsel %vm2000_vm5, %v4772_v56, 0.0 }
 0x96b   :  { %4832 = vadd.xlane.f32.xlu0 %v4831_v62  ;;  %4829 = vadd.xlane.f32.xlu1 %v4828_v32 }
 0x96f   :  { %4835 = vadd.xlane.f32.xlu1 %v4834_v24 }
 0x9b8   :  { %v4647_v52 = vpop.xlane.xlu0 %4646 }
 0x9b9   :  { %v4709_v38 = vmul.f32 0.03125, %v4647_v52 }
 0x9bb   :  { %v11505_v7 = vsub.f32 %v11303_v48, %v4709_v38 }
 0x9bc   :  { %v4653_v20 = vpop.xlane.xlu0 %4652  ;;  %v4650_v37 = vpop.xlane.xlu1 %4649 }
 0x9bd   :  { %v4711_v18 = vmul.f32 0.03125, %v4653_v20  ;;  %v4710_v11 = vmul.f32 0.03125, %v4650_v37  ;;  %v4773_v0 = vmul.f32 %v11505_v7, %v11505_v7 }
 0x9bf   :  { %v11510_v51 = vsub.f32 %v11306_v42, %v4711_v18  ;;  %v11513_v55 = vsub.f32 %v11313_v40, %v4710_v11  ;;  %v4837_v8 = vsel %vm2000_vm5, %v4773_v0, 0.0 }
 0x9c0   :  { %v4659_v16 = vpop.xlane.xlu0 %4658  ;;  %4838 = vadd.xlane.f32.xlu0 %v4837_v8  ;;  %v4656_v45 = vpop.xlane.xlu1 %4655 }
 0x9c1   :  { %v4713_v48 = vmul.f32 0.03125, %v4659_v16  ;;  %v4712_v53 = vmul.f32 0.03125, %v4656_v45  ;;  %v4775_v34 = vmul.f32 %v11510_v51, %v11510_v51  ;;  %v4774_v54 = vmul.f32 %v11513_v55, %v11513_v55 }
 0x9c3   :  { %v11521_v49 = vsub.f32 %v11325_v36, %v4713_v48  ;;  %v11524_v42 = vsub.f32 %v11317_v46, %v4712_v53  ;;  %v4843_v40 = vsel %vm2000_vm5, %v4775_v34, 0.0  ;;  %v4840_v50 = vsel %vm2000_vm5, %v4774_v54, 0.0 }
 0x9c4   :  { %v4665_v14 = vpop.xlane.xlu0 %4664  ;;  %4844 = vadd.xlane.f32.xlu0 %v4843_v40  ;;  %4841 = vadd.xlane.f32.xlu1 %v4840_v50  ;;  %v4662_v44 = vpop.xlane.xlu1 %4661 }
 0x9c5   :  { %v4715_v33 = vmul.f32 0.03125, %v4665_v14  ;;  %v4714_v21 = vmul.f32 0.03125, %v4662_v44  ;;  %v4777_v62 = vmul.f32 %v11521_v49, %v11521_v49  ;;  %v4776_v36 = vmul.f32 %v11524_v42, %v11524_v42 }
 0x9c7   :  { %v11533_v32 = vsub.f32 %v11328_v27, %v4715_v33  ;;  %v11536_v46 = vsub.f32 %v11337_v58, %v4714_v21  ;;  %v4849_v56 = vsel %vm2000_vm5, %v4777_v62, 0.0  ;;  %v4846_v24 = vsel %vm2000_vm5, %v4776_v36, 0.0 }
 0x9c8   :  { %v4671_v35 = vpop.xlane.xlu0 %4670  ;;  %4850 = vadd.xlane.f32.xlu0 %v4849_v56  ;;  %4847 = vadd.xlane.f32.xlu1 %v4846_v24  ;;  %v4668_v63 = vpop.xlane.xlu1 %4667 }
 0x9c9   :  { %v4717_v10 = vmul.f32 0.03125, %v4671_v35  ;;  %v4716_v13 = vmul.f32 0.03125, %v4668_v63  ;;  %v4779_v43 = vmul.f32 %v11533_v32, %v11533_v32  ;;  %v4778_v27 = vmul.f32 %v11536_v46, %v11536_v46 }
 0x9cb   :  { %v11545_v4 = vsub.f32 %v11349_v59, %v4717_v10  ;;  %v11548_v58 = vsub.f32 %v11342_v47, %v4716_v13  ;;  %v4855_v52 = vsel %vm2000_vm5, %v4779_v43, 0.0  ;;  %v4852_v38 = vsel %vm2000_vm5, %v4778_v27, 0.0 }
 0x9cc   :  { %v4677_v20 = vpop.xlane.xlu0 %4676  ;;  %4856 = vadd.xlane.f32.xlu0 %v4855_v52  ;;  %4853 = vadd.xlane.f32.xlu1 %v4852_v38  ;;  %v4674_v37 = vpop.xlane.xlu1 %4673 }
 0x9cd   :  { %v4719_v18 = vmul.f32 0.03125, %v4677_v20  ;;  %v4718_v11 = vmul.f32 0.03125, %v4674_v37  ;;  %v4781_v0 = vmul.f32 %v11545_v4, %v11545_v4  ;;  %v4780_v59 = vmul.f32 %v11548_v58, %v11548_v58 }
 0x9cf   :  { %v11557_v8 = vsub.f32 %v11353_v61, %v4719_v18  ;;  %v11560_v47 = vsub.f32 %v11361_v17, %v4718_v11  ;;  %v4861_v16 = vsel %vm2000_vm5, %v4781_v0, 0.0  ;;  %v4858_v45 = vsel %vm2000_vm5, %v4780_v59, 0.0 }
 0x9d0   :  { %4862 = vadd.xlane.f32.xlu0 %v4861_v16  ;;  %v4683_v48 = vpop.xlane.xlu0 %4682  ;;  %4859 = vadd.xlane.f32.xlu1 %v4858_v45  ;;  %v4680_v53 = vpop.xlane.xlu1 %4679 }
 0x9d1   :  { %v4721_v34 = vmul.f32 0.03125, %v4683_v48  ;;  %v4720_v54 = vmul.f32 0.03125, %v4680_v53  ;;  %v4783_v40 = vmul.f32 %v11557_v8, %v11557_v8  ;;  %v4782_v61 = vmul.f32 %v11560_v47, %v11560_v47 }
 0x9d3   :  { %v11569_v50 = vsub.f32 %v11373_v22, %v4721_v34  ;;  %v11572_v17 = vsub.f32 %v11364_v39, %v4720_v54  ;;  %v4867_v14 = vsel %vm2000_vm5, %v4783_v40, 0.0  ;;  %v4864_v44 = vsel %vm2000_vm5, %v4782_v61, 0.0 }
 0x9d4   :  { %4868 = vadd.xlane.f32.xlu0 %v4867_v14  ;;  %v4689_v33 = vpop.xlane.xlu0 %4688  ;;  %4865 = vadd.xlane.f32.xlu1 %v4864_v44  ;;  %v4686_v21 = vpop.xlane.xlu1 %4685 }
 0x9d5   :  { %v4723_v62 = vmul.f32 0.03125, %v4689_v33  ;;  %v4722_v36 = vmul.f32 0.03125, %v4686_v21  ;;  %v4785_v56 = vmul.f32 %v11569_v50, %v11569_v50  ;;  %v4784_v22 = vmul.f32 %v11572_v17, %v11572_v17 }
 0x9d7   :  { %v11581_v24 = vsub.f32 %v11379_v19, %v4723_v62  ;;  %v11584_v39 = vsub.f32 %v11388_v26, %v4722_v36  ;;  %v4873_v35 = vsel %vm2000_vm5, %v4785_v56, 0.0  ;;  %v4870_v63 = vsel %vm2000_vm5, %v4784_v22, 0.0 }
 0x9d8   :  { %4874 = vadd.xlane.f32.xlu0 %v4873_v35  ;;  %v4791_v10 = vpop.xlane.xlu0 %4790  ;;  %4871 = vadd.xlane.f32.xlu1 %v4870_v63  ;;  %v4692_v13 = vpop.xlane.xlu1 %4691 }
 0x9d9   :  { %v4885_v43 = vmul.f32 0.03125, %v4791_v10  ;;  %v4724_v27 = vmul.f32 0.03125, %v4692_v13  ;;  %v4787_v52 = vmul.f32 %v11581_v24, %v11581_v24  ;;  %v4786_v19 = vmul.f32 %v11584_v39, %v11584_v39 }
 0x9db   :  { %v4917_v38 = vadd.f32 1e-05, %v4885_v43  ;;  %v11593_v26 = vsub.f32 %v11401_v15, %v4724_v27  ;;  %v4879_v20 = vsel %vm2000_vm5, %v4787_v52, 0.0  ;;  %v4876_v37 = vsel %vm2000_vm5, %v4786_v19, 0.0 }
 0x9dc   :  { %4880 = vadd.xlane.f32.xlu0 %v4879_v20  ;;  %v4797_v18 = vpop.xlane.xlu0 %4796  ;;  %4877 = vadd.xlane.f32.xlu1 %v4876_v37  ;;  %v4794_v11 = vpop.xlane.xlu1 %4793  ;;  %v11604_v20 = vld [vmem:[%s12603_s4 + $0x19] ss:$0 sm:$0xff] }
 0x9dd   :  { %8003 = vrsqrt.f32 %v4917_v38  ;;  %v4887_v0 = vmul.f32 0.03125, %v4797_v18  ;;  %v4886_v59 = vmul.f32 0.03125, %v4794_v11  ;;  %v4788_v16 = vmul.f32 %v11593_v26, %v11593_v26 }
 0x9df   :  { %v4919_v45 = vadd.f32 1e-05, %v4887_v0  ;;  %v4918_v48 = vadd.f32 1e-05, %v4886_v59  ;;  %v4882_v53 = vsel %vm2000_vm5, %v4788_v16, 0.0 }
 0x9e0   :  { %v4803_v15 = vpop.xlane.xlu0 %4802  ;;  %4883 = vadd.xlane.f32.xlu1 %v4882_v53  ;;  %v4800_v34 = vpop.xlane.xlu1 %4799 }
 0x9e1   :  { %8005 = vrsqrt.f32 %v4919_v45  ;;  %v4889_v54 = vmul.f32 0.03125, %v4803_v15  ;;  %v4888_v40 = vmul.f32 0.03125, %v4800_v34  ;;  %v11612_v34 = vld [vmem:[%s12603_s4 + $0x1a] ss:$0 sm:$0xff] }
 0x9e2   :  { %8007 = vrsqrt.f32 %v4918_v48 }
 0x9e3   :  { %v4921_v61 = vadd.f32 1e-05, %v4889_v54  ;;  %v4920_v14 = vadd.f32 1e-05, %v4888_v40 }
 0x9e4   :  { %v4809_v44 = vpop.xlane.xlu0 %4808  ;;  %v4806_v33 = vpop.xlane.xlu1 %4805 }
 0x9e5   :  { %8009 = vrsqrt.f32 %v4921_v61  ;;  %v4891_v21 = vmul.f32 0.03125, %v4809_v44  ;;  %v4890_v62 = vmul.f32 0.03125, %v4806_v33  ;;  %v12773_v61 = vld [vmem:[#allocation12_spill] sm:$0xff]  ;;  %v12774_v44 = vld [vmem:[#allocation11_spill] sm:$0xff] }
 0x9e6   :  { %8011 = vrsqrt.f32 %v4920_v14 }
 0x9e7   :  { %v4923_v36 = vadd.f32 1e-05, %v4891_v21  ;;  %v4922_v56 = vadd.f32 1e-05, %v4890_v62 }
 0x9e8   :  { %v4815_v22 = vpop.xlane.xlu0 %4814  ;;  %v4812_v35 = vpop.xlane.xlu1 %4811 }
 0x9e9   :  { %8013 = vrsqrt.f32 %v4923_v36  ;;  %v4893_v63 = vmul.f32 0.03125, %v4815_v22  ;;  %v4892_v10 = vmul.f32 0.03125, %v4812_v35 }
 0x9ea   :  { %v8004_v13 = vpop.eup %8003  ;;  %8015 = vrsqrt.f32 %v4922_v56 }
 0x9eb   :  { %v4925_v43 = vadd.f32 1e-05, %v4893_v63  ;;  %v4924_v27 = vadd.f32 1e-05, %v4892_v10  ;;  %v4981_v38 = vmul.f32 %v8004_v13, %v11376_v1 }
 0x9ec   :  { %v4821_v52 = vpop.xlane.xlu0 %4820  ;;  %v4818_v19 = vpop.xlane.xlu1 %4817 }
 0x9ed   :  { %8017 = vrsqrt.f32 %v4925_v43  ;;  %v4895_v37 = vmul.f32 0.03125, %v4821_v52  ;;  %v4894_v18 = vmul.f32 0.03125, %v4818_v19  ;;  %v5017_v1 = vmul.f32 %v11604_v20, %v4981_v38  ;;  %v12776_v38 = vld [vmem:[#allocation15_spill] sm:$0xff] }
 0x9ee   :  { %v8006_v11 = vpop.eup %8005  ;;  %8019 = vrsqrt.f32 %v4924_v27  ;;  %v12775_v27 = vld [vmem:[#allocation14_spill] sm:$0xff] }
 0x9ef   :  { %v8008_v0 = vpop.eup %8007  ;;  %v4983_v59 = vmul.f32 %v8006_v11, %v11391_v23  ;;  %v4927_v16 = vadd.f32 1e-05, %v4895_v37  ;;  %v4926_v45 = vadd.f32 1e-05, %v4894_v18  ;;  %v11622_v35 = vadd.f32 %v11612_v34, %v5017_v1 }
 0x9f0   :  { %v4827_v48 = vpop.xlane.xlu0 %4826  ;;  %v4824_v53 = vpop.xlane.xlu1 %4823  ;;  %v4982_v15 = vmul.f32 %v8008_v0, %v11398_v28 }
 0x9f1   :  { %8021 = vrsqrt.f32 %v4927_v16  ;;  %v4897_v54 = vmul.f32 0.03125, %v4827_v48  ;;  %v4896_v40 = vmul.f32 0.03125, %v4824_v53  ;;  %5640 = vrot.lane.b32.xlu1 %v12773_v61, %s8237_s30  ;;  %v5019_v33 = vmul.f32 %v11604_v20, %v4983_v59 }
 0x9f2   :  { %v8010_v23 = vpop.eup %8009  ;;  %8023 = vrsqrt.f32 %v4926_v45  ;;  %v5018_v14 = vmul.f32 %v11604_v20, %v4982_v15  ;;  %5642 = vrot.lane.b32.xlu0 %v12774_v44, %s8237_s30  ;;  %v12777_v15 = vld [vmem:[#allocation8_spill] sm:$0xff] }
 0x9f3   :  { %v8012_v28 = vpop.eup %8011  ;;  %v4929_v21 = vadd.f32 1e-05, %v4897_v54  ;;  %v4928_v62 = vadd.f32 1e-05, %v4896_v40  ;;  %v4985_v10 = vmul.f32 %v8010_v23, %v11406_v29  ;;  %v11636_v18 = vadd.f32 %v11612_v34, %v5019_v33 }
 0x9f4   :  { %v4984_v36 = vmul.f32 %v8012_v28, %v11409_v2  ;;  %v4833_v56 = vpop.xlane.xlu0 %4832  ;;  %v4830_v22 = vpop.xlane.xlu1 %4829  ;;  %v11625_v63 = vadd.f32 %v11612_v34, %v5018_v14 }
 0x9f5   :  { %8025 = vrsqrt.f32 %v4929_v21  ;;  %v4899_v13 = vmul.f32 0.03125, %v4833_v56  ;;  %v4898_v43 = vmul.f32 0.03125, %v4830_v22  ;;  %5638 = vrot.lane.b32.xlu1 %v12775_v27, %s8237_s30  ;;  %v5021_v48 = vmul.f32 %v11604_v20, %v4985_v10  ;;  %v12779_v21 = vld [vmem:[#allocation10_spill] sm:$0xff] }
 0x9f6   :  { %v8014_v52 = vpop.eup %8013  ;;  %v5020_v19 = vmul.f32 %v11604_v20, %v4984_v36  ;;  %8027 = vrsqrt.f32 %v4928_v62  ;;  %v5085_v2 = vpack.c.bf16 %v11625_v63, %v11622_v35  ;;  %5636 = vrot.lane.b32.xlu0 %v12776_v38, %s8237_s30  ;;  %v12780_v36 = vld [vmem:[#allocation13_spill] sm:$0xff] }
 0x9f7   :  { %v8016_v37 = vpop.eup %8015  ;;  %v4931_v29 = vadd.f32 1e-05, %v4899_v13  ;;  %v4930_v11 = vadd.f32 1e-05, %v4898_v43  ;;  %v4987_v59 = vmul.f32 %v8014_v52, %v11419_v6  ;;  %v12778_v6 = vld [vmem:[#allocation9_spill] sm:$0xff]  ;;  %v11656_v44 = vadd.f32 %v11612_v34, %v5021_v48 }
 0x9f8   :  { %v11639_v0 = vadd.f32 %v11612_v34, %v5020_v19  ;;  %7488 = vmatprep.mubr.msk.bf16.mxu0 %vm2000_vm5, %v5085_v2  ;;  %v4836_v16 = vpop.xlane.xlu1 %4835  ;;  %v4986_v45 = vmul.f32 %v8016_v37, %v11427_v25 }
 0x9f9   :  { %8029 = vrsqrt.f32 %v4931_v29  ;;  %v4900_v53 = vmul.f32 0.03125, %v4836_v16  ;;  %5634 = vrot.lane.b32.xlu1 %v12777_v15, %s8237_s30  ;;  %v5023_v33 = vmul.f32 %v11604_v20, %v4987_v59 }
 0x9fa   :  { %v8018_v1 = vpop.eup %8017  ;;  %v5086_v54 = vpack.c.bf16 %v11639_v0, %v11636_v18  ;;  %8031 = vrsqrt.f32 %v4930_v11  ;;  %v5022_v40 = vmul.f32 %v11604_v20, %v4986_v45  ;;  %5632 = vrot.lane.b32.xlu0 %v12778_v6, %s8237_s30 }
 0x9fb   :  { %v8020_v61 = vpop.eup %8019  ;;  %v4932_v23 = vadd.f32 1e-05, %v4900_v53  ;;  %v4989_v25 = vmul.f32 %v8018_v1, %v11431_v41  ;;  %v11673_v13 = vadd.f32 %v11612_v34, %v5023_v33 }
 0x9fc   :  { %v4988_v14 = vmul.f32 %v8020_v61, %v11438_v30  ;;  %7489 = vmatmul.mubr.msk.bf16.vlgmr.msra.gmra.mxu0 %vm2000_vm5, %v5086_v54  ;;  %v11659_v28 = vadd.f32 %v11612_v34, %v5022_v40 }
 0x9fd   :  { %8033 = vrsqrt.f32 %v4932_v23  ;;  %5630 = vrot.lane.b32.xlu1 %v12779_v21, %s8237_s30  ;;  %v5025_v22 = vmul.f32 %v11604_v20, %v4989_v25 }
 0x9fe   :  { %v8022_v62 = vpop.eup %8021  ;;  %v5087_v41 = vpack.c.bf16 %v11659_v28, %v11656_v44  ;;  %v5024_v30 = vmul.f32 %v11604_v20, %v4988_v14  ;;  %5628 = vrot.lane.b32.xlu0 %v12780_v36, %s8237_s30 }
 0x9ff   :  { %v8024_v56 = vpop.eup %8023  ;;  %v4991_v10 = vmul.f32 %v8022_v62, %v11443_v31  ;;  %v11683_v37 = vadd.f32 %v11612_v34, %v5025_v22 }
 0xa00   :  { %7492 = vmatprep.mubr.msk.bf16.mxu0 %vm2000_vm5, %v5087_v41  ;;  %v11676_v43 = vadd.f32 %v11612_v34, %v5024_v30  ;;  %v4990_v27 = vmul.f32 %v8024_v56, %v11446_v60 }
 0xa01   :  { %v5027_v11 = vmul.f32 %v11604_v20, %v4991_v10 }
 0xa02   :  { %v8026_v52 = vpop.eup %8025  ;;  %v5088_v19 = vpack.c.bf16 %v11676_v43, %v11673_v13  ;;  %v5026_v2 = vmul.f32 %v11604_v20, %v4990_v27 }
 0xa03   :  { %v8028_v38 = vpop.eup %8027  ;;  %v4993_v60 = vmul.f32 %v8026_v52, %v11455_v3 }
 0xa04   :  { %v4992_v31 = vmul.f32 %v8028_v38, %v11463_v57  ;;  %7493 = vmatmul.mubr.msk.bf16.gmra.mxu0 %vm2000_vm5, %v5088_v19  ;;  %v11688_v29 = vadd.f32 %v11612_v34, %v5026_v2  ;;  %v11698_v57 = vadd.f32 %v11612_v34, %v5027_v11 }
 0xa05   :  { %v5029_v3 = vmul.f32 %v11604_v20, %v4993_v60 }
 0xa06   :  { %v8030_v59 = vpop.eup %8029  ;;  %v5089_v16 = vpack.c.bf16 %v11688_v29, %v11683_v37  ;;  %v5028_v45 = vmul.f32 %v11604_v20, %v4992_v31 }
 0xa07   :  { %v8032_v48 = vpop.eup %8031  ;;  %v4995_v53 = vmul.f32 %v8030_v59, %v11471_v9  ;;  %v11712_v23 = vadd.f32 %v11612_v34, %v5029_v3 }
 0xa08   :  { %7496 = vmatprep.mubr.msk.bf16.mxu0 %vm2000_vm5, %v5089_v16  ;;  %v11701_v15 = vadd.f32 %v11612_v34, %v5028_v45  ;;  %v4994_v1 = vmul.f32 %v8032_v48, %v11474_v12 }
 0xa09   :  { %v5031_v61 = vmul.f32 %v11604_v20, %v4995_v53 }
 0xa0a   :  { %v8034_v54 = vpop.eup %8033  ;;  %v5090_v40 = vpack.c.bf16 %v11701_v15, %v11698_v57  ;;  %v5030_v6 = vmul.f32 %v11604_v20, %v4994_v1 }
 0xa0b   :  { %v4996_v9 = vmul.f32 %v8034_v54, %v11480_v5  ;;  %v11721_v33 = vadd.f32 %v11612_v34, %v5031_v61 }
 0xa0c   :  { %7497 = vmatmul.mubr.msk.bf16.gmra.mxu0 %vm2000_vm5, %v5090_v40  ;;  %v11715_v25 = vadd.f32 %v11612_v34, %v5030_v6 }
 0xa0d   :  { %v5032_v12 = vmul.f32 %v11604_v20, %v4996_v9  ;;  %12781 = vst [vmem:[#allocation21_spill] sm:$0xff] %v11721_v33 }
 0xa0e   :  { %v5091_v14 = vpack.c.bf16 %v11715_v25, %v11712_v23 }
 0xa0f   :  { %v11724_v5 = vadd.f32 %v11612_v34, %v5032_v12 }
 0xa10   :  { %7500 = vmatprep.mubr.msk.bf16.mxu0 %vm2000_vm5, %v5091_v14 }
 0xa11   :  { %12782 = vst [vmem:[#allocation17_spill] sm:$0xff] %v11724_v5  ;;  %v5092_v21 = vpack.c.bf16 %v11724_v5, %v11721_v33 }
 0xa14   :  { %7501 = vmatmul.mubr.msk.bf16.gmra.mxu0 %vm2000_vm5, %v5092_v21 }
 0xa49   :  { %v4839_v62 = vpop.xlane.xlu0 %4838 }
 0xa4a   :  { %v4901_v41 = vmul.f32 0.03125, %v4839_v62 }
 0xa4c   :  { %v4933_v30 = vadd.f32 1e-05, %v4901_v41 }
 0xa4d   :  { %v4845_v36 = vpop.xlane.xlu0 %4844  ;;  %v4842_v56 = vpop.xlane.xlu1 %4841 }
 0xa4e   :  { %8035 = vrsqrt.f32 %v4933_v30  ;;  %v4903_v22 = vmul.f32 0.03125, %v4845_v36  ;;  %v4902_v10 = vmul.f32 0.03125, %v4842_v56 }
 0xa50   :  { %v4935_v27 = vadd.f32 1e-05, %v4903_v22  ;;  %v4934_v52 = vadd.f32 1e-05, %v4902_v10 }
 0xa51   :  { %v4851_v19 = vpop.xlane.xlu0 %4850  ;;  %v4848_v2 = vpop.xlane.xlu1 %4847 }
 0xa52   :  { %8037 = vrsqrt.f32 %v4935_v27  ;;  %v4905_v38 = vmul.f32 0.03125, %v4851_v19  ;;  %v4904_v31 = vmul.f32 0.03125, %v4848_v2 }
 0xa53   :  { %8039 = vrsqrt.f32 %v4934_v52 }
 0xa54   :  { %v4937_v11 = vadd.f32 1e-05, %v4905_v38  ;;  %v4936_v60 = vadd.f32 1e-05, %v4904_v31 }
 0xa55   :  { %v4857_v59 = vpop.xlane.xlu0 %4856  ;;  %v4854_v16 = vpop.xlane.xlu1 %4853 }
 0xa56   :  { %8041 = vrsqrt.f32 %v4937_v11  ;;  %v4907_v45 = vmul.f32 0.03125, %v4857_v59  ;;  %v4906_v48 = vmul.f32 0.03125, %v4854_v16 }
 0xa57   :  { %8043 = vrsqrt.f32 %v4936_v60 }
 0xa58   :  { %v4939_v53 = vadd.f32 1e-05, %v4907_v45  ;;  %v4938_v1 = vadd.f32 1e-05, %v4906_v48 }
 0xa59   :  { %v4863_v3 = vpop.xlane.xlu0 %4862  ;;  %v4860_v54 = vpop.xlane.xlu1 %4859 }
 0xa5a   :  { %8045 = vrsqrt.f32 %v4939_v53  ;;  %v4909_v40 = vmul.f32 0.03125, %v4863_v3  ;;  %v4908_v6 = vmul.f32 0.03125, %v4860_v54 }
 0xa5b   :  { %v8036_v9 = vpop.eup %8035  ;;  %8047 = vrsqrt.f32 %v4938_v1 }
 0xa5c   :  { %v4941_v61 = vadd.f32 1e-05, %v4909_v40  ;;  %v4940_v12 = vadd.f32 1e-05, %v4908_v6  ;;  %v4997_v62 = vmul.f32 %v8036_v9, %v11505_v7 }
 0xa5d   :  { %v4869_v14 = vpop.xlane.xlu0 %4868  ;;  %v4866_v21 = vpop.xlane.xlu1 %4865 }
 0xa5e   :  { %8049 = vrsqrt.f32 %v4941_v61  ;;  %v4911_v41 = vmul.f32 0.03125, %v4869_v14  ;;  %v4910_v30 = vmul.f32 0.03125, %v4866_v21  ;;  %v5033_v38 = vmul.f32 %v11604_v20, %v4997_v62 }
 0xa5f   :  { %v8038_v36 = vpop.eup %8037  ;;  %8051 = vrsqrt.f32 %v4940_v12 }
 0xa60   :  { %v8040_v56 = vpop.eup %8039  ;;  %v4999_v22 = vmul.f32 %v8038_v36, %v11510_v51  ;;  %v4943_v10 = vadd.f32 1e-05, %v4911_v41  ;;  %v4942_v27 = vadd.f32 1e-05, %v4910_v30 }
 0xa61   :  { %v4875_v52 = vpop.xlane.xlu0 %4874  ;;  %v4872_v19 = vpop.xlane.xlu1 %4871  ;;  %v4998_v2 = vmul.f32 %v8040_v56, %v11513_v55  ;;  %v11738_v55 = vadd.f32 %v11612_v34, %v5033_v38 }
 0xa62   :  { %8053 = vrsqrt.f32 %v4943_v10  ;;  %v4913_v31 = vmul.f32 0.03125, %v4875_v52  ;;  %v4912_v11 = vmul.f32 0.03125, %v4872_v19  ;;  %v5035_v51 = vmul.f32 %v11604_v20, %v4999_v22 }
 0xa63   :  { %v8042_v7 = vpop.eup %8041  ;;  %8055 = vrsqrt.f32 %v4942_v27  ;;  %v5034_v60 = vmul.f32 %v11604_v20, %v4998_v2 }
 0xa64   :  { %v8044_v59 = vpop.eup %8043  ;;  %v4945_v16 = vadd.f32 1e-05, %v4913_v31  ;;  %v4944_v45 = vadd.f32 1e-05, %v4912_v11  ;;  %v5001_v54 = vmul.f32 %v8042_v7, %v11521_v49  ;;  %v11748_v62 = vadd.f32 %v11612_v34, %v5035_v51 }
 0xa65   :  { %v5000_v48 = vmul.f32 %v8044_v59, %v11524_v42  ;;  %v4881_v53 = vpop.xlane.xlu0 %4880  ;;  %v4878_v1 = vpop.xlane.xlu1 %4877  ;;  %v11741_v3 = vadd.f32 %v11612_v34, %v5034_v60 }
 0xa66   :  { %8057 = vrsqrt.f32 %v4945_v16  ;;  %v4915_v40 = vmul.f32 0.03125, %v4881_v53  ;;  %v4914_v6 = vmul.f32 0.03125, %v4878_v1  ;;  %v5037_v56 = vmul.f32 %v11604_v20, %v5001_v54 }
 0xa67   :  { %v8046_v9 = vpop.eup %8045  ;;  %8059 = vrsqrt.f32 %v4944_v45  ;;  %v5093_v61 = vpack.c.bf16 %v11741_v3, %v11738_v55  ;;  %v5036_v42 = vmul.f32 %v11604_v20, %v5000_v48 }
 0xa68   :  { %v8048_v12 = vpop.eup %8047  ;;  %v4947_v14 = vadd.f32 1e-05, %v4915_v40  ;;  %v4946_v21 = vadd.f32 1e-05, %v4914_v6  ;;  %v5003_v41 = vmul.f32 %v8046_v9, %v11533_v32  ;;  %v11764_v31 = vadd.f32 %v11612_v34, %v5037_v56 }
 0xa69   :  { %7504 = vmatprep.mubr.msk.bf16.mxu0 %vm2000_vm5, %v5093_v61  ;;  %v4884_v49 = vpop.xlane.xlu1 %4883  ;;  %v11753_v30 = vadd.f32 %v11612_v34, %v5036_v42  ;;  %v5002_v36 = vmul.f32 %v8048_v12, %v11536_v46  ;;  %v5643_v22 = vpop.permute.xlu0 %5642 }
 0xa6a   :  { %8061 = vrsqrt.f32 %v4947_v14  ;;  %v4916_v10 = vmul.f32 0.03125, %v4884_v49  ;;  %7520 = vmatprep.subr.bf16.mxu1 %v5643_v22  ;;  %v5039_v7 = vmul.f32 %v11604_v20, %v5003_v41 }
 0xa6b   :  { %v8050_v27 = vpop.eup %8049  ;;  %8063 = vrsqrt.f32 %v4946_v21  ;;  %v5094_v52 = vpack.c.bf16 %v11753_v30, %v11748_v62  ;;  %v5038_v32 = vmul.f32 %v11604_v20, %v5002_v36  ;;  %7521 = vmatpush3.bf16.msra.mxu1 %v5643_v22 }
 0xa6c   :  { %v8052_v19 = vpop.eup %8051  ;;  %v4948_v2 = vadd.f32 1e-05, %v4916_v10  ;;  %v5005_v38 = vmul.f32 %v8050_v27, %v11545_v4  ;;  %v11777_v48 = vadd.f32 %v11612_v34, %v5039_v7 }
 0xa6d   :  { %v5004_v46 = vmul.f32 %v8052_v19, %v11548_v58  ;;  %7505 = vmatmul.mubr.msk.bf16.gmra.mxu0 %vm2000_vm5, %v5094_v52  ;;  %v11767_v11 = vadd.f32 %v11612_v34, %v5038_v32  ;;  %v5641_v60 = vpop.permute.xlu1 %5640  ;;  %v5637_v40 = vpop.permute.xlu0 %5636 }
 0xa6e   :  { %8065 = vrsqrt.f32 %v4948_v2  ;;  %7522 = vmatprep.subr.bf16.mxu1 %v5641_v60  ;;  %v5041_v45 = vmul.f32 %v11604_v20, %v5005_v38 }
 0xa6f   :  { %v8054_v59 = vpop.eup %8053  ;;  %v5095_v16 = vpack.c.bf16 %v11767_v11, %v11764_v31  ;;  %v5040_v4 = vmul.f32 %v11604_v20, %v5004_v46  ;;  %7523 = vmatpush3.bf16.msra.mxu1 %v5641_v60 }
 0xa70   :  { %v8056_v58 = vpop.eup %8055  ;;  %v5007_v51 = vmul.f32 %v8054_v59, %v11557_v8  ;;  %v11787_v42 = vadd.f32 %v11612_v34, %v5041_v45 }
 0xa71   :  { %7508 = vmatprep.mubr.msk.bf16.mxu0 %vm2000_vm5, %v5095_v16  ;;  %v11780_v53 = vadd.f32 %v11612_v34, %v5040_v4  ;;  %v5006_v1 = vmul.f32 %v8056_v58, %v11560_v47  ;;  %v5639_v54 = vpop.permute.xlu1 %5638  ;;  %v5633_v32 = vpop.permute.xlu0 %5632 }
 0xa72   :  { %7524 = vmatprep.subr.bf16.mxu1 %v5639_v54  ;;  %12783 = vst [vmem:[#allocation18_spill] sm:$0xff] %v11787_v42  ;;  %v5043_v14 = vmul.f32 %v11604_v20, %v5007_v51 }
 0xa73   :  { %v8058_v6 = vpop.eup %8057  ;;  %v5096_v9 = vpack.c.bf16 %v11780_v53, %v11777_v48  ;;  %v5042_v61 = vmul.f32 %v11604_v20, %v5006_v1  ;;  %7525 = vmatpush3.bf16.msra.mxu1 %v5639_v54 }
 0xa74   :  { %v8060_v8 = vpop.eup %8059  ;;  %7526 = vmatprep.subr.bf16.mxu1 %v5637_v40  ;;  %v5009_v21 = vmul.f32 %v8058_v6, %v11569_v50  ;;  %v11802_v10 = vadd.f32 %v11612_v34, %v5043_v14 }
 0xa75   :  { %v5008_v12 = vmul.f32 %v8060_v8, %v11572_v17  ;;  %7509 = vmatmul.mubr.msk.bf16.gmra.mxu0 %vm2000_vm5, %v5096_v9  ;;  %v11792_v47 = vadd.f32 %v11612_v34, %v5042_v61  ;;  %v5635_v41 = vpop.permute.xlu1 %5634  ;;  %v5629_v58 = vpop.permute.xlu0 %5628 }
 0xa76   :  { %v5045_v52 = vmul.f32 %v11604_v20, %v5009_v21 }
 0xa77   :  { %12784 = vst [vmem:[#allocation20_spill] sm:$0xff] %v11792_v47  ;;  %v8062_v49 = vpop.eup %8061  ;;  %v5097_v36 = vpack.c.bf16 %v11792_v47, %v11787_v42  ;;  %v5044_v56 = vmul.f32 %v11604_v20, %v5008_v12  ;;  %7527 = vmatpush3.bf16.msra.mxu1 %v5637_v40 }
 0xa78   :  { %v8064_v22 = vpop.eup %8063  ;;  %v5011_v17 = vmul.f32 %v8062_v49, %v11581_v24  ;;  %7528 = vmatprep.subr.bf16.mxu1 %v5635_v41  ;;  %v11816_v7 = vadd.f32 %v11612_v34, %v5045_v52 }
 0xa79   :  { %7512 = vmatprep.mubr.msk.bf16.mxu0 %vm2000_vm5, %v5097_v36  ;;  %v11805_v27 = vadd.f32 %v11612_v34, %v5044_v56  ;;  %v5010_v50 = vmul.f32 %v8064_v22, %v11584_v39  ;;  %v5631_v60 = vpop.permute.xlu1 %5630 }
 0xa7a   :  { %v5047_v46 = vmul.f32 %v11604_v20, %v5011_v17  ;;  %12786 = vst [vmem:[#allocation23_spill] sm:$0xff] %v11816_v7 }
 0xa7b   :  { %12785 = vst [vmem:[#allocation26_spill] sm:$0xff] %v11805_v27  ;;  %v8066_v19 = vpop.eup %8065  ;;  %v5098_v2 = vpack.c.bf16 %v11805_v27, %v11802_v10  ;;  %v5046_v24 = vmul.f32 %v11604_v20, %v5010_v50  ;;  %7529 = vmatpush3.bf16.msra.mxu1 %v5635_v41 }
 0xa7c   :  { %v5012_v38 = vmul.f32 %v8066_v19, %v11593_v26  ;;  %7530 = vmatprep.subr.bf16.mxu1 %v5633_v32  ;;  %v11825_v26 = vadd.f32 %v11612_v34, %v5047_v46 }
 0xa7d   :  { %7513 = vmatmul.mubr.msk.bf16.gmra.mxu0 %vm2000_vm5, %v5098_v2  ;;  %v11819_v39 = vadd.f32 %v11612_v34, %v5046_v24 }
 0xa7e   :  { %v5048_v59 = vmul.f32 %v11604_v20, %v5012_v38  ;;  %12788 = vst [vmem:[#allocation24_spill] sm:$0xff] %v11825_v26  ;;  %v11837_v20 = vld [vmem:[%s12603_s4 + $0x1b] ss:$0 sm:$0xff] }
 0xa7f   :  { %12787 = vst [vmem:[#allocation22_spill] sm:$0xff] %v11819_v39  ;;  %v5099_v16 = vpack.c.bf16 %v11819_v39, %v11816_v7  ;;  %7531 = vmatpush3.bf16.msra.mxu1 %v5633_v32 }
 0xa80   :  { %v11828_v4 = vadd.f32 %v11612_v34, %v5048_v59  ;;  %7532 = vmatprep.subr.bf16.mxu1 %v5631_v60 }
 0xa81   :  { %7516 = vmatprep.mubr.msk.bf16.mxu0 %vm2000_vm5, %v5099_v16 }
 0xa82   :  { %12789 = vst [vmem:[#allocation27_spill] sm:$0xff] %v11828_v4  ;;  %v5100_v45 = vpack.c.bf16 %v11828_v4, %v11825_v26 }
 0xa83   :  { %7533 = vmatpush3.bf16.msra.mxu1 %v5631_v60 }
 0xa84   :  { %7534 = vmatprep.subr.bf16.mxu1 %v5629_v58 }
 0xa85   :  { %7517 = vmatmul.mubr.msk.bf16.gmra.mxu0 %vm2000_vm5, %v5100_v45 }
 0xa87   :  { %7535 = vmatpush3.bf16.msra.mxu1 %v5629_v58 }
 0xabc   :  { %v7490_v51 = vpop.f32.mrf.mxu0 }
 0xabd   :  { %v11840_v34 = vadd.f32 %v7490_v51, %v11837_v20 }
 0xabe   :  { %v5189_v1 = vpop.f32.mrf.mxu0 }
 0xabf   :  { %v5318_v54 = vmul.f32 %v11840_v34, %v11840_v34  ;;  %v11845_v40 = vadd.f32 %v11837_v20, %v5189_v1 }
 0xac0   :  { %v7491_v6 = vpop.f32.mrf.mxu0 }
 0xac1   :  { %v5350_v9 = vmul.f32 %v5318_v54, %v11840_v34  ;;  %v5316_v61 = vmul.f32 %v11845_v40, %v11845_v40  ;;  %v11851_v8 = vadd.f32 %v7491_v6, %v11837_v20 }
 0xac2   :  { %v5192_v12 = vpop.f32.mrf.mxu0 }
 0xac3   :  { %v5382_v14 = vmul.f32 0.044715, %v5350_v9  ;;  %v5348_v21 = vmul.f32 %v5316_v61, %v11845_v40  ;;  %v5319_v41 = vmul.f32 %v11851_v8, %v11851_v8  ;;  %v11857_v49 = vadd.f32 %v11837_v20, %v5192_v12 }
 0xac4   :  { %v7494_v36 = vpop.f32.mrf.mxu0 }
 0xac5   :  { %v5414_v56 = vadd.f32 %v5382_v14, %v11840_v34  ;;  %v5380_v22 = vmul.f32 0.044715, %v5348_v21  ;;  %v5351_v17 = vmul.f32 %v5319_v41, %v11851_v8  ;;  %v5317_v50 = vmul.f32 %v11857_v49, %v11857_v49 }
 0xac6   :  { %v11864_v52 = vadd.f32 %v7494_v36, %v11837_v20  ;;  %v5205_v32 = vpop.f32.mrf.mxu0 }
 0xac7   :  { %v5446_v19 = vmul.f32 0.7978846, %v5414_v56  ;;  %v5412_v2 = vadd.f32 %v5380_v22, %v11845_v40  ;;  %v5383_v24 = vmul.f32 0.044715, %v5351_v17  ;;  %v5349_v38 = vmul.f32 %v5317_v50, %v11857_v49 }
 0xac8   :  { %v5322_v46 = vmul.f32 %v11864_v52, %v11864_v52  ;;  %v11871_v60 = vadd.f32 %v11837_v20, %v5205_v32  ;;  %v7495_v59 = vpop.f32.mrf.mxu0 }
 0xac9   :  { %8067 = vtanh.f32 %v5446_v19  ;;  %v5444_v16 = vmul.f32 0.7978846, %v5412_v2  ;;  %v5415_v58 = vadd.f32 %v5383_v24, %v11851_v8  ;;  %v5381_v45 = vmul.f32 0.044715, %v5349_v38 }
 0xaca   :  { %v5354_v51 = vmul.f32 %v5322_v46, %v11864_v52  ;;  %v5320_v1 = vmul.f32 %v11871_v60, %v11871_v60  ;;  %v11878_v54 = vadd.f32 %v7495_v59, %v11837_v20  ;;  %v5208_v6 = vpop.f32.mrf.mxu0 }
 0xacb   :  { %v5447_v9 = vmul.f32 0.7978846, %v5415_v58  ;;  %v5413_v61 = vadd.f32 %v5381_v45, %v11857_v49  ;;  %v11882_v12 = vadd.f32 %v11837_v20, %v5208_v6  ;;  %8069 = vtanh.f32 %v5444_v16 }
 0xacc   :  { %v5386_v14 = vmul.f32 0.044715, %v5354_v51  ;;  %v5352_v21 = vmul.f32 %v5320_v1, %v11871_v60  ;;  %v5323_v41 = vmul.f32 %v11878_v54, %v11878_v54  ;;  %v7498_v36 = vpop.f32.mrf.mxu0 }
 0xacd   :  { %8071 = vtanh.f32 %v5447_v9  ;;  %v5445_v56 = vmul.f32 0.7978846, %v5413_v61  ;;  %v5321_v22 = vmul.f32 %v11882_v12, %v11882_v12  ;;  %v11890_v17 = vadd.f32 %v7498_v36, %v11837_v20 }
 0xace   :  { %v5418_v50 = vadd.f32 %v5386_v14, %v11864_v52  ;;  %v5384_v32 = vmul.f32 0.044715, %v5352_v21  ;;  %v5355_v19 = vmul.f32 %v5323_v41, %v11878_v54  ;;  %v5221_v2 = vpop.f32.mrf.mxu0 }
 0xacf   :  { %8073 = vtanh.f32 %v5445_v56  ;;  %v5353_v24 = vmul.f32 %v5321_v22, %v11882_v12  ;;  %v5326_v38 = vmul.f32 %v11890_v17, %v11890_v17  ;;  %v11898_v46 = vadd.f32 %v11837_v20, %v5221_v2 }
 0xad0   :  { %v5450_v59 = vmul.f32 0.7978846, %v5418_v50  ;;  %v5416_v16 = vadd.f32 %v5384_v32, %v11871_v60  ;;  %v5387_v58 = vmul.f32 0.044715, %v5355_v19  ;;  %v7499_v45 = vpop.f32.mrf.mxu0 }
 0xad1   :  { %v5385_v51 = vmul.f32 0.044715, %v5353_v24  ;;  %v5358_v1 = vmul.f32 %v5326_v38, %v11890_v17  ;;  %v5324_v6 = vmul.f32 %v11898_v46, %v11898_v46  ;;  %v11905_v9 = vadd.f32 %v7499_v45, %v11837_v20 }
 0xad2   :  { %8075 = vtanh.f32 %v5450_v59  ;;  %v5448_v61 = vmul.f32 0.7978846, %v5416_v16  ;;  %v5419_v14 = vadd.f32 %v5387_v58, %v11878_v54  ;;  %v5224_v21 = vpop.f32.mrf.mxu0 }
 0xad3   :  { %v5417_v41 = vadd.f32 %v5385_v51, %v11882_v12  ;;  %v5390_v36 = vmul.f32 0.044715, %v5358_v1  ;;  %v5356_v56 = vmul.f32 %v5324_v6, %v11898_v46  ;;  %v5327_v22 = vmul.f32 %v11905_v9, %v11905_v9 }
 0xad4   :  { %8077 = vtanh.f32 %v5448_v61  ;;  %v5451_v50 = vmul.f32 0.7978846, %v5419_v14  ;;  %v11913_v32 = vadd.f32 %v11837_v20, %v5224_v21  ;;  %v7502_v19 = vpop.f32.mrf.mxu0 }
 0xad5   :  { %v5449_v2 = vmul.f32 0.7978846, %v5417_v41  ;;  %v5422_v24 = vadd.f32 %v5390_v36, %v11890_v17  ;;  %v5388_v38 = vmul.f32 0.044715, %v5356_v56  ;;  %v5359_v59 = vmul.f32 %v5327_v22, %v11905_v9 }
 0xad6   :  { %v8068_v16 = vpop.eup %8067  ;;  %8079 = vtanh.f32 %v5451_v50  ;;  %v5325_v58 = vmul.f32 %v11913_v32, %v11913_v32  ;;  %v11920_v45 = vadd.f32 %v7502_v19, %v11837_v20  ;;  %v5237_v51 = vpop.f32.mrf.mxu0 }
 0xad7   :  { %v5510_v1 = vadd.f32 1.0, %v8068_v16  ;;  %8081 = vtanh.f32 %v5449_v2  ;;  %v5454_v6 = vmul.f32 0.7978846, %v5422_v24  ;;  %v5420_v61 = vadd.f32 %v5388_v38, %v11898_v46 }
 0xad8   :  { %v5391_v14 = vmul.f32 0.044715, %v5359_v59  ;;  %v5357_v21 = vmul.f32 %v5325_v58, %v11913_v32  ;;  %v5330_v41 = vmul.f32 %v11920_v45, %v11920_v45  ;;  %v11927_v36 = vadd.f32 %v11837_v20, %v5237_v51  ;;  %v7503_v56 = vpop.f32.mrf.mxu0  ;;  %v8070_v22 = vpop.eup %8069 }
 0xad9   :  { %8083 = vtanh.f32 %v5454_v6  ;;  %v5452_v50 = vmul.f32 0.7978846, %v5420_v61  ;;  %v11930_v19 = vadd.f32 %v7503_v56, %v11837_v20  ;;  %v5542_v39 = vmul.f32 0.5, %v5510_v1 }
 0xada   :  { %v8072_v2 = vpop.eup %8071  ;;  %v5423_v24 = vadd.f32 %v5391_v14, %v11905_v9  ;;  %v5389_v38 = vmul.f32 0.044715, %v5357_v21  ;;  %v5362_v59 = vmul.f32 %v5330_v41, %v11920_v45  ;;  %v5328_v16 = vmul.f32 %v11927_v36, %v11927_v36  ;;  %v5240_v58 = vpop.f32.mrf.mxu0 }
 0xadb   :  { %v5511_v51 = vadd.f32 1.0, %v8072_v2  ;;  %8085 = vtanh.f32 %v5452_v50  ;;  %v5331_v6 = vmul.f32 %v11930_v19, %v11930_v19  ;;  %v11942_v26 = vadd.f32 %v11837_v20, %v5240_v58 }
 0xadc   :  { %v8074_v61 = vpop.eup %8073  ;;  %v5455_v4 = vmul.f32 0.7978846, %v5423_v24  ;;  %v5421_v56 = vadd.f32 %v5389_v38, %v11913_v32  ;;  %v5394_v7 = vmul.f32 0.044715, %v5362_v59  ;;  %v5360_v14 = vmul.f32 %v5328_v16, %v11927_v36 }
 0xadd   :  { %v5543_v21 = vmul.f32 0.5, %v5511_v51  ;;  %v5363_v41 = vmul.f32 %v5331_v6, %v11930_v19  ;;  %v5508_v47 = vadd.f32 1.0, %v8070_v22  ;;  %v5329_v24 = vmul.f32 %v11942_v26, %v11942_v26 }
 0xade   :  { %8087 = vtanh.f32 %v5455_v4  ;;  %v5453_v1 = vmul.f32 0.7978846, %v5421_v56  ;;  %v5426_v50 = vadd.f32 %v5394_v7, %v11920_v45  ;;  %v5392_v2 = vmul.f32 0.044715, %v5360_v14 }
 0xadf   :  { %v8076_v27 = vpop.eup %8075  ;;  %v5395_v5 = vmul.f32 0.044715, %v5363_v41  ;;  %v5509_v38 = vadd.f32 1.0, %v8074_v61  ;;  %v5574_v58 = vmul.f32 %v5542_v39, %v11840_v34  ;;  %v5361_v4 = vmul.f32 %v5329_v24, %v11942_v26 }
 0xae0   :  { %8089 = vtanh.f32 %v5453_v1  ;;  %v5458_v59 = vmul.f32 0.7978846, %v5426_v50  ;;  %v5424_v16 = vadd.f32 %v5392_v2, %v11927_v36  ;;  %v5540_v6 = vmul.f32 0.5, %v5508_v47 }
 0xae1   :  { %v8078_v51 = vpop.eup %8077  ;;  %v5427_v22 = vadd.f32 %v5395_v5, %v11930_v19  ;;  %v5575_v7 = vmul.f32 %v5543_v21, %v11851_v8  ;;  %v5514_v56 = vadd.f32 1.0, %v8076_v27  ;;  %v5541_v41 = vmul.f32 0.5, %v5509_v38 }
 0xae2   :  { %v5456_v14 = vmul.f32 0.7978846, %v5424_v16  ;;  %8091 = vtanh.f32 %v5458_v59  ;;  %v5393_v1 = vmul.f32 0.044715, %v5361_v4  ;;  %v5512_v50 = vadd.f32 1.0, %v8078_v51 }
 0xae3   :  { %v8080_v42 = vpop.eup %8079  ;;  %v5459_v61 = vmul.f32 0.7978846, %v5427_v22  ;;  %v5572_v39 = vmul.f32 %v5540_v6, %v11845_v40  ;;  %v5573_v5 = vmul.f32 %v5541_v41, %v11857_v49  ;;  %v5605_v24 = vpack.c.bf16 %v5575_v7, %v5574_v58 }
 0xae4   :  { %v8082_v33 = vpop.eup %8081  ;;  %v5515_v2 = vadd.f32 1.0, %v8080_v42  ;;  %8093 = vtanh.f32 %v5456_v14  ;;  %v5425_v47 = vadd.f32 %v5393_v1, %v11942_v26  ;;  %v5544_v8 = vmul.f32 0.5, %v5512_v50 }
 0xae5   :  { %8095 = vtanh.f32 %v5459_v61  ;;  %v5513_v34 = vadd.f32 1.0, %v8082_v33  ;;  %v5604_v21 = vpack.c.bf16 %v5573_v5, %v5572_v39  ;;  %v5546_v51 = vmul.f32 0.5, %v5514_v56 }
 0xae6   :  { %v8084_v27 = vpop.eup %8083  ;;  %v5547_v38 = vmul.f32 0.5, %v5515_v2  ;;  %v5457_v59 = vmul.f32 0.7978846, %v5425_v47  ;;  %v5576_v42 = vmul.f32 %v5544_v8, %v11871_v60 }
 0xae7   :  { %v5545_v16 = vmul.f32 0.5, %v5513_v34  ;;  %7536 = vmatprep.mubr.bf16.mxu1 %v5604_v21  ;;  %v5578_v58 = vmul.f32 %v5546_v51, %v11864_v52  ;;  %v5518_v7 = vadd.f32 1.0, %v8084_v27 }
 0xae8   :  { %v8086_v22 = vpop.eup %8085  ;;  %8097 = vtanh.f32 %v5457_v59  ;;  %7537 = vmatmul.mubr.bf16.vlgmr.msra.gmra.mxu1 %v5605_v24  ;;  %v5579_v33 = vmul.f32 %v5547_v38, %v11878_v54 }
 0xae9   :  { %v5577_v40 = vmul.f32 %v5545_v16, %v11882_v12  ;;  %v5516_v49 = vadd.f32 1.0, %v8086_v22  ;;  %v5550_v5 = vmul.f32 0.5, %v5518_v7 }
 0xaea   :  { %v5607_v50 = vpack.c.bf16 %v5579_v33, %v5578_v58 }
 0xaeb   :  { %v8088_v4 = vpop.eup %8087  ;;  %v5606_v6 = vpack.c.bf16 %v5577_v40, %v5576_v42  ;;  %v5548_v1 = vmul.f32 0.5, %v5516_v49  ;;  %v5582_v21 = vmul.f32 %v5550_v5, %v11890_v17 }
 0xaec   :  { %v5519_v14 = vadd.f32 1.0, %v8088_v4 }
 0xaed   :  { %v8090_v41 = vpop.eup %8089  ;;  %7540 = vmatprep.mubr.bf16.mxu1 %v5606_v6  ;;  %v5580_v47 = vmul.f32 %v5548_v1, %v11898_v46 }
 0xaee   :  { %v5517_v61 = vadd.f32 1.0, %v8090_v41  ;;  %v5551_v56 = vmul.f32 0.5, %v5519_v14 }
 0xaef   :  { %v8092_v2 = vpop.eup %8091 }
 0xaf0   :  { %v5549_v39 = vmul.f32 0.5, %v5517_v61  ;;  %7541 = vmatmul.mubr.bf16.gmra.mxu1 %v5607_v50  ;;  %v5583_v34 = vmul.f32 %v5551_v56, %v11905_v9  ;;  %v5522_v24 = vadd.f32 1.0, %v8092_v2 }
 0xaf1   :  { %v8094_v60 = vpop.eup %8093 }
 0xaf2   :  { %v8096_v12 = vpop.eup %8095  ;;  %v5581_v54 = vmul.f32 %v5549_v39, %v11913_v32  ;;  %v5520_v52 = vadd.f32 1.0, %v8094_v60  ;;  %v5609_v16 = vpack.c.bf16 %v5583_v34, %v5582_v21  ;;  %v5554_v42 = vmul.f32 0.5, %v5522_v24 }
 0xaf3   :  { %v5523_v8 = vadd.f32 1.0, %v8096_v12 }
 0xaf4   :  { %v5608_v27 = vpack.c.bf16 %v5581_v54, %v5580_v47  ;;  %v5552_v51 = vmul.f32 0.5, %v5520_v52  ;;  %v5586_v49 = vmul.f32 %v5554_v42, %v11920_v45 }
 0xaf5   :  { %v8098_v38 = vpop.eup %8097  ;;  %v5555_v59 = vmul.f32 0.5, %v5523_v8 }
 0xaf6   :  { %7544 = vmatprep.mubr.bf16.mxu1 %v5608_v27  ;;  %v5521_v22 = vadd.f32 1.0, %v8098_v38  ;;  %v5584_v32 = vmul.f32 %v5552_v51, %v11927_v36 }
 0xaf7   :  { %v5587_v46 = vmul.f32 %v5555_v59, %v11930_v19 }
 0xaf8   :  { %7545 = vmatmul.mubr.bf16.gmra.mxu1 %v5609_v16  ;;  %v5553_v40 = vmul.f32 0.5, %v5521_v22 }
 0xaf9   :  { %v5611_v17 = vpack.c.bf16 %v5587_v46, %v5586_v49 }
 0xafa   :  { %v5585_v9 = vmul.f32 %v5553_v40, %v11942_v26 }
 0xafc   :  { %v5610_v4 = vpack.c.bf16 %v5585_v9, %v5584_v32 }
 0xafe   :  { %7548 = vmatprep.mubr.bf16.mxu1 %v5610_v4 }
 0xb00   :  { %7549 = vmatmul.mubr.bf16.gmra.mxu1 %v5611_v17 }
 0xb2d   :  { %v7506_v33 = vpop.f32.mrf.mxu0 }
 0xb2e   :  { %v11968_v6 = vadd.f32 %v7506_v33, %v11837_v20 }
 0xb2f   :  { %v5253_v14 = vpop.f32.mrf.mxu0 }
 0xb30   :  { %v5334_v41 = vmul.f32 %v11968_v6, %v11968_v6  ;;  %v11973_v19 = vadd.f32 %v11837_v20, %v5253_v14 }
 0xb31   :  { %v7507_v36 = vpop.f32.mrf.mxu0 }
 0xb32   :  { %v5366_v26 = vmul.f32 %v5334_v41, %v11968_v6  ;;  %v5332_v45 = vmul.f32 %v11973_v19, %v11973_v19  ;;  %v11979_v58 = vadd.f32 %v7507_v36, %v11837_v20 }
 0xb33   :  { %v5256_v7 = vpop.f32.mrf.mxu0 }
 0xb34   :  { %v5398_v61 = vmul.f32 0.044715, %v5366_v26  ;;  %v5364_v1 = vmul.f32 %v5332_v45, %v11973_v19  ;;  %v5335_v56 = vmul.f32 %v11979_v58, %v11979_v58  ;;  %v11985_v50 = vadd.f32 %v11837_v20, %v5256_v7 }
 0xb35   :  { %v7510_v2 = vpop.f32.mrf.mxu0 }
 0xb36   :  { %v5430_v39 = vadd.f32 %v5398_v61, %v11968_v6  ;;  %v5396_v60 = vmul.f32 0.044715, %v5364_v1  ;;  %v5367_v5 = vmul.f32 %v5335_v56, %v11979_v58  ;;  %v5333_v12 = vmul.f32 %v11985_v50, %v11985_v50 }
 0xb37   :  { %v11992_v47 = vadd.f32 %v7510_v2, %v11837_v20  ;;  %v5269_v54 = vpop.f32.mrf.mxu0 }
 0xb38   :  { %v5462_v34 = vmul.f32 0.7978846, %v5430_v39  ;;  %v5428_v8 = vadd.f32 %v5396_v60, %v11973_v19  ;;  %v5399_v52 = vmul.f32 0.044715, %v5367_v5  ;;  %v5365_v27 = vmul.f32 %v5333_v12, %v11985_v50 }
 0xb39   :  { %v5338_v21 = vmul.f32 %v11992_v47, %v11992_v47  ;;  %v11999_v24 = vadd.f32 %v11837_v20, %v5269_v54  ;;  %v7511_v38 = vpop.f32.mrf.mxu0 }
 0xb3a   :  { %8099 = vtanh.f32 %v5462_v34  ;;  %v5460_v59 = vmul.f32 0.7978846, %v5428_v8  ;;  %v5431_v16 = vadd.f32 %v5399_v52, %v11979_v58  ;;  %v5397_v22 = vmul.f32 0.044715, %v5365_v27 }
 0xb3b   :  { %v5370_v51 = vmul.f32 %v5338_v21, %v11992_v47  ;;  %v5336_v42 = vmul.f32 %v11999_v24, %v11999_v24  ;;  %v12006_v40 = vadd.f32 %v7511_v38, %v11837_v20  ;;  %v5272_v46 = vpop.f32.mrf.mxu0 }
 0xb3c   :  { %v5463_v32 = vmul.f32 0.7978846, %v5431_v16  ;;  %v5429_v9 = vadd.f32 %v5397_v22, %v11985_v50  ;;  %v12010_v49 = vadd.f32 %v11837_v20, %v5272_v46  ;;  %8101 = vtanh.f32 %v5460_v59 }
 0xb3d   :  { %v5402_v4 = vmul.f32 0.044715, %v5370_v51  ;;  %v5368_v17 = vmul.f32 %v5336_v42, %v11999_v24  ;;  %v5339_v33 = vmul.f32 %v12006_v40, %v12006_v40  ;;  %v7514_v14 = vpop.f32.mrf.mxu0 }
 0xb3e   :  { %8103 = vtanh.f32 %v5463_v32  ;;  %v5461_v41 = vmul.f32 0.7978846, %v5429_v9  ;;  %v5337_v36 = vmul.f32 %v12010_v49, %v12010_v49  ;;  %v12018_v26 = vadd.f32 %v7514_v14, %v11837_v20 }
 0xb3f   :  { %v5434_v45 = vadd.f32 %v5402_v4, %v11992_v47  ;;  %v5400_v7 = vmul.f32 0.044715, %v5368_v17  ;;  %v5371_v61 = vmul.f32 %v5339_v33, %v12006_v40  ;;  %v5285_v1 = vpop.f32.mrf.mxu0 }
 0xb40   :  { %8105 = vtanh.f32 %v5461_v41  ;;  %v5369_v56 = vmul.f32 %v5337_v36, %v12010_v49  ;;  %v5342_v2 = vmul.f32 %v12018_v26, %v12018_v26  ;;  %v12026_v39 = vadd.f32 %v11837_v20, %v5285_v1 }
 0xb41   :  { %v5466_v60 = vmul.f32 0.7978846, %v5434_v45  ;;  %v5432_v5 = vadd.f32 %v5400_v7, %v11999_v24  ;;  %v5403_v12 = vmul.f32 0.044715, %v5371_v61  ;;  %v7515_v54 = vpop.f32.mrf.mxu0 }
 0xb42   :  { %v5401_v34 = vmul.f32 0.044715, %v5369_v56  ;;  %v5374_v8 = vmul.f32 %v5342_v2, %v12018_v26  ;;  %v5340_v52 = vmul.f32 %v12026_v39, %v12026_v39  ;;  %v12033_v27 = vadd.f32 %v7515_v54, %v11837_v20 }
 0xb43   :  { %8107 = vtanh.f32 %v5466_v60  ;;  %v5464_v21 = vmul.f32 0.7978846, %v5432_v5  ;;  %v5435_v38 = vadd.f32 %v5403_v12, %v12006_v40  ;;  %v5288_v59 = vpop.f32.mrf.mxu0 }
 0xb44   :  { %v5433_v16 = vadd.f32 %v5401_v34, %v12010_v49  ;;  %v5406_v22 = vmul.f32 0.044715, %v5374_v8  ;;  %v5372_v51 = vmul.f32 %v5340_v52, %v12026_v39  ;;  %v5343_v42 = vmul.f32 %v12033_v27, %v12033_v27 }
 0xb45   :  { %8109 = vtanh.f32 %v5464_v21  ;;  %v5467_v46 = vmul.f32 0.7978846, %v5435_v38  ;;  %v12041_v32 = vadd.f32 %v11837_v20, %v5288_v59  ;;  %v7518_v9 = vpop.f32.mrf.mxu0 }
 0xb46   :  { %v5465_v4 = vmul.f32 0.7978846, %v5433_v16  ;;  %v5438_v17 = vadd.f32 %v5406_v22, %v12018_v26  ;;  %v5404_v33 = vmul.f32 0.044715, %v5372_v51  ;;  %v5375_v14 = vmul.f32 %v5343_v42, %v12033_v27 }
 0xb47   :  { %v8100_v41 = vpop.eup %8099  ;;  %8111 = vtanh.f32 %v5467_v46  ;;  %v5341_v36 = vmul.f32 %v12041_v32, %v12041_v32  ;;  %v12048_v45 = vadd.f32 %v7518_v9, %v11837_v20  ;;  %v5301_v7 = vpop.f32.mrf.mxu0 }
 0xb48   :  { %v5526_v61 = vadd.f32 1.0, %v8100_v41  ;;  %8113 = vtanh.f32 %v5465_v4  ;;  %v5470_v1 = vmul.f32 0.7978846, %v5438_v17  ;;  %v5436_v56 = vadd.f32 %v5404_v33, %v12026_v39 }
 0xb49   :  { %v5407_v2 = vmul.f32 0.044715, %v5375_v14  ;;  %v5373_v60 = vmul.f32 %v5341_v36, %v12041_v32  ;;  %v5346_v5 = vmul.f32 %v12048_v45, %v12048_v45  ;;  %v12055_v12 = vadd.f32 %v11837_v20, %v5301_v7  ;;  %v7519_v54 = vpop.f32.mrf.mxu0  ;;  %v8102_v34 = vpop.eup %8101 }
 0xb4a   :  { %8115 = vtanh.f32 %v5470_v1  ;;  %v5468_v8 = vmul.f32 0.7978846, %v5436_v56  ;;  %v12058_v52 = vadd.f32 %v7519_v54, %v11837_v20  ;;  %v5558_v42 = vmul.f32 0.5, %v5526_v61 }
 0xb4b   :  { %v8104_v21 = vpop.eup %8103  ;;  %v5439_v38 = vadd.f32 %v5407_v2, %v12033_v27  ;;  %v5405_v59 = vmul.f32 0.044715, %v5373_v60  ;;  %v5378_v16 = vmul.f32 %v5346_v5, %v12048_v45  ;;  %v5344_v22 = vmul.f32 %v12055_v12, %v12055_v12  ;;  %v5304_v51 = vpop.f32.mrf.mxu0 }
 0xb4c   :  { %v5527_v46 = vadd.f32 1.0, %v8104_v21  ;;  %8117 = vtanh.f32 %v5468_v8  ;;  %v5347_v9 = vmul.f32 %v12058_v52, %v12058_v52  ;;  %v12070_v1 = vadd.f32 %v11837_v20, %v5304_v51 }
 0xb4d   :  { %v8106_v4 = vpop.eup %8105  ;;  %v5471_v17 = vmul.f32 0.7978846, %v5439_v38  ;;  %v5437_v33 = vadd.f32 %v5405_v59, %v12041_v32  ;;  %v5410_v14 = vmul.f32 0.044715, %v5378_v16  ;;  %v5376_v41 = vmul.f32 %v5344_v22, %v12055_v12 }
 0xb4e   :  { %v5559_v36 = vmul.f32 0.5, %v5527_v46  ;;  %v5379_v7 = vmul.f32 %v5347_v9, %v12058_v52  ;;  %v5524_v56 = vadd.f32 1.0, %v8102_v34  ;;  %v5345_v8 = vmul.f32 %v12070_v1, %v12070_v1 }
 0xb4f   :  { %8119 = vtanh.f32 %v5471_v17  ;;  %v5469_v61 = vmul.f32 0.7978846, %v5437_v33  ;;  %v5442_v2 = vadd.f32 %v5410_v14, %v12048_v45  ;;  %v5408_v60 = vmul.f32 0.044715, %v5376_v41 }
 0xb50   :  { %v8108_v5 = vpop.eup %8107  ;;  %v5411_v54 = vmul.f32 0.044715, %v5379_v7  ;;  %v5525_v21 = vadd.f32 1.0, %v8106_v4  ;;  %v5377_v34 = vmul.f32 %v5345_v8, %v12070_v1  ;;  %v5556_v22 = vmul.f32 0.5, %v5524_v56 }
 0xb51   :  { %8121 = vtanh.f32 %v5469_v61  ;;  %v5474_v38 = vmul.f32 0.7978846, %v5442_v2  ;;  %v5440_v59 = vadd.f32 %v5408_v60, %v12055_v12  ;;  %v5590_v46 = vmul.f32 %v5558_v42, %v11968_v6 }
 0xb52   :  { %v8110_v16 = vpop.eup %8109  ;;  %v5443_v20 = vadd.f32 %v5411_v54, %v12058_v52  ;;  %v5557_v51 = vmul.f32 0.5, %v5525_v21  ;;  %v5591_v9 = vmul.f32 %v5559_v36, %v11979_v58  ;;  %v5409_v4 = vmul.f32 0.044715, %v5377_v34 }
 0xb53   :  { %8123 = vtanh.f32 %v5474_v38  ;;  %v5472_v17 = vmul.f32 0.7978846, %v5440_v59  ;;  %v5588_v41 = vmul.f32 %v5556_v22, %v11973_v19  ;;  %v5530_v2 = vadd.f32 1.0, %v8108_v5 }
 0xb54   :  { %v8112_v33 = vpop.eup %8111  ;;  %v5475_v14 = vmul.f32 0.7978846, %v5443_v20  ;;  %v5589_v7 = vmul.f32 %v5557_v51, %v11985_v50  ;;  %v5528_v54 = vadd.f32 1.0, %v8110_v16  ;;  %v5441_v56 = vadd.f32 %v5409_v4, %v12070_v1 }
 0xb55   :  { %v8114_v61 = vpop.eup %8113  ;;  %v5531_v60 = vadd.f32 1.0, %v8112_v33  ;;  %8125 = vtanh.f32 %v5472_v17  ;;  %v5613_v8 = vpack.c.bf16 %v5591_v9, %v5590_v46  ;;  %v5562_v20 = vmul.f32 0.5, %v5530_v2 }
 0xb56   :  { %8127 = vtanh.f32 %v5475_v14  ;;  %v5612_v6 = vpack.c.bf16 %v5589_v7, %v5588_v41  ;;  %v5529_v42 = vadd.f32 1.0, %v8114_v61  ;;  %v5560_v21 = vmul.f32 0.5, %v5528_v54 }
 0xb57   :  { %v8116_v58 = vpop.eup %8115  ;;  %v5563_v36 = vmul.f32 0.5, %v5531_v60  ;;  %v5473_v38 = vmul.f32 0.7978846, %v5441_v56  ;;  %v5594_v17 = vmul.f32 %v5562_v20, %v11992_v47 }
 0xb58   :  { %7552 = vmatprep.mubr.bf16.mxu1 %v5612_v6  ;;  %v5561_v59 = vmul.f32 0.5, %v5529_v42  ;;  %v5592_v50 = vmul.f32 %v5560_v21, %v11999_v24  ;;  %v5534_v46 = vadd.f32 1.0, %v8116_v58 }
 0xb59   :  { %v8118_v19 = vpop.eup %8117  ;;  %7553 = vmatmul.mubr.bf16.gmra.mxu1 %v5613_v8  ;;  %8129 = vtanh.f32 %v5473_v38  ;;  %v5595_v16 = vmul.f32 %v5563_v36, %v12006_v40 }
 0xb5a   :  { %v5593_v5 = vmul.f32 %v5561_v59, %v12010_v49  ;;  %v5532_v34 = vadd.f32 1.0, %v8118_v19  ;;  %v5566_v2 = vmul.f32 0.5, %v5534_v46 }
 0xb5b   :  { %v5615_v4 = vpack.c.bf16 %v5595_v16, %v5594_v17 }
 0xb5c   :  { %v8120_v22 = vpop.eup %8119  ;;  %v5614_v51 = vpack.c.bf16 %v5593_v5, %v5592_v50  ;;  %v5564_v7 = vmul.f32 0.5, %v5532_v34  ;;  %v5598_v42 = vmul.f32 %v5566_v2, %v12018_v26  ;;  %v12098_v34 = vld [vmem:[%s12603_s4 + $0x1c] ss:$0 sm:$0xff] }
 0xb5d   :  { %v5535_v9 = vadd.f32 1.0, %v8120_v22 }
 0xb5e   :  { %v8122_v33 = vpop.eup %8121  ;;  %7556 = vmatprep.mubr.bf16.mxu1 %v5614_v51  ;;  %v5596_v54 = vmul.f32 %v5564_v7, %v12026_v39 }
 0xb5f   :  { %v5567_v14 = vmul.f32 0.5, %v5535_v9  ;;  %v5533_v41 = vadd.f32 1.0, %v8122_v33 }
 0xb60   :  { %v8124_v61 = vpop.eup %8123 }
 0xb61   :  { %7557 = vmatmul.mubr.bf16.gmra.mxu1 %v5615_v4  ;;  %v5565_v24 = vmul.f32 0.5, %v5533_v41  ;;  %v5599_v40 = vmul.f32 %v5567_v14, %v12033_v27  ;;  %v5538_v58 = vadd.f32 1.0, %v8124_v61 }
 0xb62   :  { %v8126_v49 = vpop.eup %8125 }
 0xb63   :  { %v8128_v60 = vpop.eup %8127  ;;  %v5597_v47 = vmul.f32 %v5565_v24, %v12041_v32  ;;  %v5536_v6 = vadd.f32 1.0, %v8126_v49  ;;  %v5617_v38 = vpack.c.bf16 %v5599_v40, %v5598_v42  ;;  %v5570_v20 = vmul.f32 0.5, %v5538_v58 }
 0xb64   :  { %v5539_v56 = vadd.f32 1.0, %v8128_v60 }
 0xb65   :  { %v5616_v36 = vpack.c.bf16 %v5597_v47, %v5596_v54  ;;  %v5568_v19 = vmul.f32 0.5, %v5536_v6  ;;  %v5602_v5 = vmul.f32 %v5570_v20, %v12048_v45 }
 0xb66   :  { %v8130_v8 = vpop.eup %8129  ;;  %v5571_v21 = vmul.f32 0.5, %v5539_v56 }
 0xb67   :  { %7560 = vmatprep.mubr.bf16.mxu1 %v5616_v36  ;;  %v5537_v59 = vadd.f32 1.0, %v8130_v8  ;;  %v5600_v39 = vmul.f32 %v5568_v19, %v12055_v12 }
 0xb68   :  { %v5603_v27 = vmul.f32 %v5571_v21, %v12058_v52 }
 0xb69   :  { %7561 = vmatmul.mubr.bf16.gmra.mxu1 %v5617_v38  ;;  %v5569_v50 = vmul.f32 0.5, %v5537_v59 }
 0xb6a   :  { %v5619_v16 = vpack.c.bf16 %v5603_v27, %v5602_v5 }
 0xb6b   :  { %v5601_v32 = vmul.f32 %v5569_v50, %v12070_v1 }
 0xb6d   :  { %v5618_v26 = vpack.c.bf16 %v5601_v32, %v5600_v39 }
 0xb6f   :  { %7564 = vmatprep.mubr.bf16.mxu1 %v5618_v26 }
 0xb71   :  { %7565 = vmatmul.mubr.bf16.gmra.mxu1 %v5619_v16 }
 0xba8   :  { %v7538_v22 = vpop.f32.mrf.mxu1 }
 0xba9   :  { %v5815_v51 = vadd.f32 %v7538_v22, %v11636_v18 }
 0xbaa   :  { %v5686_v17 = vpop.f32.mrf.mxu1 }
 0xbab   :  { %v12102_v52 = vadd.f32 %v12098_v34, %v5815_v51  ;;  %v5813_v12 = vadd.f32 %v5686_v17, %v11622_v35 }
 0xbac   :  { %v7539_v1 = vpop.f32.mrf.mxu1 }
 0xbad   :  { %v12106_v45 = vadd.f32 %v12098_v34, %v5813_v12  ;;  %v5816_v46 = vadd.f32 %v7539_v1, %v11639_v0  ;;  %v5887_v9 = vsel %vm2000_vm5, %v12102_v52, 0.0 }
 0xbae   :  { %5888 = vadd.xlane.f32.xlu0 %v5887_v9  ;;  %v5689_v33 = vpop.f32.mrf.mxu1 }
 0xbaf   :  { %v12112_v14 = vadd.f32 %v12098_v34, %v5816_v46  ;;  %v5814_v18 = vadd.f32 %v5689_v33, %v11625_v63  ;;  %v5881_v4 = vsel %vm2000_vm5, %v12106_v45, 0.0 }
 0xbb0   :  { %5882 = vadd.xlane.f32.xlu1 %v5881_v4  ;;  %v7542_v35 = vpop.f32.mrf.mxu1 }
 0xbb1   :  { %v12118_v41 = vadd.f32 %v12098_v34, %v5814_v18  ;;  %v5819_v0 = vadd.f32 %v7542_v35, %v11673_v13  ;;  %v5890_v7 = vsel %vm2000_vm5, %v12112_v14, 0.0 }
 0xbb2   :  { %5891 = vadd.xlane.f32.xlu0 %v5890_v7  ;;  %v5702_v61 = vpop.f32.mrf.mxu1 }
 0xbb3   :  { %v12124_v2 = vadd.f32 %v12098_v34, %v5819_v0  ;;  %v5817_v63 = vadd.f32 %v5702_v61, %v11656_v44  ;;  %v5884_v24 = vsel %vm2000_vm5, %v12118_v41, 0.0 }
 0xbb4   :  { %v7543_v49 = vpop.f32.mrf.mxu1 }
 0xbb5   :  { %v12130_v60 = vadd.f32 %v12098_v34, %v5817_v63  ;;  %v5820_v13 = vadd.f32 %v7543_v49, %v11676_v43  ;;  %v5899_v40 = vsel %vm2000_vm5, %v12124_v2, 0.0 }
 0xbb6   :  { %5885 = vadd.xlane.f32.xlu0 %v5884_v24  ;;  %v5705_v54 = vpop.f32.mrf.mxu1 }
 0xbb7   :  { %v12136_v47 = vadd.f32 %v12098_v34, %v5820_v13  ;;  %v5818_v44 = vadd.f32 %v5705_v54, %v11659_v28  ;;  %v5893_v56 = vsel %vm2000_vm5, %v12130_v60, 0.0 }
 0xbb8   :  { %v7546_v58 = vpop.f32.mrf.mxu1 }
 0xbb9   :  { %v12142_v6 = vadd.f32 %v12098_v34, %v5818_v44  ;;  %v5902_v43 = vsel %vm2000_vm5, %v12136_v47, 0.0  ;;  %v5823_v18 = vadd.f32 %v7546_v58, %v11698_v57 }
 0xbba   :  { %5900 = vadd.xlane.f32.xlu0 %v5899_v40  ;;  %v5718_v36 = vpop.f32.mrf.mxu1 }
 0xbbb   :  { %v5896_v42 = vsel %vm2000_vm5, %v12142_v6, 0.0  ;;  %v5821_v27 = vadd.f32 %v5718_v36, %v11683_v37  ;;  %v12193_v61 = vadd.f32 %v12098_v34, %v5823_v18 }
 0xbbc   :  { %v7547_v8 = vpop.f32.mrf.mxu1 }
 0xbbd   :  { %v12165_v17 = vadd.f32 %v12098_v34, %v5821_v27  ;;  %v5824_v57 = vadd.f32 %v7547_v8, %v11701_v15  ;;  %v5911_v15 = vsel %vm2000_vm5, %v12193_v61, 0.0  ;;  %v12791_v27 = vld [vmem:[#allocation18_spill] sm:$0xff] }
 0xbbe   :  { %5894 = vadd.xlane.f32.xlu0 %v5893_v56  ;;  %v5721_v21 = vpop.f32.mrf.mxu1 }
 0xbbf   :  { %v12205_v40 = vadd.f32 %v12098_v34, %v5824_v57  ;;  %v12794_v57 = vld [vmem:[#allocation20_spill] sm:$0xff] }
 0xbc0   :  { %v12148_v28 = vpop.f32.mrf.mxu1 }
 0xbc2   :  { %5903 = vadd.xlane.f32.xlu0 %v5902_v43  ;;  %v5734_v38 = vpop.f32.mrf.mxu1 }
 0xbc3   :  { %v5825_v54 = vadd.f32 %v5734_v38, %v11712_v23  ;;  %v5914_v23 = vsel %vm2000_vm5, %v12205_v40, 0.0  ;;  %v12790_v38 = vld [vmem:[#allocation21_spill] sm:$0xff] }
 0xbc4   :  { %v12150_v59 = vpop.f32.mrf.mxu1 }
 0xbc6   :  { %5897 = vadd.xlane.f32.xlu0 %v5896_v42  ;;  %v5737_v19 = vpop.f32.mrf.mxu1  ;;  %v12217_v42 = vadd.f32 %v12098_v34, %v5825_v54 }
 0xbc7   :  { %v5826_v58 = vadd.f32 %v5737_v19, %v11715_v25 }
 0xbc8   :  { %v5917_v25 = vsel %vm2000_vm5, %v12217_v42, 0.0 }
 0xc19   :  { %v7554_v20 = vpop.f32.mrf.mxu1 }
 0xc1a   :  { %v5831_v50 = vadd.f32 %v7554_v20, %v11748_v62  ;;  %v5822_v62 = vadd.f32 %v5721_v21, %v11688_v29  ;;  %v5827_v20 = vadd.f32 %v12148_v28, %v12790_v38  ;;  %v12792_v28 = vld [vmem:[#allocation17_spill] sm:$0xff] }
 0xc1b   :  { %v5750_v39 = vpop.f32.mrf.mxu1 }
 0xc1c   :  { %v12155_v32 = vadd.f32 %v12098_v34, %v5831_v50  ;;  %v5829_v5 = vadd.f32 %v5750_v39, %v11738_v55  ;;  %v12182_v4 = vadd.f32 %v12098_v34, %v5822_v62  ;;  %v12231_v50 = vadd.f32 %v12098_v34, %v5826_v58 }
 0xc1d   :  { %v7555_v26 = vpop.f32.mrf.mxu1 }
 0xc1e   :  { %v12159_v16 = vadd.f32 %v12098_v34, %v5829_v5  ;;  %v5832_v22 = vadd.f32 %v7555_v26, %v11753_v30  ;;  %v5935_v51 = vsel %vm2000_vm5, %v12155_v32, 0.0  ;;  %v5908_v63 = vsel %vm2000_vm5, %v12182_v4, 0.0 }
 0xc1f   :  { %5936 = vadd.xlane.f32.xlu1 %v5935_v51  ;;  %v5753_v37 = vpop.f32.mrf.mxu1  ;;  %v12242_v26 = vadd.f32 %v12098_v34, %v5827_v20 }
 0xc20   :  { %v12169_v12 = vadd.f32 %v12098_v34, %v5832_v22  ;;  %v5830_v55 = vadd.f32 %v5753_v37, %v11741_v3  ;;  %v5929_v1 = vsel %vm2000_vm5, %v12159_v16, 0.0  ;;  %v5905_v3 = vsel %vm2000_vm5, %v12165_v17, 0.0 }
 0xc21   :  { %5930 = vadd.xlane.f32.xlu0 %v5929_v1  ;;  %v7558_v30 = vpop.f32.mrf.mxu1  ;;  %v5828_v22 = vadd.f32 %v12150_v59, %v12792_v28  ;;  %v5920_v37 = vsel %vm2000_vm5, %v12231_v50, 0.0  ;;  %v12793_v1 = vld [vmem:[#allocation26_spill] sm:$0xff] }
 0xc22   :  { %v12175_v46 = vadd.f32 %v12098_v34, %v5830_v55  ;;  %v5835_v9 = vadd.f32 %v7558_v30, %v11777_v48  ;;  %v5938_v33 = vsel %vm2000_vm5, %v12169_v12, 0.0 }
 0xc23   :  { %5939 = vadd.xlane.f32.xlu1 %v5938_v33  ;;  %v5766_v29 = vpop.f32.mrf.mxu1  ;;  %v12255_v18 = vadd.f32 %v12098_v34, %v5828_v22 }
 0xc24   :  { %v12187_v35 = vadd.f32 %v12098_v34, %v5835_v9  ;;  %v5833_v0 = vadd.f32 %v5766_v29, %v11764_v31  ;;  %v5932_v48 = vsel %vm2000_vm5, %v12175_v46, 0.0 }
 0xc25   :  { %5906 = vadd.xlane.f32.xlu0 %v5905_v3  ;;  %v7559_v7 = vpop.f32.mrf.mxu1 }
 0xc26   :  { %v12199_v24 = vadd.f32 %v12098_v34, %v5833_v0  ;;  %v5836_v49 = vadd.f32 %v7559_v7, %v11780_v53  ;;  %v5947_v31 = vsel %vm2000_vm5, %v12187_v35, 0.0 }
 0xc27   :  { %5933 = vadd.xlane.f32.xlu1 %v5932_v48  ;;  %v5769_v13 = vpop.f32.mrf.mxu1  ;;  %v5923_v48 = vsel %vm2000_vm5, %v12242_v26, 0.0 }
 0xc28   :  { %v12211_v44 = vadd.f32 %v12098_v34, %v5836_v49  ;;  %v5834_v56 = vadd.f32 %v5769_v13, %v11767_v11  ;;  %v5941_v53 = vsel %vm2000_vm5, %v12199_v24, 0.0 }
 0xc29   :  { %5909 = vadd.xlane.f32.xlu0 %v5908_v63  ;;  %v7562_v43 = vpop.f32.mrf.mxu1 }
 0xc2a   :  { %v12223_v36 = vadd.f32 %v12098_v34, %v5834_v56  ;;  %v5839_v8 = vadd.f32 %v7562_v43, %v11802_v10  ;;  %v5950_v11 = vsel %vm2000_vm5, %v12211_v44, 0.0  ;;  %v12795_v43 = vld [vmem:[#allocation24_spill] sm:$0xff] }
 0xc2b   :  { %5948 = vadd.xlane.f32.xlu1 %v5947_v31  ;;  %v5782_v21 = vpop.f32.mrf.mxu1 }
 0xc2c   :  { %v12236_v19 = vadd.f32 %v12098_v34, %v5839_v8  ;;  %v5837_v10 = vadd.f32 %v5782_v21, %v12791_v27  ;;  %v5944_v39 = vsel %vm2000_vm5, %v12223_v36, 0.0  ;;  %v12796_v27 = vld [vmem:[#allocation23_spill] sm:$0xff] }
 0xc2d   :  { %5912 = vadd.xlane.f32.xlu0 %v5911_v15  ;;  %v7563_v5 = vpop.f32.mrf.mxu1  ;;  %v5926_v15 = vsel %vm2000_vm5, %v12255_v18, 0.0 }
 0xc2e   :  { %v12249_v55 = vadd.f32 %v12098_v34, %v5837_v10  ;;  %v5840_v30 = vadd.f32 %v7563_v5, %v12793_v1  ;;  %v5959_v33 = vsel %vm2000_vm5, %v12236_v19, 0.0  ;;  %v12797_v1 = vld [vmem:[#allocation27_spill] sm:$0xff] }
 0xc2f   :  { %5942 = vadd.xlane.f32.xlu1 %v5941_v53  ;;  %v5785_v29 = vpop.f32.mrf.mxu1 }
 0xc30   :  { %v12263_v7 = vadd.f32 %v12098_v34, %v5840_v30  ;;  %v5838_v63 = vadd.f32 %v5785_v29, %v12794_v57  ;;  %v5953_v49 = vsel %vm2000_vm5, %v12249_v55, 0.0 }
 0xc31   :  { %5915 = vadd.xlane.f32.xlu0 %v5914_v23  ;;  %v7566_v31 = vpop.f32.mrf.mxu1 }
 0xc32   :  { %v12276_v53 = vadd.f32 %v12098_v34, %v5838_v63  ;;  %v5843_v58 = vadd.f32 %v7566_v31, %v12795_v43  ;;  %v5962_v23 = vsel %vm2000_vm5, %v12263_v7, 0.0  ;;  %v12798_v63 = vld [vmem:[#allocation22_spill] sm:$0xff] }
 0xc33   :  { %5951 = vadd.xlane.f32.xlu1 %v5950_v11  ;;  %v5798_v8 = vpop.f32.mrf.mxu1 }
 0xc34   :  { %v5841_v10 = vadd.f32 %v5798_v8, %v12796_v27 }
 0xc35   :  { %5918 = vadd.xlane.f32.xlu0 %v5917_v25  ;;  %v12288_v25 = vadd.f32 %v12098_v34, %v5843_v58  ;;  %v7567_v5 = vpop.f32.mrf.mxu1 }
 0xc36   :  { %v5844_v30 = vadd.f32 %v7567_v5, %v12797_v1 }
 0xc37   :  { %5945 = vadd.xlane.f32.xlu1 %v5944_v39  ;;  %v5889_v51 = vpop.xlane.xlu0 %5888  ;;  %v5956_v39 = vsel %vm2000_vm5, %v12276_v53, 0.0 }
 0xc38   :  { %v5979_v62 = vmul.f32 0.03125, %v5889_v51  ;;  %v12312_v57 = vadd.f32 %v12098_v34, %v5844_v30 }
 0xc39   :  { %5921 = vadd.xlane.f32.xlu0 %v5920_v37  ;;  %v5883_v9 = vpop.xlane.xlu1 %5882 }
 0xc3a   :  { %v12258_v59 = vsub.f32 %v12102_v52, %v5979_v62  ;;  %v5977_v3 = vmul.f32 0.03125, %v5883_v9  ;;  %v12300_v62 = vadd.f32 %v12098_v34, %v5841_v10  ;;  %v5971_v9 = vsel %vm2000_vm5, %v12288_v25, 0.0 }
 0xc3b   :  { %5960 = vadd.xlane.f32.xlu1 %v5959_v33  ;;  %v5892_v0 = vpop.xlane.xlu0 %5891  ;;  %v5801_v33 = vpop.f32.mrf.mxu1  ;;  %v5974_v58 = vsel %vm2000_vm5, %v12312_v57, 0.0 }
 0xc3c   :  { %v12269_v13 = vsub.f32 %v12106_v45, %v5977_v3  ;;  %v5980_v52 = vmul.f32 0.03125, %v5892_v0  ;;  %v6043_v56 = vmul.f32 %v12258_v59, %v12258_v59  ;;  %v5965_v31 = vsel %vm2000_vm5, %v12300_v62, 0.0 }
 0xc3d   :  { %5924 = vadd.xlane.f32.xlu0 %v5923_v48 }
 0xc3e   :  { %v12282_v45 = vsub.f32 %v12112_v14, %v5980_v52  ;;  %v6079_v38 = vsel %vm2000_vm5, %v6043_v56, 0.0  ;;  %v6041_v20 = vmul.f32 %v12269_v13, %v12269_v13 }
 0xc3f   :  { %5954 = vadd.xlane.f32.xlu1 %v5953_v49  ;;  %v5886_v54 = vpop.xlane.xlu0 %5885  ;;  %v5842_v49 = vadd.f32 %v5801_v33, %v12798_v63 }
 0xc40   :  { %v5978_v11 = vmul.f32 0.03125, %v5886_v54  ;;  %v6073_v51 = vsel %vm2000_vm5, %v6041_v20, 0.0  ;;  %v6044_v37 = vmul.f32 %v12282_v45, %v12282_v45 }
 0xc41   :  { %5927 = vadd.xlane.f32.xlu0 %v5926_v15  ;;  %v12324_v43 = vadd.f32 %v12098_v34, %v5842_v49 }
 0xc42   :  { %v12294_v14 = vsub.f32 %v12118_v41, %v5978_v11  ;;  %v6082_v0 = vsel %vm2000_vm5, %v6044_v37, 0.0 }
 0xc43   :  { %5963 = vadd.xlane.f32.xlu1 %v5962_v23  ;;  %v5901_v21 = vpop.xlane.xlu0 %5900 }
 0xc44   :  { %v5983_v28 = vmul.f32 0.03125, %v5901_v21  ;;  %v6042_v48 = vmul.f32 %v12294_v14, %v12294_v14  ;;  %v5968_v21 = vsel %vm2000_vm5, %v12324_v43, 0.0 }
 0xc45   :  { %6080 = vadd.xlane.f32.xlu0 %v6079_v38 }
 0xc46   :  { %v12306_v41 = vsub.f32 %v12124_v2, %v5983_v28  ;;  %v6076_v54 = vsel %vm2000_vm5, %v6042_v48, 0.0 }
 0xc47   :  { %5957 = vadd.xlane.f32.xlu1 %v5956_v39  ;;  %v5895_v22 = vpop.xlane.xlu0 %5894 }
 0xc48   :  { %v5981_v29 = vmul.f32 0.03125, %v5895_v22  ;;  %v6047_v15 = vmul.f32 %v12306_v41, %v12306_v41 }
 0xc49   :  { %6074 = vadd.xlane.f32.xlu0 %v6073_v51 }
 0xc4a   :  { %v12318_v2 = vsub.f32 %v12130_v60, %v5981_v29  ;;  %v6091_v8 = vsel %vm2000_vm5, %v6047_v15, 0.0 }
 0xc4b   :  { %5972 = vadd.xlane.f32.xlu1 %v5971_v9  ;;  %v5904_v3 = vpop.xlane.xlu0 %5903 }
 0xc4c   :  { %v5984_v52 = vmul.f32 0.03125, %v5904_v3  ;;  %v6045_v11 = vmul.f32 %v12318_v2, %v12318_v2 }
 0xc4d   :  { %6083 = vadd.xlane.f32.xlu0 %v6082_v0 }
 0xc4e   :  { %v12329_v23 = vsub.f32 %v12136_v47, %v5984_v52  ;;  %v6085_v38 = vsel %vm2000_vm5, %v6045_v11, 0.0 }
 0xc4f   :  { %5966 = vadd.xlane.f32.xlu1 %v5965_v31  ;;  %v5898_v56 = vpop.xlane.xlu0 %5897 }
 0xc50   :  { %v5982_v60 = vmul.f32 0.03125, %v5898_v56  ;;  %v6048_v47 = vmul.f32 %v12329_v23, %v12329_v23 }
 0xc51   :  { %6077 = vadd.xlane.f32.xlu0 %v6076_v54 }
 0xc52   :  { %v12337_v34 = vsub.f32 %v12142_v6, %v5982_v60  ;;  %v6094_v20 = vsel %vm2000_vm5, %v6048_v47, 0.0 }
 0xc53   :  { %5975 = vadd.xlane.f32.xlu1 %v5974_v58 }
 0xc54   :  { %v6046_v27 = vmul.f32 %v12337_v34, %v12337_v34 }
 0xc55   :  { %6092 = vadd.xlane.f32.xlu0 %v6091_v8 }
 0xc56   :  { %v6088_v10 = vsel %vm2000_vm5, %v6046_v27, 0.0 }
 0xc57   :  { %5969 = vadd.xlane.f32.xlu1 %v5968_v21 }
 0xc59   :  { %6086 = vadd.xlane.f32.xlu0 %v6085_v38 }
 0xc5d   :  { %6095 = vadd.xlane.f32.xlu0 %v6094_v20 }
 0xc61   :  { %6089 = vadd.xlane.f32.xlu0 %v6088_v10 }
 0xca8   :  { %v5937_v39 = vpop.xlane.xlu1 %5936 }
 0xca9   :  { %v5995_v5 = vmul.f32 0.03125, %v5937_v39 }
 0xcaa   :  { %v5931_v28 = vpop.xlane.xlu0 %5930 }
 0xcab   :  { %v12347_v6 = vsub.f32 %v12155_v32, %v5995_v5  ;;  %v5993_v22 = vmul.f32 0.03125, %v5931_v28 }
 0xcac   :  { %v5940_v51 = vpop.xlane.xlu1 %5939 }
 0xcad   :  { %v12350_v37 = vsub.f32 %v12159_v16, %v5993_v22  ;;  %v5996_v1 = vmul.f32 0.03125, %v5940_v51  ;;  %v6059_v30 = vmul.f32 %v12347_v6, %v12347_v6 }
 0xcae   :  { %v5907_v9 = vpop.xlane.xlu0 %5906 }
 0xcaf   :  { %v12355_v33 = vsub.f32 %v12169_v12, %v5996_v1  ;;  %v6127_v29 = vsel %vm2000_vm5, %v6059_v30, 0.0  ;;  %v6057_v3 = vmul.f32 %v12350_v37, %v12350_v37  ;;  %v5985_v12 = vmul.f32 0.03125, %v5907_v9 }
 0xcb0   :  { %v5934_v32 = vpop.xlane.xlu1 %5933  ;;  %6128 = vadd.xlane.f32.xlu1 %v6127_v29 }
 0xcb1   :  { %v5994_v0 = vmul.f32 0.03125, %v5934_v32  ;;  %v6121_v63 = vsel %vm2000_vm5, %v6057_v3, 0.0  ;;  %v6060_v49 = vmul.f32 %v12355_v33, %v12355_v33  ;;  %v12373_v8 = vsub.f32 %v12165_v17, %v5985_v12 }
 0xcb2   :  { %v5910_v48 = vpop.xlane.xlu0 %5909 }
 0xcb3   :  { %v12361_v16 = vsub.f32 %v12175_v46, %v5994_v0  ;;  %v6130_v46 = vsel %vm2000_vm5, %v6060_v49, 0.0  ;;  %v5986_v39 = vmul.f32 0.03125, %v5910_v48 }
 0xcb4   :  { %v5949_v31 = vpop.xlane.xlu1 %5948  ;;  %6122 = vadd.xlane.f32.xlu1 %v6121_v63 }
 0xcb5   :  { %v5999_v52 = vmul.f32 0.03125, %v5949_v31  ;;  %v6058_v15 = vmul.f32 %v12361_v16, %v12361_v16 }
 0xcb6   :  { %v5913_v54 = vpop.xlane.xlu0 %5912 }
 0xcb7   :  { %v12369_v56 = vsub.f32 %v12187_v35, %v5999_v52  ;;  %v5987_v58 = vmul.f32 0.03125, %v5913_v54  ;;  %v6124_v47 = vsel %vm2000_vm5, %v6058_v15, 0.0 }
 0xcb8   :  { %v5943_v60 = vpop.xlane.xlu1 %5942  ;;  %6131 = vadd.xlane.f32.xlu1 %v6130_v46 }
 0xcb9   :  { %v12376_v11 = vsub.f32 %v12193_v61, %v5987_v58  ;;  %v5997_v21 = vmul.f32 0.03125, %v5943_v60  ;;  %v6063_v10 = vmul.f32 %v12369_v56, %v12369_v56 }
 0xcba   :  { %v5916_v38 = vpop.xlane.xlu0 %5915 }
 0xcbb   :  { %v12380_v20 = vsub.f32 %v12199_v24, %v5997_v21  ;;  %v5988_v35 = vmul.f32 0.03125, %v5916_v38  ;;  %v6051_v27 = vmul.f32 %v12376_v11, %v12376_v11  ;;  %v6049_v24 = vmul.f32 %v12373_v8, %v12373_v8 }
 0xcbc   :  { %v5952_v17 = vpop.xlane.xlu1 %5951  ;;  %6125 = vadd.xlane.f32.xlu1 %v6124_v47  ;;  %v6139_v1 = vsel %vm2000_vm5, %v6063_v10, 0.0 }
 0xcbd   :  { %v12387_v61 = vsub.f32 %v12205_v40, %v5988_v35  ;;  %v6000_v5 = vmul.f32 0.03125, %v5952_v17  ;;  %v6103_v28 = vsel %vm2000_vm5, %v6051_v27, 0.0  ;;  %v6061_v30 = vmul.f32 %v12380_v20, %v12380_v20 }
 0xcbe   :  { %6104 = vadd.xlane.f32.xlu0 %v6103_v28  ;;  %v5919_v22 = vpop.xlane.xlu0 %5918  ;;  %v12399_v40 = vsub.f32 %v12182_v4, %v5986_v39  ;;  %v6097_v3 = vsel %vm2000_vm5, %v6049_v24, 0.0 }
 0xcbf   :  { %v12393_v51 = vsub.f32 %v12211_v44, %v6000_v5  ;;  %v6052_v32 = vmul.f32 %v12387_v61, %v12387_v61  ;;  %v6133_v48 = vsel %vm2000_vm5, %v6061_v30, 0.0  ;;  %v5989_v4 = vmul.f32 0.03125, %v5919_v22 }
 0xcc0   :  { %v5946_v9 = vpop.xlane.xlu1 %5945  ;;  %6140 = vadd.xlane.f32.xlu1 %v6139_v1  ;;  %v6050_v52 = vmul.f32 %v12399_v40, %v12399_v40 }
 0xcc1   :  { %v5998_v29 = vmul.f32 0.03125, %v5946_v9  ;;  %v6064_v63 = vmul.f32 %v12393_v51, %v12393_v51  ;;  %v6106_v12 = vsel %vm2000_vm5, %v6052_v32, 0.0  ;;  %v12420_v21 = vsub.f32 %v12217_v42, %v5989_v4 }
 0xcc2   :  { %6098 = vadd.xlane.f32.xlu0 %v6097_v3  ;;  %v5922_v0 = vpop.xlane.xlu0 %5921  ;;  %v6100_v35 = vsel %vm2000_vm5, %v6050_v52, 0.0 }
 0xcc3   :  { %v12405_v44 = vsub.f32 %v12223_v36, %v5998_v29  ;;  %v6142_v46 = vsel %vm2000_vm5, %v6064_v63, 0.0  ;;  %v5990_v5 = vmul.f32 0.03125, %v5922_v0 }
 0xcc4   :  { %v5961_v49 = vpop.xlane.xlu1 %5960  ;;  %6134 = vadd.xlane.f32.xlu1 %v6133_v48 }
 0xcc5   :  { %v6003_v31 = vmul.f32 0.03125, %v5961_v49  ;;  %v6062_v36 = vmul.f32 %v12405_v44, %v12405_v44 }
 0xcc6   :  { %6107 = vadd.xlane.f32.xlu0 %v6106_v12  ;;  %v5925_v54 = vpop.xlane.xlu0 %5924 }
 0xcc7   :  { %v12416_v15 = vsub.f32 %v12236_v19, %v6003_v31  ;;  %v5991_v58 = vmul.f32 0.03125, %v5925_v54  ;;  %v6136_v10 = vsel %vm2000_vm5, %v6062_v36, 0.0 }
 0xcc8   :  { %v5955_v60 = vpop.xlane.xlu1 %5954  ;;  %6143 = vadd.xlane.f32.xlu1 %v6142_v46 }
 0xcc9   :  { %v12423_v38 = vsub.f32 %v12242_v26, %v5991_v58  ;;  %v6001_v47 = vmul.f32 0.03125, %v5955_v60  ;;  %v6067_v42 = vmul.f32 %v12416_v15, %v12416_v15 }
 0xcca   :  { %6101 = vadd.xlane.f32.xlu0 %v6100_v35  ;;  %v5928_v27 = vpop.xlane.xlu0 %5927 }
 0xccb   :  { %v12428_v19 = vsub.f32 %v12249_v55, %v6001_v47  ;;  %v5992_v39 = vmul.f32 0.03125, %v5928_v27  ;;  %v6055_v17 = vmul.f32 %v12423_v38, %v12423_v38  ;;  %v6053_v55 = vmul.f32 %v12420_v21, %v12420_v21 }
 0xccc   :  { %v5964_v26 = vpop.xlane.xlu1 %5963  ;;  %6137 = vadd.xlane.f32.xlu1 %v6136_v10  ;;  %v6151_v9 = vsel %vm2000_vm5, %v6067_v42, 0.0 }
 0xccd   :  { %v12435_v28 = vsub.f32 %v12255_v18, %v5992_v39  ;;  %v6004_v24 = vmul.f32 0.03125, %v5964_v26  ;;  %v6115_v22 = vsel %vm2000_vm5, %v6055_v17, 0.0  ;;  %v6065_v29 = vmul.f32 %v12428_v19, %v12428_v19 }
 0xcce   :  { %6116 = vadd.xlane.f32.xlu0 %v6115_v22  ;;  %v6081_v1 = vpop.xlane.xlu0 %6080  ;;  %v12447_v18 = vsub.f32 %v12231_v50, %v5990_v5  ;;  %v6109_v0 = vsel %vm2000_vm5, %v6053_v55, 0.0 }
 0xccf   :  { %v12441_v30 = vsub.f32 %v12263_v7, %v6004_v24  ;;  %v6056_v48 = vmul.f32 %v12435_v28, %v12435_v28  ;;  %v6145_v49 = vsel %vm2000_vm5, %v6065_v29, 0.0 }
 0xcd0   :  { %v5958_v3 = vpop.xlane.xlu1 %5957  ;;  %6152 = vadd.xlane.f32.xlu1 %v6151_v9  ;;  %v6054_v52 = vmul.f32 %v12447_v18, %v12447_v18 }
 0xcd1   :  { %v6002_v32 = vmul.f32 0.03125, %v5958_v3  ;;  %v6068_v4 = vmul.f32 %v12441_v30, %v12441_v30  ;;  %v6118_v12 = vsel %vm2000_vm5, %v6056_v48, 0.0 }
 0xcd2   :  { %6110 = vadd.xlane.f32.xlu0 %v6109_v0  ;;  %v6075_v63 = vpop.xlane.xlu0 %6074  ;;  %v6112_v47 = vsel %vm2000_vm5, %v6054_v52, 0.0 }
 0xcd3   :  { %v12453_v7 = vsub.f32 %v12276_v53, %v6002_v32  ;;  %v6154_v53 = vsel %vm2000_vm5, %v6068_v4, 0.0  ;;  %v6171_v4 = vmul.f32 0.03125, %v6081_v1 }
 0xcd4   :  { %v5973_v31 = vpop.xlane.xlu1 %5972  ;;  %6146 = vadd.xlane.f32.xlu1 %v6145_v49 }
 0xcd5   :  { %v6007_v50 = vmul.f32 0.03125, %v5973_v31  ;;  %v6066_v36 = vmul.f32 %v12453_v7, %v12453_v7 }
 0xcd6   :  { %6119 = vadd.xlane.f32.xlu0 %v6118_v12  ;;  %v6084_v58 = vpop.xlane.xlu0 %6083 }
 0xcd7   :  { %v12462_v54 = vsub.f32 %v12288_v25, %v6007_v50  ;;  %v6148_v27 = vsel %vm2000_vm5, %v6066_v36, 0.0  ;;  %v6203_v50 = vadd.f32 1e-05, %v6171_v4  ;;  %v6172_v52 = vmul.f32 0.03125, %v6084_v58  ;;  %v12494_v58 = vld [vmem:[%s12603_s4 + $0x1d] ss:$0 sm:$0xff] }
 0xcd8   :  { %v5967_v46 = vpop.xlane.xlu1 %5966  ;;  %6155 = vadd.xlane.f32.xlu1 %v6154_v53 }
 0xcd9   :  { %v6005_v60 = vmul.f32 0.03125, %v5967_v46  ;;  %v6071_v25 = vmul.f32 %v12462_v54, %v12462_v54 }
 0xcda   :  { %6113 = vadd.xlane.f32.xlu0 %v6112_v47  ;;  %v6078_v17 = vpop.xlane.xlu0 %6077 }
 0xcdb   :  { %v12469_v35 = vsub.f32 %v12300_v62, %v6005_v60  ;;  %v6163_v5 = vsel %vm2000_vm5, %v6071_v25, 0.0  ;;  %v6170_v48 = vmul.f32 0.03125, %v6078_v17 }
 0xcdc   :  { %v5976_v10 = vpop.xlane.xlu1 %5975  ;;  %6149 = vadd.xlane.f32.xlu1 %v6148_v27 }
 0xcdd   :  { %v6008_v39 = vmul.f32 0.03125, %v5976_v10  ;;  %v6069_v26 = vmul.f32 %v12469_v35, %v12469_v35  ;;  %v6202_v31 = vadd.f32 1e-05, %v6170_v48 }
 0xcde   :  { %v6093_v29 = vpop.xlane.xlu0 %6092 }
 0xcdf   :  { %v12475_v42 = vsub.f32 %v12312_v57, %v6008_v39  ;;  %v6157_v55 = vsel %vm2000_vm5, %v6069_v26, 0.0  ;;  %v6169_v57 = vmul.f32 0.03125, %v6075_v63  ;;  %v6204_v63 = vadd.f32 1e-05, %v6172_v52 }
 0xce0   :  { %6164 = vadd.xlane.f32.xlu1 %v6163_v5  ;;  %v5970_v62 = vpop.xlane.xlu1 %5969  ;;  %v6175_v27 = vmul.f32 0.03125, %v6093_v29 }
 0xce1   :  { %v6006_v24 = vmul.f32 0.03125, %v5970_v62  ;;  %v6072_v9 = vmul.f32 %v12475_v42, %v12475_v42  ;;  %v6201_v0 = vadd.f32 1e-05, %v6169_v57 }
 0xce2   :  { %v6087_v49 = vpop.xlane.xlu0 %6086  ;;  %v6207_v39 = vadd.f32 1e-05, %v6175_v27 }
 0xce3   :  { %v12481_v22 = vsub.f32 %v12324_v43, %v6006_v24  ;;  %v6166_v3 = vsel %vm2000_vm5, %v6072_v9, 0.0  ;;  %8131 = vrsqrt.f32 %v6201_v0  ;;  %v6173_v53 = vmul.f32 0.03125, %v6087_v49  ;;  %v12501_v24 = vld [vmem:[%s12603_s4 + $0x1e] ss:$0 sm:$0xff]  ;;  %s8240_s4 = smov [#allocation4]  }
 0xce4   :  { %6158 = vadd.xlane.f32.xlu1 %v6157_v55  ;;  %8133 = vrsqrt.f32 %v6202_v31  ;;  %s6447_s14 = sshll.u32 %s8240_s4, 4  ;;  %s6448_s14 = int_to_ptr.vmem [resolvable:$true] %s6447_s14 }
 0xce5   :  { %v6070_v32 = vmul.f32 %v12481_v22, %v12481_v22  ;;  %8135 = vrsqrt.f32 %v6203_v50  ;;  %v6205_v46 = vadd.f32 1e-05, %v6173_v53  ;;  %s8208_s15 = scalar_lea.vmem %s6448_s14, 1024  ;;  %p8213_p6 = scmp.lt.s32.totalorder %s6448_s14, %s6448_s14 }
 0xce6   :  { %v6096_v12 = vpop.xlane.xlu0 %6095  ;;  %8137 = vrsqrt.f32 %v6204_v63  ;;  %p8209_p5 = scmp.ne.s32.totalorder %s6448_s14, %s8208_s15  ;;  %p8214_p7 = scmp.lt.s32.totalorder %s8208_s15, %s8208_s15 }
 0xce7   :  { %v6160_v43 = vsel %vm2000_vm5, %v6070_v32, 0.0  ;;  %8139 = vrsqrt.f32 %v6205_v46  ;;  %v6176_v5 = vmul.f32 0.03125, %v6096_v12 }
 0xce8   :  { %6167 = vadd.xlane.f32.xlu1 %v6166_v3  ;;  %p8215_p8 = por %p8214_p7, %p8213_p6 }
 0xce9   :  { %v6208_v55 = vadd.f32 1e-05, %v6176_v5 }
 0xcea   :  { %v6090_v36 = vpop.xlane.xlu0 %6089  ;;  %p8216_p9 = pnand %p8215_p8, %p8209_p5 }
 0xceb   :  { %v6174_v60 = vmul.f32 0.03125, %v6090_v36 }
 0xcec   :  { %6161 = vadd.xlane.f32.xlu1 %v6160_v43 }
 0xced   :  { %v6206_v25 = vadd.f32 1e-05, %v6174_v60 }
 0xcef   :  { %8141 = vrsqrt.f32 %v6206_v25 }
 0xcf0   :  { %v8132_v47 = vpop.eup %8131  ;;  %8143 = vrsqrt.f32 %v6207_v39 }
 0xcf1   :  { %v6265_v1 = vmul.f32 %v8132_v47, %v12269_v13  ;;  %v8134_v10 = vpop.eup %8133  ;;  %8145 = vrsqrt.f32 %v6208_v55 }
 0xcf2   :  { %v8136_v17 = vpop.eup %8135  ;;  %v6266_v62 = vmul.f32 %v8134_v10, %v12294_v14 }
 0xcf3   :  { %v6301_v26 = vmul.f32 %v12494_v58, %v6265_v1  ;;  %v6267_v13 = vmul.f32 %v8136_v17, %v12258_v59  ;;  %v8138_v57 = vpop.eup %8137 }
 0xcf4   :  { %v6302_v29 = vmul.f32 %v12494_v58, %v6266_v62  ;;  %v6268_v32 = vmul.f32 %v8138_v57, %v12282_v45  ;;  %v8140_v0 = vpop.eup %8139 }
 0xcf5   :  { %v6337_v9 = vadd.f32 %v12501_v24, %v6301_v26  ;;  %v6303_v14 = vmul.f32 %v12494_v58, %v6267_v13  ;;  %v6269_v49 = vmul.f32 %v8140_v0, %v12318_v2 }
 0xcf6   :  { %v6338_v3 = vadd.f32 %v12501_v24, %v6302_v29  ;;  %v6304_v59 = vmul.f32 %v12494_v58, %v6268_v32 }
 0xcf7   :  { %v6339_v48 = vadd.f32 %v12501_v24, %v6303_v14  ;;  %v6305_v31 = vmul.f32 %v12494_v58, %v6269_v49 }
 0xcf8   :  { %v6340_v4 = vadd.f32 %v12501_v24, %v6304_v59 }
 0xcf9   :  { %v6341_v45 = vadd.f32 %v12501_v24, %v6305_v31 }
 0xcfc   :  { %v8142_v43 = vpop.eup %8141 }
 0xcfd   :  { %v6270_v50 = vmul.f32 %v8142_v43, %v12337_v34  ;;  %v8144_v12 = vpop.eup %8143 }
 0xcfe   :  { %v6271_v63 = vmul.f32 %v8144_v12, %v12306_v41  ;;  %v8146_v53 = vpop.eup %8145 }
 0xcff   :  { %v6306_v52 = vmul.f32 %v12494_v58, %v6270_v50  ;;  %v6272_v46 = vmul.f32 %v8146_v53, %v12329_v23 }
 0xd00   :  { %v6307_v36 = vmul.f32 %v12494_v58, %v6271_v63 }
 0xd01   :  { %v6342_v2 = vadd.f32 %v12501_v24, %v6306_v52  ;;  %v6308_v34 = vmul.f32 %v12494_v58, %v6272_v46 }
 0xd02   :  { %v6343_v60 = vadd.f32 %v12501_v24, %v6307_v36 }
 0xd03   :  { %v6344_v47 = vadd.f32 %v12501_v24, %v6308_v34 }
 0xd07   :  { %6369 = vxpose.xlu0.b32.start [1/16] (narrow) %v6337_v9, 32 }
 0xd0b   :  { %6370 = vxpose.xlu0.b32.cont [2/16] (narrow) %v6338_v3, 32 }
 0xd0f   :  { %6371 = vxpose.xlu0.b32.cont [3/16] (narrow) %v6339_v48, 32 }
 0xd13   :  { %6372 = vxpose.xlu0.b32.cont [4/16] (narrow) %v6340_v4, 32 }
 0xd17   :  { %6373 = vxpose.xlu0.b32.cont [5/16] (narrow) %v6341_v45, 32 }
 0xd1b   :  { %6374 = vxpose.xlu0.b32.cont [6/16] (narrow) %v6342_v2, 32 }
 0xd1f   :  { %6375 = vxpose.xlu0.b32.cont [7/16] (narrow) %v6343_v60, 32 }
 0xd23   :  { %6376 = vxpose.xlu0.b32.cont [8/16] (narrow) %v6344_v47, 32 }
 0xd39   :  { %v6129_v27 = vpop.xlane.xlu1 %6128 }
 0xd3a   :  { %v6187_v1 = vmul.f32 0.03125, %v6129_v27 }
 0xd3c   :  { %v6219_v17 = vadd.f32 1e-05, %v6187_v1 }
 0xd3d   :  { %v6123_v25 = vpop.xlane.xlu1 %6122 }
 0xd3e   :  { %v6185_v41 = vmul.f32 0.03125, %v6123_v25 }
 0xd40   :  { %v6217_v10 = vadd.f32 1e-05, %v6185_v41 }
 0xd41   :  { %v6132_v39 = vpop.xlane.xlu1 %6131 }
 0xd42   :  { %8147 = vrsqrt.f32 %v6217_v10  ;;  %v6188_v5 = vmul.f32 0.03125, %v6132_v39 }
 0xd43   :  { %8149 = vrsqrt.f32 %v6219_v17 }
 0xd44   :  { %v6220_v13 = vadd.f32 1e-05, %v6188_v5 }
 0xd45   :  { %v6126_v26 = vpop.xlane.xlu1 %6125 }
 0xd46   :  { %v6186_v23 = vmul.f32 0.03125, %v6126_v26 }
 0xd47   :  { %v6105_v62 = vpop.xlane.xlu0 %6104 }
 0xd48   :  { %v6218_v55 = vadd.f32 1e-05, %v6186_v23  ;;  %v6179_v3 = vmul.f32 0.03125, %v6105_v62 }
 0xd49   :  { %v6141_v9 = vpop.xlane.xlu1 %6140 }
 0xd4a   :  { %8151 = vrsqrt.f32 %v6218_v55  ;;  %v6191_v59 = vmul.f32 0.03125, %v6141_v9  ;;  %v6211_v31 = vadd.f32 1e-05, %v6179_v3 }
 0xd4b   :  { %v6099_v29 = vpop.xlane.xlu0 %6098  ;;  %8153 = vrsqrt.f32 %v6220_v13 }
 0xd4c   :  { %v6177_v57 = vmul.f32 0.03125, %v6099_v29  ;;  %v6223_v52 = vadd.f32 1e-05, %v6191_v59 }
 0xd4d   :  { %v6135_v14 = vpop.xlane.xlu1 %6134 }
 0xd4e   :  { %v6209_v32 = vadd.f32 1e-05, %v6177_v57  ;;  %v6189_v0 = vmul.f32 0.03125, %v6135_v14 }
 0xd4f   :  { %v8148_v48 = vpop.eup %8147  ;;  %v6108_v49 = vpop.xlane.xlu0 %6107 }
 0xd50   :  { %8155 = vrsqrt.f32 %v6209_v32  ;;  %v6221_v43 = vadd.f32 1e-05, %v6189_v0  ;;  %v6281_v4 = vmul.f32 %v8148_v48, %v12350_v37  ;;  %v6180_v50 = vmul.f32 0.03125, %v6108_v49  ;;  %v8150_v53 = vpop.eup %8149 }
 0xd51   :  { %v6144_v12 = vpop.xlane.xlu1 %6143  ;;  %v6283_v41 = vmul.f32 %v8150_v53, %v12347_v6 }
 0xd52   :  { %8157 = vrsqrt.f32 %v6221_v43  ;;  %v6317_v45 = vmul.f32 %v12494_v58, %v6281_v4  ;;  %v6192_v2 = vmul.f32 0.03125, %v6144_v12  ;;  %v6212_v60 = vadd.f32 1e-05, %v6180_v50 }
 0xd53   :  { %v6102_v63 = vpop.xlane.xlu0 %6101  ;;  %8159 = vrsqrt.f32 %v6211_v31  ;;  %v6319_v62 = vmul.f32 %v12494_v58, %v6283_v41 }
 0xd54   :  { %v6178_v36 = vmul.f32 0.03125, %v6102_v63  ;;  %v6353_v46 = vadd.f32 %v12501_v24, %v6317_v45  ;;  %8161 = vrsqrt.f32 %v6223_v52  ;;  %v6224_v1 = vadd.f32 1e-05, %v6192_v2 }
 0xd55   :  { %v6138_v34 = vpop.xlane.xlu1 %6137  ;;  %v6355_v59 = vadd.f32 %v12501_v24, %v6319_v62 }
 0xd56   :  { %v6210_v47 = vadd.f32 1e-05, %v6178_v36  ;;  %v6190_v27 = vmul.f32 0.03125, %v6138_v34  ;;  %6405 = vxpose.xlu1.b32.start [1/16] (narrow) %v6353_v46, 32 }
 0xd57   :  { %v8152_v37 = vpop.eup %8151  ;;  %v6117_v25 = vpop.xlane.xlu0 %6116 }
 0xd58   :  { %8163 = vrsqrt.f32 %v6210_v47  ;;  %v6222_v10 = vadd.f32 1e-05, %v6190_v27  ;;  %v6282_v39 = vmul.f32 %v8152_v37, %v12361_v16  ;;  %v8154_v17 = vpop.eup %8153  ;;  %v6183_v29 = vmul.f32 0.03125, %v6117_v25 }
 0xd59   :  { %8165 = vrsqrt.f32 %v6212_v60  ;;  %v6153_v5 = vpop.xlane.xlu1 %6152  ;;  %v6284_v6 = vmul.f32 %v8154_v17, %v12355_v33 }
 0xd5a   :  { %8167 = vrsqrt.f32 %v6222_v10  ;;  %v6318_v26 = vmul.f32 %v12494_v58, %v6282_v39  ;;  %v6195_v0 = vmul.f32 0.03125, %v6153_v5  ;;  %v6215_v33 = vadd.f32 1e-05, %v6183_v29 }
 0xd5b   :  { %v6111_v23 = vpop.xlane.xlu0 %6110  ;;  %8169 = vrsqrt.f32 %v6224_v1  ;;  %v6320_v4 = vmul.f32 %v12494_v58, %v6284_v6 }
 0xd5c   :  { %v6181_v13 = vmul.f32 0.03125, %v6111_v23  ;;  %v6354_v55 = vadd.f32 %v12501_v24, %v6318_v26  ;;  %v6227_v52 = vadd.f32 1e-05, %v6195_v0 }
 0xd5d   :  { %v8156_v9 = vpop.eup %8155  ;;  %v6147_v57 = vpop.xlane.xlu1 %6146  ;;  %v6356_v60 = vadd.f32 %v12501_v24, %v6320_v4 }
 0xd5e   :  { %v6213_v3 = vadd.f32 1e-05, %v6181_v13  ;;  %v6193_v16 = vmul.f32 0.03125, %v6147_v57  ;;  %6406 = vxpose.xlu1.b32.cont [2/16] (narrow) %v6354_v55, 32  ;;  %v6273_v14 = vmul.f32 %v8156_v9, %v12373_v8 }
 0xd5f   :  { %v8158_v32 = vpop.eup %8157  ;;  %v6120_v48 = vpop.xlane.xlu0 %6119 }
 0xd60   :  { %8171 = vrsqrt.f32 %v6213_v3  ;;  %v6225_v49 = vadd.f32 1e-05, %v6193_v16  ;;  %v6309_v43 = vmul.f32 %v12494_v58, %v6273_v14  ;;  %v6184_v31 = vmul.f32 0.03125, %v6120_v48  ;;  %v8160_v45 = vpop.eup %8159 }
 0xd61   :  { %v6156_v50 = vpop.xlane.xlu1 %6155  ;;  %v6285_v12 = vmul.f32 %v8158_v32, %v12380_v20  ;;  %v8162_v36 = vpop.eup %8161  ;;  %v6275_v20 = vmul.f32 %v8160_v45, %v12376_v11 }
 0xd62   :  { %8173 = vrsqrt.f32 %v6225_v49  ;;  %6407 = vxpose.xlu1.b32.cont [3/16] (narrow) %v6355_v59, 32  ;;  %v6345_v8 = vadd.f32 %v12501_v24, %v6309_v43  ;;  %v6196_v63 = vmul.f32 0.03125, %v6156_v50  ;;  %v6216_v47 = vadd.f32 1e-05, %v6184_v31 }
 0xd63   :  { %v6114_v53 = vpop.xlane.xlu0 %6113  ;;  %v6321_v2 = vmul.f32 %v12494_v58, %v6285_v12  ;;  %8175 = vrsqrt.f32 %v6215_v33  ;;  %v6287_v5 = vmul.f32 %v8162_v36, %v12369_v56  ;;  %v6311_v55 = vmul.f32 %v12494_v58, %v6275_v20 }
 0xd64   :  { %v6182_v46 = vmul.f32 0.03125, %v6114_v53  ;;  %6377 = vxpose.xlu0.b32.cont [9/16] (narrow) %v6345_v8, 32  ;;  %8177 = vrsqrt.f32 %v6227_v52  ;;  %v6228_v39 = vadd.f32 1e-05, %v6196_v63 }
 0xd65   :  { %v8164_v34 = vpop.eup %8163  ;;  %v6150_v27 = vpop.xlane.xlu1 %6149  ;;  %v6357_v17 = vadd.f32 %v12501_v24, %v6321_v2  ;;  %v6323_v29 = vmul.f32 %v12494_v58, %v6287_v5  ;;  %v6347_v14 = vadd.f32 %v12501_v24, %v6311_v55 }
 0xd66   :  { %v8166_v37 = vpop.eup %8165  ;;  %v6214_v25 = vadd.f32 1e-05, %v6182_v46  ;;  %v6194_v41 = vmul.f32 0.03125, %v6150_v27  ;;  %6408 = vxpose.xlu1.b32.cont [4/16] (narrow) %v6356_v60, 32  ;;  %v6274_v1 = vmul.f32 %v8164_v34, %v12399_v40 }
 0xd67   :  { %v8168_v10 = vpop.eup %8167  ;;  %v6276_v9 = vmul.f32 %v8166_v37, %v12387_v61  ;;  %v6359_v49 = vadd.f32 %v12501_v24, %v6323_v29 }
 0xd68   :  { %8179 = vrsqrt.f32 %v6214_v25  ;;  %v6226_v26 = vadd.f32 1e-05, %v6194_v41  ;;  %v6310_v23 = vmul.f32 %v12494_v58, %v6274_v1  ;;  %v6286_v62 = vmul.f32 %v8168_v10, %v12405_v44  ;;  %v8170_v11 = vpop.eup %8169 }
 0xd69   :  { %8181 = vrsqrt.f32 %v6216_v47  ;;  %v6165_v13 = vpop.xlane.xlu1 %6164  ;;  %v6288_v44 = vmul.f32 %v8170_v11, %v12393_v51  ;;  %v6312_v32 = vmul.f32 %v12494_v58, %v6276_v9 }
 0xd6a   :  { %8183 = vrsqrt.f32 %v6226_v26  ;;  %6409 = vxpose.xlu1.b32.cont [5/16] (narrow) %v6357_v17, 32  ;;  %v6346_v40 = vadd.f32 %v12501_v24, %v6310_v23  ;;  %v6322_v6 = vmul.f32 %v12494_v58, %v6286_v62  ;;  %v6199_v61 = vmul.f32 0.03125, %v6165_v13 }
 0xd6b   :  { %8185 = vrsqrt.f32 %v6228_v39  ;;  %v6324_v43 = vmul.f32 %v12494_v58, %v6288_v44  ;;  %v6348_v31 = vadd.f32 %v12501_v24, %v6312_v32 }
 0xd6c   :  { %6378 = vxpose.xlu0.b32.cont [10/16] (narrow) %v6346_v40, 32  ;;  %v6358_v56 = vadd.f32 %v12501_v24, %v6322_v6  ;;  %v6231_v12 = vadd.f32 1e-05, %v6199_v61 }
 0xd6d   :  { %v8172_v57 = vpop.eup %8171  ;;  %v6159_v3 = vpop.xlane.xlu1 %6158  ;;  %v6360_v8 = vadd.f32 %v12501_v24, %v6324_v43 }
 0xd6e   :  { %v6197_v16 = vmul.f32 0.03125, %v6159_v3  ;;  %6410 = vxpose.xlu1.b32.cont [6/16] (narrow) %v6358_v56, 32  ;;  %v6277_v0 = vmul.f32 %v8172_v57, %v12420_v21 }
 0xd6f   :  { %v8174_v48 = vpop.eup %8173 }
 0xd70   :  { %v6229_v59 = vadd.f32 1e-05, %v6197_v16  ;;  %6379 = vxpose.xlu0.b32.cont [11/16] (narrow) %v6347_v14, 32  ;;  %v6289_v51 = vmul.f32 %v8174_v48, %v12428_v19  ;;  %v8176_v33 = vpop.eup %8175  ;;  %v6313_v50 = vmul.f32 %v12494_v58, %v6277_v0 }
 0xd71   :  { %v6168_v4 = vpop.xlane.xlu1 %6167  ;;  %v8178_v45 = vpop.eup %8177  ;;  %v6279_v19 = vmul.f32 %v8176_v33, %v12423_v38 }
 0xd72   :  { %8187 = vrsqrt.f32 %v6229_v59  ;;  %6411 = vxpose.xlu1.b32.cont [7/16] (narrow) %v6359_v49, 32  ;;  %v6200_v21 = vmul.f32 0.03125, %v6168_v4  ;;  %v6325_v52 = vmul.f32 %v12494_v58, %v6289_v51  ;;  %v6349_v46 = vadd.f32 %v12501_v24, %v6313_v50 }
 0xd73   :  { %8189 = vrsqrt.f32 %v6231_v12  ;;  %v6291_v27 = vmul.f32 %v8178_v45, %v12416_v15  ;;  %v6315_v1 = vmul.f32 %v12494_v58, %v6279_v19 }
 0xd74   :  { %6380 = vxpose.xlu0.b32.cont [12/16] (narrow) %v6348_v31, 32  ;;  %v6232_v47 = vadd.f32 1e-05, %v6200_v21  ;;  %v6361_v37 = vadd.f32 %v12501_v24, %v6325_v52 }
 0xd75   :  { %v8180_v63 = vpop.eup %8179  ;;  %v6162_v53 = vpop.xlane.xlu1 %6161  ;;  %v6327_v17 = vmul.f32 %v12494_v58, %v6291_v27 }
 0xd76   :  { %v8182_v2 = vpop.eup %8181  ;;  %v6198_v36 = vmul.f32 0.03125, %v6162_v53  ;;  %6412 = vxpose.xlu1.b32.cont [8/16] (narrow) %v6360_v8, 32  ;;  %v6278_v60 = vmul.f32 %v8180_v63, %v12447_v18 }
 0xd77   :  { %v8184_v34 = vpop.eup %8183  ;;  %v6280_v39 = vmul.f32 %v8182_v2, %v12435_v28  ;;  %v6363_v62 = vadd.f32 %v12501_v24, %v6327_v17 }
 0xd78   :  { %v6230_v20 = vadd.f32 1e-05, %v6198_v36  ;;  %6381 = vxpose.xlu0.b32.cont [13/16] (narrow) %v6349_v46, 32  ;;  %v6314_v25 = vmul.f32 %v12494_v58, %v6278_v60  ;;  %v6290_v38 = vmul.f32 %v8184_v34, %v12453_v7  ;;  %v8186_v41 = vpop.eup %8185  ;;  %v6351_v7 = vadd.f32 %v12501_v24, %v6315_v1 }
 0xd79   :  { %v6292_v5 = vmul.f32 %v8186_v41, %v12441_v30  ;;  %v6316_v26 = vmul.f32 %v12494_v58, %v6280_v39 }
 0xd7a   :  { %8191 = vrsqrt.f32 %v6230_v20  ;;  %6413 = vxpose.xlu1.b32.cont [9/16] (narrow) %v6361_v37, 32  ;;  %v6350_v18 = vadd.f32 %v12501_v24, %v6314_v25  ;;  %v6326_v10 = vmul.f32 %v12494_v58, %v6290_v38 }
 0xd7b   :  { %8193 = vrsqrt.f32 %v6232_v47  ;;  %v6328_v11 = vmul.f32 %v12494_v58, %v6292_v5  ;;  %v6352_v13 = vadd.f32 %v12501_v24, %v6316_v26 }
 0xd7c   :  { %6382 = vxpose.xlu0.b32.cont [14/16] (narrow) %v6350_v18, 32  ;;  %v6362_v15 = vadd.f32 %v12501_v24, %v6326_v10 }
 0xd7d   :  { %v6364_v30 = vadd.f32 %v12501_v24, %v6328_v11 }
 0xd7e   :  { %6414 = vxpose.xlu1.b32.cont [10/16] (narrow) %v6362_v15, 32 }
 0xd7f   :  { %v8188_v23 = vpop.eup %8187 }
 0xd80   :  { %6383 = vxpose.xlu0.b32.cont [15/16] (narrow) %v6351_v7, 32  ;;  %v6293_v28 = vmul.f32 %v8188_v23, %v12469_v35  ;;  %v8190_v55 = vpop.eup %8189 }
 0xd81   :  { %v6295_v29 = vmul.f32 %v8190_v55, %v12462_v54 }
 0xd82   :  { %6415 = vxpose.xlu1.b32.cont [11/16] (narrow) %v6363_v62, 32  ;;  %v6329_v40 = vmul.f32 %v12494_v58, %v6293_v28 }
 0xd83   :  { %v6331_v3 = vmul.f32 %v12494_v58, %v6295_v29 }
 0xd84   :  { %6384 = vxpose.xlu0.b32.end [16/16] (narrow) %v6352_v13, 32  ;;  %v6365_v9 = vadd.f32 %v12501_v24, %v6329_v40 }
 0xd85   :  { %v6367_v14 = vadd.f32 %v12501_v24, %v6331_v3 }
 0xd86   :  { %6416 = vxpose.xlu1.b32.cont [12/16] (narrow) %v6364_v30, 32 }
 0xd87   :  { %v8192_v6 = vpop.eup %8191 }
 0xd88   :  { %v6294_v56 = vmul.f32 %v8192_v6, %v12481_v22  ;;  %v8194_v44 = vpop.eup %8193 }
 0xd89   :  { %v6296_v16 = vmul.f32 %v8194_v44, %v12475_v42 }
 0xd8a   :  { %6417 = vxpose.xlu1.b32.cont [13/16] (narrow) %v6365_v9, 32  ;;  %v6330_v35 = vmul.f32 %v12494_v58, %v6294_v56 }
 0xd8b   :  { %v6332_v32 = vmul.f32 %v12494_v58, %v6296_v16 }
 0xd8c   :  { %v6366_v57 = vadd.f32 %v12501_v24, %v6330_v35 }
 0xd8d   :  { %v6368_v22 = vadd.f32 %v12501_v24, %v6332_v32 }
 0xd8e   :  { %6418 = vxpose.xlu1.b32.cont [14/16] (narrow) %v6366_v57, 32 }
 0xd92   :  { %6419 = vxpose.xlu1.b32.cont [15/16] (narrow) %v6367_v14, 32 }
 0xd96   :  { %6420 = vxpose.xlu1.b32.end [16/16] (narrow) %v6368_v22, 32 }
 0xdc4   :  { %v6385_v54 = vpop.trf.xlu0 }
 0xdc5   :  { %6401 = vst [vmem:[#allocation4] sm:$0xff] %v6385_v54 }
 0xdc8   :  { %v6386_v0 = vpop.trf.xlu0 }
 0xdc9   :  { %6402 = vst [vmem:[#allocation4 + $0x8] sm:$0xff] %v6386_v0 }
 0xdcc   :  { %v6387_v48 = vpop.trf.xlu0 }
 0xdcd   :  { %6403 = vst [vmem:[#allocation4 + $0x10] sm:$0xff] %v6387_v48 }
 0xdd0   :  { %v6388_v61 = vpop.trf.xlu0 }
 0xdd1   :  { %6404 = vst [vmem:[#allocation4 + $0x18] sm:$0xff] %v6388_v61 }
 0xdd6   :  { %v6421_v59 = vpop.trf.xlu1 }
 0xdd7   :  { %6438 = vst [vmem:[#allocation4 + $0x20] sm:$0xff] %v6421_v59 }
 0xdda   :  { %v6422_v42 = vpop.trf.xlu1 }
 0xddb   :  { %6439 = vst [vmem:[#allocation4 + $0x28] sm:$0xff] %v6422_v42 }
 0xdde   :  { %v6423_v49 = vpop.trf.xlu1 }
 0xddf   :  { %6440 = vst [vmem:[#allocation4 + $0x30] sm:$0xff] %v6423_v49 }
 0xde2   :  { %v6424_v58 = vpop.trf.xlu1 }
 0xde3   :  { %6441 = vst [vmem:[#allocation4 + $0x38] sm:$0xff] %v6424_v58 }
 0xde4   :  { %8219 = shalt.err (!%p8216_p9)
}
 0xde5   :  { %s8241_s16 = smov 128   ;;  %s8242_s17 = smov 8  }
 0xde6   :  { %6453 = dma.vmem_to_hbm [thread:$0]  %s6448_s14, 1024, %s12604_s5, [#allocation5], %s8241_s16, %s8241_s16, %s8242_s17  }
 0xde7   :  { %8230 = dma.done.wait [#allocation5], 1024  }
 0xde8   :  { %8231 = vsyncadd [#allocation5], 4294966272 }
 0xde9   :  { %6457 = vsyncpa [#allocation5], 1 }

</bundles_post_ra>
